<compile_context>
chip_gen: v7x
topology: tpu7x:2x2x1
jax: 0.10.0
libtpu: 0.0.40
codegen_flags: <defaults>
</compile_context>

<pallas_src>
import functools
import math

import jax
import jax.numpy as jnp
from jax.experimental import pallas as pl
from jax.experimental.pallas import tpu as pltpu

D_MODEL = 32          # scaled down from 256 for the synthetic test
NUM_LAYERS = 3
NUM_HEADS = 8
HEAD_DIM = D_MODEL // NUM_HEADS

_SLAB_WIDTH = 128     # weight slab lane width (all packed matrices have <=96 cols at D=32)

VMEM_SPEC = pl.BlockSpec(memory_space=pltpu.MemorySpace.VMEM)


def _pad8(r):
    return (r + 7) & ~7


# --------------------------------------------------------------------------
# Static weight-slab layout (name -> (row_offset, rows, cols)), built at import.
# --------------------------------------------------------------------------
def _build_layout():
    d, L = D_MODEL, NUM_LAYERS
    entries = [
        # spatial branch
        ("cp_w1", (18, d // 4)), ("cp_b1", (1, d // 4)), ("cp_w2", (d // 4, d)), ("cp_b2", (1, d)),
        ("sp_w1", (19, d // 4)), ("sp_b1", (1, d // 4)), ("sp_w2", (d // 4, d)), ("sp_b2", (1, d)),
        ("dg_w", (1, d)), ("dg_b", (1, d)),
        ("sw_w", (1, d)), ("sw_b", (1, 1)),
        ("sp2_w", (d, d)), ("sp2_b", (1, d)),
        ("el_w", (d, d)), ("el_b", (1, d)),
        ("e_wqkv", (d, 3 * d)), ("e_bqkv", (1, 3 * d)),
        ("e_wo", (d, d)), ("e_bo", (1, d)),
        ("e_ln1g", (1, d)), ("e_ln1b", (1, d)),
        ("e_fw1", (d, d // 4)), ("e_fb1", (1, d // 4)), ("e_fw2", (d // 4, d)), ("e_fb2", (1, d)),
        ("e_ln2g", (1, d)), ("e_ln2b", (1, d)),
        ("p3_w1", (d, d)), ("p3_b1", (1, d)), ("p3_g", (1, d)), ("p3_b", (1, d)),
        ("p3_w2", (d, d)), ("p3_b2", (1, d)),
        # temporal branch
        ("tp_w1", (12, d // 4)), ("tp_b1", (1, d // 4)), ("tp_w2", (d // 4, d)), ("tp_b2", (1, d)),
        ("tg_w", (1, d)), ("tg_b", (1, d)),
        ("tp2_w", (d, d)), ("tp2_b", (1, d)),
        ("fu_w1a", (d, d)), ("fu_w1b", (d, d)), ("fu_b1", (1, d)),
        ("fu_w2", (d, d)), ("fu_b2", (1, d)),
        ("af_w1", (d, d // 2)), ("af_b1", (1, d // 2)), ("af_w2", (1, d // 2)), ("af_b2", (1, 1)),
        ("tj_w1", (d, d // 4)), ("tj_b1", (1, d // 4)), ("tj_w2", (d // 4, d)), ("tj_b2", (1, d)),
        ("t2_w1", (d, d)), ("t2_b1", (1, d)), ("t2_g", (1, d)), ("t2_b", (1, d)),
        ("t2_w2", (d, d)), ("t2_b2", (1, d)),
    ]
    for l in range(L):
        entries += [
            (f"dc_wvo{l}", (d, d)), (f"dc_bvo{l}", (1, d)),          # pre-folded V@O
            (f"dc_ln1g{l}", (1, d)), (f"dc_ln1b{l}", (1, d)),
            (f"dc_fw1_{l}", (d, d // 4)), (f"dc_fb1_{l}", (1, d // 4)),
            (f"dc_fw2_{l}", (d // 4, d)), (f"dc_fb2_{l}", (1, d)),
            (f"dc_ln2g{l}", (1, d)), (f"dc_ln2b{l}", (1, d)),
        ]
    layout, off = {}, 0
    for name, (r, c) in entries:
        layout[name] = (off, r, c)
        off += _pad8(r)
    return layout, off


_LAYOUT, _SLAB_ROWS = _build_layout()


# --------------------------------------------------------------------------
# In-kernel helpers
# --------------------------------------------------------------------------
def _lin(x, w, b, relu=False):
    y = jnp.dot(x, w, preferred_element_type=jnp.float32) + b
    return jnp.maximum(y, 0.0) if relu else y


def _ln(x, g, b, eps=1e-5):
    mu = jnp.mean(x, axis=-1, keepdims=True)
    var = jnp.mean((x - mu) ** 2, axis=-1, keepdims=True)
    return (x - mu) * jax.lax.rsqrt(var + eps) * g + b


def _softmax_last(x):
    x = x - jnp.max(x, axis=-1, keepdims=True)
    e = jnp.exp(x)
    return e / jnp.sum(e, axis=-1, keepdims=True)   # exact division (correctness)


# --------------------------------------------------------------------------
# Single fused kernel: forward_spatial + forward_temporal
# --------------------------------------------------------------------------
def _grae_kernel(ci_ref, si_ref, sd_ref, ti_ref, td_ref, trk_ref, w_ref, out_ref,
                 *, n, m, d, heads, layers):
    def p(name):                                   # static slab slice -> VMEM load
        off, r, c = _LAYOUT[name]
        return w_ref[off:off + r, :c]

    nn = n * n
    mn = m * n
    hd = d // heads

    out_ref[...] = jnp.zeros_like(out_ref)

    # ---------------- spatial branch ----------------
    cf = _lin(_lin(ci_ref[...], p("cp_w1"), p("cp_b1"), relu=True),
              p("cp_w2"), p("cp_b2"))                                  # [N, D]
    out_ref[0:n, 0:d] = cf

    sf = _lin(_lin(si_ref[...], p("sp_w1"), p("sp_b1"), relu=True),
              p("sp_w2"), p("sp_b2"))                                  # [NN, D]
    # TODO(synk): DFFL source unavailable; modeled as a sigmoid distance gate.
    sf = sf * jax.nn.sigmoid(sd_ref[...] * p("dg_w") + p("dg_b"))
    sf3 = sf.reshape(n, n, d)

    logits = jnp.sum(sf3 * p("sw_w"), axis=-1) + p("sw_b")             # [N, N]
    wgt = _softmax_last(logits)                                        # softmax over dim 1
    pooled = jnp.sum(sf3 * wgt[:, :, None], axis=1)                    # [N, D]
    sf2 = _lin(pooled, p("sp2_w"), p("sp2_b"))

    asso = 2.0 * sf2[:, None, :] - sf2[None, :, :]                     # [N, N, D]
    x = _lin(asso.reshape(nn, d), p("el_w"), p("el_b"))

    # 1-layer transformer encoder (statically-zero additive mask dropped)
    qkv = _lin(x, p("e_wqkv"), p("e_bqkv"))                            # [NN, 3D]
    q3 = qkv[:, 0:d].reshape(n, n, d)
    k3 = qkv[:, d:2 * d].reshape(n, n, d)
    v3 = qkv[:, 2 * d:3 * d].reshape(n, n, d)
    wo = p("e_wo")
    scale = 1.0 / math.sqrt(hd)
    # Per-head loop with the output projection folded in: no concat, only one
    # (NN, D) accumulator stays live.  A single 2-batch-dim einsum would batch
    # the heads but needs a 4-D relayout that is not guaranteed to lower in
    # Mosaic, so the (proven) 1-batch-dim einsum path is kept.
    attn = jnp.zeros((nn, d), jnp.float32)
    for h in range(heads):
        sl = slice(h * hd, (h + 1) * hd)
        s = jnp.einsum('bqd,bkd->bqk', q3[:, :, sl], k3[:, :, sl],
                       preferred_element_type=jnp.float32) * scale     # [N, N, N]
        prob = _softmax_last(s)
        oh = jnp.einsum('bqk,bkd->bqd', prob, v3[:, :, sl],
                        preferred_element_type=jnp.float32)            # [N, N, hd]
        attn = attn + jnp.dot(oh.reshape(nn, hd), wo[sl, :],
                              preferred_element_type=jnp.float32)
    attn = attn + p("e_bo")
    x = _ln(x + attn, p("e_ln1g"), p("e_ln1b"))
    ff = _lin(_lin(x, p("e_fw1"), p("e_fb1"), relu=True), p("e_fw2"), p("e_fb2"))
    x = _ln(x + ff, p("e_ln2g"), p("e_ln2b"))                          # [NN, D]

    inst = jnp.sum(x.reshape(n, n, d), axis=1) + cf                    # [N, D]
    h1 = jnp.maximum(_ln(_lin(inst, p("p3_w1"), p("p3_b1")), p("p3_g"), p("p3_b")), 0.0)
    inst = _lin(h1, p("p3_w2"), p("p3_b2"))
    out_ref[n:2 * n, 0:d] = inst

    # ---------------- temporal branch (track-major rows [M*N, .]) ----------------
    trk = trk_ref[...]                                                 # [M, D]
    tf1 = _lin(_lin(ti_ref[...], p("tp_w1"), p("tp_b1"), relu=True),
               p("tp_w2"), p("tp_b2"))                                 # [MN, D]
    # TODO(synk): DFFL source unavailable; modeled as a sigmoid distance gate.
    tf1 = tf1 * jax.nn.sigmoid(td_ref[...] * p("tg_w") + p("tg_b"))
    tf2 = (tf1.reshape(m, n, d) + inst[None, :, :]).reshape(mn, d)
    tf2 = _lin(tf2, p("tp2_w"), p("tp2_b"))                            # [MN, D]

    # weights shared across decoder levels -> load once
    fu_w1a, fu_w1b, fu_b1 = p("fu_w1a"), p("fu_w1b"), p("fu_b1")
    fu_w2, fu_b2 = p("fu_w2"), p("fu_b2")
    af_w1, af_b1, af_w2, af_b2 = p("af_w1"), p("af_b1"), p("af_w2"), p("af_b2")
    tj_w1, tj_b1, tj_w2, tj_b2 = p("tj_w1"), p("tj_b1"), p("tj_w2"), p("tj_b2")
    t2_w1, t2_b1, t2_g, t2_b = p("t2_w1"), p("t2_b1"), p("t2_g"), p("t2_b")
    t2_w2, t2_b2 = p("t2_w2"), p("t2_b2")

    mf_off = 2 * n
    aff_off = 2 * n + layers * n

    for lvl in range(layers):
        # Cross-attention over a single tracked token: softmax over Lk == 1 is
        # identically 1, so the attention output equals the V projection and the
        # Q/K projections + gen_tau additive mask are inert.  V and O are folded
        # into one matrix at init (no nonlinearity between them).
        vp = _lin(trk, p(f"dc_wvo{lvl}"), p(f"dc_bvo{lvl}"))           # [M, D]
        xt = (tf2.reshape(m, n, d) + vp[:, None, :]).reshape(mn, d)
        xt = _ln(xt, p(f"dc_ln1g{lvl}"), p(f"dc_ln1b{lvl}"))
        ff = _lin(_lin(xt, p(f"dc_fw1_{lvl}"), p(f"dc_fb1_{lvl}"), relu=True),
                  p(f"dc_fw2_{lvl}"), p(f"dc_fb2_{lvl}"))
        xt = _ln(xt + ff, p(f"dc_ln2g{lvl}"), p(f"dc_ln2b{lvl}"))      # tgt [MN, D]

        # temporal fusion on concat([tgt, tf1]) -> split matmul (no lane concat)
        hfu = jnp.maximum(
            jnp.dot(xt, fu_w1a, preferred_element_type=jnp.float32)
            + jnp.dot(tf1, fu_w1b, preferred_element_type=jnp.float32) + fu_b1, 0.0)
        tf2 = _lin(hfu, fu_w2, fu_b2)                                  # [MN, D]

        # affinity head, emitted directly as [M, N]
        ah = _lin(tf2, af_w1, af_b1, relu=True)                        # [MN, D/2]
        aff = jnp.sum(ah.reshape(m, n, d // 2) * af_w2, axis=-1) + af_b2
        out_ref[aff_off + lvl * m: aff_off + (lvl + 1) * m, 0:n] = aff

        # motion feature head
        mf = _lin(_lin(tf2, tj_w1, tj_b1, relu=True), tj_w2, tj_b2)    # [MN, D]
        mf = jnp.sum(mf.reshape(m, n, d), axis=0) + inst               # [N, D]
        mh = jnp.maximum(_ln(_lin(mf, t2_w1, t2_b1), t2_g, t2_b), 0.0)
        mf = _lin(mh, t2_w2, t2_b2)
        out_ref[mf_off + lvl * n: mf_off + (lvl + 1) * n, 0:d] = mf


# --------------------------------------------------------------------------
# Jitted wrapper: one pallas_call, then slice the output slab.
# --------------------------------------------------------------------------
@jax.jit
def _grae_core(w_slab, coordinate_info, spatial_info, spatial_dist,
               temporal_info, temporal_dist, tracked_feature):
    n = coordinate_info.shape[0]
    m = tracked_feature.shape[0]
    d, L = D_MODEL, NUM_LAYERS

    ci = coordinate_info.astype(jnp.float32)
    si = spatial_info.astype(jnp.float32).reshape(n * n, spatial_info.shape[-1])
    sd = spatial_dist.astype(jnp.float32).reshape(n * n, 1)
    # Track-major rows.  The tiny (N, M, 12) transpose stays in XLA so the kernel
    # never needs an in-kernel relayout; all other reshapes are contiguous.
    ti = jnp.transpose(temporal_info.astype(jnp.float32), (1, 0, 2)).reshape(
        m * n, temporal_info.shape[-1])
    td = temporal_dist.astype(jnp.float32).reshape(m * n, 1)
    trk = tracked_feature.astype(jnp.float32)

    rows = 2 * n + L * n + L * m
    out = pl.pallas_call(
        functools.partial(_grae_kernel, n=n, m=m, d=d, heads=NUM_HEADS, layers=L),
        out_shape=jax.ShapeDtypeStruct((rows, _SLAB_WIDTH), jnp.float32),
        in_specs=[VMEM_SPEC] * 7,
        out_specs=VMEM_SPEC,
    )(ci, si, sd, ti, td, trk, w_slab)

    cf = out[0:n, 0:d]
    inst = out[n:2 * n, 0:d]
    mfs = out[2 * n:2 * n + L * n, 0:d].reshape(L, n, d)
    aff = out[2 * n + L * n:, 0:n].reshape(L, m, n, 1)
    return cf, inst, mfs, mfs[-1], aff


@functools.lru_cache(maxsize=None)
def _attention_ones(m, n):
    # Decoder attends over a single tracked token (Lk == 1): attention weights
    # are exactly 1.  Built once, outside the jitted path.
    return jnp.ones((NUM_LAYERS, m, NUM_HEADS, n, 1), jnp.float32)


def grae_forward(w_slab, coordinate_info, spatial_info, spatial_dist,
                 temporal_info, temporal_dist, tracked_feature):
    cf, inst, mfs, mf, aff = _grae_core(
        w_slab, coordinate_info, spatial_info, spatial_dist,
        temporal_info, temporal_dist, tracked_feature)
    att = _attention_ones(tracked_feature.shape[0], coordinate_info.shape[0])
    return cf, inst, mf, mfs, aff, att


# --------------------------------------------------------------------------
# Deterministic parameter initialization -> single packed weight slab
# --------------------------------------------------------------------------
def init_params(key):
    d, L = D_MODEL, NUM_LAYERS
    keys = iter(jax.random.split(key, 128))
    nxt = lambda: next(keys)

    def w(*shape):
        return jax.random.normal(nxt(), shape, jnp.float32) * 0.02

    zeros = lambda *s: jnp.zeros(s, jnp.float32)
    ones = lambda *s: jnp.ones(s, jnp.float32)

    vals = {
        "cp_w1": w(18, d // 4), "cp_b1": zeros(1, d // 4),
        "cp_w2": w(d // 4, d), "cp_b2": zeros(1, d),
        "sp_w1": w(19, d // 4), "sp_b1": zeros(1, d // 4),
        "sp_w2": w(d // 4, d), "sp_b2": zeros(1, d),
        "dg_w": w(1, d), "dg_b": zeros(1, d),
        "sw_w": zeros(1, d),                                    # init_weights(): zero weight
        "sw_b": jax.random.uniform(nxt(), (1, 1), jnp.float32),  # uniform(0, 1) bias
        "sp2_w": w(d, d), "sp2_b": zeros(1, d),
        "el_w": w(d, d), "el_b": zeros(1, d),
        "e_wqkv": w(d, 3 * d), "e_bqkv": zeros(1, 3 * d),
        "e_wo": w(d, d), "e_bo": zeros(1, d),
        "e_ln1g": ones(1, d), "e_ln1b": zeros(1, d),
        "e_fw1": w(d, d // 4), "e_fb1": zeros(1, d // 4),
        "e_fw2": w(d // 4, d), "e_fb2": zeros(1, d),
        "e_ln2g": ones(1, d), "e_ln2b": zeros(1, d),
        "p3_w1": w(d, d), "p3_b1": zeros(1, d),
        "p3_g": ones(1, d), "p3_b": zeros(1, d),
        "p3_w2": w(d, d), "p3_b2": zeros(1, d),
        "tp_w1": w(12, d // 4), "tp_b1": zeros(1, d // 4),
        "tp_w2": w(d // 4, d), "tp_b2": zeros(1, d),
        "tg_w": w(1, d), "tg_b": zeros(1, d),
        "tp2_w": w(d, d), "tp2_b": zeros(1, d),
        "fu_b1": zeros(1, d), "fu_w2": w(d, d), "fu_b2": zeros(1, d),
        "af_w1": w(d, d // 2), "af_b1": zeros(1, d // 2),
        "af_w2": w(1, d // 2), "af_b2": zeros(1, 1),
        "tj_w1": w(d, d // 4), "tj_b1": zeros(1, d // 4),
        "tj_w2": w(d // 4, d), "tj_b2": zeros(1, d),
        "t2_w1": w(d, d), "t2_b1": zeros(1, d),
        "t2_g": ones(1, d), "t2_b": zeros(1, d),
        "t2_w2": w(d, d), "t2_b2": zeros(1, d),
    }
    # temporal_fusion Linear(2d, d): pre-split so the kernel uses a split matmul
    fu_w1 = w(2 * d, d)
    vals["fu_w1a"] = fu_w1[:d]
    vals["fu_w1b"] = fu_w1[d:]
    # affinity decoder: per-level V/O projections pre-folded at init
    for l in range(L):
        wv, bv = w(d, d), zeros(1, d)
        wo_, bo = w(d, d), zeros(1, d)
        vals[f"dc_wvo{l}"] = wv @ wo_
        vals[f"dc_bvo{l}"] = bv @ wo_ + bo
        vals[f"dc_ln1g{l}"] = ones(1, d)
        vals[f"dc_ln1b{l}"] = zeros(1, d)
        vals[f"dc_fw1_{l}"] = w(d, d // 4)
        vals[f"dc_fb1_{l}"] = zeros(1, d // 4)
        vals[f"dc_fw2_{l}"] = w(d // 4, d)
        vals[f"dc_fb2_{l}"] = zeros(1, d)
        vals[f"dc_ln2g{l}"] = ones(1, d)
        vals[f"dc_ln2b{l}"] = zeros(1, d)

    slab = jnp.zeros((_SLAB_ROWS, _SLAB_WIDTH), jnp.float32)
    for name, (off, r, c) in _LAYOUT.items():
        v = jnp.asarray(vals[name], jnp.float32)
        assert v.shape == (r, c), (name, v.shape, (r, c))
        slab = slab.at[off:off + r, :c].set(v)
    return slab


# --------------------------------------------------------------------------
if __name__ == "__main__":
    key = jax.random.PRNGKey(0)
    n_det, n_trk = 8, 8
    ks = jax.random.split(key, 8)
    coordinate_info = jax.random.normal(ks[0], (n_det, 18), jnp.float32)
    spatial_info = jax.random.normal(ks[1], (n_det, n_det, 19), jnp.float32)
    spatial_dist = jax.random.uniform(ks[2], (n_det, n_det), jnp.float32) * 10.0
    temporal_info = jax.random.normal(ks[3], (n_det, n_trk, 12), jnp.float32)
    temporal_dist = jax.random.uniform(ks[4], (n_trk, n_det), jnp.float32) * 10.0
    tracked_feature = jax.random.normal(ks[5], (n_trk, D_MODEL), jnp.float32)

    w_slab = init_params(ks[6])

    outs = grae_forward(w_slab, coordinate_info, spatial_info, spatial_dist,
                        temporal_info, temporal_dist, tracked_feature)
    jax.block_until_ready(outs)
    (coordinate_feature, instance_feature, motion_feature,
     motion_features, affinity_scores, attention_scores) = outs

    assert coordinate_feature.shape == (n_det, D_MODEL)
    assert instance_feature.shape == (n_det, D_MODEL)
    assert motion_feature.shape == (n_det, D_MODEL)
    assert motion_features.shape == (NUM_LAYERS, n_det, D_MODEL)
    assert affinity_scores.shape == (NUM_LAYERS, n_trk, n_det, 1)
    assert attention_scores.shape == (NUM_LAYERS, n_trk, NUM_HEADS, n_det, 1)
    assert bool(jnp.isfinite(coordinate_feature).all())
    assert bool(jnp.isfinite(instance_feature).all())
    assert bool(jnp.isfinite(motion_feature).all())
    assert bool(jnp.isfinite(affinity_scores).all())
    print("KERNEL_OK")
</pallas_src>

<mosaic_0001>
module attributes {stable_mosaic.version = 11 : i64} {
  func.func @_grae_kernel(%arg0: memref<8x18xf32, #tpu.memory_space<vmem>>, %arg1: memref<64x19xf32, #tpu.memory_space<vmem>>, %arg2: memref<64x1xf32, #tpu.memory_space<vmem>>, %arg3: memref<64x12xf32, #tpu.memory_space<vmem>>, %arg4: memref<64x1xf32, #tpu.memory_space<vmem>>, %arg5: memref<8x32xf32, #tpu.memory_space<vmem>>, %arg6: memref<1272x128xf32, #tpu.memory_space<vmem>>, %arg7: memref<64x128xf32, #tpu.memory_space<vmem>>) attributes {dimension_semantics = [], scalar_prefetch = 0 : i64, scratch_operands = 0 : i64, tpu.core_type = #tpu.core_type<tc>} {
    %cst = arith.constant 0.000000e+00 : f32
    %0 = vector.broadcast %cst : f32 to vector<64x128xf32>
    %c0 = arith.constant 0 : index
    %c0_0 = arith.constant 0 : index
    %1 = vector.load %arg7[%c0, %c0_0] : memref<64x128xf32, #tpu.memory_space<vmem>>, vector<64x128xf32>
    tpu.vector_store %arg7[%c0, %c0_0], %0 {strides = array<i32>} : memref<64x128xf32, #tpu.memory_space<vmem>>, vector<64x128xf32>,
    %c0_1 = arith.constant 0 : index
    %c0_2 = arith.constant 0 : index
    %2 = vector.load %arg0[%c0_1, %c0_2] : memref<8x18xf32, #tpu.memory_space<vmem>>, vector<8x18xf32>
    %c0_3 = arith.constant 0 : index
    %c0_4 = arith.constant 0 : index
    %3 = vector.load %arg6[%c0_3, %c0_4] : memref<1272x128xf32, #tpu.memory_space<vmem>>, vector<18x8xf32>
    %c24 = arith.constant 24 : index
    %c0_5 = arith.constant 0 : index
    %4 = vector.load %arg6[%c24, %c0_5] : memref<1272x128xf32, #tpu.memory_space<vmem>>, vector<1x8xf32>
    %cst_6 = arith.constant dense<0.000000e+00> : vector<8x8xf32>
    %5 = tpu.matmul %2, %3, %cst_6 {dimension_numbers = #tpu.dot_dimension_numbers<[1], [0], [0], [1], [0, 0, 1, 1], [], []>} : vector<8x18xf32>, vector<18x8xf32>, vector<8x8xf32> -> vector<8x8xf32>
    %6 = vector.broadcast %4 : vector<1x8xf32> to vector<8x8xf32>
    %7 = arith.addf %5, %6 : vector<8x8xf32>
    %cst_7 = arith.constant 0.000000e+00 : f32
    %8 = vector.broadcast %cst_7 : f32 to vector<8x8xf32>
    %9 = arith.maximumf %7, %8 : vector<8x8xf32>
    %c32 = arith.constant 32 : index
    %c0_8 = arith.constant 0 : index
    %10 = vector.load %arg6[%c32, %c0_8] : memref<1272x128xf32, #tpu.memory_space<vmem>>, vector<8x32xf32>
    %c40 = arith.constant 40 : index
    %c0_9 = arith.constant 0 : index
    %11 = vector.load %arg6[%c40, %c0_9] : memref<1272x128xf32, #tpu.memory_space<vmem>>, vector<1x32xf32>
    %cst_10 = arith.constant dense<0.000000e+00> : vector<8x32xf32>
    %12 = tpu.matmul %9, %10, %cst_10 {dimension_numbers = #tpu.dot_dimension_numbers<[1], [0], [0], [1], [0, 0, 1, 1], [], []>} : vector<8x8xf32>, vector<8x32xf32>, vector<8x32xf32> -> vector<8x32xf32>
    %13 = vector.broadcast %11 : vector<1x32xf32> to vector<8x32xf32>
    %14 = arith.addf %12, %13 : vector<8x32xf32>
    %c0_11 = arith.constant 0 : index
    %c0_12 = arith.constant 0 : index
    %15 = vector.load %arg7[%c0_11, %c0_12] : memref<64x128xf32, #tpu.memory_space<vmem>>, vector<8x32xf32>
    tpu.vector_store %arg7[%c0_11, %c0_12], %14 {strides = array<i32>} : memref<64x128xf32, #tpu.memory_space<vmem>>, vector<8x32xf32>,
    %c0_13 = arith.constant 0 : index
    %c0_14 = arith.constant 0 : index
    %16 = vector.load %arg1[%c0_13, %c0_14] : memref<64x19xf32, #tpu.memory_space<vmem>>, vector<64x19xf32>
    %c48 = arith.constant 48 : index
    %c0_15 = arith.constant 0 : index
    %17 = vector.load %arg6[%c48, %c0_15] : memref<1272x128xf32, #tpu.memory_space<vmem>>, vector<19x8xf32>
    %c72 = arith.constant 72 : index
    %c0_16 = arith.constant 0 : index
    %18 = vector.load %arg6[%c72, %c0_16] : memref<1272x128xf32, #tpu.memory_space<vmem>>, vector<1x8xf32>
    %cst_17 = arith.constant dense<0.000000e+00> : vector<64x8xf32>
    %19 = tpu.matmul %16, %17, %cst_17 {dimension_numbers = #tpu.dot_dimension_numbers<[1], [0], [0], [1], [0, 0, 1, 1], [], []>} : vector<64x19xf32>, vector<19x8xf32>, vector<64x8xf32> -> vector<64x8xf32>
    %20 = vector.broadcast %18 : vector<1x8xf32> to vector<64x8xf32>
    %21 = arith.addf %19, %20 : vector<64x8xf32>
    %cst_18 = arith.constant 0.000000e+00 : f32
    %22 = vector.broadcast %cst_18 : f32 to vector<64x8xf32>
    %23 = arith.maximumf %21, %22 : vector<64x8xf32>
    %c80 = arith.constant 80 : index
    %c0_19 = arith.constant 0 : index
    %24 = vector.load %arg6[%c80, %c0_19] : memref<1272x128xf32, #tpu.memory_space<vmem>>, vector<8x32xf32>
    %c88 = arith.constant 88 : index
    %c0_20 = arith.constant 0 : index
    %25 = vector.load %arg6[%c88, %c0_20] : memref<1272x128xf32, #tpu.memory_space<vmem>>, vector<1x32xf32>
    %cst_21 = arith.constant dense<0.000000e+00> : vector<64x32xf32>
    %26 = tpu.matmul %23, %24, %cst_21 {dimension_numbers = #tpu.dot_dimension_numbers<[1], [0], [0], [1], [0, 0, 1, 1], [], []>} : vector<64x8xf32>, vector<8x32xf32>, vector<64x32xf32> -> vector<64x32xf32>
    %27 = vector.broadcast %25 : vector<1x32xf32> to vector<64x32xf32>
    %28 = arith.addf %26, %27 : vector<64x32xf32>
    %c0_22 = arith.constant 0 : index
    %c0_23 = arith.constant 0 : index
    %29 = vector.load %arg2[%c0_22, %c0_23] : memref<64x1xf32, #tpu.memory_space<vmem>>, vector<64x1xf32>
    %c96 = arith.constant 96 : index
    %c0_24 = arith.constant 0 : index
    %30 = vector.load %arg6[%c96, %c0_24] : memref<1272x128xf32, #tpu.memory_space<vmem>>, vector<1x32xf32>
    %31 = vector.broadcast %29 : vector<64x1xf32> to vector<64x32xf32>
    %32 = vector.broadcast %30 : vector<1x32xf32> to vector<64x32xf32>
    %33 = arith.mulf %31, %32 : vector<64x32xf32>
    %c104 = arith.constant 104 : index
    %c0_25 = arith.constant 0 : index
    %34 = vector.load %arg6[%c104, %c0_25] : memref<1272x128xf32, #tpu.memory_space<vmem>>, vector<1x32xf32>
    %35 = vector.broadcast %34 : vector<1x32xf32> to vector<64x32xf32>
    %36 = arith.addf %33, %35 : vector<64x32xf32>
    %37 = arith.negf %36 : vector<64x32xf32>
    %38 = math.exp %37 : vector<64x32xf32>
    %cst_26 = arith.constant 1.000000e+00 : f32
    %39 = vector.broadcast %cst_26 : f32 to vector<64x32xf32>
    %40 = arith.addf %39, %38 : vector<64x32xf32>
    %41 = arith.divf %39, %40 : vector<64x32xf32>
    %42 = arith.mulf %28, %41 : vector<64x32xf32>
    %43 = vector.shape_cast %42 : vector<64x32xf32> to vector<8x8x32xf32>
    %c112 = arith.constant 112 : index
    %c0_27 = arith.constant 0 : index
    %44 = vector.load %arg6[%c112, %c0_27] : memref<1272x128xf32, #tpu.memory_space<vmem>>, vector<1x32xf32>
    %45 = vector.shape_cast %44 : vector<1x32xf32> to vector<1x1x32xf32>
    %46 = vector.broadcast %45 : vector<1x1x32xf32> to vector<8x8x32xf32>
    %47 = arith.mulf %43, %46 : vector<8x8x32xf32>
    %cst_28 = arith.constant dense<0.000000e+00> : vector<8x8xf32>
    %48 = vector.multi_reduction <add>, %47, %cst_28 [2] : vector<8x8x32xf32> to vector<8x8xf32>
    %c120 = arith.constant 120 : index
    %c0_29 = arith.constant 0 : index
    %49 = vector.load %arg6[%c120, %c0_29] : memref<1272x128xf32, #tpu.memory_space<vmem>>, vector<1x1xf32>
    %50 = vector.broadcast %49 : vector<1x1xf32> to vector<8x8xf32>
    %51 = arith.addf %48, %50 : vector<8x8xf32>
    %cst_30 = arith.constant dense<0xFF800000> : vector<8xf32>
    %52 = vector.multi_reduction <maximumf>, %51, %cst_30 [1] : vector<8x8xf32> to vector<8xf32>
    %53 = vector.shape_cast %52 : vector<8xf32> to vector<8x1xf32>
    %54 = vector.broadcast %53 : vector<8x1xf32> to vector<8x8xf32>
    %55 = arith.subf %51, %54 : vector<8x8xf32>
    %56 = math.exp %55 : vector<8x8xf32>
    %cst_31 = arith.constant dense<0.000000e+00> : vector<8xf32>
    %57 = vector.multi_reduction <add>, %56, %cst_31 [1] : vector<8x8xf32> to vector<8xf32>
    %58 = vector.shape_cast %57 : vector<8xf32> to vector<8x1xf32>
    %59 = vector.broadcast %58 : vector<8x1xf32> to vector<8x8xf32>
    %60 = arith.divf %56, %59 : vector<8x8xf32>
    %61 = vector.shape_cast %60 : vector<8x8xf32> to vector<8x8x1xf32>
    %62 = vector.broadcast %61 : vector<8x8x1xf32> to vector<8x8x32xf32>
    %63 = arith.mulf %43, %62 : vector<8x8x32xf32>
    %cst_32 = arith.constant dense<0.000000e+00> : vector<8x32xf32>
    %64 = vector.multi_reduction <add>, %63, %cst_32 [1] : vector<8x8x32xf32> to vector<8x32xf32>
    %c128 = arith.constant 128 : index
    %c0_33 = arith.constant 0 : index
    %65 = vector.load %arg6[%c128, %c0_33] : memref<1272x128xf32, #tpu.memory_space<vmem>>, vector<32x32xf32>
    %c160 = arith.constant 160 : index
    %c0_34 = arith.constant 0 : index
    %66 = vector.load %arg6[%c160, %c0_34] : memref<1272x128xf32, #tpu.memory_space<vmem>>, vector<1x32xf32>
    %cst_35 = arith.constant dense<0.000000e+00> : vector<8x32xf32>
    %67 = tpu.matmul %64, %65, %cst_35 {dimension_numbers = #tpu.dot_dimension_numbers<[1], [0], [0], [1], [0, 0, 1, 1], [], []>} : vector<8x32xf32>, vector<32x32xf32>, vector<8x32xf32> -> vector<8x32xf32>
    %68 = vector.broadcast %66 : vector<1x32xf32> to vector<8x32xf32>
    %69 = arith.addf %67, %68 : vector<8x32xf32>
    %70 = vector.shape_cast %69 : vector<8x32xf32> to vector<8x1x32xf32>
    %cst_36 = arith.constant 2.000000e+00 : f32
    %71 = vector.broadcast %cst_36 : f32 to vector<8x1x32xf32>
    %72 = arith.mulf %71, %70 : vector<8x1x32xf32>
    %73 = vector.shape_cast %69 : vector<8x32xf32> to vector<1x8x32xf32>
    %74 = vector.broadcast %72 : vector<8x1x32xf32> to vector<8x8x32xf32>
    %75 = vector.broadcast %73 : vector<1x8x32xf32> to vector<8x8x32xf32>
    %76 = arith.subf %74, %75 : vector<8x8x32xf32>
    %77 = vector.shape_cast %76 : vector<8x8x32xf32> to vector<64x32xf32>
    %c168 = arith.constant 168 : index
    %c0_37 = arith.constant 0 : index
    %78 = vector.load %arg6[%c168, %c0_37] : memref<1272x128xf32, #tpu.memory_space<vmem>>, vector<32x32xf32>
    %c200 = arith.constant 200 : index
    %c0_38 = arith.constant 0 : index
    %79 = vector.load %arg6[%c200, %c0_38] : memref<1272x128xf32, #tpu.memory_space<vmem>>, vector<1x32xf32>
    %cst_39 = arith.constant dense<0.000000e+00> : vector<64x32xf32>
    %80 = tpu.matmul %77, %78, %cst_39 {dimension_numbers = #tpu.dot_dimension_numbers<[1], [0], [0], [1], [0, 0, 1, 1], [], []>} : vector<64x32xf32>, vector<32x32xf32>, vector<64x32xf32> -> vector<64x32xf32>
    %81 = vector.broadcast %79 : vector<1x32xf32> to vector<64x32xf32>
    %82 = arith.addf %80, %81 : vector<64x32xf32>
    %c208 = arith.constant 208 : index
    %c0_40 = arith.constant 0 : index
    %83 = vector.load %arg6[%c208, %c0_40] : memref<1272x128xf32, #tpu.memory_space<vmem>>, vector<32x96xf32>
    %c240 = arith.constant 240 : index
    %c0_41 = arith.constant 0 : index
    %84 = vector.load %arg6[%c240, %c0_41] : memref<1272x128xf32, #tpu.memory_space<vmem>>, vector<1x96xf32>
    %cst_42 = arith.constant dense<0.000000e+00> : vector<64x96xf32>
    %85 = tpu.matmul %82, %83, %cst_42 {dimension_numbers = #tpu.dot_dimension_numbers<[1], [0], [0], [1], [0, 0, 1, 1], [], []>} : vector<64x32xf32>, vector<32x96xf32>, vector<64x96xf32> -> vector<64x96xf32>
    %86 = vector.broadcast %84 : vector<1x96xf32> to vector<64x96xf32>
    %87 = arith.addf %85, %86 : vector<64x96xf32>
    %88 = vector.extract_strided_slice %87 {offsets = [0, 0], sizes = [64, 32], strides = [1, 1]} : vector<64x96xf32> to vector<64x32xf32>
    %89 = vector.shape_cast %88 : vector<64x32xf32> to vector<8x8x32xf32>
    %90 = vector.extract_strided_slice %87 {offsets = [0, 32], sizes = [64, 32], strides = [1, 1]} : vector<64x96xf32> to vector<64x32xf32>
    %91 = vector.shape_cast %90 : vector<64x32xf32> to vector<8x8x32xf32>
    %92 = vector.extract_strided_slice %87 {offsets = [0, 64], sizes = [64, 32], strides = [1, 1]} : vector<64x96xf32> to vector<64x32xf32>
    %93 = vector.shape_cast %92 : vector<64x32xf32> to vector<8x8x32xf32>
    %c248 = arith.constant 248 : index
    %c0_43 = arith.constant 0 : index
    %94 = vector.load %arg6[%c248, %c0_43] : memref<1272x128xf32, #tpu.memory_space<vmem>>, vector<32x32xf32>
    %cst_44 = arith.constant 0.000000e+00 : f32
    %95 = vector.broadcast %cst_44 : f32 to vector<64x32xf32>
    %96 = vector.extract_strided_slice %89 {offsets = [0, 0, 0], sizes = [8, 8, 4], strides = [1, 1, 1]} : vector<8x8x32xf32> to vector<8x8x4xf32>
    %97 = vector.extract_strided_slice %91 {offsets = [0, 0, 0], sizes = [8, 8, 4], strides = [1, 1, 1]} : vector<8x8x32xf32> to vector<8x8x4xf32>
    "tpu.trace_start"() <{level = 10 : i32, message = "bqd,bkd->bqk"}> : () -> ()
    %cst_45 = arith.constant dense<0.000000e+00> : vector<8x8x8xf32>
    %98 = tpu.matmul %96, %97, %cst_45 {dimension_numbers = #tpu.dot_dimension_numbers<[2], [2], [1], [1], [0, 0, 0, 1, 1, 1], [0], [0]>} : vector<8x8x4xf32>, vector<8x8x4xf32>, vector<8x8x8xf32> -> vector<8x8x8xf32>
    "tpu.trace_stop"() : () -> ()
    %cst_46 = arith.constant 5.000000e-01 : f32
    %99 = vector.broadcast %cst_46 : f32 to vector<8x8x8xf32>
    %100 = arith.mulf %98, %99 : vector<8x8x8xf32>
    %cst_47 = arith.constant dense<0xFF800000> : vector<8x8xf32>
    %101 = vector.multi_reduction <maximumf>, %100, %cst_47 [2] : vector<8x8x8xf32> to vector<8x8xf32>
    %102 = vector.shape_cast %101 : vector<8x8xf32> to vector<8x8x1xf32>
    %103 = vector.broadcast %102 : vector<8x8x1xf32> to vector<8x8x8xf32>
    %104 = arith.subf %100, %103 : vector<8x8x8xf32>
    %105 = math.exp %104 : vector<8x8x8xf32>
    %cst_48 = arith.constant dense<0.000000e+00> : vector<8x8xf32>
    %106 = vector.multi_reduction <add>, %105, %cst_48 [2] : vector<8x8x8xf32> to vector<8x8xf32>
    %107 = vector.shape_cast %106 : vector<8x8xf32> to vector<8x8x1xf32>
    %108 = vector.broadcast %107 : vector<8x8x1xf32> to vector<8x8x8xf32>
    %109 = arith.divf %105, %108 : vector<8x8x8xf32>
    %110 = vector.extract_strided_slice %93 {offsets = [0, 0, 0], sizes = [8, 8, 4], strides = [1, 1, 1]} : vector<8x8x32xf32> to vector<8x8x4xf32>
    "tpu.trace_start"() <{level = 10 : i32, message = "bqk,bkd->bqd"}> : () -> ()
    %cst_49 = arith.constant dense<0.000000e+00> : vector<8x8x4xf32>
    %111 = tpu.matmul %109, %110, %cst_49 {dimension_numbers = #tpu.dot_dimension_numbers<[2], [1], [1], [2], [0, 0, 0, 1, 1, 2], [0], [0]>} : vector<8x8x8xf32>, vector<8x8x4xf32>, vector<8x8x4xf32> -> vector<8x8x4xf32>
    "tpu.trace_stop"() : () -> ()
    %112 = vector.shape_cast %111 : vector<8x8x4xf32> to vector<64x4xf32>
    %113 = vector.extract_strided_slice %94 {offsets = [0, 0], sizes = [4, 32], strides = [1, 1]} : vector<32x32xf32> to vector<4x32xf32>
    %cst_50 = arith.constant dense<0.000000e+00> : vector<64x32xf32>
    %114 = tpu.matmul %112, %113, %cst_50 {dimension_numbers = #tpu.dot_dimension_numbers<[1], [0], [0], [1], [0, 0, 1, 1], [], []>} : vector<64x4xf32>, vector<4x32xf32>, vector<64x32xf32> -> vector<64x32xf32>
    %115 = arith.addf %95, %114 : vector<64x32xf32>
    %116 = vector.extract_strided_slice %89 {offsets = [0, 0, 4], sizes = [8, 8, 4], strides = [1, 1, 1]} : vector<8x8x32xf32> to vector<8x8x4xf32>
    %117 = vector.extract_strided_slice %91 {offsets = [0, 0, 4], sizes = [8, 8, 4], strides = [1, 1, 1]} : vector<8x8x32xf32> to vector<8x8x4xf32>
    "tpu.trace_start"() <{level = 10 : i32, message = "bqd,bkd->bqk"}> : () -> ()
    %cst_51 = arith.constant dense<0.000000e+00> : vector<8x8x8xf32>
    %118 = tpu.matmul %116, %117, %cst_51 {dimension_numbers = #tpu.dot_dimension_numbers<[2], [2], [1], [1], [0, 0, 0, 1, 1, 1], [0], [0]>} : vector<8x8x4xf32>, vector<8x8x4xf32>, vector<8x8x8xf32> -> vector<8x8x8xf32>
    "tpu.trace_stop"() : () -> ()
    %cst_52 = arith.constant 5.000000e-01 : f32
    %119 = vector.broadcast %cst_52 : f32 to vector<8x8x8xf32>
    %120 = arith.mulf %118, %119 : vector<8x8x8xf32>
    %cst_53 = arith.constant dense<0xFF800000> : vector<8x8xf32>
    %121 = vector.multi_reduction <maximumf>, %120, %cst_53 [2] : vector<8x8x8xf32> to vector<8x8xf32>
    %122 = vector.shape_cast %121 : vector<8x8xf32> to vector<8x8x1xf32>
    %123 = vector.broadcast %122 : vector<8x8x1xf32> to vector<8x8x8xf32>
    %124 = arith.subf %120, %123 : vector<8x8x8xf32>
    %125 = math.exp %124 : vector<8x8x8xf32>
    %cst_54 = arith.constant dense<0.000000e+00> : vector<8x8xf32>
    %126 = vector.multi_reduction <add>, %125, %cst_54 [2] : vector<8x8x8xf32> to vector<8x8xf32>
    %127 = vector.shape_cast %126 : vector<8x8xf32> to vector<8x8x1xf32>
    %128 = vector.broadcast %127 : vector<8x8x1xf32> to vector<8x8x8xf32>
    %129 = arith.divf %125, %128 : vector<8x8x8xf32>
    %130 = vector.extract_strided_slice %93 {offsets = [0, 0, 4], sizes = [8, 8, 4], strides = [1, 1, 1]} : vector<8x8x32xf32> to vector<8x8x4xf32>
    "tpu.trace_start"() <{level = 10 : i32, message = "bqk,bkd->bqd"}> : () -> ()
    %cst_55 = arith.constant dense<0.000000e+00> : vector<8x8x4xf32>
    %131 = tpu.matmul %129, %130, %cst_55 {dimension_numbers = #tpu.dot_dimension_numbers<[2], [1], [1], [2], [0, 0, 0, 1, 1, 2], [0], [0]>} : vector<8x8x8xf32>, vector<8x8x4xf32>, vector<8x8x4xf32> -> vector<8x8x4xf32>
    "tpu.trace_stop"() : () -> ()
    %132 = vector.shape_cast %131 : vector<8x8x4xf32> to vector<64x4xf32>
    %133 = vector.extract_strided_slice %94 {offsets = [4, 0], sizes = [4, 32], strides = [1, 1]} : vector<32x32xf32> to vector<4x32xf32>
    %cst_56 = arith.constant dense<0.000000e+00> : vector<64x32xf32>
    %134 = tpu.matmul %132, %133, %cst_56 {dimension_numbers = #tpu.dot_dimension_numbers<[1], [0], [0], [1], [0, 0, 1, 1], [], []>} : vector<64x4xf32>, vector<4x32xf32>, vector<64x32xf32> -> vector<64x32xf32>
    %135 = arith.addf %115, %134 : vector<64x32xf32>
    %136 = vector.extract_strided_slice %89 {offsets = [0, 0, 8], sizes = [8, 8, 4], strides = [1, 1, 1]} : vector<8x8x32xf32> to vector<8x8x4xf32>
    %137 = vector.extract_strided_slice %91 {offsets = [0, 0, 8], sizes = [8, 8, 4], strides = [1, 1, 1]} : vector<8x8x32xf32> to vector<8x8x4xf32>
    "tpu.trace_start"() <{level = 10 : i32, message = "bqd,bkd->bqk"}> : () -> ()
    %cst_57 = arith.constant dense<0.000000e+00> : vector<8x8x8xf32>
    %138 = tpu.matmul %136, %137, %cst_57 {dimension_numbers = #tpu.dot_dimension_numbers<[2], [2], [1], [1], [0, 0, 0, 1, 1, 1], [0], [0]>} : vector<8x8x4xf32>, vector<8x8x4xf32>, vector<8x8x8xf32> -> vector<8x8x8xf32>
    "tpu.trace_stop"() : () -> ()
    %cst_58 = arith.constant 5.000000e-01 : f32
    %139 = vector.broadcast %cst_58 : f32 to vector<8x8x8xf32>
    %140 = arith.mulf %138, %139 : vector<8x8x8xf32>
    %cst_59 = arith.constant dense<0xFF800000> : vector<8x8xf32>
    %141 = vector.multi_reduction <maximumf>, %140, %cst_59 [2] : vector<8x8x8xf32> to vector<8x8xf32>
    %142 = vector.shape_cast %141 : vector<8x8xf32> to vector<8x8x1xf32>
    %143 = vector.broadcast %142 : vector<8x8x1xf32> to vector<8x8x8xf32>
    %144 = arith.subf %140, %143 : vector<8x8x8xf32>
    %145 = math.exp %144 : vector<8x8x8xf32>
    %cst_60 = arith.constant dense<0.000000e+00> : vector<8x8xf32>
    %146 = vector.multi_reduction <add>, %145, %cst_60 [2] : vector<8x8x8xf32> to vector<8x8xf32>
    %147 = vector.shape_cast %146 : vector<8x8xf32> to vector<8x8x1xf32>
    %148 = vector.broadcast %147 : vector<8x8x1xf32> to vector<8x8x8xf32>
    %149 = arith.divf %145, %148 : vector<8x8x8xf32>
    %150 = vector.extract_strided_slice %93 {offsets = [0, 0, 8], sizes = [8, 8, 4], strides = [1, 1, 1]} : vector<8x8x32xf32> to vector<8x8x4xf32>
    "tpu.trace_start"() <{level = 10 : i32, message = "bqk,bkd->bqd"}> : () -> ()
    %cst_61 = arith.constant dense<0.000000e+00> : vector<8x8x4xf32>
    %151 = tpu.matmul %149, %150, %cst_61 {dimension_numbers = #tpu.dot_dimension_numbers<[2], [1], [1], [2], [0, 0, 0, 1, 1, 2], [0], [0]>} : vector<8x8x8xf32>, vector<8x8x4xf32>, vector<8x8x4xf32> -> vector<8x8x4xf32>
    "tpu.trace_stop"() : () -> ()
    %152 = vector.shape_cast %151 : vector<8x8x4xf32> to vector<64x4xf32>
    %153 = vector.extract_strided_slice %94 {offsets = [8, 0], sizes = [4, 32], strides = [1, 1]} : vector<32x32xf32> to vector<4x32xf32>
    %cst_62 = arith.constant dense<0.000000e+00> : vector<64x32xf32>
    %154 = tpu.matmul %152, %153, %cst_62 {dimension_numbers = #tpu.dot_dimension_numbers<[1], [0], [0], [1], [0, 0, 1, 1], [], []>} : vector<64x4xf32>, vector<4x32xf32>, vector<64x32xf32> -> vector<64x32xf32>
    %155 = arith.addf %135, %154 : vector<64x32xf32>
    %156 = vector.extract_strided_slice %89 {offsets = [0, 0, 12], sizes = [8, 8, 4], strides = [1, 1, 1]} : vector<8x8x32xf32> to vector<8x8x4xf32>
    %157 = vector.extract_strided_slice %91 {offsets = [0, 0, 12], sizes = [8, 8, 4], strides = [1, 1, 1]} : vector<8x8x32xf32> to vector<8x8x4xf32>
    "tpu.trace_start"() <{level = 10 : i32, message = "bqd,bkd->bqk"}> : () -> ()
    %cst_63 = arith.constant dense<0.000000e+00> : vector<8x8x8xf32>
    %158 = tpu.matmul %156, %157, %cst_63 {dimension_numbers = #tpu.dot_dimension_numbers<[2], [2], [1], [1], [0, 0, 0, 1, 1, 1], [0], [0]>} : vector<8x8x4xf32>, vector<8x8x4xf32>, vector<8x8x8xf32> -> vector<8x8x8xf32>
    "tpu.trace_stop"() : () -> ()
    %cst_64 = arith.constant 5.000000e-01 : f32
    %159 = vector.broadcast %cst_64 : f32 to vector<8x8x8xf32>
    %160 = arith.mulf %158, %159 : vector<8x8x8xf32>
    %cst_65 = arith.constant dense<0xFF800000> : vector<8x8xf32>
    %161 = vector.multi_reduction <maximumf>, %160, %cst_65 [2] : vector<8x8x8xf32> to vector<8x8xf32>
    %162 = vector.shape_cast %161 : vector<8x8xf32> to vector<8x8x1xf32>
    %163 = vector.broadcast %162 : vector<8x8x1xf32> to vector<8x8x8xf32>
    %164 = arith.subf %160, %163 : vector<8x8x8xf32>
    %165 = math.exp %164 : vector<8x8x8xf32>
    %cst_66 = arith.constant dense<0.000000e+00> : vector<8x8xf32>
    %166 = vector.multi_reduction <add>, %165, %cst_66 [2] : vector<8x8x8xf32> to vector<8x8xf32>
    %167 = vector.shape_cast %166 : vector<8x8xf32> to vector<8x8x1xf32>
    %168 = vector.broadcast %167 : vector<8x8x1xf32> to vector<8x8x8xf32>
    %169 = arith.divf %165, %168 : vector<8x8x8xf32>
    %170 = vector.extract_strided_slice %93 {offsets = [0, 0, 12], sizes = [8, 8, 4], strides = [1, 1, 1]} : vector<8x8x32xf32> to vector<8x8x4xf32>
    "tpu.trace_start"() <{level = 10 : i32, message = "bqk,bkd->bqd"}> : () -> ()
    %cst_67 = arith.constant dense<0.000000e+00> : vector<8x8x4xf32>
    %171 = tpu.matmul %169, %170, %cst_67 {dimension_numbers = #tpu.dot_dimension_numbers<[2], [1], [1], [2], [0, 0, 0, 1, 1, 2], [0], [0]>} : vector<8x8x8xf32>, vector<8x8x4xf32>, vector<8x8x4xf32> -> vector<8x8x4xf32>
    "tpu.trace_stop"() : () -> ()
    %172 = vector.shape_cast %171 : vector<8x8x4xf32> to vector<64x4xf32>
    %173 = vector.extract_strided_slice %94 {offsets = [12, 0], sizes = [4, 32], strides = [1, 1]} : vector<32x32xf32> to vector<4x32xf32>
    %cst_68 = arith.constant dense<0.000000e+00> : vector<64x32xf32>
    %174 = tpu.matmul %172, %173, %cst_68 {dimension_numbers = #tpu.dot_dimension_numbers<[1], [0], [0], [1], [0, 0, 1, 1], [], []>} : vector<64x4xf32>, vector<4x32xf32>, vector<64x32xf32> -> vector<64x32xf32>
    %175 = arith.addf %155, %174 : vector<64x32xf32>
    %176 = vector.extract_strided_slice %89 {offsets = [0, 0, 16], sizes = [8, 8, 4], strides = [1, 1, 1]} : vector<8x8x32xf32> to vector<8x8x4xf32>
    %177 = vector.extract_strided_slice %91 {offsets = [0, 0, 16], sizes = [8, 8, 4], strides = [1, 1, 1]} : vector<8x8x32xf32> to vector<8x8x4xf32>
    "tpu.trace_start"() <{level = 10 : i32, message = "bqd,bkd->bqk"}> : () -> ()
    %cst_69 = arith.constant dense<0.000000e+00> : vector<8x8x8xf32>
    %178 = tpu.matmul %176, %177, %cst_69 {dimension_numbers = #tpu.dot_dimension_numbers<[2], [2], [1], [1], [0, 0, 0, 1, 1, 1], [0], [0]>} : vector<8x8x4xf32>, vector<8x8x4xf32>, vector<8x8x8xf32> -> vector<8x8x8xf32>
    "tpu.trace_stop"() : () -> ()
    %cst_70 = arith.constant 5.000000e-01 : f32
    %179 = vector.broadcast %cst_70 : f32 to vector<8x8x8xf32>
    %180 = arith.mulf %178, %179 : vector<8x8x8xf32>
    %cst_71 = arith.constant dense<0xFF800000> : vector<8x8xf32>
    %181 = vector.multi_reduction <maximumf>, %180, %cst_71 [2] : vector<8x8x8xf32> to vector<8x8xf32>
    %182 = vector.shape_cast %181 : vector<8x8xf32> to vector<8x8x1xf32>
    %183 = vector.broadcast %182 : vector<8x8x1xf32> to vector<8x8x8xf32>
    %184 = arith.subf %180, %183 : vector<8x8x8xf32>
    %185 = math.exp %184 : vector<8x8x8xf32>
    %cst_72 = arith.constant dense<0.000000e+00> : vector<8x8xf32>
    %186 = vector.multi_reduction <add>, %185, %cst_72 [2] : vector<8x8x8xf32> to vector<8x8xf32>
    %187 = vector.shape_cast %186 : vector<8x8xf32> to vector<8x8x1xf32>
    %188 = vector.broadcast %187 : vector<8x8x1xf32> to vector<8x8x8xf32>
    %189 = arith.divf %185, %188 : vector<8x8x8xf32>
    %190 = vector.extract_strided_slice %93 {offsets = [0, 0, 16], sizes = [8, 8, 4], strides = [1, 1, 1]} : vector<8x8x32xf32> to vector<8x8x4xf32>
    "tpu.trace_start"() <{level = 10 : i32, message = "bqk,bkd->bqd"}> : () -> ()
    %cst_73 = arith.constant dense<0.000000e+00> : vector<8x8x4xf32>
    %191 = tpu.matmul %189, %190, %cst_73 {dimension_numbers = #tpu.dot_dimension_numbers<[2], [1], [1], [2], [0, 0, 0, 1, 1, 2], [0], [0]>} : vector<8x8x8xf32>, vector<8x8x4xf32>, vector<8x8x4xf32> -> vector<8x8x4xf32>
    "tpu.trace_stop"() : () -> ()
    %192 = vector.shape_cast %191 : vector<8x8x4xf32> to vector<64x4xf32>
    %193 = vector.extract_strided_slice %94 {offsets = [16, 0], sizes = [4, 32], strides = [1, 1]} : vector<32x32xf32> to vector<4x32xf32>
    %cst_74 = arith.constant dense<0.000000e+00> : vector<64x32xf32>
    %194 = tpu.matmul %192, %193, %cst_74 {dimension_numbers = #tpu.dot_dimension_numbers<[1], [0], [0], [1], [0, 0, 1, 1], [], []>} : vector<64x4xf32>, vector<4x32xf32>, vector<64x32xf32> -> vector<64x32xf32>
    %195 = arith.addf %175, %194 : vector<64x32xf32>
    %196 = vector.extract_strided_slice %89 {offsets = [0, 0, 20], sizes = [8, 8, 4], strides = [1, 1, 1]} : vector<8x8x32xf32> to vector<8x8x4xf32>
    %197 = vector.extract_strided_slice %91 {offsets = [0, 0, 20], sizes = [8, 8, 4], strides = [1, 1, 1]} : vector<8x8x32xf32> to vector<8x8x4xf32>
    "tpu.trace_start"() <{level = 10 : i32, message = "bqd,bkd->bqk"}> : () -> ()
    %cst_75 = arith.constant dense<0.000000e+00> : vector<8x8x8xf32>
    %198 = tpu.matmul %196, %197, %cst_75 {dimension_numbers = #tpu.dot_dimension_numbers<[2], [2], [1], [1], [0, 0, 0, 1, 1, 1], [0], [0]>} : vector<8x8x4xf32>, vector<8x8x4xf32>, vector<8x8x8xf32> -> vector<8x8x8xf32>
    "tpu.trace_stop"() : () -> ()
    %cst_76 = arith.constant 5.000000e-01 : f32
    %199 = vector.broadcast %cst_76 : f32 to vector<8x8x8xf32>
    %200 = arith.mulf %198, %199 : vector<8x8x8xf32>
    %cst_77 = arith.constant dense<0xFF800000> : vector<8x8xf32>
    %201 = vector.multi_reduction <maximumf>, %200, %cst_77 [2] : vector<8x8x8xf32> to vector<8x8xf32>
    %202 = vector.shape_cast %201 : vector<8x8xf32> to vector<8x8x1xf32>
    %203 = vector.broadcast %202 : vector<8x8x1xf32> to vector<8x8x8xf32>
    %204 = arith.subf %200, %203 : vector<8x8x8xf32>
    %205 = math.exp %204 : vector<8x8x8xf32>
    %cst_78 = arith.constant dense<0.000000e+00> : vector<8x8xf32>
    %206 = vector.multi_reduction <add>, %205, %cst_78 [2] : vector<8x8x8xf32> to vector<8x8xf32>
    %207 = vector.shape_cast %206 : vector<8x8xf32> to vector<8x8x1xf32>
    %208 = vector.broadcast %207 : vector<8x8x1xf32> to vector<8x8x8xf32>
    %209 = arith.divf %205, %208 : vector<8x8x8xf32>
    %210 = vector.extract_strided_slice %93 {offsets = [0, 0, 20], sizes = [8, 8, 4], strides = [1, 1, 1]} : vector<8x8x32xf32> to vector<8x8x4xf32>
    "tpu.trace_start"() <{level = 10 : i32, message = "bqk,bkd->bqd"}> : () -> ()
    %cst_79 = arith.constant dense<0.000000e+00> : vector<8x8x4xf32>
    %211 = tpu.matmul %209, %210, %cst_79 {dimension_numbers = #tpu.dot_dimension_numbers<[2], [1], [1], [2], [0, 0, 0, 1, 1, 2], [0], [0]>} : vector<8x8x8xf32>, vector<8x8x4xf32>, vector<8x8x4xf32> -> vector<8x8x4xf32>
    "tpu.trace_stop"() : () -> ()
    %212 = vector.shape_cast %211 : vector<8x8x4xf32> to vector<64x4xf32>
    %213 = vector.extract_strided_slice %94 {offsets = [20, 0], sizes = [4, 32], strides = [1, 1]} : vector<32x32xf32> to vector<4x32xf32>
    %cst_80 = arith.constant dense<0.000000e+00> : vector<64x32xf32>
    %214 = tpu.matmul %212, %213, %cst_80 {dimension_numbers = #tpu.dot_dimension_numbers<[1], [0], [0], [1], [0, 0, 1, 1], [], []>} : vector<64x4xf32>, vector<4x32xf32>, vector<64x32xf32> -> vector<64x32xf32>
    %215 = arith.addf %195, %214 : vector<64x32xf32>
    %216 = vector.extract_strided_slice %89 {offsets = [0, 0, 24], sizes = [8, 8, 4], strides = [1, 1, 1]} : vector<8x8x32xf32> to vector<8x8x4xf32>
    %217 = vector.extract_strided_slice %91 {offsets = [0, 0, 24], sizes = [8, 8, 4], strides = [1, 1, 1]} : vector<8x8x32xf32> to vector<8x8x4xf32>
    "tpu.trace_start"() <{level = 10 : i32, message = "bqd,bkd->bqk"}> : () -> ()
    %cst_81 = arith.constant dense<0.000000e+00> : vector<8x8x8xf32>
    %218 = tpu.matmul %216, %217, %cst_81 {dimension_numbers = #tpu.dot_dimension_numbers<[2], [2], [1], [1], [0, 0, 0, 1, 1, 1], [0], [0]>} : vector<8x8x4xf32>, vector<8x8x4xf32>, vector<8x8x8xf32> -> vector<8x8x8xf32>
    "tpu.trace_stop"() : () -> ()
    %cst_82 = arith.constant 5.000000e-01 : f32
    %219 = vector.broadcast %cst_82 : f32 to vector<8x8x8xf32>
    %220 = arith.mulf %218, %219 : vector<8x8x8xf32>
    %cst_83 = arith.constant dense<0xFF800000> : vector<8x8xf32>
    %221 = vector.multi_reduction <maximumf>, %220, %cst_83 [2] : vector<8x8x8xf32> to vector<8x8xf32>
    %222 = vector.shape_cast %221 : vector<8x8xf32> to vector<8x8x1xf32>
    %223 = vector.broadcast %222 : vector<8x8x1xf32> to vector<8x8x8xf32>
    %224 = arith.subf %220, %223 : vector<8x8x8xf32>
    %225 = math.exp %224 : vector<8x8x8xf32>
    %cst_84 = arith.constant dense<0.000000e+00> : vector<8x8xf32>
    %226 = vector.multi_reduction <add>, %225, %cst_84 [2] : vector<8x8x8xf32> to vector<8x8xf32>
    %227 = vector.shape_cast %226 : vector<8x8xf32> to vector<8x8x1xf32>
    %228 = vector.broadcast %227 : vector<8x8x1xf32> to vector<8x8x8xf32>
    %229 = arith.divf %225, %228 : vector<8x8x8xf32>
    %230 = vector.extract_strided_slice %93 {offsets = [0, 0, 24], sizes = [8, 8, 4], strides = [1, 1, 1]} : vector<8x8x32xf32> to vector<8x8x4xf32>
    "tpu.trace_start"() <{level = 10 : i32, message = "bqk,bkd->bqd"}> : () -> ()
    %cst_85 = arith.constant dense<0.000000e+00> : vector<8x8x4xf32>
    %231 = tpu.matmul %229, %230, %cst_85 {dimension_numbers = #tpu.dot_dimension_numbers<[2], [1], [1], [2], [0, 0, 0, 1, 1, 2], [0], [0]>} : vector<8x8x8xf32>, vector<8x8x4xf32>, vector<8x8x4xf32> -> vector<8x8x4xf32>
    "tpu.trace_stop"() : () -> ()
    %232 = vector.shape_cast %231 : vector<8x8x4xf32> to vector<64x4xf32>
    %233 = vector.extract_strided_slice %94 {offsets = [24, 0], sizes = [4, 32], strides = [1, 1]} : vector<32x32xf32> to vector<4x32xf32>
    %cst_86 = arith.constant dense<0.000000e+00> : vector<64x32xf32>
    %234 = tpu.matmul %232, %233, %cst_86 {dimension_numbers = #tpu.dot_dimension_numbers<[1], [0], [0], [1], [0, 0, 1, 1], [], []>} : vector<64x4xf32>, vector<4x32xf32>, vector<64x32xf32> -> vector<64x32xf32>
    %235 = arith.addf %215, %234 : vector<64x32xf32>
    %236 = vector.extract_strided_slice %89 {offsets = [0, 0, 28], sizes = [8, 8, 4], strides = [1, 1, 1]} : vector<8x8x32xf32> to vector<8x8x4xf32>
    %237 = vector.extract_strided_slice %91 {offsets = [0, 0, 28], sizes = [8, 8, 4], strides = [1, 1, 1]} : vector<8x8x32xf32> to vector<8x8x4xf32>
    "tpu.trace_start"() <{level = 10 : i32, message = "bqd,bkd->bqk"}> : () -> ()
    %cst_87 = arith.constant dense<0.000000e+00> : vector<8x8x8xf32>
    %238 = tpu.matmul %236, %237, %cst_87 {dimension_numbers = #tpu.dot_dimension_numbers<[2], [2], [1], [1], [0, 0, 0, 1, 1, 1], [0], [0]>} : vector<8x8x4xf32>, vector<8x8x4xf32>, vector<8x8x8xf32> -> vector<8x8x8xf32>
    "tpu.trace_stop"() : () -> ()
    %cst_88 = arith.constant 5.000000e-01 : f32
    %239 = vector.broadcast %cst_88 : f32 to vector<8x8x8xf32>
    %240 = arith.mulf %238, %239 : vector<8x8x8xf32>
    %cst_89 = arith.constant dense<0xFF800000> : vector<8x8xf32>
    %241 = vector.multi_reduction <maximumf>, %240, %cst_89 [2] : vector<8x8x8xf32> to vector<8x8xf32>
    %242 = vector.shape_cast %241 : vector<8x8xf32> to vector<8x8x1xf32>
    %243 = vector.broadcast %242 : vector<8x8x1xf32> to vector<8x8x8xf32>
    %244 = arith.subf %240, %243 : vector<8x8x8xf32>
    %245 = math.exp %244 : vector<8x8x8xf32>
    %cst_90 = arith.constant dense<0.000000e+00> : vector<8x8xf32>
    %246 = vector.multi_reduction <add>, %245, %cst_90 [2] : vector<8x8x8xf32> to vector<8x8xf32>
    %247 = vector.shape_cast %246 : vector<8x8xf32> to vector<8x8x1xf32>
    %248 = vector.broadcast %247 : vector<8x8x1xf32> to vector<8x8x8xf32>
    %249 = arith.divf %245, %248 : vector<8x8x8xf32>
    %250 = vector.extract_strided_slice %93 {offsets = [0, 0, 28], sizes = [8, 8, 4], strides = [1, 1, 1]} : vector<8x8x32xf32> to vector<8x8x4xf32>
    "tpu.trace_start"() <{level = 10 : i32, message = "bqk,bkd->bqd"}> : () -> ()
    %cst_91 = arith.constant dense<0.000000e+00> : vector<8x8x4xf32>
    %251 = tpu.matmul %249, %250, %cst_91 {dimension_numbers = #tpu.dot_dimension_numbers<[2], [1], [1], [2], [0, 0, 0, 1, 1, 2], [0], [0]>} : vector<8x8x8xf32>, vector<8x8x4xf32>, vector<8x8x4xf32> -> vector<8x8x4xf32>
    "tpu.trace_stop"() : () -> ()
    %252 = vector.shape_cast %251 : vector<8x8x4xf32> to vector<64x4xf32>
    %253 = vector.extract_strided_slice %94 {offsets = [28, 0], sizes = [4, 32], strides = [1, 1]} : vector<32x32xf32> to vector<4x32xf32>
    %cst_92 = arith.constant dense<0.000000e+00> : vector<64x32xf32>
    %254 = tpu.matmul %252, %253, %cst_92 {dimension_numbers = #tpu.dot_dimension_numbers<[1], [0], [0], [1], [0, 0, 1, 1], [], []>} : vector<64x4xf32>, vector<4x32xf32>, vector<64x32xf32> -> vector<64x32xf32>
    %255 = arith.addf %235, %254 : vector<64x32xf32>
    %c280 = arith.constant 280 : index
    %c0_93 = arith.constant 0 : index
    %256 = vector.load %arg6[%c280, %c0_93] : memref<1272x128xf32, #tpu.memory_space<vmem>>, vector<1x32xf32>
    %257 = vector.broadcast %256 : vector<1x32xf32> to vector<64x32xf32>
    %258 = arith.addf %255, %257 : vector<64x32xf32>
    %259 = arith.addf %82, %258 : vector<64x32xf32>
    %c288 = arith.constant 288 : index
    %c0_94 = arith.constant 0 : index
    %260 = vector.load %arg6[%c288, %c0_94] : memref<1272x128xf32, #tpu.memory_space<vmem>>, vector<1x32xf32>
    %c296 = arith.constant 296 : index
    %c0_95 = arith.constant 0 : index
    %261 = vector.load %arg6[%c296, %c0_95] : memref<1272x128xf32, #tpu.memory_space<vmem>>, vector<1x32xf32>
    %cst_96 = arith.constant dense<0.000000e+00> : vector<64xf32>
    %262 = vector.multi_reduction <add>, %259, %cst_96 [1] : vector<64x32xf32> to vector<64xf32>
    %263 = vector.shape_cast %262 : vector<64xf32> to vector<64x1xf32>
    %cst_97 = arith.constant 3.200000e+01 : f32
    %264 = vector.broadcast %cst_97 : f32 to vector<64x1xf32>
    %265 = arith.divf %263, %264 : vector<64x1xf32>
    %266 = vector.broadcast %265 : vector<64x1xf32> to vector<64x32xf32>
    %267 = arith.subf %259, %266 : vector<64x32xf32>
    %268 = arith.mulf %267, %267 : vector<64x32xf32>
    %cst_98 = arith.constant dense<0.000000e+00> : vector<64xf32>
    %269 = vector.multi_reduction <add>, %268, %cst_98 [1] : vector<64x32xf32> to vector<64xf32>
    %270 = vector.shape_cast %269 : vector<64xf32> to vector<64x1xf32>
    %cst_99 = arith.constant 3.200000e+01 : f32
    %271 = vector.broadcast %cst_99 : f32 to vector<64x1xf32>
    %272 = arith.divf %270, %271 : vector<64x1xf32>
    %273 = vector.broadcast %265 : vector<64x1xf32> to vector<64x32xf32>
    %274 = arith.subf %259, %273 : vector<64x32xf32>
    %cst_100 = arith.constant 9.99999974E-6 : f32
    %275 = vector.broadcast %cst_100 : f32 to vector<64x1xf32>
    %276 = arith.addf %272, %275 : vector<64x1xf32>
    %277 = math.rsqrt %276 : vector<64x1xf32>
    %278 = vector.broadcast %277 : vector<64x1xf32> to vector<64x32xf32>
    %279 = arith.mulf %274, %278 : vector<64x32xf32>
    %280 = vector.broadcast %260 : vector<1x32xf32> to vector<64x32xf32>
    %281 = arith.mulf %279, %280 : vector<64x32xf32>
    %282 = vector.broadcast %261 : vector<1x32xf32> to vector<64x32xf32>
    %283 = arith.addf %281, %282 : vector<64x32xf32>
    %c304 = arith.constant 304 : index
    %c0_101 = arith.constant 0 : index
    %284 = vector.load %arg6[%c304, %c0_101] : memref<1272x128xf32, #tpu.memory_space<vmem>>, vector<32x8xf32>
    %c336 = arith.constant 336 : index
    %c0_102 = arith.constant 0 : index
    %285 = vector.load %arg6[%c336, %c0_102] : memref<1272x128xf32, #tpu.memory_space<vmem>>, vector<1x8xf32>
    %cst_103 = arith.constant dense<0.000000e+00> : vector<64x8xf32>
    %286 = tpu.matmul %283, %284, %cst_103 {dimension_numbers = #tpu.dot_dimension_numbers<[1], [0], [0], [1], [0, 0, 1, 1], [], []>} : vector<64x32xf32>, vector<32x8xf32>, vector<64x8xf32> -> vector<64x8xf32>
    %287 = vector.broadcast %285 : vector<1x8xf32> to vector<64x8xf32>
    %288 = arith.addf %286, %287 : vector<64x8xf32>
    %cst_104 = arith.constant 0.000000e+00 : f32
    %289 = vector.broadcast %cst_104 : f32 to vector<64x8xf32>
    %290 = arith.maximumf %288, %289 : vector<64x8xf32>
    %c344 = arith.constant 344 : index
    %c0_105 = arith.constant 0 : index
    %291 = vector.load %arg6[%c344, %c0_105] : memref<1272x128xf32, #tpu.memory_space<vmem>>, vector<8x32xf32>
    %c352 = arith.constant 352 : index
    %c0_106 = arith.constant 0 : index
    %292 = vector.load %arg6[%c352, %c0_106] : memref<1272x128xf32, #tpu.memory_space<vmem>>, vector<1x32xf32>
    %cst_107 = arith.constant dense<0.000000e+00> : vector<64x32xf32>
    %293 = tpu.matmul %290, %291, %cst_107 {dimension_numbers = #tpu.dot_dimension_numbers<[1], [0], [0], [1], [0, 0, 1, 1], [], []>} : vector<64x8xf32>, vector<8x32xf32>, vector<64x32xf32> -> vector<64x32xf32>
    %294 = vector.broadcast %292 : vector<1x32xf32> to vector<64x32xf32>
    %295 = arith.addf %293, %294 : vector<64x32xf32>
    %296 = arith.addf %283, %295 : vector<64x32xf32>
    %c360 = arith.constant 360 : index
    %c0_108 = arith.constant 0 : index
    %297 = vector.load %arg6[%c360, %c0_108] : memref<1272x128xf32, #tpu.memory_space<vmem>>, vector<1x32xf32>
    %c368 = arith.constant 368 : index
    %c0_109 = arith.constant 0 : index
    %298 = vector.load %arg6[%c368, %c0_109] : memref<1272x128xf32, #tpu.memory_space<vmem>>, vector<1x32xf32>
    %cst_110 = arith.constant dense<0.000000e+00> : vector<64xf32>
    %299 = vector.multi_reduction <add>, %296, %cst_110 [1] : vector<64x32xf32> to vector<64xf32>
    %300 = vector.shape_cast %299 : vector<64xf32> to vector<64x1xf32>
    %cst_111 = arith.constant 3.200000e+01 : f32
    %301 = vector.broadcast %cst_111 : f32 to vector<64x1xf32>
    %302 = arith.divf %300, %301 : vector<64x1xf32>
    %303 = vector.broadcast %302 : vector<64x1xf32> to vector<64x32xf32>
    %304 = arith.subf %296, %303 : vector<64x32xf32>
    %305 = arith.mulf %304, %304 : vector<64x32xf32>
    %cst_112 = arith.constant dense<0.000000e+00> : vector<64xf32>
    %306 = vector.multi_reduction <add>, %305, %cst_112 [1] : vector<64x32xf32> to vector<64xf32>
    %307 = vector.shape_cast %306 : vector<64xf32> to vector<64x1xf32>
    %cst_113 = arith.constant 3.200000e+01 : f32
    %308 = vector.broadcast %cst_113 : f32 to vector<64x1xf32>
    %309 = arith.divf %307, %308 : vector<64x1xf32>
    %310 = vector.broadcast %302 : vector<64x1xf32> to vector<64x32xf32>
    %311 = arith.subf %296, %310 : vector<64x32xf32>
    %cst_114 = arith.constant 9.99999974E-6 : f32
    %312 = vector.broadcast %cst_114 : f32 to vector<64x1xf32>
    %313 = arith.addf %309, %312 : vector<64x1xf32>
    %314 = math.rsqrt %313 : vector<64x1xf32>
    %315 = vector.broadcast %314 : vector<64x1xf32> to vector<64x32xf32>
    %316 = arith.mulf %311, %315 : vector<64x32xf32>
    %317 = vector.broadcast %297 : vector<1x32xf32> to vector<64x32xf32>
    %318 = arith.mulf %316, %317 : vector<64x32xf32>
    %319 = vector.broadcast %298 : vector<1x32xf32> to vector<64x32xf32>
    %320 = arith.addf %318, %319 : vector<64x32xf32>
    %321 = vector.shape_cast %320 : vector<64x32xf32> to vector<8x8x32xf32>
    %cst_115 = arith.constant dense<0.000000e+00> : vector<8x32xf32>
    %322 = vector.multi_reduction <add>, %321, %cst_115 [1] : vector<8x8x32xf32> to vector<8x32xf32>
    %323 = arith.addf %322, %14 : vector<8x32xf32>
    %c376 = arith.constant 376 : index
    %c0_116 = arith.constant 0 : index
    %324 = vector.load %arg6[%c376, %c0_116] : memref<1272x128xf32, #tpu.memory_space<vmem>>, vector<32x32xf32>
    %c408 = arith.constant 408 : index
    %c0_117 = arith.constant 0 : index
    %325 = vector.load %arg6[%c408, %c0_117] : memref<1272x128xf32, #tpu.memory_space<vmem>>, vector<1x32xf32>
    %cst_118 = arith.constant dense<0.000000e+00> : vector<8x32xf32>
    %326 = tpu.matmul %323, %324, %cst_118 {dimension_numbers = #tpu.dot_dimension_numbers<[1], [0], [0], [1], [0, 0, 1, 1], [], []>} : vector<8x32xf32>, vector<32x32xf32>, vector<8x32xf32> -> vector<8x32xf32>
    %327 = vector.broadcast %325 : vector<1x32xf32> to vector<8x32xf32>
    %328 = arith.addf %326, %327 : vector<8x32xf32>
    %c416 = arith.constant 416 : index
    %c0_119 = arith.constant 0 : index
    %329 = vector.load %arg6[%c416, %c0_119] : memref<1272x128xf32, #tpu.memory_space<vmem>>, vector<1x32xf32>
    %c424 = arith.constant 424 : index
    %c0_120 = arith.constant 0 : index
    %330 = vector.load %arg6[%c424, %c0_120] : memref<1272x128xf32, #tpu.memory_space<vmem>>, vector<1x32xf32>
    %cst_121 = arith.constant dense<0.000000e+00> : vector<8xf32>
    %331 = vector.multi_reduction <add>, %328, %cst_121 [1] : vector<8x32xf32> to vector<8xf32>
    %332 = vector.shape_cast %331 : vector<8xf32> to vector<8x1xf32>
    %cst_122 = arith.constant 3.200000e+01 : f32
    %333 = vector.broadcast %cst_122 : f32 to vector<8x1xf32>
    %334 = arith.divf %332, %333 : vector<8x1xf32>
    %335 = vector.broadcast %334 : vector<8x1xf32> to vector<8x32xf32>
    %336 = arith.subf %328, %335 : vector<8x32xf32>
    %337 = arith.mulf %336, %336 : vector<8x32xf32>
    %cst_123 = arith.constant dense<0.000000e+00> : vector<8xf32>
    %338 = vector.multi_reduction <add>, %337, %cst_123 [1] : vector<8x32xf32> to vector<8xf32>
    %339 = vector.shape_cast %338 : vector<8xf32> to vector<8x1xf32>
    %cst_124 = arith.constant 3.200000e+01 : f32
    %340 = vector.broadcast %cst_124 : f32 to vector<8x1xf32>
    %341 = arith.divf %339, %340 : vector<8x1xf32>
    %342 = vector.broadcast %334 : vector<8x1xf32> to vector<8x32xf32>
    %343 = arith.subf %328, %342 : vector<8x32xf32>
    %cst_125 = arith.constant 9.99999974E-6 : f32
    %344 = vector.broadcast %cst_125 : f32 to vector<8x1xf32>
    %345 = arith.addf %341, %344 : vector<8x1xf32>
    %346 = math.rsqrt %345 : vector<8x1xf32>
    %347 = vector.broadcast %346 : vector<8x1xf32> to vector<8x32xf32>
    %348 = arith.mulf %343, %347 : vector<8x32xf32>
    %349 = vector.broadcast %329 : vector<1x32xf32> to vector<8x32xf32>
    %350 = arith.mulf %348, %349 : vector<8x32xf32>
    %351 = vector.broadcast %330 : vector<1x32xf32> to vector<8x32xf32>
    %352 = arith.addf %350, %351 : vector<8x32xf32>
    %cst_126 = arith.constant 0.000000e+00 : f32
    %353 = vector.broadcast %cst_126 : f32 to vector<8x32xf32>
    %354 = arith.maximumf %352, %353 : vector<8x32xf32>
    %c432 = arith.constant 432 : index
    %c0_127 = arith.constant 0 : index
    %355 = vector.load %arg6[%c432, %c0_127] : memref<1272x128xf32, #tpu.memory_space<vmem>>, vector<32x32xf32>
    %c464 = arith.constant 464 : index
    %c0_128 = arith.constant 0 : index
    %356 = vector.load %arg6[%c464, %c0_128] : memref<1272x128xf32, #tpu.memory_space<vmem>>, vector<1x32xf32>
    %cst_129 = arith.constant dense<0.000000e+00> : vector<8x32xf32>
    %357 = tpu.matmul %354, %355, %cst_129 {dimension_numbers = #tpu.dot_dimension_numbers<[1], [0], [0], [1], [0, 0, 1, 1], [], []>} : vector<8x32xf32>, vector<32x32xf32>, vector<8x32xf32> -> vector<8x32xf32>
    %358 = vector.broadcast %356 : vector<1x32xf32> to vector<8x32xf32>
    %359 = arith.addf %357, %358 : vector<8x32xf32>
    %c8 = arith.constant 8 : index
    %c0_130 = arith.constant 0 : index
    %360 = vector.load %arg7[%c8, %c0_130] : memref<64x128xf32, #tpu.memory_space<vmem>>, vector<8x32xf32>
    tpu.vector_store %arg7[%c8, %c0_130], %359 {strides = array<i32>} : memref<64x128xf32, #tpu.memory_space<vmem>>, vector<8x32xf32>,
    %c0_131 = arith.constant 0 : index
    %c0_132 = arith.constant 0 : index
    %361 = vector.load %arg5[%c0_131, %c0_132] : memref<8x32xf32, #tpu.memory_space<vmem>>, vector<8x32xf32>
    %c0_133 = arith.constant 0 : index
    %c0_134 = arith.constant 0 : index
    %362 = vector.load %arg3[%c0_133, %c0_134] : memref<64x12xf32, #tpu.memory_space<vmem>>, vector<64x12xf32>
    %c472 = arith.constant 472 : index
    %c0_135 = arith.constant 0 : index
    %363 = vector.load %arg6[%c472, %c0_135] : memref<1272x128xf32, #tpu.memory_space<vmem>>, vector<12x8xf32>
    %c488 = arith.constant 488 : index
    %c0_136 = arith.constant 0 : index
    %364 = vector.load %arg6[%c488, %c0_136] : memref<1272x128xf32, #tpu.memory_space<vmem>>, vector<1x8xf32>
    %cst_137 = arith.constant dense<0.000000e+00> : vector<64x8xf32>
    %365 = tpu.matmul %362, %363, %cst_137 {dimension_numbers = #tpu.dot_dimension_numbers<[1], [0], [0], [1], [0, 0, 1, 1], [], []>} : vector<64x12xf32>, vector<12x8xf32>, vector<64x8xf32> -> vector<64x8xf32>
    %366 = vector.broadcast %364 : vector<1x8xf32> to vector<64x8xf32>
    %367 = arith.addf %365, %366 : vector<64x8xf32>
    %cst_138 = arith.constant 0.000000e+00 : f32
    %368 = vector.broadcast %cst_138 : f32 to vector<64x8xf32>
    %369 = arith.maximumf %367, %368 : vector<64x8xf32>
    %c496 = arith.constant 496 : index
    %c0_139 = arith.constant 0 : index
    %370 = vector.load %arg6[%c496, %c0_139] : memref<1272x128xf32, #tpu.memory_space<vmem>>, vector<8x32xf32>
    %c504 = arith.constant 504 : index
    %c0_140 = arith.constant 0 : index
    %371 = vector.load %arg6[%c504, %c0_140] : memref<1272x128xf32, #tpu.memory_space<vmem>>, vector<1x32xf32>
    %cst_141 = arith.constant dense<0.000000e+00> : vector<64x32xf32>
    %372 = tpu.matmul %369, %370, %cst_141 {dimension_numbers = #tpu.dot_dimension_numbers<[1], [0], [0], [1], [0, 0, 1, 1], [], []>} : vector<64x8xf32>, vector<8x32xf32>, vector<64x32xf32> -> vector<64x32xf32>
    %373 = vector.broadcast %371 : vector<1x32xf32> to vector<64x32xf32>
    %374 = arith.addf %372, %373 : vector<64x32xf32>
    %c0_142 = arith.constant 0 : index
    %c0_143 = arith.constant 0 : index
    %375 = vector.load %arg4[%c0_142, %c0_143] : memref<64x1xf32, #tpu.memory_space<vmem>>, vector<64x1xf32>
    %c512 = arith.constant 512 : index
    %c0_144 = arith.constant 0 : index
    %376 = vector.load %arg6[%c512, %c0_144] : memref<1272x128xf32, #tpu.memory_space<vmem>>, vector<1x32xf32>
    %377 = vector.broadcast %375 : vector<64x1xf32> to vector<64x32xf32>
    %378 = vector.broadcast %376 : vector<1x32xf32> to vector<64x32xf32>
    %379 = arith.mulf %377, %378 : vector<64x32xf32>
    %c520 = arith.constant 520 : index
    %c0_145 = arith.constant 0 : index
    %380 = vector.load %arg6[%c520, %c0_145] : memref<1272x128xf32, #tpu.memory_space<vmem>>, vector<1x32xf32>
    %381 = vector.broadcast %380 : vector<1x32xf32> to vector<64x32xf32>
    %382 = arith.addf %379, %381 : vector<64x32xf32>
    %383 = arith.negf %382 : vector<64x32xf32>
    %384 = math.exp %383 : vector<64x32xf32>
    %cst_146 = arith.constant 1.000000e+00 : f32
    %385 = vector.broadcast %cst_146 : f32 to vector<64x32xf32>
    %386 = arith.addf %385, %384 : vector<64x32xf32>
    %387 = arith.divf %385, %386 : vector<64x32xf32>
    %388 = arith.mulf %374, %387 : vector<64x32xf32>
    %389 = vector.shape_cast %388 : vector<64x32xf32> to vector<8x8x32xf32>
    %390 = vector.shape_cast %359 : vector<8x32xf32> to vector<1x8x32xf32>
    %391 = vector.broadcast %390 : vector<1x8x32xf32> to vector<8x8x32xf32>
    %392 = arith.addf %389, %391 : vector<8x8x32xf32>
    %393 = vector.shape_cast %392 : vector<8x8x32xf32> to vector<64x32xf32>
    %c528 = arith.constant 528 : index
    %c0_147 = arith.constant 0 : index
    %394 = vector.load %arg6[%c528, %c0_147] : memref<1272x128xf32, #tpu.memory_space<vmem>>, vector<32x32xf32>
    %c560 = arith.constant 560 : index
    %c0_148 = arith.constant 0 : index
    %395 = vector.load %arg6[%c560, %c0_148] : memref<1272x128xf32, #tpu.memory_space<vmem>>, vector<1x32xf32>
    %cst_149 = arith.constant dense<0.000000e+00> : vector<64x32xf32>
    %396 = tpu.matmul %393, %394, %cst_149 {dimension_numbers = #tpu.dot_dimension_numbers<[1], [0], [0], [1], [0, 0, 1, 1], [], []>} : vector<64x32xf32>, vector<32x32xf32>, vector<64x32xf32> -> vector<64x32xf32>
    %397 = vector.broadcast %395 : vector<1x32xf32> to vector<64x32xf32>
    %398 = arith.addf %396, %397 : vector<64x32xf32>
    %c568 = arith.constant 568 : index
    %c0_150 = arith.constant 0 : index
    %399 = vector.load %arg6[%c568, %c0_150] : memref<1272x128xf32, #tpu.memory_space<vmem>>, vector<32x32xf32>
    %c600 = arith.constant 600 : index
    %c0_151 = arith.constant 0 : index
    %400 = vector.load %arg6[%c600, %c0_151] : memref<1272x128xf32, #tpu.memory_space<vmem>>, vector<32x32xf32>
    %c632 = arith.constant 632 : index
    %c0_152 = arith.constant 0 : index
    %401 = vector.load %arg6[%c632, %c0_152] : memref<1272x128xf32, #tpu.memory_space<vmem>>, vector<1x32xf32>
    %c640 = arith.constant 640 : index
    %c0_153 = arith.constant 0 : index
    %402 = vector.load %arg6[%c640, %c0_153] : memref<1272x128xf32, #tpu.memory_space<vmem>>, vector<32x32xf32>
    %c672 = arith.constant 672 : index
    %c0_154 = arith.constant 0 : index
    %403 = vector.load %arg6[%c672, %c0_154] : memref<1272x128xf32, #tpu.memory_space<vmem>>, vector<1x32xf32>
    %c680 = arith.constant 680 : index
    %c0_155 = arith.constant 0 : index
    %404 = vector.load %arg6[%c680, %c0_155] : memref<1272x128xf32, #tpu.memory_space<vmem>>, vector<32x16xf32>
    %c712 = arith.constant 712 : index
    %c0_156 = arith.constant 0 : index
    %405 = vector.load %arg6[%c712, %c0_156] : memref<1272x128xf32, #tpu.memory_space<vmem>>, vector<1x16xf32>
    %c720 = arith.constant 720 : index
    %c0_157 = arith.constant 0 : index
    %406 = vector.load %arg6[%c720, %c0_157] : memref<1272x128xf32, #tpu.memory_space<vmem>>, vector<1x16xf32>
    %c728 = arith.constant 728 : index
    %c0_158 = arith.constant 0 : index
    %407 = vector.load %arg6[%c728, %c0_158] : memref<1272x128xf32, #tpu.memory_space<vmem>>, vector<1x1xf32>
    %c736 = arith.constant 736 : index
    %c0_159 = arith.constant 0 : index
    %408 = vector.load %arg6[%c736, %c0_159] : memref<1272x128xf32, #tpu.memory_space<vmem>>, vector<32x8xf32>
    %c768 = arith.constant 768 : index
    %c0_160 = arith.constant 0 : index
    %409 = vector.load %arg6[%c768, %c0_160] : memref<1272x128xf32, #tpu.memory_space<vmem>>, vector<1x8xf32>
    %c776 = arith.constant 776 : index
    %c0_161 = arith.constant 0 : index
    %410 = vector.load %arg6[%c776, %c0_161] : memref<1272x128xf32, #tpu.memory_space<vmem>>, vector<8x32xf32>
    %c784 = arith.constant 784 : index
    %c0_162 = arith.constant 0 : index
    %411 = vector.load %arg6[%c784, %c0_162] : memref<1272x128xf32, #tpu.memory_space<vmem>>, vector<1x32xf32>
    %c792 = arith.constant 792 : index
    %c0_163 = arith.constant 0 : index
    %412 = vector.load %arg6[%c792, %c0_163] : memref<1272x128xf32, #tpu.memory_space<vmem>>, vector<32x32xf32>
    %c824 = arith.constant 824 : index
    %c0_164 = arith.constant 0 : index
    %413 = vector.load %arg6[%c824, %c0_164] : memref<1272x128xf32, #tpu.memory_space<vmem>>, vector<1x32xf32>
    %c832 = arith.constant 832 : index
    %c0_165 = arith.constant 0 : index
    %414 = vector.load %arg6[%c832, %c0_165] : memref<1272x128xf32, #tpu.memory_space<vmem>>, vector<1x32xf32>
    %c840 = arith.constant 840 : index
    %c0_166 = arith.constant 0 : index
    %415 = vector.load %arg6[%c840, %c0_166] : memref<1272x128xf32, #tpu.memory_space<vmem>>, vector<1x32xf32>
    %c848 = arith.constant 848 : index
    %c0_167 = arith.constant 0 : index
    %416 = vector.load %arg6[%c848, %c0_167] : memref<1272x128xf32, #tpu.memory_space<vmem>>, vector<32x32xf32>
    %c880 = arith.constant 880 : index
    %c0_168 = arith.constant 0 : index
    %417 = vector.load %arg6[%c880, %c0_168] : memref<1272x128xf32, #tpu.memory_space<vmem>>, vector<1x32xf32>
    %c888 = arith.constant 888 : index
    %c0_169 = arith.constant 0 : index
    %418 = vector.load %arg6[%c888, %c0_169] : memref<1272x128xf32, #tpu.memory_space<vmem>>, vector<32x32xf32>
    %c920 = arith.constant 920 : index
    %c0_170 = arith.constant 0 : index
    %419 = vector.load %arg6[%c920, %c0_170] : memref<1272x128xf32, #tpu.memory_space<vmem>>, vector<1x32xf32>
    %cst_171 = arith.constant dense<0.000000e+00> : vector<8x32xf32>
    %420 = tpu.matmul %361, %418, %cst_171 {dimension_numbers = #tpu.dot_dimension_numbers<[1], [0], [0], [1], [0, 0, 1, 1], [], []>} : vector<8x32xf32>, vector<32x32xf32>, vector<8x32xf32> -> vector<8x32xf32>
    %421 = vector.broadcast %419 : vector<1x32xf32> to vector<8x32xf32>
    %422 = arith.addf %420, %421 : vector<8x32xf32>
    %423 = vector.shape_cast %398 : vector<64x32xf32> to vector<8x8x32xf32>
    %424 = vector.shape_cast %422 : vector<8x32xf32> to vector<8x1x32xf32>
    %425 = vector.broadcast %424 : vector<8x1x32xf32> to vector<8x8x32xf32>
    %426 = arith.addf %423, %425 : vector<8x8x32xf32>
    %427 = vector.shape_cast %426 : vector<8x8x32xf32> to vector<64x32xf32>
    %c928 = arith.constant 928 : index
    %c0_172 = arith.constant 0 : index
    %428 = vector.load %arg6[%c928, %c0_172] : memref<1272x128xf32, #tpu.memory_space<vmem>>, vector<1x32xf32>
    %c936 = arith.constant 936 : index
    %c0_173 = arith.constant 0 : index
    %429 = vector.load %arg6[%c936, %c0_173] : memref<1272x128xf32, #tpu.memory_space<vmem>>, vector<1x32xf32>
    %cst_174 = arith.constant dense<0.000000e+00> : vector<64xf32>
    %430 = vector.multi_reduction <add>, %427, %cst_174 [1] : vector<64x32xf32> to vector<64xf32>
    %431 = vector.shape_cast %430 : vector<64xf32> to vector<64x1xf32>
    %cst_175 = arith.constant 3.200000e+01 : f32
    %432 = vector.broadcast %cst_175 : f32 to vector<64x1xf32>
    %433 = arith.divf %431, %432 : vector<64x1xf32>
    %434 = vector.broadcast %433 : vector<64x1xf32> to vector<64x32xf32>
    %435 = arith.subf %427, %434 : vector<64x32xf32>
    %436 = arith.mulf %435, %435 : vector<64x32xf32>
    %cst_176 = arith.constant dense<0.000000e+00> : vector<64xf32>
    %437 = vector.multi_reduction <add>, %436, %cst_176 [1] : vector<64x32xf32> to vector<64xf32>
    %438 = vector.shape_cast %437 : vector<64xf32> to vector<64x1xf32>
    %cst_177 = arith.constant 3.200000e+01 : f32
    %439 = vector.broadcast %cst_177 : f32 to vector<64x1xf32>
    %440 = arith.divf %438, %439 : vector<64x1xf32>
    %441 = vector.broadcast %433 : vector<64x1xf32> to vector<64x32xf32>
    %442 = arith.subf %427, %441 : vector<64x32xf32>
    %cst_178 = arith.constant 9.99999974E-6 : f32
    %443 = vector.broadcast %cst_178 : f32 to vector<64x1xf32>
    %444 = arith.addf %440, %443 : vector<64x1xf32>
    %445 = math.rsqrt %444 : vector<64x1xf32>
    %446 = vector.broadcast %445 : vector<64x1xf32> to vector<64x32xf32>
    %447 = arith.mulf %442, %446 : vector<64x32xf32>
    %448 = vector.broadcast %428 : vector<1x32xf32> to vector<64x32xf32>
    %449 = arith.mulf %447, %448 : vector<64x32xf32>
    %450 = vector.broadcast %429 : vector<1x32xf32> to vector<64x32xf32>
    %451 = arith.addf %449, %450 : vector<64x32xf32>
    %c944 = arith.constant 944 : index
    %c0_179 = arith.constant 0 : index
    %452 = vector.load %arg6[%c944, %c0_179] : memref<1272x128xf32, #tpu.memory_space<vmem>>, vector<32x8xf32>
    %c976 = arith.constant 976 : index
    %c0_180 = arith.constant 0 : index
    %453 = vector.load %arg6[%c976, %c0_180] : memref<1272x128xf32, #tpu.memory_space<vmem>>, vector<1x8xf32>
    %cst_181 = arith.constant dense<0.000000e+00> : vector<64x8xf32>
    %454 = tpu.matmul %451, %452, %cst_181 {dimension_numbers = #tpu.dot_dimension_numbers<[1], [0], [0], [1], [0, 0, 1, 1], [], []>} : vector<64x32xf32>, vector<32x8xf32>, vector<64x8xf32> -> vector<64x8xf32>
    %455 = vector.broadcast %453 : vector<1x8xf32> to vector<64x8xf32>
    %456 = arith.addf %454, %455 : vector<64x8xf32>
    %cst_182 = arith.constant 0.000000e+00 : f32
    %457 = vector.broadcast %cst_182 : f32 to vector<64x8xf32>
    %458 = arith.maximumf %456, %457 : vector<64x8xf32>
    %c984 = arith.constant 984 : index
    %c0_183 = arith.constant 0 : index
    %459 = vector.load %arg6[%c984, %c0_183] : memref<1272x128xf32, #tpu.memory_space<vmem>>, vector<8x32xf32>
    %c992 = arith.constant 992 : index
    %c0_184 = arith.constant 0 : index
    %460 = vector.load %arg6[%c992, %c0_184] : memref<1272x128xf32, #tpu.memory_space<vmem>>, vector<1x32xf32>
    %cst_185 = arith.constant dense<0.000000e+00> : vector<64x32xf32>
    %461 = tpu.matmul %458, %459, %cst_185 {dimension_numbers = #tpu.dot_dimension_numbers<[1], [0], [0], [1], [0, 0, 1, 1], [], []>} : vector<64x8xf32>, vector<8x32xf32>, vector<64x32xf32> -> vector<64x32xf32>
    %462 = vector.broadcast %460 : vector<1x32xf32> to vector<64x32xf32>
    %463 = arith.addf %461, %462 : vector<64x32xf32>
    %464 = arith.addf %451, %463 : vector<64x32xf32>
    %c1000 = arith.constant 1000 : index
    %c0_186 = arith.constant 0 : index
    %465 = vector.load %arg6[%c1000, %c0_186] : memref<1272x128xf32, #tpu.memory_space<vmem>>, vector<1x32xf32>
    %c1008 = arith.constant 1008 : index
    %c0_187 = arith.constant 0 : index
    %466 = vector.load %arg6[%c1008, %c0_187] : memref<1272x128xf32, #tpu.memory_space<vmem>>, vector<1x32xf32>
    %cst_188 = arith.constant dense<0.000000e+00> : vector<64xf32>
    %467 = vector.multi_reduction <add>, %464, %cst_188 [1] : vector<64x32xf32> to vector<64xf32>
    %468 = vector.shape_cast %467 : vector<64xf32> to vector<64x1xf32>
    %cst_189 = arith.constant 3.200000e+01 : f32
    %469 = vector.broadcast %cst_189 : f32 to vector<64x1xf32>
    %470 = arith.divf %468, %469 : vector<64x1xf32>
    %471 = vector.broadcast %470 : vector<64x1xf32> to vector<64x32xf32>
    %472 = arith.subf %464, %471 : vector<64x32xf32>
    %473 = arith.mulf %472, %472 : vector<64x32xf32>
    %cst_190 = arith.constant dense<0.000000e+00> : vector<64xf32>
    %474 = vector.multi_reduction <add>, %473, %cst_190 [1] : vector<64x32xf32> to vector<64xf32>
    %475 = vector.shape_cast %474 : vector<64xf32> to vector<64x1xf32>
    %cst_191 = arith.constant 3.200000e+01 : f32
    %476 = vector.broadcast %cst_191 : f32 to vector<64x1xf32>
    %477 = arith.divf %475, %476 : vector<64x1xf32>
    %478 = vector.broadcast %470 : vector<64x1xf32> to vector<64x32xf32>
    %479 = arith.subf %464, %478 : vector<64x32xf32>
    %cst_192 = arith.constant 9.99999974E-6 : f32
    %480 = vector.broadcast %cst_192 : f32 to vector<64x1xf32>
    %481 = arith.addf %477, %480 : vector<64x1xf32>
    %482 = math.rsqrt %481 : vector<64x1xf32>
    %483 = vector.broadcast %482 : vector<64x1xf32> to vector<64x32xf32>
    %484 = arith.mulf %479, %483 : vector<64x32xf32>
    %485 = vector.broadcast %465 : vector<1x32xf32> to vector<64x32xf32>
    %486 = arith.mulf %484, %485 : vector<64x32xf32>
    %487 = vector.broadcast %466 : vector<1x32xf32> to vector<64x32xf32>
    %488 = arith.addf %486, %487 : vector<64x32xf32>
    %cst_193 = arith.constant dense<0.000000e+00> : vector<64x32xf32>
    %489 = tpu.matmul %488, %399, %cst_193 {dimension_numbers = #tpu.dot_dimension_numbers<[1], [0], [0], [1], [0, 0, 1, 1], [], []>} : vector<64x32xf32>, vector<32x32xf32>, vector<64x32xf32> -> vector<64x32xf32>
    %cst_194 = arith.constant dense<0.000000e+00> : vector<64x32xf32>
    %490 = tpu.matmul %388, %400, %cst_194 {dimension_numbers = #tpu.dot_dimension_numbers<[1], [0], [0], [1], [0, 0, 1, 1], [], []>} : vector<64x32xf32>, vector<32x32xf32>, vector<64x32xf32> -> vector<64x32xf32>
    %491 = arith.addf %489, %490 : vector<64x32xf32>
    %492 = vector.broadcast %401 : vector<1x32xf32> to vector<64x32xf32>
    %493 = arith.addf %491, %492 : vector<64x32xf32>
    %cst_195 = arith.constant 0.000000e+00 : f32
    %494 = vector.broadcast %cst_195 : f32 to vector<64x32xf32>
    %495 = arith.maximumf %493, %494 : vector<64x32xf32>
    %cst_196 = arith.constant dense<0.000000e+00> : vector<64x32xf32>
    %496 = tpu.matmul %495, %402, %cst_196 {dimension_numbers = #tpu.dot_dimension_numbers<[1], [0], [0], [1], [0, 0, 1, 1], [], []>} : vector<64x32xf32>, vector<32x32xf32>, vector<64x32xf32> -> vector<64x32xf32>
    %497 = vector.broadcast %403 : vector<1x32xf32> to vector<64x32xf32>
    %498 = arith.addf %496, %497 : vector<64x32xf32>
    %cst_197 = arith.constant dense<0.000000e+00> : vector<64x16xf32>
    %499 = tpu.matmul %498, %404, %cst_197 {dimension_numbers = #tpu.dot_dimension_numbers<[1], [0], [0], [1], [0, 0, 1, 1], [], []>} : vector<64x32xf32>, vector<32x16xf32>, vector<64x16xf32> -> vector<64x16xf32>
    %500 = vector.broadcast %405 : vector<1x16xf32> to vector<64x16xf32>
    %501 = arith.addf %499, %500 : vector<64x16xf32>
    %cst_198 = arith.constant 0.000000e+00 : f32
    %502 = vector.broadcast %cst_198 : f32 to vector<64x16xf32>
    %503 = arith.maximumf %501, %502 : vector<64x16xf32>
    %504 = vector.shape_cast %503 : vector<64x16xf32> to vector<8x8x16xf32>
    %505 = vector.shape_cast %406 : vector<1x16xf32> to vector<1x1x16xf32>
    %506 = vector.broadcast %505 : vector<1x1x16xf32> to vector<8x8x16xf32>
    %507 = arith.mulf %504, %506 : vector<8x8x16xf32>
    %cst_199 = arith.constant dense<0.000000e+00> : vector<8x8xf32>
    %508 = vector.multi_reduction <add>, %507, %cst_199 [2] : vector<8x8x16xf32> to vector<8x8xf32>
    %509 = vector.broadcast %407 : vector<1x1xf32> to vector<8x8xf32>
    %510 = arith.addf %508, %509 : vector<8x8xf32>
    %c40_200 = arith.constant 40 : index
    %c0_201 = arith.constant 0 : index
    %511 = vector.load %arg7[%c40_200, %c0_201] : memref<64x128xf32, #tpu.memory_space<vmem>>, vector<8x8xf32>
    tpu.vector_store %arg7[%c40_200, %c0_201], %510 {strides = array<i32>} : memref<64x128xf32, #tpu.memory_space<vmem>>, vector<8x8xf32>,
    %cst_202 = arith.constant dense<0.000000e+00> : vector<64x8xf32>
    %512 = tpu.matmul %498, %408, %cst_202 {dimension_numbers = #tpu.dot_dimension_numbers<[1], [0], [0], [1], [0, 0, 1, 1], [], []>} : vector<64x32xf32>, vector<32x8xf32>, vector<64x8xf32> -> vector<64x8xf32>
    %513 = vector.broadcast %409 : vector<1x8xf32> to vector<64x8xf32>
    %514 = arith.addf %512, %513 : vector<64x8xf32>
    %cst_203 = arith.constant 0.000000e+00 : f32
    %515 = vector.broadcast %cst_203 : f32 to vector<64x8xf32>
    %516 = arith.maximumf %514, %515 : vector<64x8xf32>
    %cst_204 = arith.constant dense<0.000000e+00> : vector<64x32xf32>
    %517 = tpu.matmul %516, %410, %cst_204 {dimension_numbers = #tpu.dot_dimension_numbers<[1], [0], [0], [1], [0, 0, 1, 1], [], []>} : vector<64x8xf32>, vector<8x32xf32>, vector<64x32xf32> -> vector<64x32xf32>
    %518 = vector.broadcast %411 : vector<1x32xf32> to vector<64x32xf32>
    %519 = arith.addf %517, %518 : vector<64x32xf32>
    %520 = vector.shape_cast %519 : vector<64x32xf32> to vector<8x8x32xf32>
    %cst_205 = arith.constant dense<0.000000e+00> : vector<8x32xf32>
    %521 = vector.multi_reduction <add>, %520, %cst_205 [0] : vector<8x8x32xf32> to vector<8x32xf32>
    %522 = arith.addf %521, %359 : vector<8x32xf32>
    %cst_206 = arith.constant dense<0.000000e+00> : vector<8x32xf32>
    %523 = tpu.matmul %522, %412, %cst_206 {dimension_numbers = #tpu.dot_dimension_numbers<[1], [0], [0], [1], [0, 0, 1, 1], [], []>} : vector<8x32xf32>, vector<32x32xf32>, vector<8x32xf32> -> vector<8x32xf32>
    %524 = vector.broadcast %413 : vector<1x32xf32> to vector<8x32xf32>
    %525 = arith.addf %523, %524 : vector<8x32xf32>
    %cst_207 = arith.constant dense<0.000000e+00> : vector<8xf32>
    %526 = vector.multi_reduction <add>, %525, %cst_207 [1] : vector<8x32xf32> to vector<8xf32>
    %527 = vector.shape_cast %526 : vector<8xf32> to vector<8x1xf32>
    %cst_208 = arith.constant 3.200000e+01 : f32
    %528 = vector.broadcast %cst_208 : f32 to vector<8x1xf32>
    %529 = arith.divf %527, %528 : vector<8x1xf32>
    %530 = vector.broadcast %529 : vector<8x1xf32> to vector<8x32xf32>
    %531 = arith.subf %525, %530 : vector<8x32xf32>
    %532 = arith.mulf %531, %531 : vector<8x32xf32>
    %cst_209 = arith.constant dense<0.000000e+00> : vector<8xf32>
    %533 = vector.multi_reduction <add>, %532, %cst_209 [1] : vector<8x32xf32> to vector<8xf32>
    %534 = vector.shape_cast %533 : vector<8xf32> to vector<8x1xf32>
    %cst_210 = arith.constant 3.200000e+01 : f32
    %535 = vector.broadcast %cst_210 : f32 to vector<8x1xf32>
    %536 = arith.divf %534, %535 : vector<8x1xf32>
    %537 = vector.broadcast %529 : vector<8x1xf32> to vector<8x32xf32>
    %538 = arith.subf %525, %537 : vector<8x32xf32>
    %cst_211 = arith.constant 9.99999974E-6 : f32
    %539 = vector.broadcast %cst_211 : f32 to vector<8x1xf32>
    %540 = arith.addf %536, %539 : vector<8x1xf32>
    %541 = math.rsqrt %540 : vector<8x1xf32>
    %542 = vector.broadcast %541 : vector<8x1xf32> to vector<8x32xf32>
    %543 = arith.mulf %538, %542 : vector<8x32xf32>
    %544 = vector.broadcast %414 : vector<1x32xf32> to vector<8x32xf32>
    %545 = arith.mulf %543, %544 : vector<8x32xf32>
    %546 = vector.broadcast %415 : vector<1x32xf32> to vector<8x32xf32>
    %547 = arith.addf %545, %546 : vector<8x32xf32>
    %cst_212 = arith.constant 0.000000e+00 : f32
    %548 = vector.broadcast %cst_212 : f32 to vector<8x32xf32>
    %549 = arith.maximumf %547, %548 : vector<8x32xf32>
    %cst_213 = arith.constant dense<0.000000e+00> : vector<8x32xf32>
    %550 = tpu.matmul %549, %416, %cst_213 {dimension_numbers = #tpu.dot_dimension_numbers<[1], [0], [0], [1], [0, 0, 1, 1], [], []>} : vector<8x32xf32>, vector<32x32xf32>, vector<8x32xf32> -> vector<8x32xf32>
    %551 = vector.broadcast %417 : vector<1x32xf32> to vector<8x32xf32>
    %552 = arith.addf %550, %551 : vector<8x32xf32>
    %c16 = arith.constant 16 : index
    %c0_214 = arith.constant 0 : index
    %553 = vector.load %arg7[%c16, %c0_214] : memref<64x128xf32, #tpu.memory_space<vmem>>, vector<8x32xf32>
    tpu.vector_store %arg7[%c16, %c0_214], %552 {strides = array<i32>} : memref<64x128xf32, #tpu.memory_space<vmem>>, vector<8x32xf32>,
    %c1016 = arith.constant 1016 : index
    %c0_215 = arith.constant 0 : index
    %554 = vector.load %arg6[%c1016, %c0_215] : memref<1272x128xf32, #tpu.memory_space<vmem>>, vector<32x32xf32>
    %c1048 = arith.constant 1048 : index
    %c0_216 = arith.constant 0 : index
    %555 = vector.load %arg6[%c1048, %c0_216] : memref<1272x128xf32, #tpu.memory_space<vmem>>, vector<1x32xf32>
    %cst_217 = arith.constant dense<0.000000e+00> : vector<8x32xf32>
    %556 = tpu.matmul %361, %554, %cst_217 {dimension_numbers = #tpu.dot_dimension_numbers<[1], [0], [0], [1], [0, 0, 1, 1], [], []>} : vector<8x32xf32>, vector<32x32xf32>, vector<8x32xf32> -> vector<8x32xf32>
    %557 = vector.broadcast %555 : vector<1x32xf32> to vector<8x32xf32>
    %558 = arith.addf %556, %557 : vector<8x32xf32>
    %559 = vector.shape_cast %498 : vector<64x32xf32> to vector<8x8x32xf32>
    %560 = vector.shape_cast %558 : vector<8x32xf32> to vector<8x1x32xf32>
    %561 = vector.broadcast %560 : vector<8x1x32xf32> to vector<8x8x32xf32>
    %562 = arith.addf %559, %561 : vector<8x8x32xf32>
    %563 = vector.shape_cast %562 : vector<8x8x32xf32> to vector<64x32xf32>
    %c1056 = arith.constant 1056 : index
    %c0_218 = arith.constant 0 : index
    %564 = vector.load %arg6[%c1056, %c0_218] : memref<1272x128xf32, #tpu.memory_space<vmem>>, vector<1x32xf32>
    %c1064 = arith.constant 1064 : index
    %c0_219 = arith.constant 0 : index
    %565 = vector.load %arg6[%c1064, %c0_219] : memref<1272x128xf32, #tpu.memory_space<vmem>>, vector<1x32xf32>
    %cst_220 = arith.constant dense<0.000000e+00> : vector<64xf32>
    %566 = vector.multi_reduction <add>, %563, %cst_220 [1] : vector<64x32xf32> to vector<64xf32>
    %567 = vector.shape_cast %566 : vector<64xf32> to vector<64x1xf32>
    %cst_221 = arith.constant 3.200000e+01 : f32
    %568 = vector.broadcast %cst_221 : f32 to vector<64x1xf32>
    %569 = arith.divf %567, %568 : vector<64x1xf32>
    %570 = vector.broadcast %569 : vector<64x1xf32> to vector<64x32xf32>
    %571 = arith.subf %563, %570 : vector<64x32xf32>
    %572 = arith.mulf %571, %571 : vector<64x32xf32>
    %cst_222 = arith.constant dense<0.000000e+00> : vector<64xf32>
    %573 = vector.multi_reduction <add>, %572, %cst_222 [1] : vector<64x32xf32> to vector<64xf32>
    %574 = vector.shape_cast %573 : vector<64xf32> to vector<64x1xf32>
    %cst_223 = arith.constant 3.200000e+01 : f32
    %575 = vector.broadcast %cst_223 : f32 to vector<64x1xf32>
    %576 = arith.divf %574, %575 : vector<64x1xf32>
    %577 = vector.broadcast %569 : vector<64x1xf32> to vector<64x32xf32>
    %578 = arith.subf %563, %577 : vector<64x32xf32>
    %cst_224 = arith.constant 9.99999974E-6 : f32
    %579 = vector.broadcast %cst_224 : f32 to vector<64x1xf32>
    %580 = arith.addf %576, %579 : vector<64x1xf32>
    %581 = math.rsqrt %580 : vector<64x1xf32>
    %582 = vector.broadcast %581 : vector<64x1xf32> to vector<64x32xf32>
    %583 = arith.mulf %578, %582 : vector<64x32xf32>
    %584 = vector.broadcast %564 : vector<1x32xf32> to vector<64x32xf32>
    %585 = arith.mulf %583, %584 : vector<64x32xf32>
    %586 = vector.broadcast %565 : vector<1x32xf32> to vector<64x32xf32>
    %587 = arith.addf %585, %586 : vector<64x32xf32>
    %c1072 = arith.constant 1072 : index
    %c0_225 = arith.constant 0 : index
    %588 = vector.load %arg6[%c1072, %c0_225] : memref<1272x128xf32, #tpu.memory_space<vmem>>, vector<32x8xf32>
    %c1104 = arith.constant 1104 : index
    %c0_226 = arith.constant 0 : index
    %589 = vector.load %arg6[%c1104, %c0_226] : memref<1272x128xf32, #tpu.memory_space<vmem>>, vector<1x8xf32>
    %cst_227 = arith.constant dense<0.000000e+00> : vector<64x8xf32>
    %590 = tpu.matmul %587, %588, %cst_227 {dimension_numbers = #tpu.dot_dimension_numbers<[1], [0], [0], [1], [0, 0, 1, 1], [], []>} : vector<64x32xf32>, vector<32x8xf32>, vector<64x8xf32> -> vector<64x8xf32>
    %591 = vector.broadcast %589 : vector<1x8xf32> to vector<64x8xf32>
    %592 = arith.addf %590, %591 : vector<64x8xf32>
    %cst_228 = arith.constant 0.000000e+00 : f32
    %593 = vector.broadcast %cst_228 : f32 to vector<64x8xf32>
    %594 = arith.maximumf %592, %593 : vector<64x8xf32>
    %c1112 = arith.constant 1112 : index
    %c0_229 = arith.constant 0 : index
    %595 = vector.load %arg6[%c1112, %c0_229] : memref<1272x128xf32, #tpu.memory_space<vmem>>, vector<8x32xf32>
    %c1120 = arith.constant 1120 : index
    %c0_230 = arith.constant 0 : index
    %596 = vector.load %arg6[%c1120, %c0_230] : memref<1272x128xf32, #tpu.memory_space<vmem>>, vector<1x32xf32>
    %cst_231 = arith.constant dense<0.000000e+00> : vector<64x32xf32>
    %597 = tpu.matmul %594, %595, %cst_231 {dimension_numbers = #tpu.dot_dimension_numbers<[1], [0], [0], [1], [0, 0, 1, 1], [], []>} : vector<64x8xf32>, vector<8x32xf32>, vector<64x32xf32> -> vector<64x32xf32>
    %598 = vector.broadcast %596 : vector<1x32xf32> to vector<64x32xf32>
    %599 = arith.addf %597, %598 : vector<64x32xf32>
    %600 = arith.addf %587, %599 : vector<64x32xf32>
    %c1128 = arith.constant 1128 : index
    %c0_232 = arith.constant 0 : index
    %601 = vector.load %arg6[%c1128, %c0_232] : memref<1272x128xf32, #tpu.memory_space<vmem>>, vector<1x32xf32>
    %c1136 = arith.constant 1136 : index
    %c0_233 = arith.constant 0 : index
    %602 = vector.load %arg6[%c1136, %c0_233] : memref<1272x128xf32, #tpu.memory_space<vmem>>, vector<1x32xf32>
    %cst_234 = arith.constant dense<0.000000e+00> : vector<64xf32>
    %603 = vector.multi_reduction <add>, %600, %cst_234 [1] : vector<64x32xf32> to vector<64xf32>
    %604 = vector.shape_cast %603 : vector<64xf32> to vector<64x1xf32>
    %cst_235 = arith.constant 3.200000e+01 : f32
    %605 = vector.broadcast %cst_235 : f32 to vector<64x1xf32>
    %606 = arith.divf %604, %605 : vector<64x1xf32>
    %607 = vector.broadcast %606 : vector<64x1xf32> to vector<64x32xf32>
    %608 = arith.subf %600, %607 : vector<64x32xf32>
    %609 = arith.mulf %608, %608 : vector<64x32xf32>
    %cst_236 = arith.constant dense<0.000000e+00> : vector<64xf32>
    %610 = vector.multi_reduction <add>, %609, %cst_236 [1] : vector<64x32xf32> to vector<64xf32>
    %611 = vector.shape_cast %610 : vector<64xf32> to vector<64x1xf32>
    %cst_237 = arith.constant 3.200000e+01 : f32
    %612 = vector.broadcast %cst_237 : f32 to vector<64x1xf32>
    %613 = arith.divf %611, %612 : vector<64x1xf32>
    %614 = vector.broadcast %606 : vector<64x1xf32> to vector<64x32xf32>
    %615 = arith.subf %600, %614 : vector<64x32xf32>
    %cst_238 = arith.constant 9.99999974E-6 : f32
    %616 = vector.broadcast %cst_238 : f32 to vector<64x1xf32>
    %617 = arith.addf %613, %616 : vector<64x1xf32>
    %618 = math.rsqrt %617 : vector<64x1xf32>
    %619 = vector.broadcast %618 : vector<64x1xf32> to vector<64x32xf32>
    %620 = arith.mulf %615, %619 : vector<64x32xf32>
    %621 = vector.broadcast %601 : vector<1x32xf32> to vector<64x32xf32>
    %622 = arith.mulf %620, %621 : vector<64x32xf32>
    %623 = vector.broadcast %602 : vector<1x32xf32> to vector<64x32xf32>
    %624 = arith.addf %622, %623 : vector<64x32xf32>
    %cst_239 = arith.constant dense<0.000000e+00> : vector<64x32xf32>
    %625 = tpu.matmul %624, %399, %cst_239 {dimension_numbers = #tpu.dot_dimension_numbers<[1], [0], [0], [1], [0, 0, 1, 1], [], []>} : vector<64x32xf32>, vector<32x32xf32>, vector<64x32xf32> -> vector<64x32xf32>
    %cst_240 = arith.constant dense<0.000000e+00> : vector<64x32xf32>
    %626 = tpu.matmul %388, %400, %cst_240 {dimension_numbers = #tpu.dot_dimension_numbers<[1], [0], [0], [1], [0, 0, 1, 1], [], []>} : vector<64x32xf32>, vector<32x32xf32>, vector<64x32xf32> -> vector<64x32xf32>
    %627 = arith.addf %625, %626 : vector<64x32xf32>
    %628 = vector.broadcast %401 : vector<1x32xf32> to vector<64x32xf32>
    %629 = arith.addf %627, %628 : vector<64x32xf32>
    %cst_241 = arith.constant 0.000000e+00 : f32
    %630 = vector.broadcast %cst_241 : f32 to vector<64x32xf32>
    %631 = arith.maximumf %629, %630 : vector<64x32xf32>
    %cst_242 = arith.constant dense<0.000000e+00> : vector<64x32xf32>
    %632 = tpu.matmul %631, %402, %cst_242 {dimension_numbers = #tpu.dot_dimension_numbers<[1], [0], [0], [1], [0, 0, 1, 1], [], []>} : vector<64x32xf32>, vector<32x32xf32>, vector<64x32xf32> -> vector<64x32xf32>
    %633 = vector.broadcast %403 : vector<1x32xf32> to vector<64x32xf32>
    %634 = arith.addf %632, %633 : vector<64x32xf32>
    %cst_243 = arith.constant dense<0.000000e+00> : vector<64x16xf32>
    %635 = tpu.matmul %634, %404, %cst_243 {dimension_numbers = #tpu.dot_dimension_numbers<[1], [0], [0], [1], [0, 0, 1, 1], [], []>} : vector<64x32xf32>, vector<32x16xf32>, vector<64x16xf32> -> vector<64x16xf32>
    %636 = vector.broadcast %405 : vector<1x16xf32> to vector<64x16xf32>
    %637 = arith.addf %635, %636 : vector<64x16xf32>
    %cst_244 = arith.constant 0.000000e+00 : f32
    %638 = vector.broadcast %cst_244 : f32 to vector<64x16xf32>
    %639 = arith.maximumf %637, %638 : vector<64x16xf32>
    %640 = vector.shape_cast %639 : vector<64x16xf32> to vector<8x8x16xf32>
    %641 = vector.shape_cast %406 : vector<1x16xf32> to vector<1x1x16xf32>
    %642 = vector.broadcast %641 : vector<1x1x16xf32> to vector<8x8x16xf32>
    %643 = arith.mulf %640, %642 : vector<8x8x16xf32>
    %cst_245 = arith.constant dense<0.000000e+00> : vector<8x8xf32>
    %644 = vector.multi_reduction <add>, %643, %cst_245 [2] : vector<8x8x16xf32> to vector<8x8xf32>
    %645 = vector.broadcast %407 : vector<1x1xf32> to vector<8x8xf32>
    %646 = arith.addf %644, %645 : vector<8x8xf32>
    %c48_246 = arith.constant 48 : index
    %c0_247 = arith.constant 0 : index
    %647 = vector.load %arg7[%c48_246, %c0_247] : memref<64x128xf32, #tpu.memory_space<vmem>>, vector<8x8xf32>
    tpu.vector_store %arg7[%c48_246, %c0_247], %646 {strides = array<i32>} : memref<64x128xf32, #tpu.memory_space<vmem>>, vector<8x8xf32>,
    %cst_248 = arith.constant dense<0.000000e+00> : vector<64x8xf32>
    %648 = tpu.matmul %634, %408, %cst_248 {dimension_numbers = #tpu.dot_dimension_numbers<[1], [0], [0], [1], [0, 0, 1, 1], [], []>} : vector<64x32xf32>, vector<32x8xf32>, vector<64x8xf32> -> vector<64x8xf32>
    %649 = vector.broadcast %409 : vector<1x8xf32> to vector<64x8xf32>
    %650 = arith.addf %648, %649 : vector<64x8xf32>
    %cst_249 = arith.constant 0.000000e+00 : f32
    %651 = vector.broadcast %cst_249 : f32 to vector<64x8xf32>
    %652 = arith.maximumf %650, %651 : vector<64x8xf32>
    %cst_250 = arith.constant dense<0.000000e+00> : vector<64x32xf32>
    %653 = tpu.matmul %652, %410, %cst_250 {dimension_numbers = #tpu.dot_dimension_numbers<[1], [0], [0], [1], [0, 0, 1, 1], [], []>} : vector<64x8xf32>, vector<8x32xf32>, vector<64x32xf32> -> vector<64x32xf32>
    %654 = vector.broadcast %411 : vector<1x32xf32> to vector<64x32xf32>
    %655 = arith.addf %653, %654 : vector<64x32xf32>
    %656 = vector.shape_cast %655 : vector<64x32xf32> to vector<8x8x32xf32>
    %cst_251 = arith.constant dense<0.000000e+00> : vector<8x32xf32>
    %657 = vector.multi_reduction <add>, %656, %cst_251 [0] : vector<8x8x32xf32> to vector<8x32xf32>
    %658 = arith.addf %657, %359 : vector<8x32xf32>
    %cst_252 = arith.constant dense<0.000000e+00> : vector<8x32xf32>
    %659 = tpu.matmul %658, %412, %cst_252 {dimension_numbers = #tpu.dot_dimension_numbers<[1], [0], [0], [1], [0, 0, 1, 1], [], []>} : vector<8x32xf32>, vector<32x32xf32>, vector<8x32xf32> -> vector<8x32xf32>
    %660 = vector.broadcast %413 : vector<1x32xf32> to vector<8x32xf32>
    %661 = arith.addf %659, %660 : vector<8x32xf32>
    %cst_253 = arith.constant dense<0.000000e+00> : vector<8xf32>
    %662 = vector.multi_reduction <add>, %661, %cst_253 [1] : vector<8x32xf32> to vector<8xf32>
    %663 = vector.shape_cast %662 : vector<8xf32> to vector<8x1xf32>
    %cst_254 = arith.constant 3.200000e+01 : f32
    %664 = vector.broadcast %cst_254 : f32 to vector<8x1xf32>
    %665 = arith.divf %663, %664 : vector<8x1xf32>
    %666 = vector.broadcast %665 : vector<8x1xf32> to vector<8x32xf32>
    %667 = arith.subf %661, %666 : vector<8x32xf32>
    %668 = arith.mulf %667, %667 : vector<8x32xf32>
    %cst_255 = arith.constant dense<0.000000e+00> : vector<8xf32>
    %669 = vector.multi_reduction <add>, %668, %cst_255 [1] : vector<8x32xf32> to vector<8xf32>
    %670 = vector.shape_cast %669 : vector<8xf32> to vector<8x1xf32>
    %cst_256 = arith.constant 3.200000e+01 : f32
    %671 = vector.broadcast %cst_256 : f32 to vector<8x1xf32>
    %672 = arith.divf %670, %671 : vector<8x1xf32>
    %673 = vector.broadcast %665 : vector<8x1xf32> to vector<8x32xf32>
    %674 = arith.subf %661, %673 : vector<8x32xf32>
    %cst_257 = arith.constant 9.99999974E-6 : f32
    %675 = vector.broadcast %cst_257 : f32 to vector<8x1xf32>
    %676 = arith.addf %672, %675 : vector<8x1xf32>
    %677 = math.rsqrt %676 : vector<8x1xf32>
    %678 = vector.broadcast %677 : vector<8x1xf32> to vector<8x32xf32>
    %679 = arith.mulf %674, %678 : vector<8x32xf32>
    %680 = vector.broadcast %414 : vector<1x32xf32> to vector<8x32xf32>
    %681 = arith.mulf %679, %680 : vector<8x32xf32>
    %682 = vector.broadcast %415 : vector<1x32xf32> to vector<8x32xf32>
    %683 = arith.addf %681, %682 : vector<8x32xf32>
    %cst_258 = arith.constant 0.000000e+00 : f32
    %684 = vector.broadcast %cst_258 : f32 to vector<8x32xf32>
    %685 = arith.maximumf %683, %684 : vector<8x32xf32>
    %cst_259 = arith.constant dense<0.000000e+00> : vector<8x32xf32>
    %686 = tpu.matmul %685, %416, %cst_259 {dimension_numbers = #tpu.dot_dimension_numbers<[1], [0], [0], [1], [0, 0, 1, 1], [], []>} : vector<8x32xf32>, vector<32x32xf32>, vector<8x32xf32> -> vector<8x32xf32>
    %687 = vector.broadcast %417 : vector<1x32xf32> to vector<8x32xf32>
    %688 = arith.addf %686, %687 : vector<8x32xf32>
    %c24_260 = arith.constant 24 : index
    %c0_261 = arith.constant 0 : index
    %689 = vector.load %arg7[%c24_260, %c0_261] : memref<64x128xf32, #tpu.memory_space<vmem>>, vector<8x32xf32>
    tpu.vector_store %arg7[%c24_260, %c0_261], %688 {strides = array<i32>} : memref<64x128xf32, #tpu.memory_space<vmem>>, vector<8x32xf32>,
    %c1144 = arith.constant 1144 : index
    %c0_262 = arith.constant 0 : index
    %690 = vector.load %arg6[%c1144, %c0_262] : memref<1272x128xf32, #tpu.memory_space<vmem>>, vector<32x32xf32>
    %c1176 = arith.constant 1176 : index
    %c0_263 = arith.constant 0 : index
    %691 = vector.load %arg6[%c1176, %c0_263] : memref<1272x128xf32, #tpu.memory_space<vmem>>, vector<1x32xf32>
    %cst_264 = arith.constant dense<0.000000e+00> : vector<8x32xf32>
    %692 = tpu.matmul %361, %690, %cst_264 {dimension_numbers = #tpu.dot_dimension_numbers<[1], [0], [0], [1], [0, 0, 1, 1], [], []>} : vector<8x32xf32>, vector<32x32xf32>, vector<8x32xf32> -> vector<8x32xf32>
    %693 = vector.broadcast %691 : vector<1x32xf32> to vector<8x32xf32>
    %694 = arith.addf %692, %693 : vector<8x32xf32>
    %695 = vector.shape_cast %634 : vector<64x32xf32> to vector<8x8x32xf32>
    %696 = vector.shape_cast %694 : vector<8x32xf32> to vector<8x1x32xf32>
    %697 = vector.broadcast %696 : vector<8x1x32xf32> to vector<8x8x32xf32>
    %698 = arith.addf %695, %697 : vector<8x8x32xf32>
    %699 = vector.shape_cast %698 : vector<8x8x32xf32> to vector<64x32xf32>
    %c1184 = arith.constant 1184 : index
    %c0_265 = arith.constant 0 : index
    %700 = vector.load %arg6[%c1184, %c0_265] : memref<1272x128xf32, #tpu.memory_space<vmem>>, vector<1x32xf32>
    %c1192 = arith.constant 1192 : index
    %c0_266 = arith.constant 0 : index
    %701 = vector.load %arg6[%c1192, %c0_266] : memref<1272x128xf32, #tpu.memory_space<vmem>>, vector<1x32xf32>
    %cst_267 = arith.constant dense<0.000000e+00> : vector<64xf32>
    %702 = vector.multi_reduction <add>, %699, %cst_267 [1] : vector<64x32xf32> to vector<64xf32>
    %703 = vector.shape_cast %702 : vector<64xf32> to vector<64x1xf32>
    %cst_268 = arith.constant 3.200000e+01 : f32
    %704 = vector.broadcast %cst_268 : f32 to vector<64x1xf32>
    %705 = arith.divf %703, %704 : vector<64x1xf32>
    %706 = vector.broadcast %705 : vector<64x1xf32> to vector<64x32xf32>
    %707 = arith.subf %699, %706 : vector<64x32xf32>
    %708 = arith.mulf %707, %707 : vector<64x32xf32>
    %cst_269 = arith.constant dense<0.000000e+00> : vector<64xf32>
    %709 = vector.multi_reduction <add>, %708, %cst_269 [1] : vector<64x32xf32> to vector<64xf32>
    %710 = vector.shape_cast %709 : vector<64xf32> to vector<64x1xf32>
    %cst_270 = arith.constant 3.200000e+01 : f32
    %711 = vector.broadcast %cst_270 : f32 to vector<64x1xf32>
    %712 = arith.divf %710, %711 : vector<64x1xf32>
    %713 = vector.broadcast %705 : vector<64x1xf32> to vector<64x32xf32>
    %714 = arith.subf %699, %713 : vector<64x32xf32>
    %cst_271 = arith.constant 9.99999974E-6 : f32
    %715 = vector.broadcast %cst_271 : f32 to vector<64x1xf32>
    %716 = arith.addf %712, %715 : vector<64x1xf32>
    %717 = math.rsqrt %716 : vector<64x1xf32>
    %718 = vector.broadcast %717 : vector<64x1xf32> to vector<64x32xf32>
    %719 = arith.mulf %714, %718 : vector<64x32xf32>
    %720 = vector.broadcast %700 : vector<1x32xf32> to vector<64x32xf32>
    %721 = arith.mulf %719, %720 : vector<64x32xf32>
    %722 = vector.broadcast %701 : vector<1x32xf32> to vector<64x32xf32>
    %723 = arith.addf %721, %722 : vector<64x32xf32>
    %c1200 = arith.constant 1200 : index
    %c0_272 = arith.constant 0 : index
    %724 = vector.load %arg6[%c1200, %c0_272] : memref<1272x128xf32, #tpu.memory_space<vmem>>, vector<32x8xf32>
    %c1232 = arith.constant 1232 : index
    %c0_273 = arith.constant 0 : index
    %725 = vector.load %arg6[%c1232, %c0_273] : memref<1272x128xf32, #tpu.memory_space<vmem>>, vector<1x8xf32>
    %cst_274 = arith.constant dense<0.000000e+00> : vector<64x8xf32>
    %726 = tpu.matmul %723, %724, %cst_274 {dimension_numbers = #tpu.dot_dimension_numbers<[1], [0], [0], [1], [0, 0, 1, 1], [], []>} : vector<64x32xf32>, vector<32x8xf32>, vector<64x8xf32> -> vector<64x8xf32>
    %727 = vector.broadcast %725 : vector<1x8xf32> to vector<64x8xf32>
    %728 = arith.addf %726, %727 : vector<64x8xf32>
    %cst_275 = arith.constant 0.000000e+00 : f32
    %729 = vector.broadcast %cst_275 : f32 to vector<64x8xf32>
    %730 = arith.maximumf %728, %729 : vector<64x8xf32>
    %c1240 = arith.constant 1240 : index
    %c0_276 = arith.constant 0 : index
    %731 = vector.load %arg6[%c1240, %c0_276] : memref<1272x128xf32, #tpu.memory_space<vmem>>, vector<8x32xf32>
    %c1248 = arith.constant 1248 : index
    %c0_277 = arith.constant 0 : index
    %732 = vector.load %arg6[%c1248, %c0_277] : memref<1272x128xf32, #tpu.memory_space<vmem>>, vector<1x32xf32>
    %cst_278 = arith.constant dense<0.000000e+00> : vector<64x32xf32>
    %733 = tpu.matmul %730, %731, %cst_278 {dimension_numbers = #tpu.dot_dimension_numbers<[1], [0], [0], [1], [0, 0, 1, 1], [], []>} : vector<64x8xf32>, vector<8x32xf32>, vector<64x32xf32> -> vector<64x32xf32>
    %734 = vector.broadcast %732 : vector<1x32xf32> to vector<64x32xf32>
    %735 = arith.addf %733, %734 : vector<64x32xf32>
    %736 = arith.addf %723, %735 : vector<64x32xf32>
    %c1256 = arith.constant 1256 : index
    %c0_279 = arith.constant 0 : index
    %737 = vector.load %arg6[%c1256, %c0_279] : memref<1272x128xf32, #tpu.memory_space<vmem>>, vector<1x32xf32>
    %c1264 = arith.constant 1264 : index
    %c0_280 = arith.constant 0 : index
    %738 = vector.load %arg6[%c1264, %c0_280] : memref<1272x128xf32, #tpu.memory_space<vmem>>, vector<1x32xf32>
    %cst_281 = arith.constant dense<0.000000e+00> : vector<64xf32>
    %739 = vector.multi_reduction <add>, %736, %cst_281 [1] : vector<64x32xf32> to vector<64xf32>
    %740 = vector.shape_cast %739 : vector<64xf32> to vector<64x1xf32>
    %cst_282 = arith.constant 3.200000e+01 : f32
    %741 = vector.broadcast %cst_282 : f32 to vector<64x1xf32>
    %742 = arith.divf %740, %741 : vector<64x1xf32>
    %743 = vector.broadcast %742 : vector<64x1xf32> to vector<64x32xf32>
    %744 = arith.subf %736, %743 : vector<64x32xf32>
    %745 = arith.mulf %744, %744 : vector<64x32xf32>
    %cst_283 = arith.constant dense<0.000000e+00> : vector<64xf32>
    %746 = vector.multi_reduction <add>, %745, %cst_283 [1] : vector<64x32xf32> to vector<64xf32>
    %747 = vector.shape_cast %746 : vector<64xf32> to vector<64x1xf32>
    %cst_284 = arith.constant 3.200000e+01 : f32
    %748 = vector.broadcast %cst_284 : f32 to vector<64x1xf32>
    %749 = arith.divf %747, %748 : vector<64x1xf32>
    %750 = vector.broadcast %742 : vector<64x1xf32> to vector<64x32xf32>
    %751 = arith.subf %736, %750 : vector<64x32xf32>
    %cst_285 = arith.constant 9.99999974E-6 : f32
    %752 = vector.broadcast %cst_285 : f32 to vector<64x1xf32>
    %753 = arith.addf %749, %752 : vector<64x1xf32>
    %754 = math.rsqrt %753 : vector<64x1xf32>
    %755 = vector.broadcast %754 : vector<64x1xf32> to vector<64x32xf32>
    %756 = arith.mulf %751, %755 : vector<64x32xf32>
    %757 = vector.broadcast %737 : vector<1x32xf32> to vector<64x32xf32>
    %758 = arith.mulf %756, %757 : vector<64x32xf32>
    %759 = vector.broadcast %738 : vector<1x32xf32> to vector<64x32xf32>
    %760 = arith.addf %758, %759 : vector<64x32xf32>
    %cst_286 = arith.constant dense<0.000000e+00> : vector<64x32xf32>
    %761 = tpu.matmul %760, %399, %cst_286 {dimension_numbers = #tpu.dot_dimension_numbers<[1], [0], [0], [1], [0, 0, 1, 1], [], []>} : vector<64x32xf32>, vector<32x32xf32>, vector<64x32xf32> -> vector<64x32xf32>
    %cst_287 = arith.constant dense<0.000000e+00> : vector<64x32xf32>
    %762 = tpu.matmul %388, %400, %cst_287 {dimension_numbers = #tpu.dot_dimension_numbers<[1], [0], [0], [1], [0, 0, 1, 1], [], []>} : vector<64x32xf32>, vector<32x32xf32>, vector<64x32xf32> -> vector<64x32xf32>
    %763 = arith.addf %761, %762 : vector<64x32xf32>
    %764 = vector.broadcast %401 : vector<1x32xf32> to vector<64x32xf32>
    %765 = arith.addf %763, %764 : vector<64x32xf32>
    %cst_288 = arith.constant 0.000000e+00 : f32
    %766 = vector.broadcast %cst_288 : f32 to vector<64x32xf32>
    %767 = arith.maximumf %765, %766 : vector<64x32xf32>
    %cst_289 = arith.constant dense<0.000000e+00> : vector<64x32xf32>
    %768 = tpu.matmul %767, %402, %cst_289 {dimension_numbers = #tpu.dot_dimension_numbers<[1], [0], [0], [1], [0, 0, 1, 1], [], []>} : vector<64x32xf32>, vector<32x32xf32>, vector<64x32xf32> -> vector<64x32xf32>
    %769 = vector.broadcast %403 : vector<1x32xf32> to vector<64x32xf32>
    %770 = arith.addf %768, %769 : vector<64x32xf32>
    %cst_290 = arith.constant dense<0.000000e+00> : vector<64x16xf32>
    %771 = tpu.matmul %770, %404, %cst_290 {dimension_numbers = #tpu.dot_dimension_numbers<[1], [0], [0], [1], [0, 0, 1, 1], [], []>} : vector<64x32xf32>, vector<32x16xf32>, vector<64x16xf32> -> vector<64x16xf32>
    %772 = vector.broadcast %405 : vector<1x16xf32> to vector<64x16xf32>
    %773 = arith.addf %771, %772 : vector<64x16xf32>
    %cst_291 = arith.constant 0.000000e+00 : f32
    %774 = vector.broadcast %cst_291 : f32 to vector<64x16xf32>
    %775 = arith.maximumf %773, %774 : vector<64x16xf32>
    %776 = vector.shape_cast %775 : vector<64x16xf32> to vector<8x8x16xf32>
    %777 = vector.shape_cast %406 : vector<1x16xf32> to vector<1x1x16xf32>
    %778 = vector.broadcast %777 : vector<1x1x16xf32> to vector<8x8x16xf32>
    %779 = arith.mulf %776, %778 : vector<8x8x16xf32>
    %cst_292 = arith.constant dense<0.000000e+00> : vector<8x8xf32>
    %780 = vector.multi_reduction <add>, %779, %cst_292 [2] : vector<8x8x16xf32> to vector<8x8xf32>
    %781 = vector.broadcast %407 : vector<1x1xf32> to vector<8x8xf32>
    %782 = arith.addf %780, %781 : vector<8x8xf32>
    %c56 = arith.constant 56 : index
    %c0_293 = arith.constant 0 : index
    %783 = vector.load %arg7[%c56, %c0_293] : memref<64x128xf32, #tpu.memory_space<vmem>>, vector<8x8xf32>
    tpu.vector_store %arg7[%c56, %c0_293], %782 {strides = array<i32>} : memref<64x128xf32, #tpu.memory_space<vmem>>, vector<8x8xf32>,
    %cst_294 = arith.constant dense<0.000000e+00> : vector<64x8xf32>
    %784 = tpu.matmul %770, %408, %cst_294 {dimension_numbers = #tpu.dot_dimension_numbers<[1], [0], [0], [1], [0, 0, 1, 1], [], []>} : vector<64x32xf32>, vector<32x8xf32>, vector<64x8xf32> -> vector<64x8xf32>
    %785 = vector.broadcast %409 : vector<1x8xf32> to vector<64x8xf32>
    %786 = arith.addf %784, %785 : vector<64x8xf32>
    %cst_295 = arith.constant 0.000000e+00 : f32
    %787 = vector.broadcast %cst_295 : f32 to vector<64x8xf32>
    %788 = arith.maximumf %786, %787 : vector<64x8xf32>
    %cst_296 = arith.constant dense<0.000000e+00> : vector<64x32xf32>
    %789 = tpu.matmul %788, %410, %cst_296 {dimension_numbers = #tpu.dot_dimension_numbers<[1], [0], [0], [1], [0, 0, 1, 1], [], []>} : vector<64x8xf32>, vector<8x32xf32>, vector<64x32xf32> -> vector<64x32xf32>
    %790 = vector.broadcast %411 : vector<1x32xf32> to vector<64x32xf32>
    %791 = arith.addf %789, %790 : vector<64x32xf32>
    %792 = vector.shape_cast %791 : vector<64x32xf32> to vector<8x8x32xf32>
    %cst_297 = arith.constant dense<0.000000e+00> : vector<8x32xf32>
    %793 = vector.multi_reduction <add>, %792, %cst_297 [0] : vector<8x8x32xf32> to vector<8x32xf32>
    %794 = arith.addf %793, %359 : vector<8x32xf32>
    %cst_298 = arith.constant dense<0.000000e+00> : vector<8x32xf32>
    %795 = tpu.matmul %794, %412, %cst_298 {dimension_numbers = #tpu.dot_dimension_numbers<[1], [0], [0], [1], [0, 0, 1, 1], [], []>} : vector<8x32xf32>, vector<32x32xf32>, vector<8x32xf32> -> vector<8x32xf32>
    %796 = vector.broadcast %413 : vector<1x32xf32> to vector<8x32xf32>
    %797 = arith.addf %795, %796 : vector<8x32xf32>
    %cst_299 = arith.constant dense<0.000000e+00> : vector<8xf32>
    %798 = vector.multi_reduction <add>, %797, %cst_299 [1] : vector<8x32xf32> to vector<8xf32>
    %799 = vector.shape_cast %798 : vector<8xf32> to vector<8x1xf32>
    %cst_300 = arith.constant 3.200000e+01 : f32
    %800 = vector.broadcast %cst_300 : f32 to vector<8x1xf32>
    %801 = arith.divf %799, %800 : vector<8x1xf32>
    %802 = vector.broadcast %801 : vector<8x1xf32> to vector<8x32xf32>
    %803 = arith.subf %797, %802 : vector<8x32xf32>
    %804 = arith.mulf %803, %803 : vector<8x32xf32>
    %cst_301 = arith.constant dense<0.000000e+00> : vector<8xf32>
    %805 = vector.multi_reduction <add>, %804, %cst_301 [1] : vector<8x32xf32> to vector<8xf32>
    %806 = vector.shape_cast %805 : vector<8xf32> to vector<8x1xf32>
    %cst_302 = arith.constant 3.200000e+01 : f32
    %807 = vector.broadcast %cst_302 : f32 to vector<8x1xf32>
    %808 = arith.divf %806, %807 : vector<8x1xf32>
    %809 = vector.broadcast %801 : vector<8x1xf32> to vector<8x32xf32>
    %810 = arith.subf %797, %809 : vector<8x32xf32>
    %cst_303 = arith.constant 9.99999974E-6 : f32
    %811 = vector.broadcast %cst_303 : f32 to vector<8x1xf32>
    %812 = arith.addf %808, %811 : vector<8x1xf32>
    %813 = math.rsqrt %812 : vector<8x1xf32>
    %814 = vector.broadcast %813 : vector<8x1xf32> to vector<8x32xf32>
    %815 = arith.mulf %810, %814 : vector<8x32xf32>
    %816 = vector.broadcast %414 : vector<1x32xf32> to vector<8x32xf32>
    %817 = arith.mulf %815, %816 : vector<8x32xf32>
    %818 = vector.broadcast %415 : vector<1x32xf32> to vector<8x32xf32>
    %819 = arith.addf %817, %818 : vector<8x32xf32>
    %cst_304 = arith.constant 0.000000e+00 : f32
    %820 = vector.broadcast %cst_304 : f32 to vector<8x32xf32>
    %821 = arith.maximumf %819, %820 : vector<8x32xf32>
    %cst_305 = arith.constant dense<0.000000e+00> : vector<8x32xf32>
    %822 = tpu.matmul %821, %416, %cst_305 {dimension_numbers = #tpu.dot_dimension_numbers<[1], [0], [0], [1], [0, 0, 1, 1], [], []>} : vector<8x32xf32>, vector<32x32xf32>, vector<8x32xf32> -> vector<8x32xf32>
    %823 = vector.broadcast %417 : vector<1x32xf32> to vector<8x32xf32>
    %824 = arith.addf %822, %823 : vector<8x32xf32>
    %c32_306 = arith.constant 32 : index
    %c0_307 = arith.constant 0 : index
    %825 = vector.load %arg7[%c32_306, %c0_307] : memref<64x128xf32, #tpu.memory_space<vmem>>, vector<8x32xf32>
    tpu.vector_store %arg7[%c32_306, %c0_307], %824 {strides = array<i32>} : memref<64x128xf32, #tpu.memory_space<vmem>>, vector<8x32xf32>,
    return
  }
}

</mosaic_0001>

<bundles_post_ra>
// kernel: _grae_core.1
= control target key start
LH: loop header
LB: loop body
LE: loop exit
PB: predicated region body
PF: predicated region fallthrough
CT: control target
= control target key end

     0   :  { %12 = vsyncpa [#allocation3], 0  ;;  %s23542_s24 = smov [#allocation2]   ;;  %s27022_s0 = inlined_call_operand.vmem [shape: f32[8,18], index: 0, kind: input, shape index: {}]   ;;  %s27023_s1 = inlined_call_operand.vmem [shape: f32[64,19], index: 1, kind: input, shape index: {}]   ;;  %s27024_s2 = inlined_call_operand.vmem [shape: f32[64,1], index: 2, kind: input, shape index: {}]   ;;  %s27025_s3 = inlined_call_operand.vmem [shape: f32[64,12], index: 3, kind: input, shape index: {}]   ;;  %s27026_s4 = inlined_call_operand.vmem [shape: f32[64,1], index: 4, kind: input, shape index: {}]   ;;  %s27027_s5 = inlined_call_operand.vmem [shape: f32[8,32], index: 5, kind: input, shape index: {}]   ;;  %s27028_s6 = inlined_call_operand.hbm [shape: f32[1272,128], index: 6, kind: input, shape index: {}]   ;;  %s27029_s7 = inlined_call_operand.vmem [shape: f32[64,128], index: 7, kind: output, shape index: {}]  }
   0x1   :  { %s30_s25 = sshll.u32 %s23542_s24, 4  ;;  %s23518_s28 = scalar_lea.hbm %s27028_s6, 20352  ;;  %s31_s25 = int_to_ptr.vmem [resolvable:$true] %s30_s25 }
   0x2   :  { %p23519_p0 = scmp.ne.s32.totalorder %s27028_s6, %s23518_s28  ;;  %p23522_p1 = scmp.lt.u32.totalorder %s23518_s28, %s27028_s6 }
   0x4   :  { %p23524_p2 = pnand %p23522_p1, %p23519_p0 }
   0x6   :  { %23527 = shalt.err (!%p23524_p2)
}
   0x7   :  { %s23528_s10 = scalar_lea.vmem %s31_s25, 20352  ;;  %p23533_p4 = scmp.lt.s32.totalorder %s31_s25, %s31_s25 }
   0x8   :  { %p23529_p3 = scmp.ne.s32.totalorder %s31_s25, %s23528_s10  ;;  %p23534_p5 = scmp.lt.s32.totalorder %s23528_s10, %s23528_s10 }
   0xa   :  { %p23535_p6 = por %p23534_p5, %p23533_p4 }
   0xc   :  { %p23536_p7 = pnand %p23535_p6, %p23529_p3 }
   0xe   :  { %23539 = shalt.err (!%p23536_p7)
}
   0xf   :  { %s23543_s11 = smov 128   ;;  %s23544_s12 = smov 8  }
  0x10   :  { %36 = dma.hbm_to_vmem [thread:$0]  %s27028_s6, 20352, %s31_s25, [#allocation3], %s23543_s11, %s23543_s11, %s23544_s12  }
  0x11   :  { %23540 = dma.done.wait [#allocation3], 20352  }
  0x12   :  { %23541 = vsyncadd [#allocation3], 4294946944  ;;  %v27030_v0 = vmov 0.0|0.0   ;;  %v23546_v1 = vmov 0.0   ;;  %vm23547_vm0 = vmmov 0   ;;  %v49_v2 = vld [vmem:[#allocation2] sm:$0xff] }
  0x13   :  { %22662 = vmatprep.subr.bf16.mxu0 %v27030_v0  ;;  %40 = vst [vmem:[%s27029_s7] sm:$0xff] %v23546_v1  ;;  %41 = vst [vmem:[%s27029_s7 + $0x8] sm:$0xff] %v23546_v1  ;;  %21210 = vmatprep.mubr.msk.f32.mxu0 %vm23547_vm0, %v23546_v1  ;;  %v50_v3 = vld [vmem:[#allocation2 + $0x8] sm:$0xff]  ;;  %v51_v5 = vld [vmem:[#allocation2 + $0x10] sm:$0x3]  ;;  %vm61_vm1 = vcmask 1041408   ;;  %vm57_vm2 = vcmask 146432  }
  0x14   :  { %42 = vst [vmem:[%s27029_s7 + $0x10] sm:$0xff] %v23546_v1  ;;  %43 = vst [vmem:[%s27029_s7 + $0x18] sm:$0xff] %v23546_v1  ;;  %21213 = vmatprep.subr.mxu1 %v23546_v1  ;;  %21215 = vmatprep.mubr.msk.f32.mxu1 %vm23547_vm0, %v23546_v1  ;;  %v22663_v4 = vpack.c.bf16 %v50_v3, %v49_v2  ;;  %v48_v6 = vld [vmem:[%s27022_s0] sm:$0xff]  ;;  %v226_v7 = vld [vmem:[#allocation2 + $0x30] sm:$0xff]  ;;  %vm142_vm3 = vcmask 64512   ;;  %vm234_vm4 = vcmask 154624  }
  0x15   :  { %44 = vst [vmem:[%s27029_s7 + $0x20] sm:$0xff] %v23546_v1  ;;  %45 = vst [vmem:[%s27029_s7 + $0x28] sm:$0xff] %v23546_v1  ;;  %v227_v8 = vld [vmem:[#allocation2 + $0x38] sm:$0xff]  ;;  %v136_v9 = vld [vmem:[#allocation2 + $0x20] sm:$0xff]  ;;  %vm259_vm5 = vcmask 1042432   ;;  %v23548_v28 = vmov 0  }
  0x16   :  { %46 = vst [vmem:[%s27029_s7 + $0x30] sm:$0xff] %v23546_v1  ;;  %47 = vst [vmem:[%s27029_s7 + $0x38] sm:$0xff] %v23546_v1  ;;  %22664 = vmatpush3.bf16.msra.mxu0 %v22663_v4  ;;  %v22665_v10 = vpack.c.bf16 %v227_v8, %v226_v7  ;;  %21214 = vmatpush3.msra.mxu1 %v136_v9  ;;  %v19866_v11 = vld [vmem:[#allocation2 + $0x18] ss:$0 sm:$0xff]  ;;  %v218_v16 = vld [vmem:[%s27023_s1] sm:$0xff]  ;;  %vm216_vm6 = vcmask 261120  }
  0x17   :  { %21208 = vmatprep.subr.mxu0 %v23546_v1  ;;  %v228_v17 = vld [vmem:[#allocation2 + $0x40] sm:$0x7]  ;;  %v219_v18 = vld [vmem:[%s27023_s1 + $0x8] sm:$0xff]  ;;  %v220_v19 = vld [vmem:[%s27023_s1 + $0x10] sm:$0xff]  ;;  %23000 = vset.pattern.permute.xlu1 %v23548_v28  ;;  %vm733_vm7 = vcmask 1041409   ;;  %vm735_vm8 = vcmask 1042434  }
  0x18   :  { %22666 = vmatprep.subr.bf16.mxu1 %v22665_v10  ;;  %v221_v20 = vld [vmem:[%s27023_s1 + $0x18] sm:$0xff]  ;;  %v222_v21 = vld [vmem:[%s27023_s1 + $0x20] sm:$0xff]  ;;  %v223_v22 = vld [vmem:[%s27023_s1 + $0x28] sm:$0xff]  ;;  %22999 = vset.pattern.permute.xlu0 %v23548_v28  ;;  %vm737_vm9 = vcmask 1043459   ;;  %vm739_vm10 = vcmask 1044484   ;;  %vm741_vm11 = vcmask 1045509  }
  0x19   :  { %v224_v23 = vld [vmem:[%s27023_s1 + $0x30] sm:$0xff]  ;;  %v225_v24 = vld [vmem:[%s27023_s1 + $0x38] sm:$0xff]  ;;  %v511_v27 = vld [vmem:[%s27024_s2] sm:$0xff]  ;;  %vm743_vm12 = vcmask 1046534   ;;  %vm745_vm13 = vcmask 1047559   ;;  %s23550_s18 = smov 96  }
  0x1a   :  { %21209 = vmatpush3.msk.msra.mxu0 %vm61_vm1, %v51_v5  ;;  %v376_v25 = vld [vmem:[#allocation2 + $0x50] sm:$0xff]  ;;  %522 = vperm.xlu0 %22999, %v511_v27   ;;  %v514_v29 = vld [vmem:[%s27024_s2 + $0x18] sm:$0xff]  ;;  %v512_v30 = vld [vmem:[%s27024_s2 + $0x8] sm:$0xff]  ;;  %vm1553_vm14 = vcmask 31744   ;;  %s23551_s19 = smov 64   ;;  %s23552_s20 = smov 92  }
  0x1b   :  { %21211 = vmatmul.mubr.msk.f32.vlgmr.msra.gmra.mrb[0].mxu0 %vm57_vm2, %v48_v6  ;;  %21236 = vmatprep.subr.mxu0 %v376_v25  ;;  %v513_v26 = vld [vmem:[%s27024_s2 + $0x10] sm:$0xff]  ;;  %v516_v31 = vld [vmem:[%s27024_s2 + $0x28] sm:$0xff]  ;;  %v515_v32 = vld [vmem:[%s27024_s2 + $0x20] sm:$0xff]  ;;  %s23553_s21 = smov 124   ;;  %s23554_s6 = smov 60   ;;  %vm4225_vm15 = vcmask 1043456  }
  0x1c   :  { %21237 = vmatpush3.msra.mxu0 %v376_v25  ;;  %532 = vperm.xlu1 %23000, %v513_v26   ;;  %v518_v33 = vld [vmem:[%s27024_s2 + $0x38] sm:$0xff]  ;;  %v517_v34 = vld [vmem:[%s27024_s2 + $0x30] sm:$0xff]  ;;  %v19869_v35 = vld [vmem:[#allocation2 + $0x28] ss:$0 sm:$0xff]  ;;  %s23555_s22 = smov 88   ;;  %s23556_s23 = smov 120  }
  0x1d   :  { %v19871_v39 = vld [vmem:[#allocation2 + $0x48] ss:$0 sm:$0xff]  ;;  %v19890_v4 = vld [vmem:[#allocation2 + $0x60] ss:$0 sm:$0xff]  ;;  %s23557_s26 = smov 56   ;;  %s23558_s1 = smov 84  }
  0x1e   :  { %527 = vperm.xlu0 %22999, %v512_v30   ;;  %v19891_v8 = vld [vmem:[#allocation2 + $0x68] ss:$0 sm:$0xff]  ;;  %s23559_s27 = smov 116   ;;  %s23560_s28 = smov 52   ;;  %vm14151_vm1 = vcmask 97280   ;;  %vm23573_vm2 = vmmov 1  }
  0x1f   :  { %s23561_s29 = smov 80   ;;  %s23562_s30 = smov 112  }
  0x20   :  { %537 = vperm.xlu1 %23000, %v514_v29   ;;  %s23563_s10 = smov 48   ;;  %s23564_s0 = smov 76  }
  0x21   :  { %s23565_s11 = smov 108   ;;  %s23566_s12 = smov 44  }
  0x22   :  { %542 = vperm.xlu0 %22999, %v515_v32   ;;  %s23567_s13 = smov 72   ;;  %s23568_s14 = smov 104  }
  0x23   :  { %s23569_s16 = smov 40   ;;  %s23570_s17 = smov 68  }
  0x24   :  { %547 = vperm.xlu1 %23000, %v516_v31  }
  0x26   :  { %552 = vperm.xlu0 %22999, %v517_v34  }
  0x28   :  { %557 = vperm.xlu1 %23000, %v518_v33  }
  0x99   :  { %v523_v3 = vpop.permute.xlu0 %522 }
  0x9a   :  { %v564_v9 = vmul.f32 %v19890_v4, %v523_v3 }
  0x9b   :  { %v533_v2 = vpop.permute.xlu1 %532 }
  0x9d   :  { %v528_v6 = vpop.permute.xlu0 %527 }
  0x9e   :  { %v565_v7 = vmul.f32 %v19890_v4, %v528_v6 }
  0x9f   :  { %v538_v5 = vpop.permute.xlu1 %537 }
  0xee   :  { %v131_v12 = vpop.f32.mrb[0].mxu0 }
  0xef   :  { %v132_v13 = vadd.f32 %v19866_v11, %v131_v12  ;;  %v21212_v14 = vpop.f32.mrb[1].mxu0  ;;  %v577_v11 = vadd.f32 %v19891_v8, %v564_v9  ;;  %v548_v12 = vpop.permute.xlu1 %547 }
  0xf0   :  { %v543_v14 = vpop.permute.xlu0 %542 }
  0xf1   :  { %v135_v15 = vmax.f32 %v132_v13, 0.0  ;;  %v567_v13 = vmul.f32 %v19890_v4, %v538_v5 }
  0xf3   :  { %21216 = vmatmul.mubr.msk.f32.vlgmr.msra.gmra.mrb[0].mxu1 %vm142_vm3, %v135_v15  ;;  %v566_v15 = vmul.f32 %v19890_v4, %v533_v2 }
  0xf4   :  { %22668 = vmatpush3.bf16.msra.mxu1 %v22665_v10  ;;  %21224 = vmatprep.mubr.msk.f32.mxu1 %vm234_vm4, %v218_v16  ;;  %v578_v10 = vadd.f32 %v19891_v8, %v565_v7 }
  0xf5   :  { %21222 = vmatprep.subr.msk.mxu1 %vm259_vm5, %v228_v17 }
  0xf6   :  { %v19893_v16 = vmul.f32 -1.442695, %v578_v10 }
  0xf8   :  { %21223 = vmatpush3.msk.msra.mxu1 %vm259_vm5, %v228_v17  ;;  %v19892_v17 = vmul.f32 -1.442695, %v577_v11  ;;  %23001 = vpow2.f32 %v19893_v16 }
  0xf9   :  { %21225 = vmatmul.mubr.msk.f32.vlgmr.msra.gmra.mrb[2].mxu1 %vm234_vm4, %v219_v18  ;;  %22669 = vmatprep.subr.bf16.mxu1 %v27030_v0  ;;  %v580_v18 = vadd.f32 %v19891_v8, %v567_v13 }
  0xfa   :  { %21227 = vmatprep.mubr.msk.f32.mxu1 %vm234_vm4, %v220_v19  ;;  %v569_v19 = vmul.f32 %v19890_v4, %v548_v12  ;;  %23003 = vpow2.f32 %v19892_v17 }
  0xfc   :  { %v582_v25 = vadd.f32 %v19891_v8, %v569_v19 }
  0xfd   :  { %21228 = vmatmul.mubr.msk.f32.gmra.mrb[4].mxu1 %vm234_vm4, %v221_v20  ;;  %v579_v20 = vadd.f32 %v19891_v8, %v566_v15 }
  0xfe   :  { %21230 = vmatprep.mubr.msk.f32.mxu1 %vm234_vm4, %v222_v21  ;;  %v568_v21 = vmul.f32 %v19890_v4, %v543_v14  ;;  %v19897_v30 = vmul.f32 -1.442695, %v582_v25 }
  0xff   :  { %v19894_v27 = vmul.f32 -1.442695, %v579_v20 }
 0x100   :  { %v581_v28 = vadd.f32 %v19891_v8, %v568_v21 }
 0x101   :  { %21231 = vmatmul.mubr.msk.f32.gmra.mrb[6].mxu1 %vm234_vm4, %v223_v22  ;;  %v558_v22 = vpop.permute.xlu1 %557 }
 0x102   :  { %21233 = vmatprep.mubr.msk.f32.mxu1 %vm234_vm4, %v224_v23  ;;  %v553_v23 = vpop.permute.xlu0 %552  ;;  %v571_v26 = vmul.f32 %v19890_v4, %v558_v22  ;;  %v19896_v32 = vmul.f32 -1.442695, %v581_v28  ;;  %v23002_v34 = vpop.eup %23001 }
 0x103   :  { %v570_v29 = vmul.f32 %v19890_v4, %v553_v23 }
 0x104   :  { %v584_v31 = vadd.f32 %v19891_v8, %v571_v26 }
 0x105   :  { %21234 = vmatmul.mubr.msk.f32.gmra.mrb[8].mxu1 %vm234_vm4, %v225_v24  ;;  %v19895_v24 = vmul.f32 -1.442695, %v580_v18  ;;  %v583_v33 = vadd.f32 %v19891_v8, %v570_v29  ;;  %vm22712_vm4 = vmpackc.low %vm4225_vm15, %vm23573_vm2 }
 0x106   :  { %21258 = vmatprep.mubr.msk.f32.mxu1 %vm23547_vm0, %v23546_v1  ;;  %v678_v1 = vld [vmem:[#allocation2 + $0x78] sm:$0x1] }
 0x107   :  { %22963 = vpush %v678_v1  ;;  %23005 = vpow2.f32 %v19895_v24 }
 0x108   :  { %23007 = vpow2.f32 %v19894_v27 }
 0x109   :  { %23009 = vpow2.f32 %v19897_v30 }
 0x10a   :  { %23011 = vpow2.f32 %v19896_v32 }
 0x138   :  { %s22964_s2 = spop %22963 }
 0x1c6   :  { %v212_v36 = vpop.f32.mrb[0].mxu1 }
 0x1c7   :  { %v23715_v37 = vadd.f32 %v19869_v35, %v212_v36  ;;  %v21217_v38 = vpop.f32.mrb[1].mxu1  ;;  %v19899_v35 = vmul.f32 -1.442695, %v584_v31  ;;  %v23004_v36 = vpop.eup %23003 }
 0x1c8   :  { %v19898_v38 = vmul.f32 -1.442695, %v583_v33 }
 0x1c9   :  { %217 = vst.msk [vmem:[%s27029_s7] sm:$0xff] %vm216_vm6, %v23715_v37  ;;  %23013 = vpow2.f32 %v19899_v35 }
 0x1ca   :  { %23015 = vpow2.f32 %v19898_v38 }
 0x1cc   :  { %v21226_v40 = vpop.f32.mrb[2].mxu1 }
 0x1cd   :  { %v335_v41 = vadd.f32 %v21226_v40, %v19871_v39  ;;  %v329_v42 = vpop.f32.mrb[3].mxu1  ;;  %v609_v40 = vadd.f32 1.0, %v23004_v36 }
 0x1ce   :  { %v330_v43 = vadd.f32 %v19871_v39, %v329_v42 }
 0x1cf   :  { %v369_v46 = vmax.f32 %v335_v41, 0.0  ;;  %v23006_v41 = vpop.eup %23005 }
 0x1d0   :  { %v368_v44 = vmax.f32 %v330_v43, 0.0  ;;  %v21229_v45 = vpop.f32.mrb[4].mxu1  ;;  %v23008_v42 = vpop.eup %23007  ;;  %v612_v43 = vadd.f32 1.0, %v23006_v41  ;;  %v699_v41 = vlaneseq }
 0x1d1   :  { %v345_v47 = vadd.f32 %v21229_v45, %v19871_v39  ;;  %v339_v48 = vpop.f32.mrb[5].mxu1  ;;  %v611_v45 = vadd.f32 1.0, %v23008_v42 }
 0x1d2   :  { %v340_v49 = vadd.f32 %v19871_v39, %v339_v48  ;;  %21238 = vmatprep.mubr.msk.f32.mxu0 %vm142_vm3, %v368_v44  ;;  %v23010_v44 = vpop.eup %23009  ;;  %v700_v42 = vand.u32 127, %v699_v41 }
 0x1d3   :  { %v371_v50 = vmax.f32 %v345_v47, 0.0  ;;  %21239 = vmatmul.mubr.msk.f32.vlgmr.msra.gmra.mrb[2].mxu0 %vm142_vm3, %v369_v46  ;;  %v23012_v46 = vpop.eup %23011  ;;  %v614_v47 = vadd.f32 1.0, %v23010_v44 }
 0x1d4   :  { %v370_v51 = vmax.f32 %v340_v49, 0.0  ;;  %v21232_v52 = vpop.f32.mrb[6].mxu1  ;;  %v23014_v48 = vpop.eup %23013  ;;  %v613_v49 = vadd.f32 1.0, %v23012_v46 }
 0x1d5   :  { %v355_v53 = vadd.f32 %v21232_v52, %v19871_v39  ;;  %v349_v54 = vpop.f32.mrb[7].mxu1 }
 0x1d6   :  { %v350_v55 = vadd.f32 %v19871_v39, %v349_v54  ;;  %21241 = vmatprep.mubr.msk.f32.mxu0 %vm142_vm3, %v370_v51  ;;  %v19881_v51 = vld [vmem:[#allocation2 + $0x58] ss:$0 sm:$0xff] }
 0x1d7   :  { %v373_v56 = vmax.f32 %v355_v53, 0.0  ;;  %21242 = vmatmul.mubr.msk.f32.gmra.mrb[4].mxu0 %vm142_vm3, %v371_v50  ;;  %v23016_v50 = vpop.eup %23015  ;;  %v616_v53 = vadd.f32 1.0, %v23014_v48 }
 0x1d8   :  { %v372_v57 = vmax.f32 %v350_v55, 0.0  ;;  %v21235_v58 = vpop.f32.mrb[8].mxu1 }
 0x1d9   :  { %v365_v59 = vadd.f32 %v21235_v58, %v19871_v39  ;;  %v359_v60 = vpop.f32.mrb[9].mxu1 }
 0x1da   :  { %v360_v61 = vadd.f32 %v19871_v39, %v359_v60  ;;  %21244 = vmatprep.mubr.msk.f32.mxu0 %vm142_vm3, %v372_v57  ;;  %v610_v39 = vadd.f32 1.0, %v23002_v34  ;;  %v19900_v60 = vld [vmem:[#allocation2 + $0x70] ss:$0 sm:$0xff] }
 0x1db   :  { %v375_v62 = vmax.f32 %v365_v59, 0.0  ;;  %21245 = vmatmul.mubr.msk.f32.gmra.mrb[6].mxu0 %vm142_vm3, %v373_v56  ;;  %v615_v56 = vadd.f32 1.0, %v23016_v50 }
 0x1dc   :  { %v374_v63 = vmax.f32 %v360_v61, 0.0  ;;  %23017 = vrcp.f32 %v610_v39 }
 0x1dd   :  { %23019 = vrcp.f32 %v609_v40 }
 0x1de   :  { %21247 = vmatprep.mubr.msk.f32.mxu0 %vm142_vm3, %v374_v63  ;;  %23021 = vrcp.f32 %v612_v43  ;;  %v23762_v43 = vshrl.u32 %v699_v41, 7 }
 0x1df   :  { %21248 = vmatmul.mubr.msk.f32.gmra.mrb[8].mxu0 %vm142_vm3, %v375_v62  ;;  %23023 = vrcp.f32 %v611_v45  ;;  %v681_v45 = vstv %s22964_s2 }
 0x1e0   :  { %23025 = vrcp.f32 %v614_v47  ;;  %v23765_v47 = vsub.s32 %v700_v42, %v23762_v43 }
 0x1e1   :  { %23027 = vrcp.f32 %v613_v49 }
 0x1e2   :  { %23029 = vrcp.f32 %v616_v53  ;;  %27034 = vst [vmem:[#allocation5_spill] sm:$0xff] %v23765_v47 }
 0x1e3   :  { %23031 = vrcp.f32 %v615_v56 }
 0x1e6   :  { %v23018_v52 = vpop.eup %23017 }
 0x1e7   :  { %v23020_v55 = vpop.eup %23019 }
 0x1e8   :  { %v23022_v4 = vpop.eup %23021 }
 0x1e9   :  { %v23024_v7 = vpop.eup %23023 }
 0x1ea   :  { %v23026_v16 = vpop.eup %23025 }
 0x1eb   :  { %v23028_v18 = vpop.eup %23027 }
 0x1ec   :  { %v23030_v26 = vpop.eup %23029 }
 0x1ed   :  { %v23032_v29 = vpop.eup %23031 }
 0x2a6   :  { %v21240_v54 = vpop.f32.mrb[2].mxu0 }
 0x2a7   :  { %v478_v57 = vadd.f32 %v21240_v54, %v19881_v51  ;;  %v472_v58 = vpop.f32.mrb[3].mxu0 }
 0x2a8   :  { %v473_v59 = vadd.f32 %v19881_v51, %v472_v58 }
 0x2a9   :  { %v23730_v61 = vmul.f32 %v23018_v52, %v478_v57 }
 0x2aa   :  { %v21243_v62 = vpop.f32.mrb[4].mxu0  ;;  %v23732_v63 = vmul.f32 %v23020_v55, %v473_v59 }
 0x2ab   :  { %v488_v1 = vadd.f32 %v21243_v62, %v19881_v51  ;;  %v482_v2 = vpop.f32.mrb[5].mxu0  ;;  %v647_v3 = vmul.f32 %v19900_v60, %v23730_v61 }
 0x2ac   :  { %v483_v5 = vadd.f32 %v19881_v51, %v482_v2  ;;  %v646_v6 = vmul.f32 %v19900_v60, %v23732_v63 }
 0x2ad   :  { %v657_v8 = vsel %vm216_vm6, %v647_v3, 0.0  ;;  %v23737_v9 = vmul.f32 %v23022_v4, %v488_v1 }
 0x2ae   :  { %658 = vadd.xlane.f32.xlu1 %v657_v8  ;;  %v21246_v10 = vpop.f32.mrb[6].mxu0  ;;  %v654_v11 = vsel %vm216_vm6, %v646_v6, 0.0  ;;  %v23740_v12 = vmul.f32 %v23024_v7, %v483_v5 }
 0x2af   :  { %v498_v13 = vadd.f32 %v21246_v10, %v19881_v51  ;;  %v492_v14 = vpop.f32.mrb[7].mxu0  ;;  %655 = vadd.xlane.f32.xlu0 %v654_v11  ;;  %v649_v15 = vmul.f32 %v19900_v60, %v23737_v9 }
 0x2b0   :  { %v493_v17 = vadd.f32 %v19881_v51, %v492_v14  ;;  %v648_v20 = vmul.f32 %v19900_v60, %v23740_v12 }
 0x2b1   :  { %v663_v19 = vsel %vm216_vm6, %v649_v15, 0.0  ;;  %v23747_v23 = vmul.f32 %v23026_v16, %v498_v13 }
 0x2b2   :  { %v21249_v21 = vpop.f32.mrb[8].mxu0  ;;  %v23745_v22 = vmul.f32 %v23028_v18, %v493_v17  ;;  %v660_v30 = vsel %vm216_vm6, %v648_v20, 0.0  ;;  %v758_v20 = vsub.s32 1, %v23762_v43 }
 0x2b3   :  { %v508_v24 = vadd.f32 %v21249_v21, %v19881_v51  ;;  %v502_v25 = vpop.f32.mrb[9].mxu0  ;;  %664 = vadd.xlane.f32.xlu0 %v663_v19  ;;  %v651_v33 = vmul.f32 %v19900_v60, %v23747_v23  ;;  %v23784_v19 = vsub.s32 0, %v23762_v43  ;;  %v762_v21 = vsub.s32 2, %v23762_v43 }
 0x2b4   :  { %v503_v27 = vadd.f32 %v19881_v51, %v502_v25  ;;  %v650_v28 = vmul.f32 %v19900_v60, %v23745_v22  ;;  %v770_v25 = vsub.s32 4, %v23762_v43 }
 0x2b5   :  { %v23755_v34 = vmul.f32 %v23030_v26, %v508_v24  ;;  %v669_v38 = vsel %vm216_vm6, %v651_v33, 0.0  ;;  %v766_v24 = vsub.s32 3, %v23762_v43  ;;  %v774_v26 = vsub.s32 5, %v23762_v43 }
 0x2b6   :  { %v666_v31 = vsel %vm216_vm6, %v650_v28, 0.0  ;;  %v23752_v32 = vmul.f32 %v23032_v29, %v503_v27  ;;  %v778_v33 = vsub.s32 6, %v23762_v43 }
 0x2b7   :  { %667 = vadd.xlane.f32.xlu1 %v666_v31  ;;  %661 = vadd.xlane.f32.xlu0 %v660_v30  ;;  %v653_v39 = vmul.f32 %v19900_v60, %v23755_v34 }
 0x2b8   :  { %v652_v35 = vmul.f32 %v19900_v60, %v23752_v32 }
 0x2b9   :  { %v675_v40 = vsel %vm216_vm6, %v653_v39, 0.0 }
 0x2ba   :  { %v672_v36 = vsel %vm216_vm6, %v652_v35, 0.0 }
 0x2bb   :  { %673 = vadd.xlane.f32.xlu1 %v672_v36  ;;  %670 = vadd.xlane.f32.xlu0 %v669_v38 }
 0x2bf   :  { %676 = vadd.xlane.f32.xlu0 %v675_v40  ;;  %v782_v40 = vsub.s32 7, %v23762_v43 }
 0x33b   :  { %v659_v46 = vpop.xlane.xlu1 %658 }
 0x33c   :  { %v656_v44 = vpop.xlane.xlu0 %655  ;;  %v684_v48 = vadd.f32 %v681_v45, %v659_v46 }
 0x33d   :  { %v683_v49 = vadd.f32 %v681_v45, %v656_v44 }
 0x33e   :  { %v708_v51 = vrot.slane %v684_v48, %v23765_v47 }
 0x33f   :  { %v704_v52 = vrot.slane %v683_v49, %v23765_v47 }
 0x340   :  { %v665_v50 = vpop.xlane.xlu0 %664 }
 0x341   :  { %v686_v53 = vadd.f32 %v681_v45, %v665_v50  ;;  %v734_v59 = vsel %vm733_vm7, %v708_v51, %v704_v52 }
 0x343   :  { %v716_v60 = vrot.slane %v686_v53, %v23765_v47 }
 0x344   :  { %v668_v54 = vpop.xlane.xlu1 %667  ;;  %v662_v55 = vpop.xlane.xlu0 %661 }
 0x345   :  { %v687_v56 = vadd.f32 %v681_v45, %v668_v54  ;;  %v685_v57 = vadd.f32 %v681_v45, %v662_v55 }
 0x347   :  { %v712_v58 = vrot.slane %v685_v57, %v23765_v47  ;;  %v720_v2 = vrot.slane %v687_v56, %v23765_v47 }
 0x348   :  { %v674_v62 = vpop.xlane.xlu1 %673  ;;  %v671_v1 = vpop.xlane.xlu0 %670 }
 0x349   :  { %v736_v3 = vsel %vm735_vm8, %v712_v58, %v734_v59  ;;  %v689_v4 = vadd.f32 %v681_v45, %v674_v62  ;;  %v688_v5 = vadd.f32 %v681_v45, %v671_v1 }
 0x34a   :  { %v738_v6 = vsel %vm737_vm9, %v716_v60, %v736_v3 }
 0x34b   :  { %v724_v7 = vrot.slane %v688_v5, %v23765_v47  ;;  %v740_v8 = vsel %vm739_vm10, %v720_v2, %v738_v6  ;;  %v728_v10 = vrot.slane %v689_v4, %v23765_v47 }
 0x34c   :  { %v677_v11 = vpop.xlane.xlu0 %676 }
 0x34d   :  { %v690_v13 = vadd.f32 %v681_v45, %v677_v11  ;;  %v742_v14 = vsel %vm741_vm11, %v724_v7, %v740_v8 }
 0x34e   :  { %v744_v16 = vsel %vm743_vm12, %v728_v10, %v742_v14 }
 0x34f   :  { %v732_v15 = vrot.slane %v690_v13, %v23765_v47 }
 0x351   :  { %v746_v17 = vsel %vm745_vm13, %v732_v15, %v744_v16 }
 0x352   :  { %v748_v18 = vsel %vm142_vm3, %v746_v17, -inf }
 0x353   :  { %749 = vmax.xlane.f32.xlu1 %v748_v18 }
 0x3e0   :  { %v750_v27 = vpop.xlane.xlu1 %749 }
 0x3e1   :  { %v755_v28 = vrot.slane %v750_v27, %v23784_v19  ;;  %v759_v29 = vrot.slane %v750_v27, %v758_v20  ;;  %v763_v30 = vrot.slane %v750_v27, %v762_v21  ;;  %v767_v31 = vrot.slane %v750_v27, %v766_v24 }
 0x3e2   :  { %v771_v35 = vrot.slane %v750_v27, %v770_v25  ;;  %v775_v41 = vrot.slane %v750_v27, %v774_v26  ;;  %v779_v46 = vrot.slane %v750_v27, %v778_v33  ;;  %v783_v52 = vrot.slane %v750_v27, %v782_v40 }
 0x3e3   :  { %v793_v36 = vsub.f32 %v684_v48, %v759_v29  ;;  %v792_v38 = vsub.f32 %v683_v49, %v755_v28  ;;  %v794_v39 = vsub.f32 %v685_v57, %v763_v30  ;;  %v795_v42 = vsub.f32 %v686_v53, %v767_v31 }
 0x3e4   :  { %v796_v51 = vsub.f32 %v687_v56, %v771_v35  ;;  %v797_v49 = vsub.f32 %v688_v5, %v775_v41  ;;  %v798_v55 = vsub.f32 %v689_v4, %v779_v46  ;;  %v799_v53 = vsub.f32 %v690_v13, %v783_v52 }
 0x3e5   :  { %v802_v44 = vmul.f32 1.442695, %v793_v36  ;;  %v800_v45 = vmul.f32 1.442695, %v792_v38  ;;  %v804_v50 = vmul.f32 1.442695, %v794_v39 }
 0x3e6   :  { %v806_v48 = vmul.f32 1.442695, %v795_v42  ;;  %v808_v54 = vmul.f32 1.442695, %v796_v51  ;;  %v810_v57 = vmul.f32 1.442695, %v797_v49 }
 0x3e7   :  { %23033 = vpow2.f32 %v802_v44  ;;  %v812_v58 = vmul.f32 1.442695, %v798_v55  ;;  %v814_v59 = vmul.f32 1.442695, %v799_v53 }
 0x3e8   :  { %23035 = vpow2.f32 %v800_v45 }
 0x3e9   :  { %23037 = vpow2.f32 %v804_v50 }
 0x3ea   :  { %23039 = vpow2.f32 %v806_v48 }
 0x3eb   :  { %23041 = vpow2.f32 %v808_v54 }
 0x3ec   :  { %23043 = vpow2.f32 %v810_v57 }
 0x3ed   :  { %23045 = vpow2.f32 %v812_v58 }
 0x3ee   :  { %23047 = vpow2.f32 %v814_v59 }
 0x3f1   :  { %v23034_v60 = vpop.eup %23033 }
 0x3f2   :  { %v23036_v62 = vpop.eup %23035  ;;  %828 = vperm.xlu1 %23000, %v23034_v60  }
 0x3f3   :  { %825 = vperm.xlu0 %22999, %v23036_v62   ;;  %v23038_v56 = vpop.eup %23037 }
 0x3f4   :  { %v23040_v1 = vpop.eup %23039 }
 0x3f5   :  { %v23808_v2 = vpop.eup %23041 }
 0x3f6   :  { %831 = vperm.xlu1 %23000, %v23038_v56   ;;  %v23810_v3 = vpop.eup %23043 }
 0x3f7   :  { %834 = vperm.xlu0 %22999, %v23040_v1   ;;  %v23814_v4 = vpop.eup %23045 }
 0x3f8   :  { %v23816_v5 = vpop.eup %23047 }
 0x3fa   :  { %837 = vperm.xlu1 %23000, %v23808_v2  }
 0x3fb   :  { %840 = vperm.xlu0 %22999, %v23810_v3  }
 0x3fe   :  { %843 = vperm.xlu1 %23000, %v23814_v4  }
 0x3ff   :  { %846 = vperm.xlu0 %22999, %v23816_v5  }
 0x471   :  { %v829_v6 = vpop.permute.xlu1 %828 }
 0x472   :  { %v826_v7 = vpop.permute.xlu0 %825  ;;  %v855_v8 = vrot.slane %v829_v6, %v23765_v47 }
 0x473   :  { %v851_v10 = vrot.slane %v826_v7, %v23765_v47 }
 0x475   :  { %v832_v11 = vpop.permute.xlu1 %831  ;;  %v880_v15 = vsel %vm733_vm7, %v855_v8, %v851_v10 }
 0x476   :  { %v859_v13 = vrot.slane %v832_v11, %v23765_v47  ;;  %v835_v14 = vpop.permute.xlu0 %834  ;;  %v1054_v11 = vld [vmem:[#allocation2 + $0x90] sm:$0xff] }
 0x477   :  { %v863_v16 = vrot.slane %v835_v14, %v23765_v47  ;;  %v1055_v14 = vld [vmem:[#allocation2 + $0x98] sm:$0xff] }
 0x478   :  { %v881_v17 = vsel %vm735_vm8, %v859_v13, %v880_v15 }
 0x479   :  { %v838_v18 = vpop.permute.xlu1 %837  ;;  %v882_v29 = vsel %vm737_vm9, %v863_v16, %v881_v17 }
 0x47a   :  { %v867_v27 = vrot.slane %v838_v18, %v23765_v47  ;;  %v841_v28 = vpop.permute.xlu0 %840 }
 0x47b   :  { %v871_v30 = vrot.slane %v841_v28, %v23765_v47 }
 0x47c   :  { %v883_v31 = vsel %vm739_vm10, %v867_v27, %v882_v29 }
 0x47d   :  { %v844_v35 = vpop.permute.xlu1 %843  ;;  %v884_v41 = vsel %vm741_vm11, %v871_v30, %v883_v31 }
 0x47e   :  { %v875_v36 = vrot.slane %v844_v35, %v23765_v47  ;;  %v847_v38 = vpop.permute.xlu0 %846 }
 0x47f   :  { %v879_v39 = vrot.slane %v847_v38, %v23765_v47 }
 0x480   :  { %v885_v42 = vsel %vm743_vm12, %v875_v36, %v884_v41 }
 0x481   :  { %v886_v44 = vsel %vm745_vm13, %v879_v39, %v885_v42 }
 0x482   :  { %v888_v45 = vsel %vm142_vm3, %v886_v44, 0.0 }
 0x483   :  { %889 = vadd.xlane.f32.xlu1 %v888_v45 }
 0x510   :  { %v890_v46 = vpop.xlane.xlu1 %889 }
 0x511   :  { %v895_v50 = vrot.slane %v890_v46, %v23784_v19  ;;  %v899_v51 = vrot.slane %v890_v46, %v758_v20  ;;  %v903_v52 = vrot.slane %v890_v46, %v762_v21  ;;  %v907_v48 = vrot.slane %v890_v46, %v766_v24 }
 0x512   :  { %v911_v54 = vrot.slane %v890_v46, %v770_v25  ;;  %v915_v20 = vrot.slane %v890_v46, %v774_v26  ;;  %v919_v21 = vrot.slane %v890_v46, %v778_v33  ;;  %v923_v25 = vrot.slane %v890_v46, %v782_v40  ;;  %v1052_v40 = vld [vmem:[#allocation2 + $0x80] sm:$0xff] }
 0x513   :  { %23049 = vrcp.f32 %v895_v50 }
 0x514   :  { %23051 = vrcp.f32 %v899_v51 }
 0x515   :  { %23053 = vrcp.f32 %v903_v52 }
 0x516   :  { %23055 = vrcp.f32 %v907_v48 }
 0x517   :  { %23057 = vrcp.f32 %v911_v54 }
 0x518   :  { %23059 = vrcp.f32 %v915_v20 }
 0x519   :  { %23061 = vrcp.f32 %v919_v21 }
 0x51a   :  { %23063 = vrcp.f32 %v923_v25 }
 0x51d   :  { %v23050_v49 = vpop.eup %23049 }
 0x51e   :  { %v933_v55 = vmul.f32 %v23050_v49, %v23036_v62  ;;  %v23052_v57 = vpop.eup %23051 }
 0x51f   :  { %v935_v53 = vmul.f32 %v23052_v57, %v23034_v60  ;;  %v23054_v58 = vpop.eup %23053 }
 0x520   :  { %950 = vperm.xlu0 %22999, %v933_v55   ;;  %v937_v24 = vmul.f32 %v23054_v58, %v23038_v56  ;;  %v23056_v59 = vpop.eup %23055 }
 0x521   :  { %v939_v62 = vmul.f32 %v23056_v59, %v23040_v1  ;;  %v23058_v6 = vpop.eup %23057  ;;  %v1053_v1 = vld [vmem:[#allocation2 + $0x88] sm:$0xff] }
 0x522   :  { %v941_v26 = vmul.f32 %v23058_v6, %v23808_v2  ;;  %v23060_v60 = vpop.eup %23059  ;;  %v22670_v13 = vpack.c.bf16 %v1053_v1, %v1052_v40  ;;  %v22673_v2 = vpack.c.bf16 %v1055_v14, %v1054_v11 }
 0x523   :  { %v943_v7 = vmul.f32 %v23060_v60, %v23810_v3  ;;  %v23062_v8 = vpop.eup %23061 }
 0x524   :  { %955 = vperm.xlu0 %22999, %v935_v53   ;;  %v945_v33 = vmul.f32 %v23062_v8, %v23814_v4  ;;  %v23064_v56 = vpop.eup %23063  ;;  %22671 = vmatpush3.bf16.msra.mxu1 %v22670_v13 }
 0x525   :  { %v947_v10 = vmul.f32 %v23064_v56, %v23816_v5  ;;  %22672 = vmatprep.subr.bf16.mxu1 %v27030_v0 }
 0x528   :  { %960 = vperm.xlu0 %22999, %v937_v24   ;;  %22674 = vmatpush3.bf16.msra.mxu1 %v22673_v2 }
 0x52c   :  { %965 = vperm.xlu0 %22999, %v939_v62  }
 0x530   :  { %970 = vperm.xlu0 %22999, %v941_v26  }
 0x534   :  { %975 = vperm.xlu0 %22999, %v943_v7  }
 0x538   :  { %980 = vperm.xlu0 %22999, %v945_v33  }
 0x53c   :  { %985 = vperm.xlu0 %22999, %v947_v10  }
 0x59f   :  { %v951_v3 = vpop.permute.xlu0 %950 }
 0x5a0   :  { %v988_v17 = vmul.f32 %v951_v3, %v23732_v63 }
 0x5a2   :  { %v996_v29 = vsel %vm216_vm6, %v988_v17, 0.0 }
 0x5a3   :  { %v956_v15 = vpop.permute.xlu0 %955  ;;  %v997_v38 = vrot.slane %v996_v29, 4 }
 0x5a4   :  { %v989_v16 = vmul.f32 %v956_v15, %v23730_v61 }
 0x5a5   :  { %v998_v44 = vadd.f32 %v997_v38, %v996_v29 }
 0x5a6   :  { %v1003_v18 = vsel %vm216_vm6, %v989_v16, 0.0 }
 0x5a7   :  { %v961_v4 = vpop.permute.xlu0 %960  ;;  %v1004_v31 = vrot.slane %v1003_v18, 4  ;;  %v999_v54 = vrot.slane %v998_v44, 2 }
 0x5a8   :  { %v990_v5 = vmul.f32 %v961_v4, %v23740_v12 }
 0x5a9   :  { %v1005_v41 = vadd.f32 %v1004_v31, %v1003_v18  ;;  %v1000_v25 = vadd.f32 %v999_v54, %v998_v44  ;;  %v1271_v44 = vld [vmem:[#allocation2 + $0xb0] sm:$0xff]  ;;  %v23549_v54 = vmov 1966171168  }
 0x5aa   :  { %v1010_v27 = vsel %vm216_vm6, %v990_v5, 0.0 }
 0x5ab   :  { %v966_v28 = vpop.permute.xlu0 %965  ;;  %v1011_v35 = vrot.slane %v1010_v27, 4 }
 0x5ac   :  { %v991_v30 = vmul.f32 %v966_v28, %v23737_v9  ;;  %v1006_v9 = vrot.slane %v1005_v41, 2 }
 0x5ad   :  { %v1012_v12 = vadd.f32 %v1011_v35, %v1010_v27 }
 0x5ae   :  { %v1017_v36 = vsel %vm216_vm6, %v991_v30, 0.0  ;;  %v1007_v58 = vadd.f32 %v1006_v9, %v1005_v41  ;;  %v23883_v9 = vld [vmem:[%s27029_s7 + $0x8] sm:$0xff] }
 0x5af   :  { %v1018_v61 = vrot.slane %v1017_v36, 4  ;;  %v971_v39 = vpop.permute.xlu0 %970  ;;  %v1013_v48 = vrot.slane %v1012_v12, 2 }
 0x5b0   :  { %v992_v63 = vmul.f32 %v971_v39, %v23745_v22  ;;  %v1008_v8 = vrot.slane %v1007_v58, 1 }
 0x5b1   :  { %v1019_v45 = vadd.f32 %v1018_v61, %v1017_v36  ;;  %v1014_v24 = vadd.f32 %v1013_v48, %v1012_v12  ;;  %v1409_v48 = vld [vmem:[#allocation2 + $0xd8] sm:$0xff] }
 0x5b2   :  { %v1024_v42 = vsel %vm216_vm6, %v992_v63, 0.0  ;;  %v1009_v2 = vadd.f32 %v1008_v8, %v1007_v58 }
 0x5b3   :  { %v1025_v46 = vrot.slane %v1024_v42, 4  ;;  %v976_v50 = vpop.permute.xlu0 %975  ;;  %v1020_v55 = vrot.slane %v1019_v45, 2  ;;  %v1015_v10 = vrot.slane %v1014_v24, 1 }
 0x5b4   :  { %v993_v51 = vmul.f32 %v976_v50, %v23747_v23  ;;  %v1273_v50 = vld [vmem:[#allocation2 + $0xc0] sm:$0xff] }
 0x5b5   :  { %v1026_v52 = vadd.f32 %v1025_v46, %v1024_v42  ;;  %v1021_v62 = vadd.f32 %v1020_v55, %v1019_v45  ;;  %v1016_v4 = vadd.f32 %v1015_v10, %v1014_v24  ;;  %v1270_v42 = vld [vmem:[#allocation2 + $0xa8] sm:$0xff]  ;;  %v1272_v45 = vld [vmem:[#allocation2 + $0xb8] sm:$0xff]  ;;  %v1151_v55 = vunpack.c.l.s4 %v23549_v54 }
 0x5b6   :  { %v1031_v49 = vsel %vm216_vm6, %v993_v51, 0.0  ;;  %v22675_v46 = vpack.c.bf16 %v1271_v44, %v1270_v42  ;;  %v22679_v51 = vpack.c.bf16 %v1273_v50, %v1272_v45 }
 0x5b7   :  { %v1032_v57 = vrot.slane %v1031_v49, 4  ;;  %v981_v20 = vpop.permute.xlu0 %980  ;;  %v1027_v22 = vrot.slane %v1026_v52, 2  ;;  %v1022_v1 = vrot.slane %v1021_v62, 1 }
 0x5b8   :  { %v994_v53 = vmul.f32 %v981_v20, %v23752_v32  ;;  %v1001_v32 = vrot.slane %v1000_v25, 1  ;;  %22676 = vmatprep.subr.bf16.mxu0 %v22675_v46  ;;  %v19901_v20 = vld [vmem:[#allocation2 + $0xa0] ss:$0 sm:$0xff] }
 0x5b9   :  { %v1033_v21 = vadd.f32 %v1032_v57, %v1031_v49  ;;  %v1028_v60 = vadd.f32 %v1027_v22, %v1026_v52  ;;  %v1023_v5 = vadd.f32 %v1022_v1, %v1021_v62  ;;  %22678 = vmatpush3.bf16.msra.mxu0 %v22675_v46  ;;  %v1408_v52 = vld [vmem:[#allocation2 + $0xd0] sm:$0xff]  ;;  %v1152_v57 = vunpack.c.0.s8 %v1151_v55 }
 0x5ba   :  { %v1038_v59 = vsel %vm216_vm6, %v994_v53, 0.0  ;;  %v1002_v17 = vadd.f32 %v1001_v32, %v1000_v25  ;;  %22680 = vmatprep.subr.bf16.mxu0 %v22679_v51  ;;  %v22683_v49 = vpack.c.bf16 %v1409_v48, %v1408_v52 }
 0x5bb   :  { %v1034_v23 = vrot.slane %v1033_v21, 2  ;;  %v1039_v6 = vrot.slane %v1038_v59, 4  ;;  %v986_v26 = vpop.permute.xlu0 %985  ;;  %v1029_v14 = vrot.slane %v1028_v60, 1  ;;  %v23887_v22 = vsub.s32 %v1152_v57, %v23762_v43 }
 0x5bc   :  { %v995_v7 = vmul.f32 %v986_v26, %v23755_v34  ;;  %v1069_v28 = vsel %vm733_vm7, %v1009_v2, %v1002_v17  ;;  %22684 = vmatprep.subr.bf16.mxu1 %v22683_v49 }
 0x5bd   :  { %v1035_v33 = vadd.f32 %v1034_v23, %v1033_v21  ;;  %v1040_v56 = vadd.f32 %v1039_v6, %v1038_v59  ;;  %v1030_v27 = vadd.f32 %v1029_v14, %v1028_v60  ;;  %v1070_v31 = vsel %vm735_vm8, %v1016_v4, %v1069_v28  ;;  %22682 = vmatpush3.bf16.msra.mxu0 %v22679_v51 }
 0x5be   :  { %v1045_v40 = vsel %vm216_vm6, %v995_v7, 0.0  ;;  %v1071_v36 = vsel %vm737_vm9, %v1023_v5, %v1070_v31  ;;  %21301 = vmatprep.subr.mxu0 %v23883_v9 }
 0x5bf   :  { %v1041_v11 = vrot.slane %v1040_v56, 2  ;;  %v1046_v13 = vrot.slane %v1045_v40, 4  ;;  %v1036_v3 = vrot.slane %v1035_v33, 1  ;;  %v1072_v61 = vsel %vm739_vm10, %v1030_v27, %v1071_v36 }
 0x5c1   :  { %v1042_v15 = vadd.f32 %v1041_v11, %v1040_v56  ;;  %v1047_v16 = vadd.f32 %v1046_v13, %v1045_v40  ;;  %v1037_v29 = vadd.f32 %v1036_v3, %v1035_v33 }
 0x5c3   :  { %v1043_v18 = vrot.slane %v1042_v15, 1  ;;  %v1048_v34 = vrot.slane %v1047_v16, 2  ;;  %v1073_v63 = vsel %vm741_vm11, %v1037_v29, %v1072_v61  ;;  %v1410_v61 = vld [vmem:[#allocation2 + $0xe0] sm:$0xff] }
 0x5c5   :  { %v1049_v30 = vadd.f32 %v1048_v34, %v1047_v16  ;;  %v1044_v35 = vadd.f32 %v1043_v18, %v1042_v15 }
 0x5c7   :  { %v1050_v38 = vrot.slane %v1049_v30, 1  ;;  %v1074_v41 = vsel %vm743_vm12, %v1044_v35, %v1073_v63 }
 0x5c9   :  { %v1051_v39 = vadd.f32 %v1050_v38, %v1049_v30 }
 0x5cb   :  { %v1075_v12 = vsel %vm745_vm13, %v1051_v39, %v1074_v41  ;;  %v1411_v39 = vld [vmem:[#allocation2 + $0xe8] sm:$0xff] }
 0x5cc   :  { %21259 = vmatmul.mubr.msk.f32.vlgmr.msra.gmra.mrb[10].mxu1 %vm216_vm6, %v1075_v12  ;;  %v22687_v63 = vpack.c.bf16 %v1411_v39, %v1410_v61  ;;  %v19903_v41 = vld [vmem:[#allocation2 + $0xc8] ss:$0 sm:$0xff] }
 0x5cd   :  { %22686 = vmatpush3.bf16.msra.mxu1 %v22683_v49 }
 0x5ce   :  { %22688 = vmatprep.subr.bf16.mxu1 %v22687_v63 }
 0x5d1   :  { %22690 = vmatpush3.bf16.msra.mxu1 %v22687_v63 }
 0x5d2   :  { %21311 = vmatprep.subr.mxu1 %v23883_v9 }
 0x69f   :  { %v1144_v53 = vpop.f32.mrb[10].mxu1 }
 0x6a0   :  { %v1145_v58 = vadd.f32 %v19901_v20, %v1144_v53  ;;  %v21260_v21 = vpop.f32.mrb[11].mxu1 }
 0x6a1   :  { %v19912_v21 = vld [vmem:[#allocation2 + $0xf0] ss:$0 sm:$0xff] }
 0x6a2   :  { %v1156_v24 = vrot.slane %v1145_v58, %v23887_v22  ;;  %v1149_v59 = vcombine.high %v1145_v58, %v1145_v58 }
 0x6a4   :  { %v1164_v25 = vcombine.high %v1156_v24, %v1156_v24  ;;  %v1172_v62 = vrot.slane %v1156_v24, %v23887_v22  ;;  %v1163_v23 = vrot.slane %v1149_v59, %v23887_v22 }
 0x6a6   :  { %v1186_v6 = vrot.slane %v1164_v25, %v23887_v22  ;;  %v1206_v26 = vmul.f32 2.0, %v1172_v62  ;;  %v1194_v60 = vcombine.high %v1172_v62, %v1172_v62  ;;  %v1179_v7 = vrot.slane %v1163_v23, %v23887_v22 }
 0x6a7   :  { %v1165_v8 = vcombine.high %v1163_v23, %v1163_v23 }
 0x6a8   :  { %v1225_v43 = vrot.slane %v1206_v26, %v23784_v19  ;;  %v1207_v33 = vmul.f32 2.0, %v1186_v6  ;;  %v1208_v56 = vmul.f32 2.0, %v1194_v60  ;;  %v1196_v10 = vcombine.high %v1186_v6, %v1186_v6 }
 0x6a9   :  { %v1210_v40 = vmul.f32 2.0, %v1179_v7  ;;  %v1193_v32 = vrot.slane %v1165_v8, %v23887_v22  ;;  %v1195_v1 = vcombine.high %v1179_v7, %v1179_v7 }
 0x6aa   :  { %v1262_v11 = vsub.f32 %v1225_v43, %v1145_v58  ;;  %v1229_v13 = vrot.slane %v1207_v33, %v23784_v19  ;;  %v1233_v14 = vrot.slane %v1208_v56, %v23784_v19  ;;  %v1209_v2 = vmul.f32 2.0, %v1196_v10 }
 0x6ab   :  { %v1211_v3 = vmul.f32 2.0, %v1193_v32  ;;  %v1197_v17 = vcombine.high %v1193_v32, %v1193_v32  ;;  %v1241_v5 = vrot.slane %v1210_v40, %v23784_v19  ;;  %v1212_v18 = vmul.f32 2.0, %v1195_v1 }
 0x6ac   :  { %21269 = vmatprep.mubr.msk.f32.mxu0 %vm216_vm6, %v1262_v11  ;;  %v1263_v15 = vsub.f32 %v1229_v13, %v1145_v58  ;;  %v1264_v16 = vsub.f32 %v1233_v14, %v1145_v58  ;;  %v1237_v4 = vrot.slane %v1209_v2, %v23784_v19 }
 0x6ad   :  { %v1245_v27 = vrot.slane %v1211_v3, %v23784_v19  ;;  %v1213_v28 = vmul.f32 2.0, %v1197_v17  ;;  %v1266_v29 = vsub.f32 %v1241_v5, %v1145_v58  ;;  %v1249_v30 = vrot.slane %v1212_v18, %v23784_v19 }
 0x6ae   :  { %21270 = vmatmul.mubr.msk.f32.vlgmr.msra.gmra.mrb[10].mxu0 %vm216_vm6, %v1263_v15  ;;  %v1265_v34 = vsub.f32 %v1237_v4, %v1145_v58 }
 0x6af   :  { %21272 = vmatprep.mubr.msk.f32.mxu0 %vm216_vm6, %v1264_v16  ;;  %v1267_v31 = vsub.f32 %v1245_v27, %v1145_v58  ;;  %v1253_v35 = vrot.slane %v1213_v28, %v23784_v19  ;;  %v1268_v36 = vsub.f32 %v1249_v30, %v1145_v58 }
 0x6b1   :  { %v1269_v38 = vsub.f32 %v1253_v35, %v1145_v58 }
 0x6b2   :  { %21273 = vmatmul.mubr.msk.f32.gmra.mrb[12].mxu0 %vm216_vm6, %v1265_v34 }
 0x6b3   :  { %21275 = vmatprep.mubr.msk.f32.mxu0 %vm216_vm6, %v1266_v29 }
 0x6b6   :  { %21276 = vmatmul.mubr.msk.f32.gmra.mrb[14].mxu0 %vm216_vm6, %v1267_v31 }
 0x6b7   :  { %21278 = vmatprep.mubr.msk.f32.mxu0 %vm216_vm6, %v1268_v36 }
 0x6ba   :  { %21279 = vmatmul.mubr.msk.f32.gmra.mrb[16].mxu0 %vm216_vm6, %v1269_v38 }
 0x6bb   :  { %21303 = vmatprep.mubr.msk.f32.mxu0 %vm23547_vm0, %v23883_v9 }
 0x781   :  { %v21271_v12 = vpop.f32.mrb[10].mxu0 }
 0x782   :  { %v1369_v42 = vpop.f32.mrb[11].mxu0  ;;  %v23916_v45 = vadd.f32 %v21271_v12, %v19903_v41 }
 0x783   :  { %v23914_v44 = vadd.f32 %v19903_v41, %v1369_v42 }
 0x785   :  { %v21274_v46 = vpop.f32.mrb[12].mxu0  ;;  %21289 = vmatprep.mubr.msk.f32.mxu1 %vm216_vm6, %v23914_v44 }
 0x786   :  { %v1379_v50 = vpop.f32.mrb[13].mxu0  ;;  %21290 = vmatmul.mubr.msk.f32.vlgmr.msra.gmra.mrb[12].mxu1 %vm216_vm6, %v23916_v45  ;;  %v23924_v52 = vadd.f32 %v21274_v46, %v19903_v41 }
 0x787   :  { %v23922_v51 = vadd.f32 %v19903_v41, %v1379_v50 }
 0x789   :  { %v21277_v48 = vpop.f32.mrb[14].mxu0  ;;  %21292 = vmatprep.mubr.msk.f32.mxu1 %vm216_vm6, %v23922_v51 }
 0x78a   :  { %v1389_v49 = vpop.f32.mrb[15].mxu0  ;;  %21293 = vmatmul.mubr.msk.f32.gmra.mrb[14].mxu1 %vm216_vm6, %v23924_v52  ;;  %v23932_v55 = vadd.f32 %v21277_v48, %v19903_v41 }
 0x78b   :  { %v23930_v54 = vadd.f32 %v19903_v41, %v1389_v49 }
 0x78d   :  { %v21280_v57 = vpop.f32.mrb[16].mxu0  ;;  %21295 = vmatprep.mubr.msk.f32.mxu1 %vm216_vm6, %v23930_v54 }
 0x78e   :  { %v1399_v20 = vpop.f32.mrb[17].mxu0  ;;  %21296 = vmatmul.mubr.msk.f32.gmra.mrb[16].mxu1 %vm216_vm6, %v23932_v55  ;;  %v23940_v58 = vadd.f32 %v21280_v57, %v19903_v41 }
 0x78f   :  { %v23938_v53 = vadd.f32 %v19903_v41, %v1399_v20 }
 0x791   :  { %21298 = vmatprep.mubr.msk.f32.mxu1 %vm216_vm6, %v23938_v53 }
 0x792   :  { %21299 = vmatmul.mubr.msk.f32.gmra.mrb[18].mxu1 %vm216_vm6, %v23940_v58 }
 0x793   :  { %21313 = vmatprep.mubr.msk.f32.mxu1 %vm23547_vm0, %v23883_v9 }
 0x859   :  { %v21291_v24 = vpop.f32.mrb[12].mxu1 }
 0x85a   :  { %v23948_v59 = vadd.f32 %v21291_v24, %v19912_v21  ;;  %v1507_v25 = vpop.f32.mrb[13].mxu1 }
 0x85b   :  { %v23950_v62 = vadd.f32 %v19912_v21, %v1507_v25 }
 0x85c   :  { %1629 = vrot.lane.b32.xlu1 %v23948_v59, %s23550_s18 }
 0x85d   :  { %v21294_v23 = vpop.f32.mrb[14].mxu1  ;;  %1551 = vrot.lane.b32.xlu0 %v23950_v62, %s23550_s18 }
 0x85e   :  { %v23954_v6 = vadd.f32 %v21294_v23, %v19912_v21  ;;  %v1517_v26 = vpop.f32.mrb[15].mxu1 }
 0x85f   :  { %v23966_v40 = vadd.f32 %v19912_v21, %v1517_v26 }
 0x861   :  { %v21297_v60 = vpop.f32.mrb[16].mxu1  ;;  %1783 = vrot.lane.b32.xlu0 %v23954_v6, %s23550_s18 }
 0x862   :  { %v23957_v7 = vadd.f32 %v21297_v60, %v19912_v21  ;;  %v1527_v8 = vpop.f32.mrb[17].mxu1 }
 0x863   :  { %v23959_v43 = vadd.f32 %v19912_v21, %v1527_v8 }
 0x865   :  { %v21300_v33 = vpop.f32.mrb[18].mxu1  ;;  %1860 = vrot.lane.b32.xlu1 %v23959_v43, %s23550_s18  ;;  %1937 = vrot.lane.b32.xlu0 %v23957_v7, %s23550_s18 }
 0x866   :  { %v23963_v56 = vadd.f32 %v21300_v33, %v19912_v21  ;;  %v1537_v10 = vpop.f32.mrb[19].mxu1 }
 0x867   :  { %v23969_v32 = vadd.f32 %v19912_v21, %v1537_v10 }
 0x869   :  { %2091 = vrot.lane.b32.xlu0 %v23963_v56, %s23550_s18 }
 0x86d   :  { %1706 = vrot.lane.b32.xlu0 %v23966_v40, %s23550_s18 }
 0x871   :  { %2014 = vrot.lane.b32.xlu0 %v23969_v32, %s23550_s18  ;;  %s23571_s18 = smov 100  }
 0x8ce   :  { %v1630_v11 = vpop.permute.xlu1 %1629 }
 0x8cf   :  { %v1552_v1 = vpop.permute.xlu0 %1551 }
 0x8d0   :  { %21302 = vmatpush3.xpose.msk.msra.mxu0 %vm1553_vm14, %v1552_v1 }
 0x8d1   :  { %21306 = vmatprep.subr.mxu0 %v23883_v9 }
 0x8d3   :  { %21304 = vmatmul.mubr.msk.f32.vlgmr.msra.gmra.mrb[18].mxu0 %vm1553_vm14, %v23950_v62  ;;  %v1784_v13 = vpop.permute.xlu0 %1783 }
 0x8d4   :  { %21307 = vmatpush3.xpose.msk.msra.mxu0 %vm1553_vm14, %v1630_v11  ;;  %21308 = vmatprep.mubr.msk.f32.mxu0 %vm23547_vm0, %v23883_v9 }
 0x8d5   :  { %21316 = vmatprep.subr.mxu0 %v23883_v9 }
 0x8d7   :  { %21309 = vmatmul.mubr.msk.f32.vlgmr.msra.gmra.mrb[20].mxu0 %vm1553_vm14, %v23948_v59  ;;  %v1938_v14 = vpop.permute.xlu0 %1937  ;;  %v1861_v15 = vpop.permute.xlu1 %1860 }
 0x8d8   :  { %21317 = vmatpush3.xpose.msk.msra.mxu0 %vm1553_vm14, %v1784_v13  ;;  %21318 = vmatprep.mubr.msk.f32.mxu0 %vm23547_vm0, %v23883_v9 }
 0x8d9   :  { %21326 = vmatprep.subr.mxu0 %v23883_v9 }
 0x8db   :  { %21319 = vmatmul.mubr.msk.f32.vlgmr.msra.gmra.mrb[22].mxu0 %vm1553_vm14, %v23954_v6  ;;  %v2092_v2 = vpop.permute.xlu0 %2091 }
 0x8dc   :  { %21327 = vmatpush3.xpose.msk.msra.mxu0 %vm1553_vm14, %v1938_v14  ;;  %21328 = vmatprep.mubr.msk.f32.mxu0 %vm23547_vm0, %v23883_v9 }
 0x8dd   :  { %21336 = vmatprep.subr.mxu0 %v23883_v9 }
 0x8df   :  { %21329 = vmatmul.mubr.msk.f32.vlgmr.msra.gmra.mrb[24].mxu0 %vm1553_vm14, %v23957_v7  ;;  %v1707_v3 = vpop.permute.xlu0 %1706 }
 0x8e0   :  { %21312 = vmatpush3.xpose.msk.msra.mxu1 %vm1553_vm14, %v1707_v3  ;;  %21337 = vmatpush3.xpose.msk.msra.mxu0 %vm1553_vm14, %v2092_v2 }
 0x8e1   :  { %21338 = vmatprep.mubr.msk.f32.mxu0 %vm23547_vm0, %v23883_v9  ;;  %21321 = vmatprep.subr.mxu1 %v23883_v9 }
 0x8e2   :  { %21346 = vmatprep.subr.mxu0 %v23883_v9 }
 0x8e3   :  { %21314 = vmatmul.mubr.msk.f32.vlgmr.msra.gmra.mrb[20].mxu1 %vm1553_vm14, %v23966_v40  ;;  %21339 = vmatmul.mubr.msk.f32.vlgmr.msra.gmra.mrb[26].mxu0 %vm1553_vm14, %v23963_v56  ;;  %v2015_v16 = vpop.permute.xlu0 %2014 }
 0x8e4   :  { %21322 = vmatpush3.xpose.msk.msra.mxu1 %vm1553_vm14, %v1861_v15  ;;  %21323 = vmatprep.mubr.msk.f32.mxu1 %vm23547_vm0, %v23883_v9 }
 0x8e5   :  { %21331 = vmatprep.subr.mxu1 %v23883_v9  ;;  %21348 = vmatprep.mubr.msk.f32.mxu0 %vm23547_vm0, %v23883_v9 }
 0x8e7   :  { %21324 = vmatmul.mubr.msk.f32.vlgmr.msra.gmra.mrb[22].mxu1 %vm1553_vm14, %v23959_v43 }
 0x8e8   :  { %21332 = vmatpush3.xpose.msk.msra.mxu1 %vm1553_vm14, %v2015_v16  ;;  %21333 = vmatprep.mubr.msk.f32.mxu1 %vm23547_vm0, %v23883_v9 }
 0x8e9   :  { %21341 = vmatprep.subr.mxu1 %v23883_v9 }
 0x8eb   :  { %21334 = vmatmul.mubr.msk.f32.vlgmr.msra.gmra.mrb[24].mxu1 %vm1553_vm14, %v23969_v32 }
 0x8ec   :  { %21343 = vmatprep.mubr.msk.f32.mxu1 %vm23547_vm0, %v23883_v9 }
 0x9a6   :  { %v24020_v4 = vpop.f32.mrb[18].mxu0 }
 0x9a7   :  { %v21305_v17 = vpop.f32.mrb[19].mxu0 }
 0x9aa   :  { %v1701_v5 = vpop.f32.mrb[20].mxu0 }
 0x9ab   :  { %v21310_v18 = vpop.f32.mrb[21].mxu0  ;;  %v2168_v34 = vmul.f32 0.5, %v1701_v5 }
 0x9ad   :  { %v2178_v27 = vsel %vm142_vm3, %v2168_v34, -inf }
 0x9ae   :  { %2179 = vmax.xlane.f32.xlu1 %v2178_v27  ;;  %v1855_v28 = vpop.f32.mrb[22].mxu0 }
 0x9af   :  { %v21320_v29 = vpop.f32.mrb[23].mxu0  ;;  %v2170_v30 = vmul.f32 0.5, %v1855_v28 }
 0x9b1   :  { %v2184_v31 = vsel %vm142_vm3, %v2170_v30, -inf }
 0x9b2   :  { %2185 = vmax.xlane.f32.xlu0 %v2184_v31  ;;  %v2009_v35 = vpop.f32.mrb[24].mxu0  ;;  %v24061_v31 = vmul.f32 0.5, %v24020_v4 }
 0x9b3   :  { %v21330_v36 = vpop.f32.mrb[25].mxu0  ;;  %v2172_v38 = vmul.f32 0.5, %v2009_v35 }
 0x9b4   :  { %v2175_v36 = vsel %vm142_vm3, %v24061_v31, -inf }
 0x9b5   :  { %v2190_v61 = vsel %vm142_vm3, %v2172_v38, -inf }
 0x9b6   :  { %2191 = vmax.xlane.f32.xlu0 %v2190_v61  ;;  %v1778_v39 = vpop.f32.mrb[20].mxu1  ;;  %v2163_v63 = vpop.f32.mrb[26].mxu0 }
 0x9b7   :  { %v21315_v41 = vpop.f32.mrb[21].mxu1  ;;  %v21340_v12 = vpop.f32.mrb[27].mxu0  ;;  %v2174_v49 = vmul.f32 0.5, %v2163_v63  ;;  %v2169_v27 = vmul.f32 0.5, %v1778_v39 }
 0x9b9   :  { %v2196_v57 = vsel %vm142_vm3, %v2174_v49, -inf  ;;  %v2181_v29 = vsel %vm142_vm3, %v2169_v27, -inf }
 0x9ba   :  { %v1932_v42 = vpop.f32.mrb[22].mxu1 }
 0x9bb   :  { %v21325_v46 = vpop.f32.mrb[23].mxu1  ;;  %v24051_v28 = vmul.f32 0.5, %v1932_v42 }
 0x9be   :  { %v2086_v50 = vpop.f32.mrb[24].mxu1 }
 0x9bf   :  { %2491 = vrot.lane.b32.xlu1 %v23954_v6, %s23551_s19  ;;  %v21335_v48 = vpop.f32.mrb[25].mxu1  ;;  %v24063_v35 = vmul.f32 0.5, %v2086_v50 }
 0x9cc   :  { %2339 = vrot.lane.b32.xlu0 %v23948_v59, %s23551_s19 }
 0x9e3   :  { %2197 = vmax.xlane.f32.xlu1 %v2196_v57 }
 0x9f4   :  { %2643 = vrot.lane.b32.xlu1 %v23957_v7, %s23551_s19 }
 0xa3b   :  { %v2180_v20 = vpop.xlane.xlu1 %2179 }
 0xa3c   :  { %v2200_v21 = vsub.f32 %v2168_v34, %v2180_v20 }
 0xa3e   :  { %v2209_v24 = vmul.f32 1.442695, %v2200_v21 }
 0xa3f   :  { %v2186_v25 = vpop.xlane.xlu0 %2185  ;;  %v2492_v15 = vpop.permute.xlu1 %2491 }
 0xa40   :  { %23065 = vpow2.f32 %v2209_v24  ;;  %v2202_v23 = vsub.f32 %v2170_v30, %v2186_v25  ;;  %v2187_v30 = vsel %vm142_vm3, %v24051_v28, -inf }
 0xa42   :  { %v2213_v26 = vmul.f32 1.442695, %v2202_v23 }
 0xa43   :  { %v2192_v60 = vpop.xlane.xlu0 %2191 }
 0xa44   :  { %23067 = vpow2.f32 %v2213_v26  ;;  %v2204_v8 = vsub.f32 %v2172_v38, %v2192_v60  ;;  %v2193_v38 = vsel %vm142_vm3, %v24063_v35, -inf }
 0xa46   :  { %v2217_v33 = vmul.f32 1.442695, %v2204_v8 }
 0xa47   :  { %v2340_v10 = vpop.permute.xlu0 %2339 }
 0xa48   :  { %23069 = vpow2.f32 %v2217_v33  ;;  %21347 = vmatpush3.msra.mxu0 %v2340_v10 }
 0xa49   :  { %21356 = vmatprep.subr.mxu0 %v23883_v9 }
 0xa4a   :  { %v23066_v1 = vpop.eup %23065 }
 0xa4b   :  { %v2226_v11 = vsel %vm142_vm3, %v23066_v1, 0.0 }
 0xa4c   :  { %2227 = vadd.xlane.f32.xlu0 %v2226_v11 }
 0xa4e   :  { %v23068_v13 = vpop.eup %23067 }
 0xa4f   :  { %v2232_v14 = vsel %vm142_vm3, %v23068_v13, 0.0 }
 0xa50   :  { %2233 = vadd.xlane.f32.xlu1 %v2232_v14 }
 0xa52   :  { %v23070_v2 = vpop.eup %23069 }
 0xa53   :  { %v2238_v3 = vsel %vm142_vm3, %v23070_v2, 0.0 }
 0xa54   :  { %2239 = vadd.xlane.f32.xlu0 %v2238_v3 }
 0xa61   :  { %2951 = vrot.lane.b32.xlu1 %v23948_v59, %s23552_s20 }
 0xa65   :  { %3107 = vrot.lane.b32.xlu1 %v23954_v6, %s23552_s20 }
 0xa6a   :  { %2795 = vrot.lane.b32.xlu0 %v23963_v56, %s23551_s19 }
 0xa6e   :  { %2949 = vrot.lane.b32.xlu0 %v23948_v59, %s23553_s21 }
 0xa70   :  { %v2198_v16 = vpop.xlane.xlu1 %2197 }
 0xa71   :  { %v2206_v17 = vsub.f32 %v2174_v49, %v2198_v16 }
 0xa72   :  { %3105 = vrot.lane.b32.xlu0 %v23954_v6, %s23553_s21 }
 0xa73   :  { %v2221_v5 = vmul.f32 1.442695, %v2206_v17 }
 0xa74   :  { %v2644_v61 = vpop.permute.xlu1 %2643 }
 0xa75   :  { %23071 = vpow2.f32 %v2221_v5 }
 0xa76   :  { %3261 = vrot.lane.b32.xlu0 %v23957_v7, %s23553_s21 }
 0xa7a   :  { %3417 = vrot.lane.b32.xlu0 %v23963_v56, %s23553_s21 }
 0xa7f   :  { %v23072_v18 = vpop.eup %23071 }
 0xa80   :  { %v2244_v34 = vsel %vm142_vm3, %v23072_v18, 0.0 }
 0xa89   :  { %2245 = vadd.xlane.f32.xlu1 %v2244_v34 }
 0xa99   :  { %2182 = vmax.xlane.f32.xlu0 %v2181_v29 }
 0xa9a   :  { %3263 = vrot.lane.b32.xlu1 %v23957_v7, %s23552_s20 }
 0xa9d   :  { %2188 = vmax.xlane.f32.xlu0 %v2187_v30 }
 0xa9e   :  { %3419 = vrot.lane.b32.xlu1 %v23963_v56, %s23552_s20 }
 0xac2   :  { %2176 = vmax.xlane.f32.xlu1 %v2175_v36 }
 0xac6   :  { %2194 = vmax.xlane.f32.xlu1 %v2193_v38 }
 0xad9   :  { %v2228_v39 = vpop.xlane.xlu0 %2227 }
 0xada   :  { %23073 = vrcp.f32 %v2228_v39 }
 0xadd   :  { %v2234_v63 = vpop.xlane.xlu1 %2233 }
 0xade   :  { %23075 = vrcp.f32 %v2234_v63 }
 0xae1   :  { %v2240_v41 = vpop.xlane.xlu0 %2239  ;;  %v2952_v57 = vpop.permute.xlu1 %2951 }
 0xae2   :  { %23077 = vrcp.f32 %v2240_v41 }
 0xae4   :  { %v23074_v12 = vpop.eup %23073 }
 0xae5   :  { %v2250_v4 = vmul.f32 %v23074_v12, %v23066_v1  ;;  %v2796_v49 = vpop.permute.xlu0 %2795  ;;  %v3108_v21 = vpop.permute.xlu1 %3107 }
 0xae7   :  { %21349 = vmatmul.mubr.msk.f32.vlgmr.msra.gmra.mrb[28].mxu0 %vm142_vm3, %v2250_v4 }
 0xae8   :  { %v23076_v42 = vpop.eup %23075  ;;  %21357 = vmatpush3.msra.mxu0 %v2492_v15  ;;  %21358 = vmatprep.mubr.msk.f32.mxu0 %vm23547_vm0, %v23883_v9 }
 0xae9   :  { %21366 = vmatprep.subr.mxu0 %v23883_v9  ;;  %v2254_v46 = vmul.f32 %v23076_v42, %v23068_v13  ;;  %v2950_v20 = vpop.permute.xlu0 %2949 }
 0xaeb   :  { %21359 = vmatmul.mubr.msk.f32.vlgmr.msra.gmra.mrb[30].mxu0 %vm142_vm3, %v2254_v46 }
 0xaec   :  { %v23078_v50 = vpop.eup %23077  ;;  %21367 = vmatpush3.msra.mxu0 %v2644_v61  ;;  %21368 = vmatprep.mubr.msk.f32.mxu0 %vm23547_vm0, %v23883_v9 }
 0xaed   :  { %21376 = vmatprep.subr.mxu0 %v23883_v9  ;;  %v2258_v48 = vmul.f32 %v23078_v50, %v23070_v2  ;;  %v3106_v24 = vpop.permute.xlu0 %3105 }
 0xaef   :  { %21369 = vmatmul.mubr.msk.f32.vlgmr.msra.gmra.mrb[32].mxu0 %vm142_vm3, %v2258_v48 }
 0xaf0   :  { %21377 = vmatpush3.msra.mxu0 %v2796_v49  ;;  %21378 = vmatprep.mubr.msk.f32.mxu0 %vm23547_vm0, %v23883_v9 }
 0xaf1   :  { %21386 = vmatprep.subr.mxu0 %v23883_v9  ;;  %v3262_v23 = vpop.permute.xlu0 %3261 }
 0xaf5   :  { %v3418_v60 = vpop.permute.xlu0 %3417 }
 0xb16   :  { %v2246_v25 = vpop.xlane.xlu1 %2245 }
 0xb17   :  { %23079 = vrcp.f32 %v2246_v25 }
 0xb1a   :  { %v3264_v11 = vpop.permute.xlu1 %3263 }
 0xb1e   :  { %v3420_v13 = vpop.permute.xlu1 %3419 }
 0xb21   :  { %v23080_v26 = vpop.eup %23079 }
 0xb22   :  { %v2262_v8 = vmul.f32 %v23080_v26, %v23072_v18 }
 0xb24   :  { %21379 = vmatmul.mubr.msk.f32.vlgmr.msra.gmra.mrb[34].mxu0 %vm142_vm3, %v2262_v8 }
 0xb25   :  { %21387 = vmatpush3.xpose.msk.msra.mxu0 %vm1553_vm14, %v2952_v57  ;;  %21388 = vmatprep.mubr.msk.f32.mxu0 %vm23547_vm0, %v23883_v9 }
 0xb26   :  { %v2183_v33 = vpop.xlane.xlu0 %2182  ;;  %21396 = vmatprep.subr.mxu0 %v23883_v9 }
 0xb27   :  { %v2201_v10 = vsub.f32 %v2169_v27, %v2183_v33 }
 0xb28   :  { %21389 = vmatmul.mubr.msk.f32.vlgmr.msra.gmra.mrb[36].mxu0 %vm1553_vm14, %v2950_v20 }
 0xb29   :  { %v2211_v1 = vmul.f32 1.442695, %v2201_v10  ;;  %21397 = vmatpush3.xpose.msk.msra.mxu0 %vm1553_vm14, %v3108_v21  ;;  %21398 = vmatprep.mubr.msk.f32.mxu0 %vm23547_vm0, %v23883_v9 }
 0xb2a   :  { %21406 = vmatprep.subr.mxu0 %v23883_v9  ;;  %v2189_v3 = vpop.xlane.xlu0 %2188 }
 0xb2b   :  { %23081 = vpow2.f32 %v2211_v1  ;;  %v2203_v15 = vsub.f32 %v24051_v28, %v2189_v3 }
 0xb2c   :  { %21399 = vmatmul.mubr.msk.f32.vlgmr.msra.gmra.mrb[38].mxu0 %vm1553_vm14, %v3106_v24 }
 0xb2d   :  { %21407 = vmatpush3.xpose.msk.msra.mxu0 %vm1553_vm14, %v3264_v11  ;;  %21408 = vmatprep.mubr.msk.f32.mxu0 %vm23547_vm0, %v23883_v9  ;;  %v2215_v5 = vmul.f32 1.442695, %v2203_v15 }
 0xb2e   :  { %21416 = vmatprep.subr.mxu0 %v23883_v9 }
 0xb30   :  { %21409 = vmatmul.mubr.msk.f32.vlgmr.msra.gmra.mrb[40].mxu0 %vm1553_vm14, %v3262_v23 }
 0xb31   :  { %21417 = vmatpush3.xpose.msk.msra.mxu0 %vm1553_vm14, %v3420_v13  ;;  %21418 = vmatprep.mubr.msk.f32.mxu0 %vm23547_vm0, %v23883_v9 }
 0xb32   :  { %21426 = vmatprep.subr.mxu0 %v23883_v9 }
 0xb34   :  { %21419 = vmatmul.mubr.msk.f32.vlgmr.msra.gmra.mrb[42].mxu0 %vm1553_vm14, %v3418_v60 }
 0xb35   :  { %v24102_v14 = vpop.eup %23081  ;;  %21428 = vmatprep.mubr.msk.f32.mxu0 %vm23547_vm0, %v23883_v9 }
 0xb36   :  { %v2229_v2 = vsel %vm142_vm3, %v24102_v14, 0.0 }
 0xb37   :  { %2230 = vadd.xlane.f32.xlu1 %v2229_v2 }
 0xb4f   :  { %v2177_v16 = vpop.xlane.xlu1 %2176 }
 0xb50   :  { %v2199_v17 = vsub.f32 %v24061_v31, %v2177_v16 }
 0xb52   :  { %v2207_v18 = vmul.f32 1.442695, %v2199_v17 }
 0xb53   :  { %v2195_v34 = vpop.xlane.xlu1 %2194 }
 0xb54   :  { %23083 = vpow2.f32 %v2207_v18  ;;  %v2205_v27 = vsub.f32 %v24063_v35, %v2195_v34 }
 0xb55   :  { %23085 = vpow2.f32 %v2215_v5 }
 0xb56   :  { %v2219_v29 = vmul.f32 1.442695, %v2205_v27 }
 0xb58   :  { %23087 = vpow2.f32 %v2219_v29 }
 0xb5e   :  { %v23084_v30 = vpop.eup %23083 }
 0xb5f   :  { %v2223_v36 = vsel %vm142_vm3, %v23084_v30, 0.0  ;;  %v23086_v38 = vpop.eup %23085 }
 0xb60   :  { %2224 = vadd.xlane.f32.xlu0 %v2223_v36  ;;  %v2235_v31 = vsel %vm142_vm3, %v23086_v38, 0.0 }
 0xb62   :  { %v24112_v61 = vpop.eup %23087 }
 0xb63   :  { %v2241_v28 = vsel %vm142_vm3, %v24112_v61, 0.0 }
 0xb64   :  { %2242 = vadd.xlane.f32.xlu1 %v2241_v28  ;;  %2236 = vadd.xlane.f32.xlu0 %v2235_v31 }
 0xb75   :  { %2415 = vrot.lane.b32.xlu1 %v23966_v40, %s23551_s19 }
 0xb79   :  { %2567 = vrot.lane.b32.xlu1 %v23959_v43, %s23551_s19 }
 0xb7a   :  { %2263 = vrot.lane.b32.xlu0 %v23950_v62, %s23551_s19 }
 0xb7d   :  { %2873 = vrot.lane.b32.xlu1 %v23950_v62, %s23552_s20 }
 0xb7e   :  { %2719 = vrot.lane.b32.xlu0 %v23969_v32, %s23551_s19  ;;  %s23572_s19 = smov 36  }
 0xb81   :  { %3029 = vrot.lane.b32.xlu1 %v23966_v40, %s23552_s20 }
 0xb82   :  { %2871 = vrot.lane.b32.xlu0 %v23950_v62, %s23553_s21 }
 0xb85   :  { %3185 = vrot.lane.b32.xlu1 %v23959_v43, %s23552_s20 }
 0xb86   :  { %3027 = vrot.lane.b32.xlu0 %v23966_v40, %s23553_s21 }
 0xb89   :  { %3341 = vrot.lane.b32.xlu1 %v23969_v32, %s23552_s20 }
 0xb8a   :  { %3183 = vrot.lane.b32.xlu0 %v23959_v43, %s23553_s21 }
 0xb8e   :  { %3339 = vrot.lane.b32.xlu0 %v23969_v32, %s23553_s21 }
 0xbba   :  { %v24141_v35 = vpop.f32.mrb[28].mxu0 }
 0xbbb   :  { %v21350_v39 = vpop.f32.mrb[29].mxu0 }
 0xbbe   :  { %v24143_v63 = vpop.f32.mrb[30].mxu0 }
 0xbbf   :  { %v21360_v41 = vpop.f32.mrb[31].mxu0 }
 0xbc2   :  { %v24145_v12 = vpop.f32.mrb[32].mxu0 }
 0xbc3   :  { %v21370_v4 = vpop.f32.mrb[33].mxu0 }
 0xbc4   :  { %v2231_v42 = vpop.xlane.xlu1 %2230 }
 0xbed   :  { %v2225_v46 = vpop.xlane.xlu0 %2224 }
 0xbee   :  { %23089 = vrcp.f32 %v2225_v46 }
 0xbef   :  { %23091 = vrcp.f32 %v2231_v42 }
 0xbf1   :  { %v2237_v50 = vpop.xlane.xlu0 %2236  ;;  %v2243_v48 = vpop.xlane.xlu1 %2242 }
 0xbf2   :  { %23093 = vrcp.f32 %v2237_v50 }
 0xbf3   :  { %23095 = vrcp.f32 %v2243_v48 }
 0xbf5   :  { %v2264_v49 = vpop.permute.xlu0 %2263  ;;  %v2416_v21 = vpop.permute.xlu1 %2415 }
 0xbf6   :  { %21342 = vmatpush3.msra.mxu1 %v2264_v49 }
 0xbf7   :  { %v24147_v57 = vpop.f32.mrb[34].mxu0  ;;  %21351 = vmatprep.subr.mxu1 %v23883_v9 }
 0xbf8   :  { %v23090_v20 = vpop.eup %23089  ;;  %v21380_v24 = vpop.f32.mrb[35].mxu0 }
 0xbf9   :  { %v2248_v25 = vmul.f32 %v23090_v20, %v23084_v30  ;;  %v23092_v23 = vpop.eup %23091  ;;  %v2568_v1 = vpop.permute.xlu1 %2567 }
 0xbfa   :  { %v2252_v33 = vmul.f32 %v23092_v23, %v24102_v14  ;;  %v2720_v15 = vpop.permute.xlu0 %2719 }
 0xbfb   :  { %21344 = vmatmul.mubr.msk.f32.vlgmr.msra.gmra.mrb[26].mxu1 %vm142_vm3, %v2248_v25  ;;  %v3023_v26 = vpop.f32.mrb[36].mxu0 }
 0xbfc   :  { %21352 = vmatpush3.msra.mxu1 %v2416_v21  ;;  %v21390_v60 = vpop.f32.mrb[37].mxu0  ;;  %21353 = vmatprep.mubr.msk.f32.mxu1 %vm23547_vm0, %v23883_v9  ;;  %v24153_v8 = vmul.f32 0.5, %v3023_v26  ;;  %v23094_v10 = vpop.eup %23093 }
 0xbfd   :  { %21361 = vmatprep.subr.mxu1 %v23883_v9  ;;  %v2256_v16 = vmul.f32 %v23094_v10, %v23086_v38  ;;  %v23096_v14 = vpop.eup %23095  ;;  %v2874_v18 = vpop.permute.xlu1 %2873 }
 0xbfe   :  { %v3506_v11 = vsel %vm142_vm3, %v24153_v8, -inf  ;;  %v2260_v29 = vmul.f32 %v23096_v14, %v24112_v61  ;;  %v2872_v36 = vpop.permute.xlu0 %2871 }
 0xbff   :  { %v3179_v13 = vpop.f32.mrb[38].mxu0  ;;  %3507 = vmax.xlane.f32.xlu1 %v3506_v11  ;;  %21354 = vmatmul.mubr.msk.f32.vlgmr.msra.gmra.mrb[28].mxu1 %vm142_vm3, %v2252_v33 }
 0xc00   :  { %21362 = vmatpush3.msra.mxu1 %v2568_v1  ;;  %v21400_v2 = vpop.f32.mrb[39].mxu0  ;;  %21363 = vmatprep.mubr.msk.f32.mxu1 %vm23547_vm0, %v23883_v9  ;;  %v3498_v3 = vmul.f32 0.5, %v3179_v13 }
 0xc01   :  { %21371 = vmatprep.subr.mxu1 %v23883_v9  ;;  %v3030_v31 = vpop.permute.xlu1 %3029 }
 0xc02   :  { %v3512_v17 = vsel %vm142_vm3, %v3498_v3, -inf  ;;  %v3028_v39 = vpop.permute.xlu0 %3027 }
 0xc03   :  { %v3335_v5 = vpop.f32.mrb[40].mxu0  ;;  %3513 = vmax.xlane.f32.xlu0 %v3512_v17  ;;  %21364 = vmatmul.mubr.msk.f32.vlgmr.msra.gmra.mrb[30].mxu1 %vm142_vm3, %v2256_v16 }
 0xc04   :  { %v3500_v34 = vmul.f32 0.5, %v3335_v5  ;;  %21372 = vmatpush3.msra.mxu1 %v2720_v15  ;;  %v21410_v27 = vpop.f32.mrb[41].mxu0  ;;  %21373 = vmatprep.mubr.msk.f32.mxu1 %vm23547_vm0, %v23883_v9 }
 0xc05   :  { %21381 = vmatprep.subr.mxu1 %v23883_v9  ;;  %v3186_v61 = vpop.permute.xlu1 %3185 }
 0xc06   :  { %v3518_v30 = vsel %vm142_vm3, %v3500_v34, -inf  ;;  %v3184_v41 = vpop.permute.xlu0 %3183 }
 0xc07   :  { %v3491_v38 = vpop.f32.mrb[42].mxu0  ;;  %3519 = vmax.xlane.f32.xlu0 %v3518_v30  ;;  %21374 = vmatmul.mubr.msk.f32.vlgmr.msra.gmra.mrb[32].mxu1 %vm142_vm3, %v2260_v29 }
 0xc08   :  { %v21420_v28 = vpop.f32.mrb[43].mxu0  ;;  %21383 = vmatprep.mubr.msk.f32.mxu1 %vm23547_vm0, %v23883_v9  ;;  %v3502_v46 = vmul.f32 0.5, %v3491_v38 }
 0xc09   :  { %v3342_v4 = vpop.permute.xlu1 %3341 }
 0xc0a   :  { %v3340_v42 = vpop.permute.xlu0 %3339  ;;  %v3524_v50 = vsel %vm142_vm3, %v3502_v46, -inf }
 0xc0b   :  { %21382 = vmatpush3.xpose.msk.msra.mxu1 %vm1553_vm14, %v2874_v18 }
 0xc0c   :  { %21391 = vmatprep.subr.mxu1 %v23883_v9 }
 0xc0e   :  { %21384 = vmatmul.mubr.msk.f32.vlgmr.msra.gmra.mrb[34].mxu1 %vm1553_vm14, %v2872_v36 }
 0xc0f   :  { %21392 = vmatpush3.xpose.msk.msra.mxu1 %vm1553_vm14, %v3030_v31  ;;  %21393 = vmatprep.mubr.msk.f32.mxu1 %vm23547_vm0, %v23883_v9 }
 0xc10   :  { %3819 = vrot.lane.b32.xlu1 %v23954_v6, %s23554_s6  ;;  %21401 = vmatprep.subr.mxu1 %v23883_v9 }
 0xc12   :  { %21394 = vmatmul.mubr.msk.f32.vlgmr.msra.gmra.mrb[36].mxu1 %vm1553_vm14, %v3028_v39 }
 0xc13   :  { %21402 = vmatpush3.xpose.msk.msra.mxu1 %vm1553_vm14, %v3186_v61  ;;  %21403 = vmatprep.mubr.msk.f32.mxu1 %vm23547_vm0, %v23883_v9 }
 0xc14   :  { %21411 = vmatprep.subr.mxu1 %v23883_v9 }
 0xc16   :  { %21404 = vmatmul.mubr.msk.f32.vlgmr.msra.gmra.mrb[38].mxu1 %vm1553_vm14, %v3184_v41 }
 0xc17   :  { %21412 = vmatpush3.xpose.msk.msra.mxu1 %vm1553_vm14, %v3342_v4  ;;  %21413 = vmatprep.mubr.msk.f32.mxu1 %vm23547_vm0, %v23883_v9 }
 0xc18   :  { %21421 = vmatprep.subr.mxu1 %v23883_v9 }
 0xc1a   :  { %21414 = vmatmul.mubr.msk.f32.vlgmr.msra.gmra.mrb[40].mxu1 %vm1553_vm14, %v3340_v42 }
 0xc1b   :  { %21423 = vmatprep.mubr.msk.f32.mxu1 %vm23547_vm0, %v23883_v9 }
 0xc1d   :  { %3667 = vrot.lane.b32.xlu0 %v23948_v59, %s23554_s6 }
 0xc34   :  { %3525 = vmax.xlane.f32.xlu1 %v3524_v50 }
 0xc45   :  { %3971 = vrot.lane.b32.xlu1 %v23957_v7, %s23554_s6 }
 0xc8c   :  { %v3508_v48 = vpop.xlane.xlu1 %3507 }
 0xc8d   :  { %v3528_v49 = vsub.f32 %v24153_v8, %v3508_v48 }
 0xc8f   :  { %v3537_v20 = vmul.f32 1.442695, %v3528_v49 }
 0xc90   :  { %v3514_v21 = vpop.xlane.xlu0 %3513 }
 0xc91   :  { %23097 = vpow2.f32 %v3537_v20  ;;  %v3530_v24 = vsub.f32 %v3498_v3, %v3514_v21 }
 0xc93   :  { %v3541_v25 = vmul.f32 1.442695, %v3530_v24 }
 0xc94   :  { %v3520_v23 = vpop.xlane.xlu0 %3519 }
 0xc95   :  { %23099 = vpow2.f32 %v3541_v25  ;;  %v3532_v26 = vsub.f32 %v3500_v34, %v3520_v23 }
 0xc97   :  { %v3545_v60 = vmul.f32 1.442695, %v3532_v26 }
 0xc98   :  { %v3668_v33 = vpop.permute.xlu0 %3667 }
 0xc99   :  { %23101 = vpow2.f32 %v3545_v60  ;;  %21427 = vmatpush3.msra.mxu0 %v3668_v33 }
 0xc9a   :  { %21436 = vmatprep.subr.mxu0 %v23883_v9  ;;  %v3820_v9 = vpop.permute.xlu1 %3819 }
 0xc9b   :  { %v24202_v10 = vpop.eup %23097 }
 0xc9c   :  { %v3554_v1 = vsel %vm142_vm3, %v24202_v10, 0.0 }
 0xc9d   :  { %3555 = vadd.xlane.f32.xlu0 %v3554_v1 }
 0xc9f   :  { %v24206_v8 = vpop.eup %23099 }
 0xca0   :  { %v3560_v11 = vsel %vm142_vm3, %v24206_v8, 0.0 }
 0xca1   :  { %3561 = vadd.xlane.f32.xlu1 %v3560_v11 }
 0xca3   :  { %v24210_v13 = vpop.eup %23101 }
 0xca4   :  { %v3566_v2 = vsel %vm142_vm3, %v24210_v13, 0.0 }
 0xca5   :  { %3567 = vadd.xlane.f32.xlu0 %v3566_v2 }
 0xcb2   :  { %4466 = vrot.lane.b32.xlu1 %v23950_v62, %s23555_s22 }
 0xcb6   :  { %4544 = vrot.lane.b32.xlu1 %v23948_v59, %s23555_s22 }
 0xcbb   :  { %4123 = vrot.lane.b32.xlu0 %v23963_v56, %s23554_s6 }
 0xcbf   :  { %4464 = vrot.lane.b32.xlu0 %v23950_v62, %s23556_s23 }
 0xcc1   :  { %v3526_v3 = vpop.xlane.xlu1 %3525 }
 0xcc2   :  { %v3534_v15 = vsub.f32 %v3502_v46, %v3526_v3 }
 0xcc3   :  { %4542 = vrot.lane.b32.xlu0 %v23948_v59, %s23556_s23 }
 0xcc4   :  { %v3549_v16 = vmul.f32 1.442695, %v3534_v15  ;;  %v24273_v15 = vld [vmem:[%s27029_s7 + $0x8] sm:$0xff] }
 0xcc5   :  { %v3972_v26 = vpop.permute.xlu1 %3971 }
 0xcc6   :  { %23103 = vpow2.f32 %v3549_v16 }
 0xcc7   :  { %4620 = vrot.lane.b32.xlu0 %v23966_v40, %s23556_s23 }
 0xccb   :  { %4698 = vrot.lane.b32.xlu0 %v23954_v6, %s23556_s23 }
 0xcce   :  { %v24224_v14 = vpop.f32.mrb[26].mxu1 }
 0xccf   :  { %v21345_v17 = vpop.f32.mrb[27].mxu1  ;;  %4776 = vrot.lane.b32.xlu0 %v23959_v43, %s23556_s23 }
 0xcd0   :  { %v24230_v34 = vpop.eup %23103 }
 0xcd1   :  { %v3572_v30 = vsel %vm142_vm3, %v24230_v34, 0.0 }
 0xcd2   :  { %v24227_v5 = vpop.f32.mrb[28].mxu1 }
 0xcd3   :  { %v21355_v18 = vpop.f32.mrb[29].mxu1  ;;  %4854 = vrot.lane.b32.xlu0 %v23957_v7, %s23556_s23 }
 0xcd6   :  { %v24232_v27 = vpop.f32.mrb[30].mxu1 }
 0xcd7   :  { %v21365_v29 = vpop.f32.mrb[31].mxu1  ;;  %4932 = vrot.lane.b32.xlu0 %v23969_v32, %s23556_s23 }
 0xcda   :  { %v24237_v36 = vpop.f32.mrb[32].mxu1  ;;  %3573 = vadd.xlane.f32.xlu1 %v3572_v30 }
 0xcdb   :  { %v21375_v38 = vpop.f32.mrb[33].mxu1  ;;  %5010 = vrot.lane.b32.xlu0 %v23963_v56, %s23556_s23 }
 0xce1   :  { %v2945_v28 = vpop.f32.mrb[34].mxu1 }
 0xce2   :  { %v21385_v31 = vpop.f32.mrb[35].mxu1  ;;  %v24260_v21 = vmul.f32 0.5, %v2945_v28 }
 0xce4   :  { %v3503_v25 = vsel %vm142_vm3, %v24260_v21, -inf }
 0xce5   :  { %v3101_v39 = vpop.f32.mrb[36].mxu1 }
 0xce6   :  { %v21395_v61 = vpop.f32.mrb[37].mxu1  ;;  %v24246_v50 = vmul.f32 0.5, %v3101_v39 }
 0xce8   :  { %v3509_v49 = vsel %vm142_vm3, %v24246_v50, -inf }
 0xce9   :  { %v3257_v41 = vpop.f32.mrb[38].mxu1 }
 0xcea   :  { %v21405_v4 = vpop.f32.mrb[39].mxu1  ;;  %v24250_v48 = vmul.f32 0.5, %v3257_v41 }
 0xceb   :  { %4622 = vrot.lane.b32.xlu1 %v23966_v40, %s23555_s22 }
 0xcec   :  { %v3515_v20 = vsel %vm142_vm3, %v24250_v48, -inf }
 0xced   :  { %v3413_v42 = vpop.f32.mrb[40].mxu1 }
 0xcee   :  { %v21415_v46 = vpop.f32.mrb[41].mxu1  ;;  %v24262_v24 = vmul.f32 0.5, %v3413_v42 }
 0xcef   :  { %4700 = vrot.lane.b32.xlu1 %v23954_v6, %s23555_s22 }
 0xcf0   :  { %v3521_v23 = vsel %vm142_vm3, %v24262_v24, -inf }
 0xcf3   :  { %4778 = vrot.lane.b32.xlu1 %v23959_v43, %s23555_s22 }
 0xcf7   :  { %4856 = vrot.lane.b32.xlu1 %v23957_v7, %s23555_s22 }
 0xcfa   :  { %3510 = vmax.xlane.f32.xlu0 %v3509_v49 }
 0xcfb   :  { %4934 = vrot.lane.b32.xlu1 %v23969_v32, %s23555_s22 }
 0xcfe   :  { %3516 = vmax.xlane.f32.xlu0 %v3515_v20 }
 0xcff   :  { %5012 = vrot.lane.b32.xlu1 %v23963_v56, %s23555_s22 }
 0xd23   :  { %3504 = vmax.xlane.f32.xlu1 %v3503_v25 }
 0xd27   :  { %3522 = vmax.xlane.f32.xlu1 %v3521_v23 }
 0xd2a   :  { %v3556_v60 = vpop.xlane.xlu0 %3555 }
 0xd2b   :  { %23105 = vrcp.f32 %v3556_v60 }
 0xd2e   :  { %v3562_v33 = vpop.xlane.xlu1 %3561 }
 0xd2f   :  { %23107 = vrcp.f32 %v3562_v33 }
 0xd32   :  { %v3568_v1 = vpop.xlane.xlu0 %3567  ;;  %v4467_v18 = vpop.permute.xlu1 %4466 }
 0xd33   :  { %23109 = vrcp.f32 %v3568_v1 }
 0xd35   :  { %v23106_v11 = vpop.eup %23105 }
 0xd36   :  { %v3578_v2 = vmul.f32 %v23106_v11, %v24202_v10  ;;  %v4545_v30 = vpop.permute.xlu1 %4544 }
 0xd38   :  { %21429 = vmatmul.mubr.msk.f32.vlgmr.msra.gmra.mrb[44].mxu0 %vm142_vm3, %v3578_v2 }
 0xd39   :  { %v23108_v3 = vpop.eup %23107  ;;  %21437 = vmatpush3.msra.mxu0 %v3820_v9  ;;  %21438 = vmatprep.mubr.msk.f32.mxu0 %vm23547_vm0, %v24273_v15  ;;  %v4124_v9 = vpop.permute.xlu0 %4123 }
 0xd3a   :  { %21446 = vmatprep.subr.mxu0 %v24273_v15  ;;  %v3582_v16 = vmul.f32 %v23108_v3, %v24206_v8 }
 0xd3c   :  { %21439 = vmatmul.mubr.msk.f32.vlgmr.msra.gmra.mrb[46].mxu0 %vm142_vm3, %v3582_v16 }
 0xd3d   :  { %v23110_v17 = vpop.eup %23109  ;;  %21447 = vmatpush3.msra.mxu0 %v3972_v26  ;;  %21448 = vmatprep.mubr.msk.f32.mxu0 %vm23547_vm0, %v24273_v15  ;;  %v4465_v8 = vpop.permute.xlu0 %4464 }
 0xd3e   :  { %21456 = vmatprep.subr.mxu0 %v24273_v15  ;;  %v3586_v10 = vmul.f32 %v23110_v17, %v24210_v13 }
 0xd40   :  { %21449 = vmatmul.mubr.msk.f32.vlgmr.msra.gmra.mrb[48].mxu0 %vm142_vm3, %v3586_v10 }
 0xd41   :  { %21457 = vmatpush3.msra.mxu0 %v4124_v9  ;;  %21458 = vmatprep.mubr.msk.f32.mxu0 %vm23547_vm0, %v24273_v15  ;;  %v4543_v29 = vpop.permute.xlu0 %4542 }
 0xd42   :  { %21489 = vmatprep.subr.mxu0 %v24273_v15 }
 0xd45   :  { %v4621_v38 = vpop.permute.xlu0 %4620 }
 0xd49   :  { %v4699_v31 = vpop.permute.xlu0 %4698 }
 0xd4d   :  { %v4777_v39 = vpop.permute.xlu0 %4776 }
 0xd51   :  { %v4855_v4 = vpop.permute.xlu0 %4854 }
 0xd67   :  { %v3574_v28 = vpop.xlane.xlu1 %3573 }
 0xd68   :  { %23111 = vrcp.f32 %v3574_v28 }
 0xd6b   :  { %v4623_v13 = vpop.permute.xlu1 %4622 }
 0xd6f   :  { %v4701_v42 = vpop.permute.xlu1 %4700 }
 0xd72   :  { %v23112_v61 = vpop.eup %23111 }
 0xd73   :  { %v3590_v41 = vmul.f32 %v23112_v61, %v24230_v34  ;;  %v4933_v34 = vpop.permute.xlu0 %4932  ;;  %v4779_v46 = vpop.permute.xlu1 %4778 }
 0xd75   :  { %21459 = vmatmul.mubr.msk.f32.vlgmr.msra.gmra.mrb[50].mxu0 %vm142_vm3, %v3590_v41 }
 0xd76   :  { %21490 = vmatpush3.xpose.msk.msra.mxu0 %vm1553_vm14, %v4467_v18  ;;  %21491 = vmatprep.mubr.msk.f32.mxu0 %vm23547_vm0, %v24273_v15 }
 0xd77   :  { %21494 = vmatprep.subr.mxu0 %v24273_v15  ;;  %v5011_v49 = vpop.permute.xlu0 %5010  ;;  %v4857_v20 = vpop.permute.xlu1 %4856 }
 0xd79   :  { %21492 = vmatmul.mubr.msk.f32.vlgmr.msra.gmra.mrb[52].mxu0 %vm1553_vm14, %v4465_v8 }
 0xd7a   :  { %21495 = vmatpush3.xpose.msk.msra.mxu0 %vm1553_vm14, %v4545_v30  ;;  %21496 = vmatprep.mubr.msk.f32.mxu0 %vm23547_vm0, %v24273_v15 }
 0xd7b   :  { %21499 = vmatprep.subr.mxu0 %v24273_v15  ;;  %v4935_v60 = vpop.permute.xlu1 %4934 }
 0xd7d   :  { %21497 = vmatmul.mubr.msk.f32.vlgmr.msra.gmra.mrb[54].mxu0 %vm1553_vm14, %v4543_v29 }
 0xd7e   :  { %21500 = vmatpush3.xpose.msk.msra.mxu0 %vm1553_vm14, %v4623_v13  ;;  %21501 = vmatprep.mubr.msk.f32.mxu0 %vm23547_vm0, %v24273_v15 }
 0xd7f   :  { %21504 = vmatprep.subr.mxu0 %v24273_v15 }
 0xd81   :  { %21502 = vmatmul.mubr.msk.f32.vlgmr.msra.gmra.mrb[56].mxu0 %vm1553_vm14, %v4621_v38 }
 0xd82   :  { %21505 = vmatpush3.xpose.msk.msra.mxu0 %vm1553_vm14, %v4701_v42  ;;  %21506 = vmatprep.mubr.msk.f32.mxu0 %vm23547_vm0, %v24273_v15 }
 0xd83   :  { %21509 = vmatprep.subr.mxu0 %v24273_v15 }
 0xd85   :  { %21507 = vmatmul.mubr.msk.f32.vlgmr.msra.gmra.mrb[58].mxu0 %vm1553_vm14, %v4699_v31 }
 0xd86   :  { %21510 = vmatpush3.xpose.msk.msra.mxu0 %vm1553_vm14, %v4779_v46  ;;  %21511 = vmatprep.mubr.msk.f32.mxu0 %vm23547_vm0, %v24273_v15 }
 0xd87   :  { %v3511_v25 = vpop.xlane.xlu0 %3510  ;;  %21514 = vmatprep.subr.mxu0 %v24273_v15 }
 0xd88   :  { %v3529_v23 = vsub.f32 %v24246_v50, %v3511_v25  ;;  %v5013_v50 = vpop.permute.xlu1 %5012 }
 0xd89   :  { %21512 = vmatmul.mubr.msk.f32.vlgmr.msra.gmra.mrb[60].mxu0 %vm1553_vm14, %v4777_v39 }
 0xd8a   :  { %v3539_v26 = vmul.f32 1.442695, %v3529_v23  ;;  %21515 = vmatpush3.xpose.msk.msra.mxu0 %vm1553_vm14, %v4857_v20  ;;  %21516 = vmatprep.mubr.msk.f32.mxu0 %vm23547_vm0, %v24273_v15 }
 0xd8b   :  { %21519 = vmatprep.subr.mxu0 %v24273_v15  ;;  %v3517_v11 = vpop.xlane.xlu0 %3516 }
 0xd8c   :  { %23113 = vpow2.f32 %v3539_v26  ;;  %v3531_v2 = vsub.f32 %v24250_v48, %v3517_v11 }
 0xd8d   :  { %21517 = vmatmul.mubr.msk.f32.vlgmr.msra.gmra.mrb[62].mxu0 %vm1553_vm14, %v4855_v4 }
 0xd8e   :  { %21520 = vmatpush3.xpose.msk.msra.mxu0 %vm1553_vm14, %v4935_v60  ;;  %21521 = vmatprep.mubr.msk.f32.mxu0 %vm23547_vm0, %v24273_v15  ;;  %v3543_v17 = vmul.f32 1.442695, %v3531_v2 }
 0xd8f   :  { %21524 = vmatprep.subr.mxu0 %v24273_v15 }
 0xd91   :  { %21522 = vmatmul.mubr.msk.f32.vlgmr.msra.gmra.mrb[64].mxu0 %vm1553_vm14, %v4933_v34 }
 0xd92   :  { %21525 = vmatpush3.xpose.msk.msra.mxu0 %vm1553_vm14, %v5013_v50  ;;  %21526 = vmatprep.mubr.msk.f32.mxu0 %vm23547_vm0, %v24273_v15 }
 0xd93   :  { %21534 = vmatprep.subr.mxu0 %v24273_v15 }
 0xd95   :  { %21527 = vmatmul.mubr.msk.f32.vlgmr.msra.gmra.mrb[66].mxu0 %vm1553_vm14, %v5011_v49 }
 0xd96   :  { %v24331_v33 = vpop.eup %23113  ;;  %21536 = vmatprep.mubr.msk.f32.mxu0 %vm23547_vm0, %v24273_v15 }
 0xd97   :  { %v3557_v1 = vsel %vm142_vm3, %v24331_v33, 0.0 }
 0xd98   :  { %3558 = vadd.xlane.f32.xlu1 %v3557_v1 }
 0xdb0   :  { %v3505_v3 = vpop.xlane.xlu1 %3504 }
 0xdb1   :  { %v3527_v16 = vsub.f32 %v24260_v21, %v3505_v3 }
 0xdb3   :  { %v3535_v10 = vmul.f32 1.442695, %v3527_v16 }
 0xdb4   :  { %v3523_v9 = vpop.xlane.xlu1 %3522 }
 0xdb5   :  { %23115 = vpow2.f32 %v3535_v10  ;;  %v3533_v8 = vsub.f32 %v24262_v24, %v3523_v9 }
 0xdb6   :  { %23117 = vpow2.f32 %v3543_v17 }
 0xdb7   :  { %v3547_v18 = vmul.f32 1.442695, %v3533_v8 }
 0xdb9   :  { %23119 = vpow2.f32 %v3547_v18 }
 0xdbf   :  { %v23116_v29 = vpop.eup %23115 }
 0xdc0   :  { %v3551_v30 = vsel %vm142_vm3, %v23116_v29, 0.0  ;;  %v24341_v38 = vpop.eup %23117 }
 0xdc1   :  { %3552 = vadd.xlane.f32.xlu0 %v3551_v30  ;;  %v3563_v21 = vsel %vm142_vm3, %v24341_v38, 0.0 }
 0xdc3   :  { %v24343_v28 = vpop.eup %23119 }
 0xdc4   :  { %v3569_v48 = vsel %vm142_vm3, %v24343_v28, 0.0 }
 0xdc5   :  { %3570 = vadd.xlane.f32.xlu1 %v3569_v48  ;;  %3564 = vadd.xlane.f32.xlu0 %v3563_v21 }
 0xdd6   :  { %3743 = vrot.lane.b32.xlu1 %v23966_v40, %s23554_s6 }
 0xdda   :  { %3895 = vrot.lane.b32.xlu1 %v23959_v43, %s23554_s6 }
 0xddb   :  { %3591 = vrot.lane.b32.xlu0 %v23950_v62, %s23554_s6 }
 0xddf   :  { %4047 = vrot.lane.b32.xlu0 %v23969_v32, %s23554_s6 }
 0xe0b   :  { %v24357_v24 = vpop.f32.mrb[44].mxu0 }
 0xe0c   :  { %v21430_v31 = vpop.f32.mrb[45].mxu0 }
 0xe0f   :  { %v24359_v39 = vpop.f32.mrb[46].mxu0 }
 0xe10   :  { %v21440_v61 = vpop.f32.mrb[47].mxu0 }
 0xe13   :  { %v24361_v13 = vpop.f32.mrb[48].mxu0 }
 0xe14   :  { %v21450_v41 = vpop.f32.mrb[49].mxu0 }
 0xe25   :  { %v3559_v20 = vpop.xlane.xlu1 %3558 }
 0xe48   :  { %v24363_v4 = vpop.f32.mrb[50].mxu0 }
 0xe49   :  { %v21460_v42 = vpop.f32.mrb[51].mxu0 }
 0xe4c   :  { %v4538_v34 = vpop.f32.mrb[52].mxu0 }
 0xe4d   :  { %v24365_v46 = vmul.f32 0.5, %v4538_v34  ;;  %v21493_v49 = vpop.f32.mrb[53].mxu0 }
 0xe4e   :  { %v3553_v25 = vpop.xlane.xlu0 %3552 }
 0xe4f   :  { %23121 = vrcp.f32 %v3553_v25  ;;  %v5096_v23 = vsel %vm142_vm3, %v24365_v46, -inf }
 0xe50   :  { %v4616_v26 = vpop.f32.mrb[54].mxu0  ;;  %5097 = vmax.xlane.f32.xlu1 %v5096_v23  ;;  %23123 = vrcp.f32 %v3559_v20 }
 0xe51   :  { %v24369_v60 = vmul.f32 0.5, %v4616_v26  ;;  %v21498_v50 = vpop.f32.mrb[55].mxu0 }
 0xe52   :  { %v3565_v1 = vpop.xlane.xlu0 %3564  ;;  %v3571_v2 = vpop.xlane.xlu1 %3570 }
 0xe53   :  { %v5099_v11 = vsel %vm142_vm3, %v24369_v60, -inf  ;;  %23125 = vrcp.f32 %v3565_v1 }
 0xe54   :  { %v4694_v3 = vpop.f32.mrb[56].mxu0  ;;  %5100 = vmax.xlane.f32.xlu0 %v5099_v11  ;;  %23127 = vrcp.f32 %v3571_v2 }
 0xe55   :  { %v24373_v16 = vmul.f32 0.5, %v4694_v3  ;;  %v21503_v17 = vpop.f32.mrb[57].mxu0 }
 0xe56   :  { %v3592_v10 = vpop.permute.xlu0 %3591  ;;  %v3744_v21 = vpop.permute.xlu1 %3743 }
 0xe57   :  { %21422 = vmatpush3.msra.mxu1 %v3592_v10  ;;  %v5102_v9 = vsel %vm142_vm3, %v24373_v16, -inf }
 0xe58   :  { %v4772_v8 = vpop.f32.mrb[58].mxu0  ;;  %5103 = vmax.xlane.f32.xlu0 %v5102_v9  ;;  %21431 = vmatprep.subr.mxu1 %v24273_v15 }
 0xe59   :  { %v23122_v18 = vpop.eup %23121  ;;  %v24378_v30 = vmul.f32 0.5, %v4772_v8  ;;  %v21508_v48 = vpop.f32.mrb[59].mxu0 }
 0xe5a   :  { %v3576_v31 = vmul.f32 %v23122_v18, %v23116_v29  ;;  %v23124_v61 = vpop.eup %23123  ;;  %v3896_v23 = vpop.permute.xlu1 %3895 }
 0xe5b   :  { %v5105_v41 = vsel %vm142_vm3, %v24378_v30, -inf  ;;  %v3580_v20 = vmul.f32 %v23124_v61, %v24331_v33  ;;  %v4048_v3 = vpop.permute.xlu0 %4047 }
 0xe5c   :  { %v4850_v42 = vpop.f32.mrb[60].mxu0  ;;  %5106 = vmax.xlane.f32.xlu1 %v5105_v41  ;;  %21424 = vmatmul.mubr.msk.f32.vlgmr.msra.gmra.mrb[42].mxu1 %vm142_vm3, %v3576_v31 }
 0xe5d   :  { %v24383_v34 = vmul.f32 0.5, %v4850_v42  ;;  %21432 = vmatpush3.msra.mxu1 %v3744_v21  ;;  %v21513_v49 = vpop.f32.mrb[61].mxu0  ;;  %21433 = vmatprep.mubr.msk.f32.mxu1 %vm23547_vm0, %v24273_v15  ;;  %v23126_v29 = vpop.eup %23125 }
 0xe5e   :  { %21441 = vmatprep.subr.mxu1 %v24273_v15  ;;  %v3584_v33 = vmul.f32 %v23126_v29, %v24341_v38  ;;  %v23128_v11 = vpop.eup %23127 }
 0xe5f   :  { %v5108_v25 = vsel %vm142_vm3, %v24383_v34, -inf  ;;  %v3588_v8 = vmul.f32 %v23128_v11, %v24343_v28  ;;  %v24419_v28 = vld [vmem:[#allocation2 + $0xf8] sm:$0xff] }
 0xe60   :  { %v4928_v26 = vpop.f32.mrb[62].mxu0  ;;  %5109 = vmax.xlane.f32.xlu0 %v5108_v25  ;;  %21434 = vmatmul.mubr.msk.f32.vlgmr.msra.gmra.mrb[44].mxu1 %vm142_vm3, %v3580_v20  ;;  %v4200_v61 = vrot.slane %v24419_v28, 4 }
 0xe61   :  { %v24392_v50 = vmul.f32 0.5, %v4928_v26  ;;  %21442 = vmatpush3.msra.mxu1 %v3896_v23  ;;  %v21518_v1 = vpop.f32.mrb[63].mxu0  ;;  %21443 = vmatprep.mubr.msk.f32.mxu1 %vm23547_vm0, %v24273_v15 }
 0xe62   :  { %21451 = vmatprep.subr.mxu1 %v24273_v15 }
 0xe63   :  { %v5111_v2 = vsel %vm142_vm3, %v24392_v50, -inf }
 0xe64   :  { %v5006_v17 = vpop.f32.mrb[64].mxu0  ;;  %5112 = vmax.xlane.f32.xlu1 %v5111_v2  ;;  %21444 = vmatmul.mubr.msk.f32.vlgmr.msra.gmra.mrb[46].mxu1 %vm142_vm3, %v3584_v33 }
 0xe65   :  { %v5094_v10 = vmul.f32 0.5, %v5006_v17  ;;  %21452 = vmatpush3.msra.mxu1 %v4048_v3  ;;  %v21523_v9 = vpop.f32.mrb[65].mxu0  ;;  %21453 = vmatprep.mubr.msk.f32.mxu1 %vm23547_vm0, %v24273_v15 }
 0xe66   :  { %21461 = vmatprep.subr.msk.mxu1 %vm4225_vm15, %v4200_v61 }
 0xe67   :  { %v5114_v18 = vsel %vm142_vm3, %v5094_v10, -inf }
 0xe68   :  { %v5084_v38 = vpop.f32.mrb[66].mxu0  ;;  %5115 = vmax.xlane.f32.xlu0 %v5114_v18  ;;  %21454 = vmatmul.mubr.msk.f32.vlgmr.msra.gmra.mrb[48].mxu1 %vm142_vm3, %v3588_v8 }
 0xe69   :  { %v5095_v48 = vmul.f32 0.5, %v5084_v38  ;;  %v21528_v21 = vpop.f32.mrb[67].mxu0  ;;  %21462 = vmatpush3.msk.msra.mxu1 %vm4225_vm15, %v4200_v61 }
 0xe6a   :  { %21475 = vmatprep.subr.msk.mxu1 %vm4225_vm15, %v24419_v28 }
 0xe6b   :  { %v5117_v31 = vsel %vm142_vm3, %v5095_v48, -inf }
 0xe6c   :  { %5118 = vmax.xlane.f32.xlu1 %v5117_v31 }
 0xe7d   :  { %5260 = vrot.lane.b32.xlu1 %v23948_v59, %s23557_s26 }
 0xe7e   :  { %5184 = vrot.lane.b32.xlu0 %v23950_v62, %s23557_s26 }
 0xe81   :  { %5336 = vrot.lane.b32.xlu1 %v23966_v40, %s23557_s26 }
 0xe82   :  { %5412 = vrot.lane.b32.xlu0 %v23954_v6, %s23557_s26 }
 0xe85   :  { %5488 = vrot.lane.b32.xlu1 %v23959_v43, %s23557_s26 }
 0xe86   :  { %5564 = vrot.lane.b32.xlu0 %v23957_v7, %s23557_s26 }
 0xedd   :  { %v5098_v41 = vpop.xlane.xlu1 %5097 }
 0xede   :  { %v5120_v42 = vsub.f32 %v24365_v46, %v5098_v41 }
 0xee0   :  { %v5128_v49 = vmul.f32 1.442695, %v5120_v42 }
 0xee1   :  { %v5101_v20 = vpop.xlane.xlu0 %5100 }
 0xee2   :  { %23129 = vpow2.f32 %v5128_v49  ;;  %v5121_v29 = vsub.f32 %v24369_v60, %v5101_v20 }
 0xee4   :  { %v5130_v25 = vmul.f32 1.442695, %v5121_v29 }
 0xee5   :  { %v5104_v23 = vpop.xlane.xlu0 %5103 }
 0xee6   :  { %23131 = vpow2.f32 %v5130_v25  ;;  %v5122_v26 = vsub.f32 %v24373_v16, %v5104_v23 }
 0xee8   :  { %v5132_v1 = vmul.f32 1.442695, %v5122_v26 }
 0xee9   :  { %v5107_v33 = vpop.xlane.xlu1 %5106 }
 0xeea   :  { %23133 = vpow2.f32 %v5132_v1  ;;  %v5123_v11 = vsub.f32 %v24378_v30, %v5107_v33 }
 0xeec   :  { %v24430_v2 = vpop.eup %23129  ;;  %v5134_v3 = vmul.f32 1.442695, %v5123_v11 }
 0xeed   :  { %v5110_v17 = vpop.xlane.xlu0 %5109  ;;  %v5144_v46 = vsel %vm142_vm3, %v24430_v2, 0.0 }
 0xeee   :  { %23135 = vpow2.f32 %v5134_v3  ;;  %v5124_v60 = vsub.f32 %v24383_v34, %v5110_v17  ;;  %5145 = vadd.xlane.f32.xlu0 %v5144_v46 }
 0xef0   :  { %v24435_v9 = vpop.eup %23131  ;;  %v5136_v8 = vmul.f32 1.442695, %v5124_v60 }
 0xef1   :  { %v5113_v16 = vpop.xlane.xlu1 %5112  ;;  %v5147_v18 = vsel %vm142_vm3, %v24435_v9, 0.0 }
 0xef2   :  { %23137 = vpow2.f32 %v5136_v8  ;;  %v5125_v30 = vsub.f32 %v24392_v50, %v5113_v16  ;;  %5148 = vadd.xlane.f32.xlu1 %v5147_v18 }
 0xef4   :  { %v24440_v38 = vpop.eup %23133  ;;  %v5138_v21 = vmul.f32 1.442695, %v5125_v30 }
 0xef5   :  { %v5116_v31 = vpop.xlane.xlu0 %5115  ;;  %v5150_v61 = vsel %vm142_vm3, %v24440_v38, 0.0 }
 0xef6   :  { %23139 = vpow2.f32 %v5138_v21  ;;  %v5126_v34 = vsub.f32 %v5094_v10, %v5116_v31  ;;  %5151 = vadd.xlane.f32.xlu0 %v5150_v61 }
 0xef8   :  { %v24444_v41 = vpop.eup %23135  ;;  %v5140_v42 = vmul.f32 1.442695, %v5126_v34 }
 0xef9   :  { %v5119_v49 = vpop.xlane.xlu1 %5118  ;;  %v5153_v20 = vsel %vm142_vm3, %v24444_v41, 0.0 }
 0xefa   :  { %23141 = vpow2.f32 %v5140_v42  ;;  %v5127_v50 = vsub.f32 %v5095_v48, %v5119_v49  ;;  %5154 = vadd.xlane.f32.xlu1 %v5153_v20 }
 0xefc   :  { %v24448_v29 = vpop.eup %23137  ;;  %v5142_v25 = vmul.f32 1.442695, %v5127_v50 }
 0xefd   :  { %v5261_v23 = vpop.permute.xlu1 %5260  ;;  %v5156_v26 = vsel %vm142_vm3, %v24448_v29, 0.0 }
 0xefe   :  { %23143 = vpow2.f32 %v5142_v25  ;;  %21535 = vmatpush3.msra.mxu0 %v5261_v23  ;;  %5157 = vadd.xlane.f32.xlu0 %v5156_v26  ;;  %v24551_v23 = vld [vmem:[#allocation2 + $0x100] sm:$0xff] }
 0xeff   :  { %21544 = vmatprep.subr.mxu0 %v24273_v15 }
 0xf00   :  { %v24453_v10 = vpop.eup %23139 }
 0xf01   :  { %v5159_v1 = vsel %vm142_vm3, %v24453_v10, 0.0 }
 0xf02   :  { %5160 = vadd.xlane.f32.xlu1 %v5159_v1 }
 0xf04   :  { %v24457_v48 = vpop.eup %23141 }
 0xf05   :  { %v5162_v33 = vsel %vm142_vm3, %v24457_v48, 0.0 }
 0xf06   :  { %5163 = vadd.xlane.f32.xlu0 %v5162_v33 }
 0xf08   :  { %v24461_v11 = vpop.eup %23143 }
 0xf09   :  { %v5165_v3 = vsel %vm142_vm3, %v24461_v11, 0.0 }
 0xf0a   :  { %5166 = vadd.xlane.f32.xlu1 %v5165_v3 }
 0xf1b   :  { %5640 = vrot.lane.b32.xlu1 %v23969_v32, %s23557_s26 }
 0xf1c   :  { %5716 = vrot.lane.b32.xlu0 %v23963_v56, %s23557_s26 }
 0xf1f   :  { %5934 = vrot.lane.b32.xlu1 %v23950_v62, %s23558_s1 }
 0xf20   :  { %5932 = vrot.lane.b32.xlu0 %v23950_v62, %s23559_s27 }
 0xf23   :  { %6012 = vrot.lane.b32.xlu1 %v23948_v59, %s23558_s1 }
 0xf24   :  { %6010 = vrot.lane.b32.xlu0 %v23948_v59, %s23559_s27 }
 0xf27   :  { %6090 = vrot.lane.b32.xlu1 %v23966_v40, %s23558_s1 }
 0xf28   :  { %6088 = vrot.lane.b32.xlu0 %v23966_v40, %s23559_s27 }
 0xf2b   :  { %6168 = vrot.lane.b32.xlu1 %v23954_v6, %s23558_s1 }
 0xf2c   :  { %6166 = vrot.lane.b32.xlu0 %v23954_v6, %s23559_s27 }
 0xf2f   :  { %v3663_v17 = vpop.f32.mrb[42].mxu1  ;;  %6246 = vrot.lane.b32.xlu1 %v23959_v43, %s23558_s1 }
 0xf30   :  { %v21425_v46 = vpop.f32.mrb[43].mxu1  ;;  %21463 = vmatprep.mubr.msk.f32.mxu1 %vm1553_vm14, %v3663_v17  ;;  %6324 = vrot.lane.b32.xlu0 %v23957_v7, %s23558_s1 }
 0xf31   :  { %21464 = vmatmul.mubr.msk.f32.vlgmr.msra.gmra.mrb[50].mxu1 %vm1553_vm14, %v24357_v24 }
 0xf32   :  { %21476 = vmatpush3.msk.msra.mxu1 %vm4225_vm15, %v24419_v28 }
 0xf33   :  { %v3815_v60 = vpop.f32.mrb[44].mxu1  ;;  %6244 = vrot.lane.b32.xlu1 %v23959_v43, %s23559_s27  ;;  %21529 = vmatprep.subr.mxu1 %v24273_v15 }
 0xf34   :  { %v21435_v8 = vpop.f32.mrb[45].mxu1  ;;  %21466 = vmatprep.mubr.msk.f32.mxu1 %vm1553_vm14, %v3815_v60  ;;  %6322 = vrot.lane.b32.xlu0 %v23957_v7, %s23559_s27 }
 0xf35   :  { %21467 = vmatmul.mubr.msk.f32.gmra.mrb[52].mxu1 %vm1553_vm14, %v24359_v39  ;;  %v5185_v39 = vpop.permute.xlu0 %5184 }
 0xf37   :  { %v3967_v16 = vpop.f32.mrb[46].mxu1  ;;  %6402 = vrot.lane.b32.xlu1 %v23969_v32, %s23558_s1 }
 0xf38   :  { %v21445_v24 = vpop.f32.mrb[47].mxu1  ;;  %21469 = vmatprep.mubr.msk.f32.mxu1 %vm1553_vm14, %v3967_v16  ;;  %6480 = vrot.lane.b32.xlu0 %v23963_v56, %s23558_s1 }
 0xf39   :  { %21470 = vmatmul.mubr.msk.f32.gmra.mrb[54].mxu1 %vm1553_vm14, %v24361_v13 }
 0xf3b   :  { %v4119_v28 = vpop.f32.mrb[48].mxu1  ;;  %6400 = vrot.lane.b32.xlu1 %v23969_v32, %s23559_s27 }
 0xf3c   :  { %v21455_v18 = vpop.f32.mrb[49].mxu1  ;;  %21472 = vmatprep.mubr.msk.f32.mxu1 %vm1553_vm14, %v4119_v28  ;;  %6478 = vrot.lane.b32.xlu0 %v23963_v56, %s23559_s27 }
 0xf3d   :  { %21473 = vmatmul.mubr.msk.f32.gmra.mrb[56].mxu1 %vm1553_vm14, %v24363_v4 }
 0xf3e   :  { %21477 = vmatprep.mubr.msk.f32.mxu1 %vm1553_vm14, %v24224_v14  ;;  %v5337_v14 = vpop.permute.xlu1 %5336 }
 0xf41   :  { %21478 = vmatmul.mubr.msk.f32.vlgmr.msra.gmra.mrb[50].mxu1 %vm1553_vm14, %v24141_v35  ;;  %v5413_v35 = vpop.permute.xlu0 %5412 }
 0xf42   :  { %21530 = vmatpush3.msra.mxu1 %v5185_v39  ;;  %21480 = vmatprep.mubr.msk.f32.mxu1 %vm1553_vm14, %v24227_v5  ;;  %v5489_v13 = vpop.permute.xlu1 %5488 }
 0xf43   :  { %21539 = vmatprep.subr.mxu1 %v24273_v15 }
 0xf45   :  { %21481 = vmatmul.mubr.msk.f32.gmra.mrb[52].mxu1 %vm1553_vm14, %v24143_v63  ;;  %v5565_v5 = vpop.permute.xlu0 %5564 }
 0xf46   :  { %21483 = vmatprep.mubr.msk.f32.mxu1 %vm1553_vm14, %v24232_v27 }
 0xf49   :  { %21484 = vmatmul.mubr.msk.f32.gmra.mrb[54].mxu1 %vm1553_vm14, %v24145_v12 }
 0xf4a   :  { %21486 = vmatprep.mubr.msk.f32.mxu1 %vm1553_vm14, %v24237_v36 }
 0xf4d   :  { %21487 = vmatmul.mubr.msk.f32.gmra.mrb[56].mxu1 %vm1553_vm14, %v24147_v57 }
 0xf4e   :  { %21531 = vmatprep.mubr.msk.f32.mxu1 %vm23547_vm0, %v24273_v15 }
 0xf7b   :  { %v5146_v63 = vpop.xlane.xlu0 %5145 }
 0xf7c   :  { %23145 = vrcp.f32 %v5146_v63 }
 0xf7f   :  { %v5149_v4 = vpop.xlane.xlu1 %5148 }
 0xf80   :  { %23147 = vrcp.f32 %v5149_v4 }
 0xf83   :  { %v5152_v27 = vpop.xlane.xlu0 %5151 }
 0xf84   :  { %23149 = vrcp.f32 %v5152_v27 }
 0xf86   :  { %v23146_v12 = vpop.eup %23145 }
 0xf87   :  { %v5169_v30 = vmul.f32 %v23146_v12, %v24430_v2  ;;  %v5155_v36 = vpop.xlane.xlu1 %5154 }
 0xf88   :  { %23151 = vrcp.f32 %v5155_v36 }
 0xf89   :  { %21532 = vmatmul.mubr.msk.f32.vlgmr.msra.gmra.mrb[58].mxu1 %vm142_vm3, %v5169_v30 }
 0xf8a   :  { %v23148_v57 = vpop.eup %23147  ;;  %21540 = vmatpush3.msra.mxu1 %v5337_v14  ;;  %21541 = vmatprep.mubr.msk.f32.mxu1 %vm23547_vm0, %v24273_v15 }
 0xf8b   :  { %v5158_v21 = vpop.xlane.xlu0 %5157  ;;  %v5171_v31 = vmul.f32 %v23148_v57, %v24435_v9  ;;  %21549 = vmatprep.subr.mxu1 %v24273_v15 }
 0xf8c   :  { %23153 = vrcp.f32 %v5158_v21 }
 0xf8d   :  { %21537 = vmatmul.mubr.msk.f32.vlgmr.msra.gmra.mrb[68].mxu0 %vm142_vm3, %v5171_v31 }
 0xf8e   :  { %v23150_v61 = vpop.eup %23149  ;;  %21545 = vmatpush3.msra.mxu0 %v5413_v35  ;;  %21546 = vmatprep.mubr.msk.f32.mxu0 %vm23547_vm0, %v24273_v15 }
 0xf8f   :  { %v5161_v2 = vpop.xlane.xlu1 %5160  ;;  %v5173_v34 = vmul.f32 %v23150_v61, %v24440_v38  ;;  %21554 = vmatprep.subr.mxu0 %v24273_v15 }
 0xf90   :  { %23155 = vrcp.f32 %v5161_v2 }
 0xf91   :  { %21542 = vmatmul.mubr.msk.f32.vlgmr.msra.gmra.mrb[60].mxu1 %vm142_vm3, %v5173_v34 }
 0xf92   :  { %v23152_v42 = vpop.eup %23151  ;;  %21550 = vmatpush3.msra.mxu1 %v5489_v13  ;;  %21551 = vmatprep.mubr.msk.f32.mxu1 %vm23547_vm0, %v24273_v15 }
 0xf93   :  { %v5164_v9 = vpop.xlane.xlu0 %5163  ;;  %v5175_v49 = vmul.f32 %v23152_v42, %v24444_v41  ;;  %21559 = vmatprep.subr.mxu1 %v24273_v15 }
 0xf94   :  { %23157 = vrcp.f32 %v5164_v9 }
 0xf95   :  { %21547 = vmatmul.mubr.msk.f32.vlgmr.msra.gmra.mrb[70].mxu0 %vm142_vm3, %v5175_v49 }
 0xf96   :  { %v23154_v20 = vpop.eup %23153  ;;  %21555 = vmatpush3.msra.mxu0 %v5565_v5  ;;  %21556 = vmatprep.mubr.msk.f32.mxu0 %vm23547_vm0, %v24273_v15 }
 0xf97   :  { %v5167_v38 = vpop.xlane.xlu1 %5166  ;;  %v5717_v50 = vpop.permute.xlu0 %5716  ;;  %v5177_v25 = vmul.f32 %v23154_v20, %v24448_v29  ;;  %21564 = vmatprep.subr.mxu0 %v24273_v15 }
 0xf98   :  { %23159 = vrcp.f32 %v5167_v38 }
 0xf99   :  { %21552 = vmatmul.mubr.msk.f32.vlgmr.msra.gmra.mrb[62].mxu1 %vm142_vm3, %v5177_v25 }
 0xf9a   :  { %v23156_v41 = vpop.eup %23155  ;;  %21561 = vmatprep.mubr.msk.f32.mxu1 %vm23547_vm0, %v24273_v15 }
 0xf9b   :  { %v5641_v26 = vpop.permute.xlu1 %5640  ;;  %v5933_v1 = vpop.permute.xlu0 %5932  ;;  %v5179_v33 = vmul.f32 %v23156_v41, %v24453_v10 }
 0xf9c   :  { %21560 = vmatpush3.msra.mxu1 %v5641_v26 }
 0xf9d   :  { %21557 = vmatmul.mubr.msk.f32.vlgmr.msra.gmra.mrb[72].mxu0 %vm142_vm3, %v5179_v33  ;;  %21569 = vmatprep.subr.msk.mxu1 %vm4225_vm15, %v24551_v23 }
 0xf9e   :  { %v23158_v29 = vpop.eup %23157  ;;  %21565 = vmatpush3.msra.mxu0 %v5717_v50  ;;  %21566 = vmatprep.mubr.msk.f32.mxu0 %vm23547_vm0, %v24273_v15 }
 0xf9f   :  { %v5935_v3 = vpop.permute.xlu1 %5934  ;;  %v6011_v17 = vpop.permute.xlu0 %6010  ;;  %v5181_v46 = vmul.f32 %v23158_v29, %v24457_v48  ;;  %21583 = vmatprep.subr.mxu0 %v24273_v15 }
 0xfa1   :  { %21562 = vmatmul.mubr.msk.f32.vlgmr.msra.gmra.mrb[64].mxu1 %vm142_vm3, %v5181_v46 }
 0xfa2   :  { %v23160_v10 = vpop.eup %23159  ;;  %21570 = vmatpush3.msk.msra.mxu1 %vm4225_vm15, %v24551_v23 }
 0xfa3   :  { %v6089_v60 = vpop.permute.xlu0 %6088  ;;  %v5183_v8 = vmul.f32 %v23160_v10, %v24461_v11  ;;  %21603 = vmatprep.subr.mxu1 %v24273_v15  ;;  %v6013_v16 = vpop.permute.xlu1 %6012 }
 0xfa5   :  { %21567 = vmatmul.mubr.msk.f32.vlgmr.msra.gmra.mrb[74].mxu0 %vm142_vm3, %v5183_v8 }
 0xfa6   :  { %21584 = vmatpush3.xpose.msk.msra.mxu0 %vm1553_vm14, %v5935_v3  ;;  %21585 = vmatprep.mubr.msk.f32.mxu0 %vm23547_vm0, %v24273_v15 }
 0xfa7   :  { %v6167_v48 = vpop.permute.xlu0 %6166  ;;  %21588 = vmatprep.subr.mxu0 %v24273_v15  ;;  %v6091_v11 = vpop.permute.xlu1 %6090 }
 0xfa9   :  { %21586 = vmatmul.mubr.msk.f32.vlgmr.msra.gmra.mrb[76].mxu0 %vm1553_vm14, %v5933_v1 }
 0xfaa   :  { %21589 = vmatpush3.xpose.msk.msra.mxu0 %vm1553_vm14, %v6013_v16  ;;  %21590 = vmatprep.mubr.msk.f32.mxu0 %vm23547_vm0, %v24273_v15 }
 0xfab   :  { %v6325_v24 = vpop.permute.xlu0 %6324  ;;  %21593 = vmatprep.subr.mxu0 %v24273_v15  ;;  %v6169_v18 = vpop.permute.xlu1 %6168 }
 0xfad   :  { %21591 = vmatmul.mubr.msk.f32.vlgmr.msra.gmra.mrb[78].mxu0 %vm1553_vm14, %v6011_v17 }
 0xfae   :  { %21594 = vmatpush3.xpose.msk.msra.mxu0 %vm1553_vm14, %v6091_v11  ;;  %21595 = vmatprep.mubr.msk.f32.mxu0 %vm23547_vm0, %v24273_v15 }
 0xfaf   :  { %21598 = vmatprep.subr.mxu0 %v24273_v15  ;;  %v6323_v28 = vpop.permute.xlu0 %6322  ;;  %v6247_v63 = vpop.permute.xlu1 %6246 }
 0xfb1   :  { %21596 = vmatmul.mubr.msk.f32.vlgmr.msra.gmra.mrb[80].mxu0 %vm1553_vm14, %v6089_v60 }
 0xfb2   :  { %21599 = vmatpush3.xpose.msk.msra.mxu0 %vm1553_vm14, %v6169_v18  ;;  %21600 = vmatprep.mubr.msk.f32.mxu0 %vm23547_vm0, %v24273_v15 }
 0xfb3   :  { %21608 = vmatprep.subr.mxu0 %v24273_v15  ;;  %v6481_v39 = vpop.permute.xlu0 %6480  ;;  %v6245_v2 = vpop.permute.xlu1 %6244 }
 0xfb5   :  { %21601 = vmatmul.mubr.msk.f32.vlgmr.msra.gmra.mrb[82].mxu0 %vm1553_vm14, %v6167_v48 }
 0xfb6   :  { %21609 = vmatpush3.xpose.msk.msra.mxu0 %vm1553_vm14, %v6325_v24  ;;  %21610 = vmatprep.mubr.msk.f32.mxu0 %vm23547_vm0, %v24273_v15 }
 0xfb7   :  { %21618 = vmatprep.subr.mxu0 %v24273_v15  ;;  %v6479_v35 = vpop.permute.xlu0 %6478  ;;  %v6403_v20 = vpop.permute.xlu1 %6402 }
 0xfb9   :  { %21611 = vmatmul.mubr.msk.f32.vlgmr.msra.gmra.mrb[84].mxu0 %vm1553_vm14, %v6323_v28 }
 0xfba   :  { %21619 = vmatpush3.xpose.msk.msra.mxu0 %vm1553_vm14, %v6481_v39  ;;  %21620 = vmatprep.mubr.msk.f32.mxu0 %vm23547_vm0, %v24273_v15 }
 0xfbb   :  { %21628 = vmatprep.subr.mxu0 %v24273_v15  ;;  %v6401_v26 = vpop.permute.xlu1 %6400 }
 0xfbd   :  { %21621 = vmatmul.mubr.msk.f32.vlgmr.msra.gmra.mrb[86].mxu0 %vm1553_vm14, %v6479_v35 }
 0xfbe   :  { %21630 = vmatprep.mubr.msk.f32.mxu0 %vm23547_vm0, %v24273_v15 }
0x105c   :  { %v5256_v14 = vpop.f32.mrb[58].mxu1 }
0x105d   :  { %v21533_v5 = vpop.f32.mrb[59].mxu1  ;;  %21571 = vmatprep.mubr.msk.f32.mxu1 %vm1553_vm14, %v5256_v14 }
0x1060   :  { %v5332_v13 = vpop.f32.mrb[68].mxu0 }
0x1061   :  { %v21538_v4 = vpop.f32.mrb[69].mxu0  ;;  %21572 = vmatmul.mubr.msk.f32.vlgmr.msra.gmra.mrb[50].mxu1 %vm1553_vm14, %v5332_v13 }
0x1062   :  { %21604 = vmatpush3.xpose.msk.msra.mxu1 %vm1553_vm14, %v6247_v63 }
0x1063   :  { %21613 = vmatprep.subr.mxu1 %v24273_v15 }
0x1064   :  { %v5408_v27 = vpop.f32.mrb[60].mxu1 }
0x1065   :  { %v21543_v12 = vpop.f32.mrb[61].mxu1  ;;  %21574 = vmatprep.mubr.msk.f32.mxu1 %vm1553_vm14, %v5408_v27 }
0x1068   :  { %v5484_v30 = vpop.f32.mrb[70].mxu0 }
0x1069   :  { %v21548_v36 = vpop.f32.mrb[71].mxu0  ;;  %21575 = vmatmul.mubr.msk.f32.gmra.mrb[52].mxu1 %vm1553_vm14, %v5484_v30 }
0x106c   :  { %v5560_v57 = vpop.f32.mrb[62].mxu1 }
0x106d   :  { %v21553_v21 = vpop.f32.mrb[63].mxu1  ;;  %21577 = vmatprep.mubr.msk.f32.mxu1 %vm1553_vm14, %v5560_v57 }
0x1070   :  { %v5636_v31 = vpop.f32.mrb[72].mxu0 }
0x1071   :  { %v21558_v61 = vpop.f32.mrb[73].mxu0  ;;  %21578 = vmatmul.mubr.msk.f32.gmra.mrb[54].mxu1 %vm1553_vm14, %v5636_v31 }
0x1074   :  { %v5712_v34 = vpop.f32.mrb[64].mxu1 }
0x1075   :  { %v21563_v42 = vpop.f32.mrb[65].mxu1  ;;  %21580 = vmatprep.mubr.msk.f32.mxu1 %vm1553_vm14, %v5712_v34 }
0x1078   :  { %v5788_v9 = vpop.f32.mrb[74].mxu0 }
0x1079   :  { %v21568_v49 = vpop.f32.mrb[75].mxu0  ;;  %21581 = vmatmul.mubr.msk.f32.gmra.mrb[56].mxu1 %vm1553_vm14, %v5788_v9 }
0x107a   :  { %21605 = vmatprep.mubr.msk.f32.mxu1 %vm23547_vm0, %v24273_v15 }
0x107c   :  { %v6006_v38 = vpop.f32.mrb[76].mxu0 }
0x107d   :  { %v24611_v50 = vmul.f32 0.5, %v6006_v38  ;;  %v21587_v25 = vpop.f32.mrb[77].mxu0  ;;  %21606 = vmatmul.mubr.msk.f32.vlgmr.msra.gmra.mrb[66].mxu1 %vm1553_vm14, %v6245_v2 }
0x107e   :  { %21614 = vmatpush3.xpose.msk.msra.mxu1 %vm1553_vm14, %v6403_v20  ;;  %21615 = vmatprep.mubr.msk.f32.mxu1 %vm23547_vm0, %v24273_v15 }
0x107f   :  { %v6564_v41 = vsel %vm142_vm3, %v24611_v50, -inf  ;;  %21623 = vmatprep.subr.mxu1 %v24273_v15 }
0x1080   :  { %6565 = vmax.xlane.f32.xlu1 %v6564_v41  ;;  %v6084_v1 = vpop.f32.mrb[78].mxu0 }
0x1081   :  { %v6557_v33 = vmul.f32 0.5, %v6084_v1  ;;  %v21592_v29 = vpop.f32.mrb[79].mxu0  ;;  %21616 = vmatmul.mubr.msk.f32.vlgmr.msra.gmra.mrb[68].mxu1 %vm1553_vm14, %v6401_v26 }
0x1082   :  { %21625 = vmatprep.mubr.msk.f32.mxu1 %vm23547_vm0, %v24273_v15 }
0x1083   :  { %v6567_v3 = vsel %vm142_vm3, %v6557_v33, -inf }
0x1084   :  { %6568 = vmax.xlane.f32.xlu0 %v6567_v3  ;;  %v6162_v17 = vpop.f32.mrb[80].mxu0 }
0x1085   :  { %v6558_v46 = vmul.f32 0.5, %v6162_v17  ;;  %v21597_v10 = vpop.f32.mrb[81].mxu0 }
0x1087   :  { %v6570_v60 = vsel %vm142_vm3, %v6558_v46, -inf }
0x1088   :  { %6571 = vmax.xlane.f32.xlu0 %v6570_v60  ;;  %v6240_v8 = vpop.f32.mrb[82].mxu0 }
0x1089   :  { %v6559_v16 = vmul.f32 0.5, %v6240_v8  ;;  %v21602_v48 = vpop.f32.mrb[83].mxu0 }
0x108b   :  { %v6573_v11 = vsel %vm142_vm3, %v6559_v16, -inf }
0x108c   :  { %6574 = vmax.xlane.f32.xlu1 %v6573_v11  ;;  %v6396_v24 = vpop.f32.mrb[84].mxu0 }
0x108d   :  { %v6561_v28 = vmul.f32 0.5, %v6396_v24  ;;  %v21612_v18 = vpop.f32.mrb[85].mxu0 }
0x108f   :  { %v6579_v15 = vsel %vm142_vm3, %v6561_v28, -inf }
0x1090   :  { %6580 = vmax.xlane.f32.xlu1 %v6579_v15  ;;  %v6552_v39 = vpop.f32.mrb[86].mxu0 }
0x1091   :  { %v6563_v35 = vmul.f32 0.5, %v6552_v39  ;;  %v21622_v14 = vpop.f32.mrb[87].mxu0 }
0x1093   :  { %v6585_v5 = vsel %vm142_vm3, %v6563_v35, -inf }
0x1094   :  { %6586 = vmax.xlane.f32.xlu1 %v6585_v5 }
0x110d   :  { %v6566_v27 = vpop.xlane.xlu1 %6565 }
0x110e   :  { %v6588_v1 = vsub.f32 %v24611_v50, %v6566_v27  ;;  %v24689_v27 = vld [vmem:[%s27029_s7 + $0x8] sm:$0xff] }
0x1110   :  { %v6596_v29 = vmul.f32 1.442695, %v6588_v1 }
0x1111   :  { %v6569_v13 = vpop.xlane.xlu0 %6568 }
0x1112   :  { %v6589_v63 = vsub.f32 %v6557_v33, %v6569_v13 }
0x1114   :  { %v6598_v4 = vmul.f32 1.442695, %v6589_v63 }
0x1115   :  { %v6572_v33 = vpop.xlane.xlu0 %6571 }
0x1116   :  { %23161 = vpow2.f32 %v6598_v4  ;;  %v6590_v3 = vsub.f32 %v6558_v46, %v6572_v33 }
0x1118   :  { %v6600_v17 = vmul.f32 1.442695, %v6590_v3 }
0x1119   :  { %v6575_v12 = vpop.xlane.xlu1 %6574 }
0x111a   :  { %v6591_v30 = vsub.f32 %v6559_v16, %v6575_v12 }
0x111c   :  { %v6602_v36 = vmul.f32 1.442695, %v6591_v30 }
0x111d   :  { %v6581_v57 = vpop.xlane.xlu1 %6580 }
0x111e   :  { %23163 = vpow2.f32 %v6602_v36  ;;  %v6593_v21 = vsub.f32 %v6561_v28, %v6581_v57 }
0x1120   :  { %v24628_v31 = vpop.eup %23161  ;;  %v6606_v61 = vmul.f32 1.442695, %v6593_v21 }
0x1121   :  { %v6587_v2 = vpop.xlane.xlu1 %6586  ;;  %v6615_v34 = vsel %vm142_vm3, %v24628_v31, 0.0 }
0x1122   :  { %23165 = vpow2.f32 %v6606_v61  ;;  %v6595_v42 = vsub.f32 %v6563_v35, %v6587_v2  ;;  %6616 = vadd.xlane.f32.xlu1 %v6615_v34 }
0x1124   :  { %v6610_v9 = vmul.f32 1.442695, %v6595_v42 }
0x1126   :  { %23167 = vpow2.f32 %v6610_v9 }
0x1127   :  { %23169 = vpow2.f32 %v6596_v29 }
0x1128   :  { %v24632_v49 = vpop.eup %23163  ;;  %23171 = vpow2.f32 %v6600_v17 }
0x1129   :  { %v6621_v20 = vsel %vm142_vm3, %v24632_v49, 0.0 }
0x112a   :  { %6622 = vadd.xlane.f32.xlu1 %v6621_v20 }
0x112c   :  { %v24636_v38 = vpop.eup %23165 }
0x112d   :  { %v6627_v25 = vsel %vm142_vm3, %v24636_v38, 0.0 }
0x112e   :  { %6628 = vadd.xlane.f32.xlu1 %v6627_v25 }
0x1130   :  { %v24640_v41 = vpop.eup %23167 }
0x1131   :  { %v6633_v26 = vsel %vm142_vm3, %v24640_v41, 0.0  ;;  %v23170_v24 = vpop.eup %23169 }
0x1132   :  { %6634 = vadd.xlane.f32.xlu1 %v6633_v26  ;;  %v6612_v28 = vsel %vm142_vm3, %v23170_v24, 0.0  ;;  %v24662_v18 = vpop.eup %23171 }
0x1133   :  { %v6618_v15 = vsel %vm142_vm3, %v24662_v18, 0.0 }
0x1143   :  { %6728 = vrot.lane.b32.xlu1 %v23948_v59, %s23560_s28 }
0x1147   :  { %6804 = vrot.lane.b32.xlu1 %v23966_v40, %s23560_s28 }
0x114b   :  { %6956 = vrot.lane.b32.xlu1 %v23959_v43, %s23560_s28 }
0x114f   :  { %7108 = vrot.lane.b32.xlu1 %v23969_v32, %s23560_s28 }
0x1150   :  { %v6318_v10 = vpop.f32.mrb[66].mxu1 }
0x1151   :  { %v6560_v60 = vmul.f32 0.5, %v6318_v10  ;;  %v21607_v8 = vpop.f32.mrb[67].mxu1 }
0x1153   :  { %7402 = vrot.lane.b32.xlu1 %v23950_v62, %s23561_s29  ;;  %v6576_v50 = vsel %vm142_vm3, %v6560_v60, -inf }
0x1154   :  { %v6474_v16 = vpop.f32.mrb[68].mxu1  ;;  %6577 = vmax.xlane.f32.xlu0 %v6576_v50 }
0x1155   :  { %v6562_v46 = vmul.f32 0.5, %v6474_v16  ;;  %v21617_v48 = vpop.f32.mrb[69].mxu1 }
0x1157   :  { %7480 = vrot.lane.b32.xlu1 %v23948_v59, %s23561_s29  ;;  %v6582_v11 = vsel %vm142_vm3, %v6562_v46, -inf }
0x1158   :  { %6583 = vmax.xlane.f32.xlu0 %v6582_v11 }
0x115b   :  { %7558 = vrot.lane.b32.xlu1 %v23966_v40, %s23561_s29 }
0x115c   :  { %6613 = vadd.xlane.f32.xlu0 %v6612_v28 }
0x115f   :  { %7636 = vrot.lane.b32.xlu1 %v23954_v6, %s23561_s29 }
0x1160   :  { %6619 = vadd.xlane.f32.xlu0 %v6618_v15 }
0x1163   :  { %7714 = vrot.lane.b32.xlu1 %v23959_v43, %s23561_s29 }
0x1167   :  { %7712 = vrot.lane.b32.xlu1 %v23959_v43, %s23562_s30 }
0x116b   :  { %7870 = vrot.lane.b32.xlu1 %v23969_v32, %s23561_s29 }
0x116f   :  { %7868 = vrot.lane.b32.xlu1 %v23969_v32, %s23562_s30 }
0x1176   :  { %6652 = vrot.lane.b32.xlu0 %v23950_v62, %s23560_s28 }
0x117a   :  { %6880 = vrot.lane.b32.xlu0 %v23954_v6, %s23560_s28 }
0x117e   :  { %7032 = vrot.lane.b32.xlu0 %v23957_v7, %s23560_s28 }
0x11af   :  { %v6617_v39 = vpop.xlane.xlu1 %6616 }
0x11b0   :  { %23173 = vrcp.f32 %v6617_v39  ;;  %v7260_v39 = vrot.slane %v24551_v23, 4 }
0x11b7   :  { %v6623_v35 = vpop.xlane.xlu1 %6622 }
0x11ba   :  { %v23174_v13 = vpop.eup %23173 }
0x11bb   :  { %v6629_v14 = vpop.xlane.xlu1 %6628  ;;  %v6639_v4 = vmul.f32 %v23174_v13, %v24628_v31 }
0x11bf   :  { %v24682_v5 = vpop.xlane.xlu1 %6634 }
0x11c3   :  { %v6729_v63 = vpop.permute.xlu1 %6728 }
0x11c4   :  { %21629 = vmatpush3.msra.mxu0 %v6729_v63 }
0x11c5   :  { %21631 = vmatmul.mubr.msk.f32.vlgmr.msra.gmra.mrb[88].mxu0 %vm142_vm3, %v6639_v4  ;;  %21638 = vmatprep.subr.mxu0 %v24689_v27 }
0x11c6   :  { %21640 = vmatprep.mubr.msk.f32.mxu0 %vm23547_vm0, %v24689_v27 }
0x11c7   :  { %v6805_v17 = vpop.permute.xlu1 %6804 }
0x11cb   :  { %v6957_v16 = vpop.permute.xlu1 %6956 }
0x11e1   :  { %v6578_v12 = vpop.xlane.xlu0 %6577 }
0x11e2   :  { %v6592_v30 = vsub.f32 %v6560_v60, %v6578_v12 }
0x11e4   :  { %v6604_v36 = vmul.f32 1.442695, %v6592_v30 }
0x11e5   :  { %v6584_v57 = vpop.xlane.xlu0 %6583 }
0x11e6   :  { %23175 = vpow2.f32 %v6604_v36  ;;  %v6594_v21 = vsub.f32 %v6562_v46, %v6584_v57  ;;  %v7109_v46 = vpop.permute.xlu1 %7108 }
0x11e7   :  { %23177 = vrcp.f32 %v6623_v35 }
0x11e8   :  { %v6608_v31 = vmul.f32 1.442695, %v6594_v21 }
0x11e9   :  { %v6614_v61 = vpop.xlane.xlu0 %6613 }
0x11ea   :  { %23179 = vpow2.f32 %v6608_v31 }
0x11eb   :  { %23181 = vrcp.f32 %v6614_v61 }
0x11ec   :  { %23183 = vrcp.f32 %v6629_v14 }
0x11ed   :  { %v6620_v2 = vpop.xlane.xlu0 %6619 }
0x11ee   :  { %23185 = vrcp.f32 %v6620_v2 }
0x11ef   :  { %23187 = vrcp.f32 %v24682_v5 }
0x11f0   :  { %v24694_v34 = vpop.eup %23175 }
0x11f1   :  { %v6653_v42 = vpop.permute.xlu0 %6652  ;;  %v6624_v9 = vsel %vm142_vm3, %v24694_v34, 0.0  ;;  %v23178_v20 = vpop.eup %23177 }
0x11f2   :  { %6625 = vadd.xlane.f32.xlu0 %v6624_v9  ;;  %21624 = vmatpush3.msra.mxu1 %v6653_v42  ;;  %v6643_v29 = vmul.f32 %v23178_v20, %v24632_v49 }
0x11f3   :  { %21633 = vmatprep.subr.mxu1 %v24689_v27 }
0x11f4   :  { %v24699_v25 = vpop.eup %23179 }
0x11f5   :  { %v23182_v26 = vpop.eup %23181  ;;  %v6881_v1 = vpop.permute.xlu0 %6880  ;;  %v6630_v33 = vsel %vm142_vm3, %v24699_v25, 0.0 }
0x11f6   :  { %v23184_v3 = vpop.eup %23183  ;;  %6631 = vadd.xlane.f32.xlu0 %v6630_v33  ;;  %21639 = vmatpush3.msra.mxu0 %v6881_v1  ;;  %v6637_v10 = vmul.f32 %v23182_v26, %v23170_v24 }
0x11f7   :  { %21641 = vmatmul.mubr.msk.f32.vlgmr.msra.gmra.mrb[90].mxu0 %vm142_vm3, %v6643_v29  ;;  %21648 = vmatprep.subr.mxu0 %v24689_v27  ;;  %v6647_v50 = vmul.f32 %v23184_v3, %v24636_v38 }
0x11f8   :  { %v23186_v60 = vpop.eup %23185  ;;  %21626 = vmatmul.mubr.msk.f32.vlgmr.msra.gmra.mrb[70].mxu1 %vm142_vm3, %v6637_v10  ;;  %21650 = vmatprep.mubr.msk.f32.mxu0 %vm23547_vm0, %v24689_v27 }
0x11f9   :  { %21634 = vmatpush3.msra.mxu1 %v6805_v17  ;;  %v7033_v8 = vpop.permute.xlu0 %7032  ;;  %21635 = vmatprep.mubr.msk.f32.mxu1 %vm23547_vm0, %v24689_v27  ;;  %v6641_v49 = vmul.f32 %v23186_v60, %v24662_v18  ;;  %v23188_v11 = vpop.eup %23187 }
0x11fa   :  { %21643 = vmatprep.subr.mxu1 %v24689_v27  ;;  %21649 = vmatpush3.msra.mxu0 %v7033_v8  ;;  %v6651_v28 = vmul.f32 %v23188_v11, %v24640_v41  ;;  %v7403_v18 = vpop.permute.xlu1 %7402 }
0x11fb   :  { %21651 = vmatmul.mubr.msk.f32.vlgmr.msra.gmra.mrb[92].mxu0 %vm142_vm3, %v6647_v50  ;;  %21658 = vmatprep.subr.mxu0 %v24689_v27 }
0x11fc   :  { %21636 = vmatmul.mubr.msk.f32.vlgmr.msra.gmra.mrb[72].mxu1 %vm142_vm3, %v6641_v49  ;;  %21660 = vmatprep.mubr.msk.f32.mxu0 %vm23547_vm0, %v24689_v27 }
0x11fd   :  { %21644 = vmatpush3.msra.mxu1 %v6957_v16  ;;  %21645 = vmatprep.mubr.msk.f32.mxu1 %vm23547_vm0, %v24689_v27 }
0x11fe   :  { %21653 = vmatprep.subr.mxu1 %v24689_v27  ;;  %v7481_v13 = vpop.permute.xlu1 %7480 }
0x1202   :  { %v7559_v4 = vpop.permute.xlu1 %7558 }
0x1206   :  { %v7637_v57 = vpop.permute.xlu1 %7636 }
0x120c   :  { %7184 = vrot.lane.b32.xlu0 %v23963_v56, %s23560_s28 }
0x1210   :  { %7400 = vrot.lane.b32.xlu0 %v23950_v62, %s23562_s30 }
0x1214   :  { %7478 = vrot.lane.b32.xlu0 %v23948_v59, %s23562_s30 }
0x1218   :  { %7556 = vrot.lane.b32.xlu0 %v23966_v40, %s23562_s30 }
0x121c   :  { %7634 = vrot.lane.b32.xlu0 %v23954_v6, %s23562_s30 }
0x1220   :  { %7792 = vrot.lane.b32.xlu0 %v23957_v7, %s23561_s29 }
0x1224   :  { %7790 = vrot.lane.b32.xlu0 %v23957_v7, %s23562_s30 }
0x1228   :  { %7948 = vrot.lane.b32.xlu0 %v23963_v56, %s23561_s29 }
0x122c   :  { %7946 = vrot.lane.b32.xlu0 %v23963_v56, %s23562_s30 }
0x127f   :  { %v6626_v38 = vpop.xlane.xlu0 %6625 }
0x1280   :  { %23189 = vrcp.f32 %v6626_v38 }
0x1283   :  { %v6632_v48 = vpop.xlane.xlu0 %6631 }
0x1284   :  { %23191 = vrcp.f32 %v6632_v48 }
0x1287   :  { %v7185_v24 = vpop.permute.xlu0 %7184 }
0x1288   :  { %21659 = vmatpush3.msra.mxu0 %v7185_v24 }
0x1289   :  { %21661 = vmatmul.mubr.msk.f32.vlgmr.msra.gmra.mrb[94].mxu0 %vm142_vm3, %v6651_v28  ;;  %21677 = vmatprep.subr.mxu0 %v24689_v27 }
0x128a   :  { %v23190_v15 = vpop.eup %23189  ;;  %21679 = vmatprep.mubr.msk.f32.mxu0 %vm23547_vm0, %v24689_v27 }
0x128b   :  { %v7401_v35 = vpop.permute.xlu0 %7400  ;;  %v6645_v14 = vmul.f32 %v23190_v15, %v24694_v34 }
0x128d   :  { %21646 = vmatmul.mubr.msk.f32.vlgmr.msra.gmra.mrb[74].mxu1 %vm142_vm3, %v6645_v14 }
0x128e   :  { %v23192_v5 = vpop.eup %23191  ;;  %21654 = vmatpush3.msra.mxu1 %v7109_v46  ;;  %21655 = vmatprep.mubr.msk.f32.mxu1 %vm23547_vm0, %v24689_v27 }
0x128f   :  { %21678 = vmatpush3.xpose.msk.msra.mxu0 %vm1553_vm14, %v7403_v18  ;;  %v7479_v41 = vpop.permute.xlu0 %7478  ;;  %v6649_v63 = vmul.f32 %v23192_v5, %v24699_v25  ;;  %21663 = vmatprep.subr.msk.mxu1 %vm4225_vm15, %v7260_v39  ;;  %v7715_v25 = vpop.permute.xlu1 %7714 }
0x1290   :  { %21682 = vmatprep.subr.mxu0 %v24689_v27 }
0x1291   :  { %21656 = vmatmul.mubr.msk.f32.vlgmr.msra.gmra.mrb[76].mxu1 %vm142_vm3, %v6649_v63 }
0x1292   :  { %21680 = vmatmul.mubr.msk.f32.vlgmr.msra.gmra.mrb[96].mxu0 %vm1553_vm14, %v7401_v35  ;;  %21664 = vmatpush3.msk.msra.mxu1 %vm4225_vm15, %v7260_v39 }
0x1293   :  { %21683 = vmatpush3.xpose.msk.msra.mxu0 %vm1553_vm14, %v7481_v13  ;;  %v7557_v23 = vpop.permute.xlu0 %7556  ;;  %21684 = vmatprep.mubr.msk.f32.mxu0 %vm23547_vm0, %v24689_v27  ;;  %v7713_v60 = vpop.permute.xlu1 %7712 }
0x1294   :  { %21687 = vmatprep.subr.mxu0 %v24689_v27  ;;  %21697 = vmatprep.subr.mxu1 %v24689_v27 }
0x1296   :  { %21685 = vmatmul.mubr.msk.f32.vlgmr.msra.gmra.mrb[98].mxu0 %vm1553_vm14, %v7479_v41 }
0x1297   :  { %21688 = vmatpush3.xpose.msk.msra.mxu0 %vm1553_vm14, %v7559_v4  ;;  %v7635_v12 = vpop.permute.xlu0 %7634  ;;  %21689 = vmatprep.mubr.msk.f32.mxu0 %vm23547_vm0, %v24689_v27  ;;  %v7871_v48 = vpop.permute.xlu1 %7870 }
0x1298   :  { %v6800_v30 = vpop.f32.mrb[88].mxu0  ;;  %21692 = vmatprep.subr.mxu0 %v24689_v27 }
0x1299   :  { %v21632_v36 = vpop.f32.mrb[89].mxu0 }
0x129a   :  { %21690 = vmatmul.mubr.msk.f32.vlgmr.msra.gmra.mrb[100].mxu0 %vm1553_vm14, %v7557_v23 }
0x129b   :  { %21693 = vmatpush3.xpose.msk.msra.mxu0 %vm1553_vm14, %v7637_v57  ;;  %v7793_v21 = vpop.permute.xlu0 %7792  ;;  %21694 = vmatprep.mubr.msk.f32.mxu0 %vm23547_vm0, %v24689_v27  ;;  %v7869_v39 = vpop.permute.xlu1 %7868 }
0x129c   :  { %21702 = vmatprep.subr.mxu0 %v24689_v27 }
0x129e   :  { %21695 = vmatmul.mubr.msk.f32.vlgmr.msra.gmra.mrb[102].mxu0 %vm1553_vm14, %v7635_v12 }
0x129f   :  { %21703 = vmatpush3.xpose.msk.msra.mxu0 %vm1553_vm14, %v7793_v21  ;;  %v7791_v31 = vpop.permute.xlu0 %7790  ;;  %21704 = vmatprep.mubr.msk.f32.mxu0 %vm23547_vm0, %v24689_v27 }
0x12a0   :  { %21712 = vmatprep.subr.mxu0 %v24689_v27 }
0x12a2   :  { %21705 = vmatmul.mubr.msk.f32.vlgmr.msra.gmra.mrb[104].mxu0 %vm1553_vm14, %v7791_v31 }
0x12a3   :  { %v7949_v61 = vpop.permute.xlu0 %7948  ;;  %21714 = vmatprep.mubr.msk.f32.mxu0 %vm23547_vm0, %v24689_v27 }
0x12a4   :  { %21713 = vmatpush3.xpose.msk.msra.mxu0 %vm1553_vm14, %v7949_v61 }
0x12a5   :  { %21722 = vmatprep.subr.mxu0 %v24689_v27 }
0x12a7   :  { %v7947_v2 = vpop.permute.xlu0 %7946 }
0x12a8   :  { %21715 = vmatmul.mubr.msk.f32.vlgmr.msra.gmra.mrb[106].mxu0 %vm1553_vm14, %v7947_v2 }
0x12a9   :  { %21724 = vmatprep.mubr.msk.f32.mxu0 %vm23547_vm0, %v24689_v27 }
0x12ca   :  { %v6952_v34 = vpop.f32.mrb[90].mxu0 }
0x12cb   :  { %v6724_v42 = vpop.f32.mrb[70].mxu1  ;;  %v21642_v9 = vpop.f32.mrb[91].mxu0 }
0x12cc   :  { %v21627_v20 = vpop.f32.mrb[71].mxu1  ;;  %21665 = vmatprep.mubr.msk.f32.mxu1 %vm1553_vm14, %v6724_v42 }
0x12cd   :  { %21666 = vmatmul.mubr.msk.f32.vlgmr.msra.gmra.mrb[50].mxu1 %vm1553_vm14, %v6800_v30 }
0x12ce   :  { %21698 = vmatpush3.xpose.msk.msra.mxu1 %vm1553_vm14, %v7715_v25  ;;  %v7104_v26 = vpop.f32.mrb[92].mxu0 }
0x12cf   :  { %v6876_v1 = vpop.f32.mrb[72].mxu1  ;;  %v21652_v33 = vpop.f32.mrb[93].mxu0  ;;  %21707 = vmatprep.subr.mxu1 %v24689_v27 }
0x12d0   :  { %v21637_v29 = vpop.f32.mrb[73].mxu1  ;;  %21668 = vmatprep.mubr.msk.f32.mxu1 %vm1553_vm14, %v6876_v1 }
0x12d1   :  { %21669 = vmatmul.mubr.msk.f32.gmra.mrb[52].mxu1 %vm1553_vm14, %v6952_v34 }
0x135c   :  { %v7256_v3 = vpop.f32.mrb[94].mxu0 }
0x135d   :  { %v21662_v17 = vpop.f32.mrb[95].mxu0 }
0x1360   :  { %v7028_v10 = vpop.f32.mrb[74].mxu1 }
0x1361   :  { %v21647_v8 = vpop.f32.mrb[75].mxu1  ;;  %21671 = vmatprep.mubr.msk.f32.mxu1 %vm1553_vm14, %v7028_v10 }
0x1362   :  { %21672 = vmatmul.mubr.msk.f32.gmra.mrb[54].mxu1 %vm1553_vm14, %v7104_v26 }
0x1364   :  { %v7180_v49 = vpop.f32.mrb[76].mxu1 }
0x1365   :  { %v21657_v50 = vpop.f32.mrb[77].mxu1  ;;  %21674 = vmatprep.mubr.msk.f32.mxu1 %vm1553_vm14, %v7180_v49  ;;  %v7474_v16 = vpop.f32.mrb[96].mxu0 }
0x1366   :  { %v24795_v38 = vmul.f32 0.5, %v7474_v16  ;;  %21675 = vmatmul.mubr.msk.f32.gmra.mrb[56].mxu1 %vm1553_vm14, %v7256_v3  ;;  %v21681_v46 = vpop.f32.mrb[97].mxu0 }
0x1367   :  { %21699 = vmatprep.mubr.msk.f32.mxu1 %vm23547_vm0, %v24689_v27 }
0x1368   :  { %v8032_v11 = vsel %vm142_vm3, %v24795_v38, -inf }
0x1369   :  { %8033 = vmax.xlane.f32.xlu1 %v8032_v11  ;;  %v7552_v24 = vpop.f32.mrb[98].mxu0 }
0x136a   :  { %v8025_v28 = vmul.f32 0.5, %v7552_v24  ;;  %v21686_v18 = vpop.f32.mrb[99].mxu0  ;;  %21700 = vmatmul.mubr.msk.f32.vlgmr.msra.gmra.mrb[78].mxu1 %vm1553_vm14, %v7713_v60 }
0x136b   :  { %21708 = vmatpush3.xpose.msk.msra.mxu1 %vm1553_vm14, %v7871_v48  ;;  %21709 = vmatprep.mubr.msk.f32.mxu1 %vm23547_vm0, %v24689_v27 }
0x136c   :  { %v8035_v15 = vsel %vm142_vm3, %v8025_v28, -inf  ;;  %21717 = vmatprep.subr.mxu1 %v24689_v27 }
0x136d   :  { %8036 = vmax.xlane.f32.xlu0 %v8035_v15  ;;  %v7630_v35 = vpop.f32.mrb[100].mxu0 }
0x136e   :  { %v8026_v14 = vmul.f32 0.5, %v7630_v35  ;;  %v21691_v5 = vpop.f32.mrb[101].mxu0  ;;  %21710 = vmatmul.mubr.msk.f32.vlgmr.msra.gmra.mrb[80].mxu1 %vm1553_vm14, %v7869_v39 }
0x136f   :  { %21719 = vmatprep.mubr.msk.f32.mxu1 %vm23547_vm0, %v24689_v27 }
0x1370   :  { %v8038_v13 = vsel %vm142_vm3, %v8026_v14, -inf }
0x1371   :  { %8039 = vmax.xlane.f32.xlu0 %v8038_v13  ;;  %v7708_v41 = vpop.f32.mrb[102].mxu0 }
0x1372   :  { %v8027_v63 = vmul.f32 0.5, %v7708_v41  ;;  %v21696_v23 = vpop.f32.mrb[103].mxu0 }
0x1374   :  { %v8041_v4 = vsel %vm142_vm3, %v8027_v63, -inf }
0x1375   :  { %8042 = vmax.xlane.f32.xlu1 %v8041_v4  ;;  %v7864_v12 = vpop.f32.mrb[104].mxu0 }
0x1376   :  { %v8029_v30 = vmul.f32 0.5, %v7864_v12  ;;  %v21706_v36 = vpop.f32.mrb[105].mxu0 }
0x1378   :  { %v8047_v57 = vsel %vm142_vm3, %v8029_v30, -inf }
0x1379   :  { %8048 = vmax.xlane.f32.xlu1 %v8047_v57 }
0x137b   :  { %v8020_v21 = vpop.f32.mrb[106].mxu0 }
0x137c   :  { %v8031_v31 = vmul.f32 0.5, %v8020_v21  ;;  %v21716_v61 = vpop.f32.mrb[107].mxu0 }
0x137e   :  { %v8053_v2 = vsel %vm142_vm3, %v8031_v31, -inf }
0x137f   :  { %8054 = vmax.xlane.f32.xlu1 %v8053_v2 }
0x13f6   :  { %v8034_v20 = vpop.xlane.xlu1 %8033 }
0x13fa   :  { %v8037_v34 = vpop.xlane.xlu0 %8036 }
0x13fb   :  { %v8057_v42 = vsub.f32 %v8025_v28, %v8037_v34  ;;  %v8056_v28 = vsub.f32 %v24795_v38, %v8034_v20 }
0x13fd   :  { %v8066_v9 = vmul.f32 1.442695, %v8057_v42  ;;  %v8064_v15 = vmul.f32 1.442695, %v8056_v28 }
0x13fe   :  { %v8040_v18 = vpop.xlane.xlu0 %8039 }
0x13ff   :  { %23193 = vpow2.f32 %v8066_v9  ;;  %v8058_v39 = vsub.f32 %v8026_v14, %v8040_v18 }
0x1401   :  { %v8068_v35 = vmul.f32 1.442695, %v8058_v39 }
0x1402   :  { %v8043_v25 = vpop.xlane.xlu1 %8042 }
0x1403   :  { %v8059_v26 = vsub.f32 %v8027_v63, %v8043_v25 }
0x1405   :  { %v8070_v1 = vmul.f32 1.442695, %v8059_v26 }
0x1406   :  { %v8049_v33 = vpop.xlane.xlu1 %8048 }
0x1407   :  { %23195 = vpow2.f32 %v8070_v1  ;;  %v8061_v29 = vsub.f32 %v8029_v30, %v8049_v33 }
0x1409   :  { %v24815_v3 = vpop.eup %23193  ;;  %v8074_v17 = vmul.f32 1.442695, %v8061_v29 }
0x140a   :  { %v8083_v10 = vsel %vm142_vm3, %v24815_v3, 0.0 }
0x140b   :  { %23197 = vpow2.f32 %v8074_v17  ;;  %8084 = vadd.xlane.f32.xlu1 %v8083_v10 }
0x140c   :  { %v8055_v60 = vpop.xlane.xlu1 %8054 }
0x140d   :  { %v8063_v8 = vsub.f32 %v8031_v31, %v8055_v60 }
0x140f   :  { %v8078_v49 = vmul.f32 1.442695, %v8063_v8 }
0x1411   :  { %v24819_v50 = vpop.eup %23195  ;;  %23199 = vpow2.f32 %v8078_v49 }
0x1412   :  { %v8089_v16 = vsel %vm142_vm3, %v24819_v50, 0.0  ;;  %23201 = vpow2.f32 %v8064_v15 }
0x1413   :  { %8090 = vadd.xlane.f32.xlu1 %v8089_v16  ;;  %23203 = vpow2.f32 %v8068_v35 }
0x1415   :  { %v24823_v46 = vpop.eup %23197 }
0x1416   :  { %v8095_v48 = vsel %vm142_vm3, %v24823_v46, 0.0 }
0x1417   :  { %8096 = vadd.xlane.f32.xlu1 %v8095_v48 }
0x141b   :  { %v24827_v11 = vpop.eup %23199 }
0x141c   :  { %v8101_v24 = vsel %vm142_vm3, %v24827_v11, 0.0  ;;  %v23202_v12 = vpop.eup %23201 }
0x141d   :  { %8102 = vadd.xlane.f32.xlu1 %v8101_v24  ;;  %v8080_v30 = vsel %vm142_vm3, %v23202_v12, 0.0  ;;  %v24849_v36 = vpop.eup %23203 }
0x141e   :  { %v8086_v57 = vsel %vm142_vm3, %v24849_v36, 0.0 }
0x142e   :  { %8196 = vrot.lane.b32.xlu1 %v23948_v59, %s23563_s10 }
0x1432   :  { %8272 = vrot.lane.b32.xlu1 %v23966_v40, %s23563_s10 }
0x1436   :  { %8424 = vrot.lane.b32.xlu1 %v23959_v43, %s23563_s10 }
0x143a   :  { %8576 = vrot.lane.b32.xlu1 %v23969_v32, %s23563_s10 }
0x143d   :  { %v7786_v5 = vpop.f32.mrb[78].mxu1 }
0x143e   :  { %v8028_v13 = vmul.f32 0.5, %v7786_v5  ;;  %v21701_v41 = vpop.f32.mrb[79].mxu1  ;;  %8870 = vrot.lane.b32.xlu1 %v23950_v62, %s23564_s0 }
0x1440   :  { %v8044_v38 = vsel %vm142_vm3, %v8028_v13, -inf }
0x1441   :  { %v7942_v63 = vpop.f32.mrb[80].mxu1  ;;  %8045 = vmax.xlane.f32.xlu0 %v8044_v38 }
0x1442   :  { %v8030_v23 = vmul.f32 0.5, %v7942_v63  ;;  %v21711_v4 = vpop.f32.mrb[81].mxu1  ;;  %8948 = vrot.lane.b32.xlu1 %v23948_v59, %s23564_s0 }
0x1444   :  { %v8050_v14 = vsel %vm142_vm3, %v8030_v23, -inf }
0x1445   :  { %8051 = vmax.xlane.f32.xlu0 %v8050_v14 }
0x1446   :  { %9026 = vrot.lane.b32.xlu1 %v23966_v40, %s23564_s0 }
0x1449   :  { %8081 = vadd.xlane.f32.xlu0 %v8080_v30 }
0x144a   :  { %9104 = vrot.lane.b32.xlu1 %v23954_v6, %s23564_s0 }
0x144d   :  { %8087 = vadd.xlane.f32.xlu0 %v8086_v57 }
0x144e   :  { %9182 = vrot.lane.b32.xlu1 %v23959_v43, %s23564_s0 }
0x1452   :  { %9180 = vrot.lane.b32.xlu1 %v23959_v43, %s23565_s11 }
0x1456   :  { %9338 = vrot.lane.b32.xlu1 %v23969_v32, %s23564_s0 }
0x145a   :  { %9336 = vrot.lane.b32.xlu1 %v23969_v32, %s23565_s11 }
0x1463   :  { %8120 = vrot.lane.b32.xlu0 %v23950_v62, %s23563_s10 }
0x1467   :  { %8348 = vrot.lane.b32.xlu0 %v23954_v6, %s23563_s10 }
0x146b   :  { %8500 = vrot.lane.b32.xlu0 %v23957_v7, %s23563_s10 }
0x1498   :  { %v8085_v21 = vpop.xlane.xlu1 %8084 }
0x1499   :  { %23205 = vrcp.f32 %v8085_v21 }
0x14a0   :  { %v8091_v31 = vpop.xlane.xlu1 %8090 }
0x14a3   :  { %v23206_v34 = vpop.eup %23205 }
0x14a4   :  { %v8097_v61 = vpop.xlane.xlu1 %8096  ;;  %v8107_v9 = vmul.f32 %v23206_v34, %v24815_v3 }
0x14aa   :  { %v24869_v2 = vpop.xlane.xlu1 %8102 }
0x14ae   :  { %v8197_v42 = vpop.permute.xlu1 %8196 }
0x14af   :  { %21723 = vmatpush3.msra.mxu0 %v8197_v42 }
0x14b0   :  { %21725 = vmatmul.mubr.msk.f32.vlgmr.msra.gmra.mrb[108].mxu0 %vm142_vm3, %v8107_v9  ;;  %21732 = vmatprep.subr.mxu0 %v24689_v27 }
0x14b1   :  { %21734 = vmatprep.mubr.msk.f32.mxu0 %vm23547_vm0, %v24689_v27 }
0x14b2   :  { %v8273_v39 = vpop.permute.xlu1 %8272 }
0x14b6   :  { %v8425_v38 = vpop.permute.xlu1 %8424 }
0x14ba   :  { %v8577_v63 = vpop.permute.xlu1 %8576 }
0x14be   :  { %v8871_v30 = vpop.permute.xlu1 %8870 }
0x14ce   :  { %v8046_v20 = vpop.xlane.xlu0 %8045 }
0x14cf   :  { %v8060_v25 = vsub.f32 %v8028_v13, %v8046_v20 }
0x14d1   :  { %v8072_v26 = vmul.f32 1.442695, %v8060_v25 }
0x14d2   :  { %v8052_v1 = vpop.xlane.xlu0 %8051 }
0x14d3   :  { %23207 = vpow2.f32 %v8072_v26  ;;  %v8062_v33 = vsub.f32 %v8030_v23, %v8052_v1 }
0x14d4   :  { %23209 = vrcp.f32 %v8091_v31  ;;  %v24925_v31 = vld [vmem:[#allocation2 + $0x108] sm:$0xff] }
0x14d5   :  { %v8076_v29 = vmul.f32 1.442695, %v8062_v33 }
0x14d6   :  { %v8082_v17 = vpop.xlane.xlu0 %8081 }
0x14d7   :  { %23211 = vpow2.f32 %v8076_v29 }
0x14d8   :  { %23213 = vrcp.f32 %v8082_v17 }
0x14d9   :  { %23215 = vrcp.f32 %v8097_v61 }
0x14da   :  { %v8088_v3 = vpop.xlane.xlu0 %8087 }
0x14db   :  { %23217 = vrcp.f32 %v8088_v3 }
0x14dc   :  { %23219 = vrcp.f32 %v24869_v2  ;;  %v8949_v2 = vpop.permute.xlu1 %8948 }
0x14dd   :  { %v23208_v10 = vpop.eup %23207 }
0x14de   :  { %v8121_v60 = vpop.permute.xlu0 %8120  ;;  %v8092_v8 = vsel %vm142_vm3, %v23208_v10, 0.0  ;;  %v23210_v49 = vpop.eup %23209 }
0x14df   :  { %8093 = vadd.xlane.f32.xlu0 %v8092_v8  ;;  %21718 = vmatpush3.msra.mxu1 %v8121_v60  ;;  %v8111_v18 = vmul.f32 %v23210_v49, %v24819_v50 }
0x14e0   :  { %21727 = vmatprep.subr.mxu1 %v24689_v27  ;;  %v9027_v9 = vpop.permute.xlu1 %9026 }
0x14e1   :  { %v24878_v16 = vpop.eup %23211 }
0x14e2   :  { %v23214_v48 = vpop.eup %23213  ;;  %v8349_v24 = vpop.permute.xlu0 %8348  ;;  %v8098_v28 = vsel %vm142_vm3, %v24878_v16, 0.0 }
0x14e3   :  { %v23216_v15 = vpop.eup %23215  ;;  %8099 = vadd.xlane.f32.xlu0 %v8098_v28  ;;  %21733 = vmatpush3.msra.mxu0 %v8349_v24  ;;  %v8105_v35 = vmul.f32 %v23214_v48, %v23202_v12 }
0x14e4   :  { %21735 = vmatmul.mubr.msk.f32.vlgmr.msra.gmra.mrb[110].mxu0 %vm142_vm3, %v8111_v18  ;;  %21742 = vmatprep.subr.mxu0 %v24689_v27  ;;  %v8115_v41 = vmul.f32 %v23216_v15, %v24823_v46  ;;  %v9105_v1 = vpop.permute.xlu1 %9104 }
0x14e5   :  { %v23218_v5 = vpop.eup %23217  ;;  %21720 = vmatmul.mubr.msk.f32.vlgmr.msra.gmra.mrb[82].mxu1 %vm142_vm3, %v8105_v35  ;;  %21744 = vmatprep.mubr.msk.f32.mxu0 %vm23547_vm0, %v24689_v27 }
0x14e6   :  { %21728 = vmatpush3.msra.mxu1 %v8273_v39  ;;  %v8501_v13 = vpop.permute.xlu0 %8500  ;;  %21729 = vmatprep.mubr.msk.f32.mxu1 %vm23547_vm0, %v24689_v27  ;;  %v8109_v50 = vmul.f32 %v23218_v5, %v24849_v36  ;;  %v23220_v4 = vpop.eup %23219 }
0x14e7   :  { %21737 = vmatprep.subr.mxu1 %v24689_v27  ;;  %21743 = vmatpush3.msra.mxu0 %v8501_v13  ;;  %v8119_v12 = vmul.f32 %v23220_v4, %v24827_v11 }
0x14e8   :  { %21745 = vmatmul.mubr.msk.f32.vlgmr.msra.gmra.mrb[112].mxu0 %vm142_vm3, %v8115_v41  ;;  %21752 = vmatprep.subr.mxu0 %v24689_v27 }
0x14e9   :  { %21730 = vmatmul.mubr.msk.f32.vlgmr.msra.gmra.mrb[84].mxu1 %vm142_vm3, %v8109_v50  ;;  %21754 = vmatprep.mubr.msk.f32.mxu0 %vm23547_vm0, %v24689_v27 }
0x14ea   :  { %21738 = vmatpush3.msra.mxu1 %v8425_v38  ;;  %21739 = vmatprep.mubr.msk.f32.mxu1 %vm23547_vm0, %v24689_v27 }
0x14eb   :  { %21747 = vmatprep.subr.mxu1 %v24689_v27 }
0x14f9   :  { %8652 = vrot.lane.b32.xlu0 %v23963_v56, %s23563_s10 }
0x14fd   :  { %8868 = vrot.lane.b32.xlu0 %v23950_v62, %s23565_s11 }
0x1501   :  { %8946 = vrot.lane.b32.xlu0 %v23948_v59, %s23565_s11 }
0x1505   :  { %9024 = vrot.lane.b32.xlu0 %v23966_v40, %s23565_s11 }
0x1509   :  { %9102 = vrot.lane.b32.xlu0 %v23954_v6, %s23565_s11 }
0x150d   :  { %9260 = vrot.lane.b32.xlu0 %v23957_v7, %s23564_s0 }
0x1511   :  { %9258 = vrot.lane.b32.xlu0 %v23957_v7, %s23565_s11 }
0x1515   :  { %9416 = vrot.lane.b32.xlu0 %v23963_v56, %s23564_s0 }
0x1519   :  { %9414 = vrot.lane.b32.xlu0 %v23963_v56, %s23565_s11 }
0x156c   :  { %v8094_v46 = vpop.xlane.xlu0 %8093 }
0x156d   :  { %23221 = vrcp.f32 %v8094_v46 }
0x1570   :  { %v8100_v23 = vpop.xlane.xlu0 %8099 }
0x1571   :  { %23223 = vrcp.f32 %v8100_v23 }
0x1574   :  { %v8653_v14 = vpop.permute.xlu0 %8652 }
0x1575   :  { %21753 = vmatpush3.msra.mxu0 %v8653_v14 }
0x1576   :  { %21755 = vmatmul.mubr.msk.f32.vlgmr.msra.gmra.mrb[114].mxu0 %vm142_vm3, %v8119_v12  ;;  %21771 = vmatprep.subr.mxu0 %v24689_v27 }
0x1577   :  { %v23222_v36 = vpop.eup %23221  ;;  %21773 = vmatprep.mubr.msk.f32.mxu0 %vm23547_vm0, %v24689_v27 }
0x1578   :  { %v8869_v57 = vpop.permute.xlu0 %8868  ;;  %v8113_v21 = vmul.f32 %v23222_v36, %v23208_v10 }
0x157a   :  { %21740 = vmatmul.mubr.msk.f32.vlgmr.msra.gmra.mrb[86].mxu1 %vm142_vm3, %v8113_v21 }
0x157b   :  { %v23224_v61 = vpop.eup %23223  ;;  %21748 = vmatpush3.msra.mxu1 %v8577_v63  ;;  %21749 = vmatprep.mubr.msk.f32.mxu1 %vm23547_vm0, %v24689_v27 }
0x157c   :  { %21772 = vmatpush3.xpose.msk.msra.mxu0 %vm1553_vm14, %v8871_v30  ;;  %v8947_v11 = vpop.permute.xlu0 %8946  ;;  %v8117_v34 = vmul.f32 %v23224_v61, %v24878_v16  ;;  %21757 = vmatprep.subr.msk.mxu1 %vm4225_vm15, %v24925_v31  ;;  %v9183_v16 = vpop.permute.xlu1 %9182 }
0x157d   :  { %21776 = vmatprep.subr.mxu0 %v24689_v27 }
0x157e   :  { %21750 = vmatmul.mubr.msk.f32.vlgmr.msra.gmra.mrb[88].mxu1 %vm142_vm3, %v8117_v34 }
0x157f   :  { %21774 = vmatmul.mubr.msk.f32.vlgmr.msra.gmra.mrb[116].mxu0 %vm1553_vm14, %v8869_v57  ;;  %21758 = vmatpush3.msk.msra.mxu1 %vm4225_vm15, %v24925_v31 }
0x1580   :  { %21777 = vmatpush3.xpose.msk.msra.mxu0 %vm1553_vm14, %v8949_v2  ;;  %v9025_v42 = vpop.permute.xlu0 %9024  ;;  %21778 = vmatprep.mubr.msk.f32.mxu0 %vm23547_vm0, %v24689_v27  ;;  %v9181_v5 = vpop.permute.xlu1 %9180 }
0x1581   :  { %21781 = vmatprep.subr.mxu0 %v24689_v27  ;;  %21791 = vmatprep.subr.mxu1 %v24689_v27 }
0x1583   :  { %v8268_v20 = vpop.f32.mrb[108].mxu0  ;;  %21779 = vmatmul.mubr.msk.f32.vlgmr.msra.gmra.mrb[118].mxu0 %vm1553_vm14, %v8947_v11 }
0x1584   :  { %v21726_v25 = vpop.f32.mrb[109].mxu0  ;;  %21782 = vmatpush3.xpose.msk.msra.mxu0 %vm1553_vm14, %v9027_v9  ;;  %v9103_v26 = vpop.permute.xlu0 %9102  ;;  %21783 = vmatprep.mubr.msk.f32.mxu0 %vm23547_vm0, %v24689_v27 }
0x1585   :  { %21786 = vmatprep.subr.mxu0 %v24689_v27  ;;  %v9339_v23 = vpop.permute.xlu1 %9338 }
0x1587   :  { %21784 = vmatmul.mubr.msk.f32.vlgmr.msra.gmra.mrb[120].mxu0 %vm1553_vm14, %v9025_v42 }
0x1588   :  { %21787 = vmatpush3.xpose.msk.msra.mxu0 %vm1553_vm14, %v9105_v1  ;;  %v9261_v33 = vpop.permute.xlu0 %9260  ;;  %21788 = vmatprep.mubr.msk.f32.mxu0 %vm23547_vm0, %v24689_v27 }
0x1589   :  { %21796 = vmatprep.subr.mxu0 %v24689_v27  ;;  %v9337_v57 = vpop.permute.xlu1 %9336 }
0x158b   :  { %21789 = vmatmul.mubr.msk.f32.vlgmr.msra.gmra.mrb[122].mxu0 %vm1553_vm14, %v9103_v26 }
0x158c   :  { %21797 = vmatpush3.xpose.msk.msra.mxu0 %vm1553_vm14, %v9261_v33  ;;  %v9259_v29 = vpop.permute.xlu0 %9258  ;;  %21798 = vmatprep.mubr.msk.f32.mxu0 %vm23547_vm0, %v24689_v27 }
0x158d   :  { %21806 = vmatprep.subr.mxu0 %v24689_v27 }
0x158f   :  { %21799 = vmatmul.mubr.msk.f32.vlgmr.msra.gmra.mrb[124].mxu0 %vm1553_vm14, %v9259_v29 }
0x1590   :  { %v9417_v17 = vpop.permute.xlu0 %9416  ;;  %21808 = vmatprep.mubr.msk.f32.mxu0 %vm23547_vm0, %v24689_v27 }
0x1591   :  { %21807 = vmatpush3.xpose.msk.msra.mxu0 %vm1553_vm14, %v9417_v17 }
0x1592   :  { %21816 = vmatprep.subr.mxu0 %v24689_v27 }
0x1594   :  { %v9415_v3 = vpop.permute.xlu0 %9414 }
0x1595   :  { %21809 = vmatmul.mubr.msk.f32.vlgmr.msra.gmra.mrb[126].mxu0 %vm1553_vm14, %v9415_v3 }
0x1596   :  { %21818 = vmatprep.mubr.msk.f32.mxu0 %vm23547_vm0, %v24689_v27 }
0x15b7   :  { %v8420_v10 = vpop.f32.mrb[110].mxu0 }
0x15b8   :  { %v8192_v60 = vpop.f32.mrb[82].mxu1  ;;  %v21736_v8 = vpop.f32.mrb[111].mxu0 }
0x15b9   :  { %v21721_v49 = vpop.f32.mrb[83].mxu1  ;;  %21759 = vmatprep.mubr.msk.f32.mxu1 %vm1553_vm14, %v8192_v60 }
0x15ba   :  { %21760 = vmatmul.mubr.msk.f32.vlgmr.msra.gmra.mrb[50].mxu1 %vm1553_vm14, %v8268_v20 }
0x15bb   :  { %21792 = vmatpush3.xpose.msk.msra.mxu1 %vm1553_vm14, %v9183_v16  ;;  %v8572_v48 = vpop.f32.mrb[112].mxu0 }
0x15bc   :  { %v8344_v24 = vpop.f32.mrb[84].mxu1  ;;  %v21746_v28 = vpop.f32.mrb[113].mxu0  ;;  %21801 = vmatprep.subr.mxu1 %v24689_v27 }
0x15bd   :  { %v21731_v18 = vpop.f32.mrb[85].mxu1  ;;  %21762 = vmatprep.mubr.msk.f32.mxu1 %vm1553_vm14, %v8344_v24 }
0x15be   :  { %21763 = vmatmul.mubr.msk.f32.gmra.mrb[52].mxu1 %vm1553_vm14, %v8420_v10 }
0x1649   :  { %v8724_v15 = vpop.f32.mrb[114].mxu0 }
0x164a   :  { %v21756_v39 = vpop.f32.mrb[115].mxu0 }
0x164d   :  { %v8496_v35 = vpop.f32.mrb[86].mxu1 }
0x164e   :  { %v21741_v13 = vpop.f32.mrb[87].mxu1  ;;  %21765 = vmatprep.mubr.msk.f32.mxu1 %vm1553_vm14, %v8496_v35 }
0x164f   :  { %21766 = vmatmul.mubr.msk.f32.gmra.mrb[54].mxu1 %vm1553_vm14, %v8572_v48 }
0x1651   :  { %v8648_v50 = vpop.f32.mrb[88].mxu1 }
0x1652   :  { %v21751_v41 = vpop.f32.mrb[89].mxu1  ;;  %21768 = vmatprep.mubr.msk.f32.mxu1 %vm1553_vm14, %v8648_v50  ;;  %v8942_v38 = vpop.f32.mrb[116].mxu0 }
0x1653   :  { %v24976_v46 = vmul.f32 0.5, %v8942_v38  ;;  %21769 = vmatmul.mubr.msk.f32.gmra.mrb[56].mxu1 %vm1553_vm14, %v8724_v15  ;;  %v21775_v63 = vpop.f32.mrb[117].mxu0 }
0x1654   :  { %21793 = vmatprep.mubr.msk.f32.mxu1 %vm23547_vm0, %v24689_v27 }
0x1655   :  { %v9500_v4 = vsel %vm142_vm3, %v24976_v46, -inf }
0x1656   :  { %9501 = vmax.xlane.f32.xlu1 %v9500_v4  ;;  %v9020_v14 = vpop.f32.mrb[118].mxu0 }
0x1657   :  { %v9493_v12 = vmul.f32 0.5, %v9020_v14  ;;  %v21780_v30 = vpop.f32.mrb[119].mxu0  ;;  %21794 = vmatmul.mubr.msk.f32.vlgmr.msra.gmra.mrb[90].mxu1 %vm1553_vm14, %v9181_v5 }
0x1658   :  { %21802 = vmatpush3.xpose.msk.msra.mxu1 %vm1553_vm14, %v9339_v23  ;;  %21803 = vmatprep.mubr.msk.f32.mxu1 %vm23547_vm0, %v24689_v27 }
0x1659   :  { %v9503_v36 = vsel %vm142_vm3, %v9493_v12, -inf  ;;  %21811 = vmatprep.subr.mxu1 %v24689_v27 }
0x165a   :  { %9504 = vmax.xlane.f32.xlu0 %v9503_v36  ;;  %v9098_v21 = vpop.f32.mrb[120].mxu0 }
0x165b   :  { %v9494_v61 = vmul.f32 0.5, %v9098_v21  ;;  %v21785_v2 = vpop.f32.mrb[121].mxu0  ;;  %21804 = vmatmul.mubr.msk.f32.vlgmr.msra.gmra.mrb[92].mxu1 %vm1553_vm14, %v9337_v57 }
0x165c   :  { %21813 = vmatprep.mubr.msk.f32.mxu1 %vm23547_vm0, %v24689_v27 }
0x165d   :  { %v9506_v11 = vsel %vm142_vm3, %v9494_v61, -inf }
0x165e   :  { %9507 = vmax.xlane.f32.xlu0 %v9506_v11  ;;  %v9176_v34 = vpop.f32.mrb[122].mxu0 }
0x165f   :  { %v9495_v42 = vmul.f32 0.5, %v9176_v34  ;;  %v21790_v9 = vpop.f32.mrb[123].mxu0 }
0x1661   :  { %v9509_v20 = vsel %vm142_vm3, %v9495_v42, -inf }
0x1662   :  { %9510 = vmax.xlane.f32.xlu1 %v9509_v20  ;;  %v9332_v25 = vpop.f32.mrb[124].mxu0 }
0x1663   :  { %v9497_v26 = vmul.f32 0.5, %v9332_v25  ;;  %v21800_v1 = vpop.f32.mrb[125].mxu0 }
0x1665   :  { %v9515_v33 = vsel %vm142_vm3, %v9497_v26, -inf }
0x1666   :  { %9516 = vmax.xlane.f32.xlu1 %v9515_v33 }
0x1668   :  { %v9488_v29 = vpop.f32.mrb[126].mxu0 }
0x1669   :  { %v9499_v17 = vmul.f32 0.5, %v9488_v29  ;;  %v21810_v3 = vpop.f32.mrb[127].mxu0 }
0x166b   :  { %v9521_v27 = vsel %vm142_vm3, %v9499_v17, -inf }
0x166c   :  { %9522 = vmax.xlane.f32.xlu1 %v9521_v27 }
0x16e3   :  { %v9502_v49 = vpop.xlane.xlu1 %9501 }
0x16e7   :  { %v9505_v10 = vpop.xlane.xlu0 %9504 }
0x16e8   :  { %v9525_v60 = vsub.f32 %v9493_v12, %v9505_v10  ;;  %v9524_v12 = vsub.f32 %v24976_v46, %v9502_v49  ;;  %v25057_v49 = vld [vmem:[%s27029_s7 + $0x8] sm:$0xff] }
0x16ea   :  { %v9534_v8 = vmul.f32 1.442695, %v9525_v60  ;;  %v9532_v36 = vmul.f32 1.442695, %v9524_v12 }
0x16eb   :  { %v9508_v30 = vpop.xlane.xlu0 %9507 }
0x16ec   :  { %23225 = vpow2.f32 %v9534_v8  ;;  %v9526_v57 = vsub.f32 %v9494_v61, %v9508_v30 }
0x16ee   :  { %v9536_v21 = vmul.f32 1.442695, %v9526_v57 }
0x16ef   :  { %v9511_v16 = vpop.xlane.xlu1 %9510 }
0x16f0   :  { %v9527_v48 = vsub.f32 %v9495_v42, %v9511_v16 }
0x16f2   :  { %v9538_v24 = vmul.f32 1.442695, %v9527_v48 }
0x16f3   :  { %v9517_v28 = vpop.xlane.xlu1 %9516 }
0x16f4   :  { %23227 = vpow2.f32 %v9538_v24  ;;  %v9529_v18 = vsub.f32 %v9497_v26, %v9517_v28 }
0x16f6   :  { %v24996_v15 = vpop.eup %23225  ;;  %v9542_v39 = vmul.f32 1.442695, %v9529_v18 }
0x16f7   :  { %v9551_v35 = vsel %vm142_vm3, %v24996_v15, 0.0 }
0x16f8   :  { %23229 = vpow2.f32 %v9542_v39  ;;  %9552 = vadd.xlane.f32.xlu1 %v9551_v35 }
0x16f9   :  { %v9523_v5 = vpop.xlane.xlu1 %9522 }
0x16fa   :  { %v9531_v13 = vsub.f32 %v9499_v17, %v9523_v5 }
0x16fc   :  { %v9546_v50 = vmul.f32 1.442695, %v9531_v13 }
0x16fe   :  { %v25000_v41 = vpop.eup %23227  ;;  %23231 = vpow2.f32 %v9546_v50 }
0x16ff   :  { %v9557_v38 = vsel %vm142_vm3, %v25000_v41, 0.0  ;;  %23233 = vpow2.f32 %v9532_v36 }
0x1700   :  { %9558 = vadd.xlane.f32.xlu1 %v9557_v38  ;;  %23235 = vpow2.f32 %v9536_v21 }
0x1702   :  { %v25004_v63 = vpop.eup %23229 }
0x1703   :  { %v9563_v23 = vsel %vm142_vm3, %v25004_v63, 0.0 }
0x1704   :  { %9564 = vadd.xlane.f32.xlu1 %v9563_v23 }
0x1708   :  { %v25008_v4 = vpop.eup %23231 }
0x1709   :  { %v9569_v14 = vsel %vm142_vm3, %v25008_v4, 0.0  ;;  %v23234_v25 = vpop.eup %23233 }
0x170a   :  { %9570 = vadd.xlane.f32.xlu1 %v9569_v14  ;;  %v9548_v26 = vsel %vm142_vm3, %v23234_v25, 0.0  ;;  %v25030_v1 = vpop.eup %23235 }
0x170b   :  { %v9554_v33 = vsel %vm142_vm3, %v25030_v1, 0.0 }
0x171b   :  { %9664 = vrot.lane.b32.xlu1 %v23948_v59, %s23566_s12 }
0x171f   :  { %9740 = vrot.lane.b32.xlu1 %v23966_v40, %s23566_s12 }
0x1723   :  { %9892 = vrot.lane.b32.xlu1 %v23959_v43, %s23566_s12 }
0x1727   :  { %10044 = vrot.lane.b32.xlu1 %v23969_v32, %s23566_s12 }
0x172a   :  { %v9254_v2 = vpop.f32.mrb[90].mxu1 }
0x172b   :  { %v9496_v11 = vmul.f32 0.5, %v9254_v2  ;;  %v21795_v34 = vpop.f32.mrb[91].mxu1  ;;  %10338 = vrot.lane.b32.xlu1 %v23950_v62, %s23567_s13 }
0x172d   :  { %v9512_v46 = vsel %vm142_vm3, %v9496_v11, -inf }
0x172e   :  { %v9410_v42 = vpop.f32.mrb[92].mxu1  ;;  %9513 = vmax.xlane.f32.xlu0 %v9512_v46 }
0x172f   :  { %v9498_v9 = vmul.f32 0.5, %v9410_v42  ;;  %v21805_v20 = vpop.f32.mrb[93].mxu1  ;;  %10416 = vrot.lane.b32.xlu1 %v23948_v59, %s23567_s13 }
0x1731   :  { %v9518_v61 = vsel %vm142_vm3, %v9498_v9, -inf }
0x1732   :  { %9519 = vmax.xlane.f32.xlu0 %v9518_v61 }
0x1733   :  { %10494 = vrot.lane.b32.xlu1 %v23966_v40, %s23567_s13 }
0x1736   :  { %9549 = vadd.xlane.f32.xlu0 %v9548_v26 }
0x1737   :  { %10572 = vrot.lane.b32.xlu1 %v23954_v6, %s23567_s13 }
0x173a   :  { %9555 = vadd.xlane.f32.xlu0 %v9554_v33 }
0x173b   :  { %10650 = vrot.lane.b32.xlu1 %v23959_v43, %s23567_s13 }
0x173f   :  { %10648 = vrot.lane.b32.xlu1 %v23959_v43, %s23568_s14 }
0x1743   :  { %10806 = vrot.lane.b32.xlu1 %v23969_v32, %s23567_s13 }
0x1747   :  { %10804 = vrot.lane.b32.xlu1 %v23969_v32, %s23568_s14 }
0x1750   :  { %9588 = vrot.lane.b32.xlu0 %v23950_v62, %s23566_s12 }
0x1754   :  { %9816 = vrot.lane.b32.xlu0 %v23954_v6, %s23566_s12 }
0x1758   :  { %9968 = vrot.lane.b32.xlu0 %v23957_v7, %s23566_s12 }
0x1785   :  { %v9553_v29 = vpop.xlane.xlu1 %9552 }
0x1786   :  { %23237 = vrcp.f32 %v9553_v29  ;;  %v10196_v29 = vrot.slane %v24925_v31, 4 }
0x178d   :  { %v9559_v17 = vpop.xlane.xlu1 %9558 }
0x1790   :  { %v23238_v10 = vpop.eup %23237 }
0x1791   :  { %v9565_v3 = vpop.xlane.xlu1 %9564  ;;  %v9575_v8 = vmul.f32 %v23238_v10, %v24996_v15 }
0x1797   :  { %v25050_v27 = vpop.xlane.xlu1 %9570 }
0x179b   :  { %v9665_v60 = vpop.permute.xlu1 %9664 }
0x179c   :  { %21817 = vmatpush3.msra.mxu0 %v9665_v60 }
0x179d   :  { %21819 = vmatmul.mubr.msk.f32.vlgmr.msra.gmra.mrb[128].mxu0 %vm142_vm3, %v9575_v8  ;;  %21826 = vmatprep.subr.mxu0 %v25057_v49 }
0x179e   :  { %21828 = vmatprep.mubr.msk.f32.mxu0 %vm23547_vm0, %v25057_v49 }
0x179f   :  { %v9741_v21 = vpop.permute.xlu1 %9740 }
0x17a3   :  { %v9893_v42 = vpop.permute.xlu1 %9892 }
0x17bb   :  { %v9514_v16 = vpop.xlane.xlu0 %9513 }
0x17bc   :  { %v9528_v48 = vsub.f32 %v9496_v11, %v9514_v16 }
0x17be   :  { %v9540_v24 = vmul.f32 1.442695, %v9528_v48 }
0x17bf   :  { %v9520_v28 = vpop.xlane.xlu0 %9519 }
0x17c0   :  { %23239 = vpow2.f32 %v9540_v24  ;;  %v9530_v18 = vsub.f32 %v9498_v9, %v9520_v28  ;;  %v10045_v9 = vpop.permute.xlu1 %10044 }
0x17c1   :  { %23241 = vrcp.f32 %v9559_v17 }
0x17c2   :  { %v9544_v15 = vmul.f32 1.442695, %v9530_v18 }
0x17c3   :  { %v9550_v39 = vpop.xlane.xlu0 %9549 }
0x17c4   :  { %23243 = vpow2.f32 %v9544_v15 }
0x17c5   :  { %23245 = vrcp.f32 %v9550_v39 }
0x17c6   :  { %23247 = vrcp.f32 %v9565_v3 }
0x17c7   :  { %v9556_v35 = vpop.xlane.xlu0 %9555 }
0x17c8   :  { %23249 = vrcp.f32 %v9556_v35 }
0x17c9   :  { %23251 = vrcp.f32 %v25050_v27 }
0x17ca   :  { %v25062_v5 = vpop.eup %23239 }
0x17cb   :  { %v9589_v13 = vpop.permute.xlu0 %9588  ;;  %v9560_v50 = vsel %vm142_vm3, %v25062_v5, 0.0  ;;  %v23242_v38 = vpop.eup %23241 }
0x17cc   :  { %9561 = vadd.xlane.f32.xlu0 %v9560_v50  ;;  %21812 = vmatpush3.msra.mxu1 %v9589_v13  ;;  %v9579_v36 = vmul.f32 %v23242_v38, %v25000_v41 }
0x17cd   :  { %21821 = vmatprep.subr.mxu1 %v25057_v49 }
0x17ce   :  { %v25067_v23 = vpop.eup %23243 }
0x17cf   :  { %v23246_v14 = vpop.eup %23245  ;;  %v9817_v12 = vpop.permute.xlu0 %9816  ;;  %v9566_v30 = vsel %vm142_vm3, %v25067_v23, 0.0 }
0x17d0   :  { %v23248_v57 = vpop.eup %23247  ;;  %9567 = vadd.xlane.f32.xlu0 %v9566_v30  ;;  %21827 = vmatpush3.msra.mxu0 %v9817_v12  ;;  %v9573_v2 = vmul.f32 %v23246_v14, %v23234_v25 }
0x17d1   :  { %21829 = vmatmul.mubr.msk.f32.vlgmr.msra.gmra.mrb[130].mxu0 %vm142_vm3, %v9579_v36  ;;  %21836 = vmatprep.subr.mxu0 %v25057_v49  ;;  %v9583_v46 = vmul.f32 %v23248_v57, %v25004_v63 }
0x17d2   :  { %v23250_v11 = vpop.eup %23249  ;;  %21814 = vmatmul.mubr.msk.f32.vlgmr.msra.gmra.mrb[94].mxu1 %vm142_vm3, %v9573_v2  ;;  %21838 = vmatprep.mubr.msk.f32.mxu0 %vm23547_vm0, %v25057_v49 }
0x17d3   :  { %21822 = vmatpush3.msra.mxu1 %v9741_v21  ;;  %v9969_v34 = vpop.permute.xlu0 %9968  ;;  %21823 = vmatprep.mubr.msk.f32.mxu1 %vm23547_vm0, %v25057_v49  ;;  %v9577_v41 = vmul.f32 %v23250_v11, %v25030_v1  ;;  %v23252_v61 = vpop.eup %23251 }
0x17d4   :  { %21831 = vmatprep.subr.mxu1 %v25057_v49  ;;  %21837 = vmatpush3.msra.mxu0 %v9969_v34  ;;  %v9587_v26 = vmul.f32 %v23252_v61, %v25008_v4  ;;  %v10339_v1 = vpop.permute.xlu1 %10338 }
0x17d5   :  { %21839 = vmatmul.mubr.msk.f32.vlgmr.msra.gmra.mrb[132].mxu0 %vm142_vm3, %v9583_v46  ;;  %21846 = vmatprep.subr.mxu0 %v25057_v49 }
0x17d6   :  { %21824 = vmatmul.mubr.msk.f32.vlgmr.msra.gmra.mrb[96].mxu1 %vm142_vm3, %v9577_v41  ;;  %21848 = vmatprep.mubr.msk.f32.mxu0 %vm23547_vm0, %v25057_v49 }
0x17d7   :  { %21832 = vmatpush3.msra.mxu1 %v9893_v42  ;;  %21833 = vmatprep.mubr.msk.f32.mxu1 %vm23547_vm0, %v25057_v49 }
0x17d8   :  { %21841 = vmatprep.subr.mxu1 %v25057_v49  ;;  %v10417_v10 = vpop.permute.xlu1 %10416 }
0x17dc   :  { %v10495_v8 = vpop.permute.xlu1 %10494 }
0x17e0   :  { %v10573_v28 = vpop.permute.xlu1 %10572 }
0x17e6   :  { %10120 = vrot.lane.b32.xlu0 %v23963_v56, %s23566_s12 }
0x17ea   :  { %10336 = vrot.lane.b32.xlu0 %v23950_v62, %s23568_s14 }
0x17ee   :  { %10414 = vrot.lane.b32.xlu0 %v23948_v59, %s23568_s14 }
0x17f2   :  { %10492 = vrot.lane.b32.xlu0 %v23966_v40, %s23568_s14 }
0x17f6   :  { %10570 = vrot.lane.b32.xlu0 %v23954_v6, %s23568_s14 }
0x17fa   :  { %10728 = vrot.lane.b32.xlu0 %v23957_v7, %s23567_s13 }
0x17fe   :  { %10726 = vrot.lane.b32.xlu0 %v23957_v7, %s23568_s14 }
0x1802   :  { %10884 = vrot.lane.b32.xlu0 %v23963_v56, %s23567_s13 }
0x1806   :  { %10882 = vrot.lane.b32.xlu0 %v23963_v56, %s23568_s14 }
0x1859   :  { %v9562_v63 = vpop.xlane.xlu0 %9561 }
0x185a   :  { %23253 = vrcp.f32 %v9562_v63 }
0x185d   :  { %v9568_v20 = vpop.xlane.xlu0 %9567 }
0x185e   :  { %23255 = vrcp.f32 %v9568_v20 }
0x1861   :  { %v10121_v25 = vpop.permute.xlu0 %10120 }
0x1862   :  { %21847 = vmatpush3.msra.mxu0 %v10121_v25 }
0x1863   :  { %21849 = vmatmul.mubr.msk.f32.vlgmr.msra.gmra.mrb[134].mxu0 %vm142_vm3, %v9587_v26  ;;  %21865 = vmatprep.subr.mxu0 %v25057_v49 }
0x1864   :  { %v23254_v33 = vpop.eup %23253  ;;  %21867 = vmatprep.mubr.msk.f32.mxu0 %vm23547_vm0, %v25057_v49 }
0x1865   :  { %v10337_v17 = vpop.permute.xlu0 %10336  ;;  %v9581_v3 = vmul.f32 %v23254_v33, %v25062_v5 }
0x1867   :  { %21834 = vmatmul.mubr.msk.f32.vlgmr.msra.gmra.mrb[98].mxu1 %vm142_vm3, %v9581_v3 }
0x1868   :  { %v23256_v27 = vpop.eup %23255  ;;  %21842 = vmatpush3.msra.mxu1 %v10045_v9  ;;  %21843 = vmatprep.mubr.msk.f32.mxu1 %vm23547_vm0, %v25057_v49 }
0x1869   :  { %21866 = vmatpush3.xpose.msk.msra.mxu0 %vm1553_vm14, %v10339_v1  ;;  %v10415_v4 = vpop.permute.xlu0 %10414  ;;  %v9585_v60 = vmul.f32 %v23256_v27, %v25067_v23  ;;  %21851 = vmatprep.subr.msk.mxu1 %vm4225_vm15, %v10196_v29  ;;  %v10651_v23 = vpop.permute.xlu1 %10650 }
0x186a   :  { %21870 = vmatprep.subr.mxu0 %v25057_v49 }
0x186b   :  { %21844 = vmatmul.mubr.msk.f32.vlgmr.msra.gmra.mrb[100].mxu1 %vm142_vm3, %v9585_v60 }
0x186c   :  { %21868 = vmatmul.mubr.msk.f32.vlgmr.msra.gmra.mrb[136].mxu0 %vm1553_vm14, %v10337_v17  ;;  %21852 = vmatpush3.msk.msra.mxu1 %vm4225_vm15, %v10196_v29 }
0x186d   :  { %21871 = vmatpush3.xpose.msk.msra.mxu0 %vm1553_vm14, %v10417_v10  ;;  %v10493_v31 = vpop.permute.xlu0 %10492  ;;  %21872 = vmatprep.mubr.msk.f32.mxu0 %vm23547_vm0, %v25057_v49  ;;  %v10649_v11 = vpop.permute.xlu1 %10648 }
0x186e   :  { %21875 = vmatprep.subr.mxu0 %v25057_v49  ;;  %21885 = vmatprep.subr.mxu1 %v25057_v49 }
0x1870   :  { %v9736_v16 = vpop.f32.mrb[128].mxu0  ;;  %21873 = vmatmul.mubr.msk.f32.vlgmr.msra.gmra.mrb[138].mxu0 %vm1553_vm14, %v10415_v4 }
0x1871   :  { %v21820_v48 = vpop.f32.mrb[129].mxu0  ;;  %21876 = vmatpush3.xpose.msk.msra.mxu0 %vm1553_vm14, %v10495_v8  ;;  %v10571_v24 = vpop.permute.xlu0 %10570  ;;  %21877 = vmatprep.mubr.msk.f32.mxu0 %vm23547_vm0, %v25057_v49 }
0x1872   :  { %21880 = vmatprep.subr.mxu0 %v25057_v49  ;;  %v10807_v20 = vpop.permute.xlu1 %10806 }
0x1874   :  { %21878 = vmatmul.mubr.msk.f32.vlgmr.msra.gmra.mrb[140].mxu0 %vm1553_vm14, %v10493_v31 }
0x1875   :  { %21881 = vmatpush3.xpose.msk.msra.mxu0 %vm1553_vm14, %v10573_v28  ;;  %v10729_v18 = vpop.permute.xlu0 %10728  ;;  %21882 = vmatprep.mubr.msk.f32.mxu0 %vm23547_vm0, %v25057_v49 }
0x1876   :  { %21890 = vmatprep.subr.mxu0 %v25057_v49  ;;  %v10805_v29 = vpop.permute.xlu1 %10804 }
0x1878   :  { %21883 = vmatmul.mubr.msk.f32.vlgmr.msra.gmra.mrb[142].mxu0 %vm1553_vm14, %v10571_v24 }
0x1879   :  { %21891 = vmatpush3.xpose.msk.msra.mxu0 %vm1553_vm14, %v10729_v18  ;;  %v10727_v15 = vpop.permute.xlu0 %10726  ;;  %21892 = vmatprep.mubr.msk.f32.mxu0 %vm23547_vm0, %v25057_v49 }
0x187a   :  { %21900 = vmatprep.subr.mxu0 %v25057_v49 }
0x187c   :  { %21893 = vmatmul.mubr.msk.f32.vlgmr.msra.gmra.mrb[144].mxu0 %vm1553_vm14, %v10727_v15 }
0x187d   :  { %v10885_v39 = vpop.permute.xlu0 %10884  ;;  %21902 = vmatprep.mubr.msk.f32.mxu0 %vm23547_vm0, %v25057_v49 }
0x187e   :  { %21901 = vmatpush3.xpose.msk.msra.mxu0 %vm1553_vm14, %v10885_v39 }
0x187f   :  { %21910 = vmatprep.subr.mxu0 %v25057_v49 }
0x1881   :  { %v10883_v35 = vpop.permute.xlu0 %10882 }
0x1882   :  { %21903 = vmatmul.mubr.msk.f32.vlgmr.msra.gmra.mrb[146].mxu0 %vm1553_vm14, %v10883_v35 }
0x1883   :  { %21912 = vmatprep.mubr.msk.f32.mxu0 %vm23547_vm0, %v25057_v49 }
0x18a4   :  { %v9888_v5 = vpop.f32.mrb[130].mxu0 }
0x18a5   :  { %v9660_v13 = vpop.f32.mrb[94].mxu1  ;;  %v21830_v50 = vpop.f32.mrb[131].mxu0 }
0x18a6   :  { %v21815_v38 = vpop.f32.mrb[95].mxu1  ;;  %21853 = vmatprep.mubr.msk.f32.mxu1 %vm1553_vm14, %v9660_v13 }
0x18a7   :  { %21854 = vmatmul.mubr.msk.f32.vlgmr.msra.gmra.mrb[50].mxu1 %vm1553_vm14, %v9736_v16 }
0x18a8   :  { %21886 = vmatpush3.xpose.msk.msra.mxu1 %vm1553_vm14, %v10651_v23  ;;  %v10040_v14 = vpop.f32.mrb[132].mxu0 }
0x18a9   :  { %v9812_v12 = vpop.f32.mrb[96].mxu1  ;;  %v21840_v30 = vpop.f32.mrb[133].mxu0  ;;  %21895 = vmatprep.subr.mxu1 %v25057_v49 }
0x18aa   :  { %v21825_v36 = vpop.f32.mrb[97].mxu1  ;;  %21856 = vmatprep.mubr.msk.f32.mxu1 %vm1553_vm14, %v9812_v12 }
0x18ab   :  { %21857 = vmatmul.mubr.msk.f32.gmra.mrb[52].mxu1 %vm1553_vm14, %v9888_v5 }
0x1936   :  { %v10192_v57 = vpop.f32.mrb[134].mxu0 }
0x1937   :  { %v21850_v21 = vpop.f32.mrb[135].mxu0 }
0x193a   :  { %v9964_v2 = vpop.f32.mrb[98].mxu1 }
0x193b   :  { %v21835_v34 = vpop.f32.mrb[99].mxu1  ;;  %21859 = vmatprep.mubr.msk.f32.mxu1 %vm1553_vm14, %v9964_v2 }
0x193c   :  { %21860 = vmatmul.mubr.msk.f32.gmra.mrb[54].mxu1 %vm1553_vm14, %v10040_v14 }
0x193e   :  { %v10116_v41 = vpop.f32.mrb[100].mxu1 }
0x193f   :  { %v21845_v46 = vpop.f32.mrb[101].mxu1  ;;  %21862 = vmatprep.mubr.msk.f32.mxu1 %vm1553_vm14, %v10116_v41  ;;  %v10410_v42 = vpop.f32.mrb[136].mxu0 }
0x1940   :  { %v25163_v63 = vmul.f32 0.5, %v10410_v42  ;;  %21863 = vmatmul.mubr.msk.f32.gmra.mrb[56].mxu1 %vm1553_vm14, %v10192_v57  ;;  %v21869_v9 = vpop.f32.mrb[137].mxu0 }
0x1941   :  { %21887 = vmatprep.mubr.msk.f32.mxu1 %vm23547_vm0, %v25057_v49 }
0x1942   :  { %v10968_v61 = vsel %vm142_vm3, %v25163_v63, -inf }
0x1943   :  { %10969 = vmax.xlane.f32.xlu1 %v10968_v61  ;;  %v10488_v25 = vpop.f32.mrb[138].mxu0 }
0x1944   :  { %v10961_v26 = vmul.f32 0.5, %v10488_v25  ;;  %v21874_v1 = vpop.f32.mrb[139].mxu0  ;;  %21888 = vmatmul.mubr.msk.f32.vlgmr.msra.gmra.mrb[102].mxu1 %vm1553_vm14, %v10649_v11 }
0x1945   :  { %21896 = vmatpush3.xpose.msk.msra.mxu1 %vm1553_vm14, %v10807_v20  ;;  %21897 = vmatprep.mubr.msk.f32.mxu1 %vm23547_vm0, %v25057_v49 }
0x1946   :  { %v10971_v33 = vsel %vm142_vm3, %v10961_v26, -inf  ;;  %21905 = vmatprep.subr.mxu1 %v25057_v49 }
0x1947   :  { %10972 = vmax.xlane.f32.xlu0 %v10971_v33  ;;  %v10566_v17 = vpop.f32.mrb[140].mxu0 }
0x1948   :  { %v10962_v3 = vmul.f32 0.5, %v10566_v17  ;;  %v21879_v27 = vpop.f32.mrb[141].mxu0  ;;  %21898 = vmatmul.mubr.msk.f32.vlgmr.msra.gmra.mrb[104].mxu1 %vm1553_vm14, %v10805_v29 }
0x1949   :  { %21907 = vmatprep.mubr.msk.f32.mxu1 %vm23547_vm0, %v25057_v49 }
0x194a   :  { %v10974_v10 = vsel %vm142_vm3, %v10962_v3, -inf }
0x194b   :  { %10975 = vmax.xlane.f32.xlu0 %v10974_v10  ;;  %v10644_v4 = vpop.f32.mrb[142].mxu0 }
0x194c   :  { %v10963_v60 = vmul.f32 0.5, %v10644_v4  ;;  %v21884_v31 = vpop.f32.mrb[143].mxu0 }
0x194e   :  { %v10977_v8 = vsel %vm142_vm3, %v10963_v60, -inf }
0x194f   :  { %10978 = vmax.xlane.f32.xlu1 %v10977_v8  ;;  %v10800_v16 = vpop.f32.mrb[144].mxu0 }
0x1950   :  { %v10965_v48 = vmul.f32 0.5, %v10800_v16  ;;  %v21894_v24 = vpop.f32.mrb[145].mxu0 }
0x1952   :  { %v10983_v28 = vsel %vm142_vm3, %v10965_v48, -inf }
0x1953   :  { %10984 = vmax.xlane.f32.xlu1 %v10983_v28 }
0x1955   :  { %v10956_v18 = vpop.f32.mrb[146].mxu0 }
0x1956   :  { %v10967_v15 = vmul.f32 0.5, %v10956_v18  ;;  %v21904_v39 = vpop.f32.mrb[147].mxu0 }
0x1958   :  { %v10989_v35 = vsel %vm142_vm3, %v10967_v15, -inf }
0x1959   :  { %10990 = vmax.xlane.f32.xlu1 %v10989_v35 }
0x19d0   :  { %v10970_v38 = vpop.xlane.xlu1 %10969 }
0x19d4   :  { %v10973_v5 = vpop.xlane.xlu0 %10972 }
0x19d5   :  { %v10993_v13 = vsub.f32 %v10961_v26, %v10973_v5  ;;  %v10992_v26 = vsub.f32 %v25163_v63, %v10970_v38 }
0x19d7   :  { %v11002_v50 = vmul.f32 1.442695, %v10993_v13  ;;  %v11000_v33 = vmul.f32 1.442695, %v10992_v26 }
0x19d8   :  { %v10976_v1 = vpop.xlane.xlu0 %10975 }
0x19d9   :  { %23257 = vpow2.f32 %v11002_v50  ;;  %v10994_v29 = vsub.f32 %v10962_v3, %v10976_v1 }
0x19db   :  { %v11004_v17 = vmul.f32 1.442695, %v10994_v29 }
0x19dc   :  { %v10979_v23 = vpop.xlane.xlu1 %10978 }
0x19dd   :  { %v10995_v14 = vsub.f32 %v10963_v60, %v10979_v23 }
0x19df   :  { %v11006_v12 = vmul.f32 1.442695, %v10995_v14 }
0x19e0   :  { %v10985_v30 = vpop.xlane.xlu1 %10984 }
0x19e1   :  { %23259 = vpow2.f32 %v11006_v12  ;;  %v10997_v36 = vsub.f32 %v10965_v48, %v10985_v30 }
0x19e3   :  { %v25183_v57 = vpop.eup %23257  ;;  %v11010_v21 = vmul.f32 1.442695, %v10997_v36 }
0x19e4   :  { %v11019_v2 = vsel %vm142_vm3, %v25183_v57, 0.0 }
0x19e5   :  { %23261 = vpow2.f32 %v11010_v21  ;;  %11020 = vadd.xlane.f32.xlu1 %v11019_v2 }
0x19e6   :  { %v10991_v11 = vpop.xlane.xlu1 %10990 }
0x19e7   :  { %v10999_v34 = vsub.f32 %v10967_v15, %v10991_v11 }
0x19e9   :  { %v11014_v41 = vmul.f32 1.442695, %v10999_v34 }
0x19eb   :  { %v25187_v46 = vpop.eup %23259  ;;  %23263 = vpow2.f32 %v11014_v41 }
0x19ec   :  { %v11025_v42 = vsel %vm142_vm3, %v25187_v46, 0.0  ;;  %23265 = vpow2.f32 %v11000_v33 }
0x19ed   :  { %11026 = vadd.xlane.f32.xlu1 %v11025_v42  ;;  %23267 = vpow2.f32 %v11004_v17 }
0x19ef   :  { %v25191_v9 = vpop.eup %23261 }
0x19f0   :  { %v11031_v20 = vsel %vm142_vm3, %v25191_v9, 0.0 }
0x19f1   :  { %11032 = vadd.xlane.f32.xlu1 %v11031_v20 }
0x19f5   :  { %v25195_v61 = vpop.eup %23263 }
0x19f6   :  { %v11037_v25 = vsel %vm142_vm3, %v25195_v61, 0.0  ;;  %v23266_v16 = vpop.eup %23265 }
0x19f7   :  { %11038 = vadd.xlane.f32.xlu1 %v11037_v25  ;;  %v11016_v48 = vsel %vm142_vm3, %v23266_v16, 0.0  ;;  %v25217_v24 = vpop.eup %23267 }
0x19f8   :  { %v11022_v28 = vsel %vm142_vm3, %v25217_v24, 0.0 }
0x1a08   :  { %11132 = vrot.lane.b32.xlu1 %v23948_v59, %s23569_s16 }
0x1a0c   :  { %11208 = vrot.lane.b32.xlu1 %v23966_v40, %s23569_s16 }
0x1a10   :  { %11360 = vrot.lane.b32.xlu1 %v23959_v43, %s23569_s16 }
0x1a14   :  { %11512 = vrot.lane.b32.xlu1 %v23969_v32, %s23569_s16 }
0x1a17   :  { %v10722_v27 = vpop.f32.mrb[102].mxu1 }
0x1a18   :  { %v10964_v10 = vmul.f32 0.5, %v10722_v27  ;;  %v21889_v4 = vpop.f32.mrb[103].mxu1  ;;  %11806 = vrot.lane.b32.xlu1 %v23950_v62, %s23570_s17 }
0x1a1a   :  { %v10980_v63 = vsel %vm142_vm3, %v10964_v10, -inf }
0x1a1b   :  { %v10878_v60 = vpop.f32.mrb[104].mxu1  ;;  %10981 = vmax.xlane.f32.xlu0 %v10980_v63 }
0x1a1c   :  { %v10966_v31 = vmul.f32 0.5, %v10878_v60  ;;  %v21899_v8 = vpop.f32.mrb[105].mxu1  ;;  %11884 = vrot.lane.b32.xlu1 %v23948_v59, %s23570_s17 }
0x1a1e   :  { %v10986_v3 = vsel %vm142_vm3, %v10966_v31, -inf }
0x1a1f   :  { %10987 = vmax.xlane.f32.xlu0 %v10986_v3 }
0x1a20   :  { %11962 = vrot.lane.b32.xlu1 %v23966_v40, %s23570_s17 }
0x1a23   :  { %11017 = vadd.xlane.f32.xlu0 %v11016_v48 }
0x1a24   :  { %12040 = vrot.lane.b32.xlu1 %v23954_v6, %s23570_s17 }
0x1a27   :  { %11023 = vadd.xlane.f32.xlu0 %v11022_v28 }
0x1a28   :  { %12118 = vrot.lane.b32.xlu1 %v23959_v43, %s23570_s17 }
0x1a2c   :  { %12116 = vrot.lane.b32.xlu1 %v23959_v43, %s23571_s18 }
0x1a30   :  { %12274 = vrot.lane.b32.xlu1 %v23969_v32, %s23570_s17 }
0x1a34   :  { %12272 = vrot.lane.b32.xlu1 %v23969_v32, %s23571_s18 }
0x1a3d   :  { %11056 = vrot.lane.b32.xlu0 %v23950_v62, %s23569_s16 }
0x1a41   :  { %11284 = vrot.lane.b32.xlu0 %v23954_v6, %s23569_s16 }
0x1a45   :  { %11436 = vrot.lane.b32.xlu0 %v23957_v7, %s23569_s16 }
0x1a72   :  { %v11021_v18 = vpop.xlane.xlu1 %11020 }
0x1a73   :  { %23269 = vrcp.f32 %v11021_v18 }
0x1a7a   :  { %v11027_v15 = vpop.xlane.xlu1 %11026 }
0x1a7d   :  { %v23270_v5 = vpop.eup %23269 }
0x1a7e   :  { %v11033_v39 = vpop.xlane.xlu1 %11032  ;;  %v11043_v50 = vmul.f32 %v23270_v5, %v25183_v57 }
0x1a84   :  { %v25237_v35 = vpop.xlane.xlu1 %11038 }
0x1a88   :  { %v11133_v13 = vpop.permute.xlu1 %11132 }
0x1a89   :  { %21911 = vmatpush3.msra.mxu0 %v11133_v13 }
0x1a8a   :  { %21913 = vmatmul.mubr.msk.f32.vlgmr.msra.gmra.mrb[148].mxu0 %vm142_vm3, %v11043_v50  ;;  %21920 = vmatprep.subr.mxu0 %v25057_v49 }
0x1a8b   :  { %21922 = vmatprep.mubr.msk.f32.mxu0 %vm23547_vm0, %v25057_v49 }
0x1a8c   :  { %v11209_v29 = vpop.permute.xlu1 %11208 }
0x1a90   :  { %v11361_v63 = vpop.permute.xlu1 %11360 }
0x1a94   :  { %v11513_v60 = vpop.permute.xlu1 %11512 }
0x1a98   :  { %v11807_v48 = vpop.permute.xlu1 %11806 }
0x1aa8   :  { %v10982_v38 = vpop.xlane.xlu0 %10981 }
0x1aa9   :  { %v10996_v23 = vsub.f32 %v10964_v10, %v10982_v38 }
0x1aab   :  { %v11008_v14 = vmul.f32 1.442695, %v10996_v23 }
0x1aac   :  { %v10988_v12 = vpop.xlane.xlu0 %10987 }
0x1aad   :  { %23271 = vpow2.f32 %v11008_v14  ;;  %v10998_v30 = vsub.f32 %v10966_v31, %v10988_v12 }
0x1aae   :  { %23273 = vrcp.f32 %v11027_v15  ;;  %v25293_v15 = vld [vmem:[#allocation2 + $0x110] sm:$0xff] }
0x1aaf   :  { %v11012_v36 = vmul.f32 1.442695, %v10998_v30 }
0x1ab0   :  { %v11018_v21 = vpop.xlane.xlu0 %11017 }
0x1ab1   :  { %23275 = vpow2.f32 %v11012_v36 }
0x1ab2   :  { %23277 = vrcp.f32 %v11018_v21 }
0x1ab3   :  { %23279 = vrcp.f32 %v11033_v39 }
0x1ab4   :  { %v11024_v57 = vpop.xlane.xlu0 %11023 }
0x1ab5   :  { %23281 = vrcp.f32 %v11024_v57 }
0x1ab6   :  { %23283 = vrcp.f32 %v25237_v35  ;;  %v11885_v35 = vpop.permute.xlu1 %11884 }
0x1ab7   :  { %v23272_v2 = vpop.eup %23271 }
0x1ab8   :  { %v11057_v11 = vpop.permute.xlu0 %11056  ;;  %v11028_v34 = vsel %vm142_vm3, %v23272_v2, 0.0  ;;  %v23274_v41 = vpop.eup %23273 }
0x1ab9   :  { %11029 = vadd.xlane.f32.xlu0 %v11028_v34  ;;  %21906 = vmatpush3.msra.mxu1 %v11057_v11  ;;  %v11047_v1 = vmul.f32 %v23274_v41, %v25187_v46 }
0x1aba   :  { %21915 = vmatprep.subr.mxu1 %v25057_v49  ;;  %v11963_v50 = vpop.permute.xlu1 %11962 }
0x1abb   :  { %v25246_v42 = vpop.eup %23275 }
0x1abc   :  { %v23278_v20 = vpop.eup %23277  ;;  %v11285_v25 = vpop.permute.xlu0 %11284  ;;  %v11034_v26 = vsel %vm142_vm3, %v25246_v42, 0.0 }
0x1abd   :  { %v23280_v33 = vpop.eup %23279  ;;  %11035 = vadd.xlane.f32.xlu0 %v11034_v26  ;;  %21921 = vmatpush3.msra.mxu0 %v11285_v25  ;;  %v11041_v17 = vmul.f32 %v23278_v20, %v23266_v16 }
0x1abe   :  { %21923 = vmatmul.mubr.msk.f32.vlgmr.msra.gmra.mrb[150].mxu0 %vm142_vm3, %v11047_v1  ;;  %21930 = vmatprep.subr.mxu0 %v25057_v49  ;;  %v11051_v4 = vmul.f32 %v23280_v33, %v25191_v9  ;;  %v12041_v12 = vpop.permute.xlu1 %12040 }
0x1abf   :  { %v23282_v27 = vpop.eup %23281  ;;  %21908 = vmatmul.mubr.msk.f32.vlgmr.msra.gmra.mrb[106].mxu1 %vm142_vm3, %v11041_v17  ;;  %21932 = vmatprep.mubr.msk.f32.mxu0 %vm23547_vm0, %v25057_v49 }
0x1ac0   :  { %21916 = vmatpush3.msra.mxu1 %v11209_v29  ;;  %v11437_v10 = vpop.permute.xlu0 %11436  ;;  %21917 = vmatprep.mubr.msk.f32.mxu1 %vm23547_vm0, %v25057_v49  ;;  %v11045_v46 = vmul.f32 %v23282_v27, %v25217_v24  ;;  %v23284_v8 = vpop.eup %23283 }
0x1ac1   :  { %21925 = vmatprep.subr.mxu1 %v25057_v49  ;;  %21931 = vmatpush3.msra.mxu0 %v11437_v10  ;;  %v11055_v16 = vmul.f32 %v23284_v8, %v25195_v61 }
0x1ac2   :  { %21933 = vmatmul.mubr.msk.f32.vlgmr.msra.gmra.mrb[152].mxu0 %vm142_vm3, %v11051_v4  ;;  %21940 = vmatprep.subr.mxu0 %v25057_v49 }
0x1ac3   :  { %21918 = vmatmul.mubr.msk.f32.vlgmr.msra.gmra.mrb[108].mxu1 %vm142_vm3, %v11045_v46  ;;  %21942 = vmatprep.mubr.msk.f32.mxu0 %vm23547_vm0, %v25057_v49 }
0x1ac4   :  { %21926 = vmatpush3.msra.mxu1 %v11361_v63  ;;  %21927 = vmatprep.mubr.msk.f32.mxu1 %vm23547_vm0, %v25057_v49 }
0x1ac5   :  { %21935 = vmatprep.subr.mxu1 %v25057_v49 }
0x1ad3   :  { %11588 = vrot.lane.b32.xlu0 %v23963_v56, %s23569_s16 }
0x1ad7   :  { %11804 = vrot.lane.b32.xlu0 %v23950_v62, %s23571_s18 }
0x1adb   :  { %11882 = vrot.lane.b32.xlu0 %v23948_v59, %s23571_s18 }
0x1adf   :  { %11960 = vrot.lane.b32.xlu0 %v23966_v40, %s23571_s18 }
0x1ae3   :  { %12038 = vrot.lane.b32.xlu0 %v23954_v6, %s23571_s18 }
0x1ae7   :  { %12196 = vrot.lane.b32.xlu0 %v23957_v7, %s23570_s17 }
0x1aeb   :  { %12194 = vrot.lane.b32.xlu0 %v23957_v7, %s23571_s18 }
0x1aef   :  { %12352 = vrot.lane.b32.xlu0 %v23963_v56, %s23570_s17 }
0x1af3   :  { %12350 = vrot.lane.b32.xlu0 %v23963_v56, %s23571_s18 }
0x1b46   :  { %v11030_v9 = vpop.xlane.xlu0 %11029 }
0x1b47   :  { %23285 = vrcp.f32 %v11030_v9 }
0x1b4a   :  { %v11036_v31 = vpop.xlane.xlu0 %11035 }
0x1b4b   :  { %23287 = vrcp.f32 %v11036_v31 }
0x1b4e   :  { %v11589_v3 = vpop.permute.xlu0 %11588 }
0x1b4f   :  { %21941 = vmatpush3.msra.mxu0 %v11589_v3 }
0x1b50   :  { %21943 = vmatmul.mubr.msk.f32.vlgmr.msra.gmra.mrb[154].mxu0 %vm142_vm3, %v11055_v16  ;;  %21959 = vmatprep.subr.mxu0 %v25057_v49 }
0x1b51   :  { %v23286_v24 = vpop.eup %23285  ;;  %21961 = vmatprep.mubr.msk.f32.mxu0 %vm23547_vm0, %v25057_v49 }
0x1b52   :  { %v11805_v28 = vpop.permute.xlu0 %11804  ;;  %v11049_v18 = vmul.f32 %v23286_v24, %v23272_v2 }
0x1b54   :  { %21928 = vmatmul.mubr.msk.f32.vlgmr.msra.gmra.mrb[110].mxu1 %vm142_vm3, %v11049_v18 }
0x1b55   :  { %v23288_v39 = vpop.eup %23287  ;;  %21936 = vmatpush3.msra.mxu1 %v11513_v60  ;;  %21937 = vmatprep.mubr.msk.f32.mxu1 %vm23547_vm0, %v25057_v49 }
0x1b56   :  { %21960 = vmatpush3.xpose.msk.msra.mxu0 %vm1553_vm14, %v11807_v48  ;;  %v11883_v61 = vpop.permute.xlu0 %11882  ;;  %v11053_v5 = vmul.f32 %v23288_v39, %v25246_v42  ;;  %21945 = vmatprep.subr.msk.mxu1 %vm4225_vm15, %v25293_v15  ;;  %v12119_v42 = vpop.permute.xlu1 %12118 }
0x1b57   :  { %21964 = vmatprep.subr.mxu0 %v25057_v49 }
0x1b58   :  { %21938 = vmatmul.mubr.msk.f32.vlgmr.msra.gmra.mrb[112].mxu1 %vm142_vm3, %v11053_v5 }
0x1b59   :  { %21962 = vmatmul.mubr.msk.f32.vlgmr.msra.gmra.mrb[156].mxu0 %vm1553_vm14, %v11805_v28  ;;  %21946 = vmatpush3.msk.msra.mxu1 %vm4225_vm15, %v25293_v15 }
0x1b5a   :  { %21965 = vmatpush3.xpose.msk.msra.mxu0 %vm1553_vm14, %v11885_v35  ;;  %v11961_v13 = vpop.permute.xlu0 %11960  ;;  %21966 = vmatprep.mubr.msk.f32.mxu0 %vm23547_vm0, %v25057_v49  ;;  %v12117_v27 = vpop.permute.xlu1 %12116 }
0x1b5b   :  { %21969 = vmatprep.subr.mxu0 %v25057_v49  ;;  %21979 = vmatprep.subr.mxu1 %v25057_v49 }
0x1b5d   :  { %v11204_v38 = vpop.f32.mrb[148].mxu0  ;;  %21967 = vmatmul.mubr.msk.f32.vlgmr.msra.gmra.mrb[158].mxu0 %vm1553_vm14, %v11883_v61 }
0x1b5e   :  { %v21914_v23 = vpop.f32.mrb[149].mxu0  ;;  %21970 = vmatpush3.xpose.msk.msra.mxu0 %vm1553_vm14, %v11963_v50  ;;  %v12039_v14 = vpop.permute.xlu0 %12038  ;;  %21971 = vmatprep.mubr.msk.f32.mxu0 %vm23547_vm0, %v25057_v49 }
0x1b5f   :  { %21974 = vmatprep.subr.mxu0 %v25057_v49  ;;  %v12275_v31 = vpop.permute.xlu1 %12274 }
0x1b61   :  { %21972 = vmatmul.mubr.msk.f32.vlgmr.msra.gmra.mrb[160].mxu0 %vm1553_vm14, %v11961_v13 }
0x1b62   :  { %21975 = vmatpush3.xpose.msk.msra.mxu0 %vm1553_vm14, %v12041_v12  ;;  %v12197_v30 = vpop.permute.xlu0 %12196  ;;  %21976 = vmatprep.mubr.msk.f32.mxu0 %vm23547_vm0, %v25057_v49 }
0x1b63   :  { %21984 = vmatprep.subr.mxu0 %v25057_v49  ;;  %v12273_v28 = vpop.permute.xlu1 %12272 }
0x1b65   :  { %21977 = vmatmul.mubr.msk.f32.vlgmr.msra.gmra.mrb[162].mxu0 %vm1553_vm14, %v12039_v14 }
0x1b66   :  { %21985 = vmatpush3.xpose.msk.msra.mxu0 %vm1553_vm14, %v12197_v30  ;;  %v12195_v36 = vpop.permute.xlu0 %12194  ;;  %21986 = vmatprep.mubr.msk.f32.mxu0 %vm23547_vm0, %v25057_v49 }
0x1b67   :  { %21994 = vmatprep.subr.mxu0 %v25057_v49 }
0x1b69   :  { %21987 = vmatmul.mubr.msk.f32.vlgmr.msra.gmra.mrb[164].mxu0 %vm1553_vm14, %v12195_v36 }
0x1b6a   :  { %v12353_v21 = vpop.permute.xlu0 %12352  ;;  %21996 = vmatprep.mubr.msk.f32.mxu0 %vm23547_vm0, %v25057_v49 }
0x1b6b   :  { %21995 = vmatpush3.xpose.msk.msra.mxu0 %vm1553_vm14, %v12353_v21 }
0x1b6c   :  { %22004 = vmatprep.subr.mxu0 %v25057_v49 }
0x1b6e   :  { %v12351_v57 = vpop.permute.xlu0 %12350 }
0x1b6f   :  { %21997 = vmatmul.mubr.msk.f32.vlgmr.msra.gmra.mrb[166].mxu0 %vm1553_vm14, %v12351_v57 }
0x1b70   :  { %22006 = vmatprep.mubr.msk.f32.mxu0 %vm23547_vm0, %v25057_v49 }
0x1b91   :  { %v11356_v2 = vpop.f32.mrb[150].mxu0 }
0x1b92   :  { %v11128_v11 = vpop.f32.mrb[106].mxu1  ;;  %v21924_v34 = vpop.f32.mrb[151].mxu0 }
0x1b93   :  { %v21909_v41 = vpop.f32.mrb[107].mxu1  ;;  %21947 = vmatprep.mubr.msk.f32.mxu1 %vm1553_vm14, %v11128_v11 }
0x1b94   :  { %21948 = vmatmul.mubr.msk.f32.vlgmr.msra.gmra.mrb[50].mxu1 %vm1553_vm14, %v11204_v38 }
0x1b95   :  { %21980 = vmatpush3.xpose.msk.msra.mxu1 %vm1553_vm14, %v12119_v42  ;;  %v11508_v20 = vpop.f32.mrb[152].mxu0 }
0x1b96   :  { %v11280_v25 = vpop.f32.mrb[108].mxu1  ;;  %v21934_v26 = vpop.f32.mrb[153].mxu0  ;;  %21989 = vmatprep.subr.mxu1 %v25057_v49 }
0x1b97   :  { %v21919_v1 = vpop.f32.mrb[109].mxu1  ;;  %21950 = vmatprep.mubr.msk.f32.mxu1 %vm1553_vm14, %v11280_v25 }
0x1b98   :  { %21951 = vmatmul.mubr.msk.f32.gmra.mrb[52].mxu1 %vm1553_vm14, %v11356_v2 }
0x1c23   :  { %v11660_v33 = vpop.f32.mrb[154].mxu0 }
0x1c24   :  { %v21944_v29 = vpop.f32.mrb[155].mxu0 }
0x1c27   :  { %v11432_v17 = vpop.f32.mrb[110].mxu1 }
0x1c28   :  { %v21929_v10 = vpop.f32.mrb[111].mxu1  ;;  %21953 = vmatprep.mubr.msk.f32.mxu1 %vm1553_vm14, %v11432_v17 }
0x1c29   :  { %21954 = vmatmul.mubr.msk.f32.gmra.mrb[54].mxu1 %vm1553_vm14, %v11508_v20 }
0x1c2b   :  { %v11584_v46 = vpop.f32.mrb[112].mxu1 }
0x1c2c   :  { %v21939_v4 = vpop.f32.mrb[113].mxu1  ;;  %21956 = vmatprep.mubr.msk.f32.mxu1 %vm1553_vm14, %v11584_v46  ;;  %v11878_v63 = vpop.f32.mrb[156].mxu0 }
0x1c2d   :  { %v25344_v9 = vmul.f32 0.5, %v11878_v63  ;;  %21957 = vmatmul.mubr.msk.f32.gmra.mrb[56].mxu1 %vm1553_vm14, %v11660_v33  ;;  %v21963_v60 = vpop.f32.mrb[157].mxu0 }
0x1c2e   :  { %21981 = vmatprep.mubr.msk.f32.mxu1 %vm23547_vm0, %v25057_v49 }
0x1c2f   :  { %v12436_v8 = vsel %vm142_vm3, %v25344_v9, -inf }
0x1c30   :  { %12437 = vmax.xlane.f32.xlu1 %v12436_v8  ;;  %v11956_v3 = vpop.f32.mrb[158].mxu0 }
0x1c31   :  { %v12429_v16 = vmul.f32 0.5, %v11956_v3  ;;  %v21968_v48 = vpop.f32.mrb[159].mxu0  ;;  %21982 = vmatmul.mubr.msk.f32.vlgmr.msra.gmra.mrb[114].mxu1 %vm1553_vm14, %v12117_v27 }
0x1c32   :  { %21990 = vmatpush3.xpose.msk.msra.mxu1 %vm1553_vm14, %v12275_v31  ;;  %21991 = vmatprep.mubr.msk.f32.mxu1 %vm23547_vm0, %v25057_v49 }
0x1c33   :  { %v12439_v24 = vsel %vm142_vm3, %v12429_v16, -inf  ;;  %21999 = vmatprep.subr.mxu1 %v25057_v49 }
0x1c34   :  { %12440 = vmax.xlane.f32.xlu0 %v12439_v24  ;;  %v12034_v18 = vpop.f32.mrb[160].mxu0 }
0x1c35   :  { %v12430_v39 = vmul.f32 0.5, %v12034_v18  ;;  %v21973_v35 = vpop.f32.mrb[161].mxu0  ;;  %21992 = vmatmul.mubr.msk.f32.vlgmr.msra.gmra.mrb[116].mxu1 %vm1553_vm14, %v12273_v28 }
0x1c36   :  { %22001 = vmatprep.mubr.msk.f32.mxu1 %vm23547_vm0, %v25057_v49 }
0x1c37   :  { %v12442_v61 = vsel %vm142_vm3, %v12430_v39, -inf }
0x1c38   :  { %12443 = vmax.xlane.f32.xlu0 %v12442_v61  ;;  %v12112_v5 = vpop.f32.mrb[162].mxu0 }
0x1c39   :  { %v12431_v13 = vmul.f32 0.5, %v12112_v5  ;;  %v21978_v50 = vpop.f32.mrb[163].mxu0 }
0x1c3b   :  { %v12445_v38 = vsel %vm142_vm3, %v12431_v13, -inf }
0x1c3c   :  { %12446 = vmax.xlane.f32.xlu1 %v12445_v38  ;;  %v12268_v23 = vpop.f32.mrb[164].mxu0 }
0x1c3d   :  { %v12433_v14 = vmul.f32 0.5, %v12268_v23  ;;  %v21988_v12 = vpop.f32.mrb[165].mxu0 }
0x1c3f   :  { %v12451_v30 = vsel %vm142_vm3, %v12433_v14, -inf }
0x1c40   :  { %12452 = vmax.xlane.f32.xlu1 %v12451_v30 }
0x1c42   :  { %v12424_v36 = vpop.f32.mrb[166].mxu0 }
0x1c43   :  { %v12435_v21 = vmul.f32 0.5, %v12424_v36  ;;  %v21998_v57 = vpop.f32.mrb[167].mxu0 }
0x1c45   :  { %v12457_v49 = vsel %vm142_vm3, %v12435_v21, -inf }
0x1c46   :  { %12458 = vmax.xlane.f32.xlu1 %v12457_v49 }
0x1cbd   :  { %v12438_v41 = vpop.xlane.xlu1 %12437 }
0x1cc1   :  { %v12441_v2 = vpop.xlane.xlu0 %12440 }
0x1cc2   :  { %v12461_v11 = vsub.f32 %v12429_v16, %v12441_v2  ;;  %v12460_v16 = vsub.f32 %v25344_v9, %v12438_v41 }
0x1cc4   :  { %v12470_v34 = vmul.f32 1.442695, %v12461_v11  ;;  %v12468_v24 = vmul.f32 1.442695, %v12460_v16 }
0x1cc5   :  { %v12444_v48 = vpop.xlane.xlu0 %12443 }
0x1cc6   :  { %23289 = vpow2.f32 %v12470_v34  ;;  %v12462_v28 = vsub.f32 %v12430_v39, %v12444_v48 }
0x1cc8   :  { %v12472_v18 = vmul.f32 1.442695, %v12462_v28 }
0x1cc9   :  { %v12447_v42 = vpop.xlane.xlu1 %12446 }
0x1cca   :  { %v12463_v20 = vsub.f32 %v12431_v13, %v12447_v42 }
0x1ccc   :  { %v12474_v25 = vmul.f32 1.442695, %v12463_v20 }
0x1ccd   :  { %v12453_v26 = vpop.xlane.xlu1 %12452 }
0x1cce   :  { %23291 = vpow2.f32 %v12474_v25  ;;  %v12465_v1 = vsub.f32 %v12433_v14, %v12453_v26 }
0x1cd0   :  { %v23290_v33 = vpop.eup %23289  ;;  %v12478_v29 = vmul.f32 1.442695, %v12465_v1 }
0x1cd1   :  { %v12487_v17 = vsel %vm142_vm3, %v23290_v33, 0.0 }
0x1cd2   :  { %23293 = vpow2.f32 %v12478_v29  ;;  %12488 = vadd.xlane.f32.xlu1 %v12487_v17 }
0x1cd3   :  { %v12459_v27 = vpop.xlane.xlu1 %12458 }
0x1cd4   :  { %v12467_v10 = vsub.f32 %v12435_v21, %v12459_v27 }
0x1cd6   :  { %v12482_v46 = vmul.f32 1.442695, %v12467_v10 }
0x1cd8   :  { %v25365_v4 = vpop.eup %23291  ;;  %23295 = vpow2.f32 %v12482_v46 }
0x1cd9   :  { %v12493_v63 = vsel %vm142_vm3, %v25365_v4, 0.0  ;;  %23297 = vpow2.f32 %v12468_v24 }
0x1cda   :  { %12494 = vadd.xlane.f32.xlu1 %v12493_v63  ;;  %23299 = vpow2.f32 %v12472_v18 }
0x1cdc   :  { %v25369_v60 = vpop.eup %23293 }
0x1cdd   :  { %v12499_v31 = vsel %vm142_vm3, %v25369_v60, 0.0 }
0x1cde   :  { %12500 = vadd.xlane.f32.xlu1 %v12499_v31 }
0x1ce2   :  { %v25373_v8 = vpop.eup %23295 }
0x1ce3   :  { %v12505_v3 = vsel %vm142_vm3, %v25373_v8, 0.0 }
0x1ce4   :  { %12506 = vadd.xlane.f32.xlu1 %v12505_v3 }
0x1cf5   :  { %12600 = vrot.lane.b32.xlu1 %v23948_v59, %s23572_s19 }
0x1cf9   :  { %12676 = vrot.lane.b32.xlu1 %v23966_v40, %s23572_s19 }
0x1cfd   :  { %12828 = vrot.lane.b32.xlu1 %v23959_v43, %s23572_s19  ;;  %v23298_v43 = vpop.eup %23297 }
0x1cfe   :  { %v12484_v39 = vsel %vm142_vm3, %v23298_v43, 0.0  ;;  %v23300_v38 = vpop.eup %23299 }
0x1d01   :  { %12980 = vrot.lane.b32.xlu1 %v23969_v32, %s23572_s19  ;;  %v12490_v32 = vsel %vm142_vm3, %v23300_v38, 0.0 }
0x1d04   :  { %v12190_v35 = vpop.f32.mrb[114].mxu1 }
0x1d05   :  { %v12432_v61 = vmul.f32 0.5, %v12190_v35  ;;  %v21983_v5 = vpop.f32.mrb[115].mxu1 }
0x1d07   :  { %v12448_v59 = vsel %vm142_vm3, %v12432_v61, -inf }
0x1d08   :  { %v12346_v40 = vpop.f32.mrb[116].mxu1  ;;  %12449 = vmax.xlane.f32.xlu0 %v12448_v59  ;;  %v13132_v59 = vrot.slane %v25293_v15, 4 }
0x1d09   :  { %v12434_v9 = vmul.f32 0.5, %v12346_v40  ;;  %v21993_v13 = vpop.f32.mrb[117].mxu1 }
0x1d0b   :  { %v12454_v50 = vsel %vm142_vm3, %v12434_v9, -inf }
0x1d0c   :  { %12455 = vmax.xlane.f32.xlu0 %v12454_v50 }
0x1d10   :  { %12485 = vadd.xlane.f32.xlu0 %v12484_v39 }
0x1d14   :  { %12491 = vadd.xlane.f32.xlu0 %v12490_v32 }
0x1d2a   :  { %12524 = vrot.lane.b32.xlu0 %v23950_v62, %s23572_s19  ;;  %v25400_v62 = vld [vmem:[%s27029_s7 + $0x8] sm:$0xff] }
0x1d2e   :  { %12752 = vrot.lane.b32.xlu0 %v23954_v6, %s23572_s19 }
0x1d32   :  { %12904 = vrot.lane.b32.xlu0 %v23957_v7, %s23572_s19 }
0x1d5f   :  { %v12489_v23 = vpop.xlane.xlu1 %12488 }
0x1d60   :  { %23301 = vrcp.f32 %v12489_v23 }
0x1d67   :  { %v12495_v14 = vpop.xlane.xlu1 %12494 }
0x1d6a   :  { %v23302_v36 = vpop.eup %23301 }
0x1d6b   :  { %v12501_v12 = vpop.xlane.xlu1 %12500  ;;  %v12511_v57 = vmul.f32 %v23302_v36, %v23290_v33 }
0x1d71   :  { %v12507_v30 = vpop.xlane.xlu1 %12506 }
0x1d75   :  { %v12601_v21 = vpop.permute.xlu1 %12600 }
0x1d76   :  { %22005 = vmatpush3.msra.mxu0 %v12601_v21 }
0x1d77   :  { %22007 = vmatmul.mubr.msk.f32.vlgmr.msra.gmra.mrb[168].mxu0 %vm142_vm3, %v12511_v57  ;;  %22014 = vmatprep.subr.mxu0 %v25400_v62 }
0x1d78   :  { %22016 = vmatprep.mubr.msk.f32.mxu0 %vm23547_vm0, %v25400_v62 }
0x1d79   :  { %v12677_v63 = vpop.permute.xlu1 %12676 }
0x1d7d   :  { %v12829_v24 = vpop.permute.xlu1 %12828 }
0x1d95   :  { %v12450_v6 = vpop.xlane.xlu0 %12449 }
0x1d96   :  { %v12464_v7 = vsub.f32 %v12432_v61, %v12450_v6 }
0x1d98   :  { %v12476_v49 = vmul.f32 1.442695, %v12464_v7 }
0x1d99   :  { %v12456_v2 = vpop.xlane.xlu0 %12455 }
0x1d9a   :  { %23303 = vpow2.f32 %v12476_v49  ;;  %v12466_v11 = vsub.f32 %v12434_v9, %v12456_v2  ;;  %v12981_v9 = vpop.permute.xlu1 %12980  ;;  %v20185_v49 = vld [vmem:[#allocation2 + $0x118] ss:$0 sm:$0xff] }
0x1d9b   :  { %23305 = vrcp.f32 %v12495_v14 }
0x1d9c   :  { %v12480_v34 = vmul.f32 1.442695, %v12466_v11 }
0x1d9d   :  { %v12486_v41 = vpop.xlane.xlu0 %12485 }
0x1d9e   :  { %23307 = vpow2.f32 %v12480_v34 }
0x1d9f   :  { %23309 = vrcp.f32 %v12486_v41 }
0x1da0   :  { %23311 = vrcp.f32 %v12501_v12 }
0x1da1   :  { %v12492_v42 = vpop.xlane.xlu0 %12491 }
0x1da2   :  { %23313 = vrcp.f32 %v12492_v42 }
0x1da3   :  { %23315 = vrcp.f32 %v12507_v30 }
0x1da4   :  { %v23304_v20 = vpop.eup %23303 }
0x1da5   :  { %v12525_v25 = vpop.permute.xlu0 %12524  ;;  %v12496_v26 = vsel %vm142_vm3, %v23304_v20, 0.0  ;;  %v23306_v1 = vpop.eup %23305 }
0x1da6   :  { %12497 = vadd.xlane.f32.xlu0 %v12496_v26  ;;  %22000 = vmatpush3.msra.mxu1 %v12525_v25  ;;  %v12515_v10 = vmul.f32 %v23306_v1, %v25365_v4 }
0x1da7   :  { %22009 = vmatprep.subr.mxu1 %v25400_v62 }
0x1da8   :  { %v23308_v33 = vpop.eup %23307 }
0x1da9   :  { %v23310_v29 = vpop.eup %23309  ;;  %v12753_v17 = vpop.permute.xlu0 %12752  ;;  %v12502_v27 = vsel %vm142_vm3, %v23308_v33, 0.0 }
0x1daa   :  { %v23312_v46 = vpop.eup %23311  ;;  %12503 = vadd.xlane.f32.xlu0 %v12502_v27  ;;  %22015 = vmatpush3.msra.mxu0 %v12753_v17  ;;  %v12509_v31 = vmul.f32 %v23310_v29, %v23298_v43 }
0x1dab   :  { %22017 = vmatmul.mubr.msk.f32.vlgmr.msra.gmra.mrb[170].mxu0 %vm142_vm3, %v12515_v10  ;;  %22024 = vmatprep.subr.mxu0 %v25400_v62  ;;  %v12519_v48 = vmul.f32 %v23312_v46, %v25369_v60 }
0x1dac   :  { %v23314_v3 = vpop.eup %23313  ;;  %22002 = vmatmul.mubr.msk.f32.vlgmr.msra.gmra.mrb[118].mxu1 %vm142_vm3, %v12509_v31  ;;  %22026 = vmatprep.mubr.msk.f32.mxu0 %vm23547_vm0, %v25400_v62 }
0x1dad   :  { %22010 = vmatpush3.msra.mxu1 %v12677_v63  ;;  %v12905_v16 = vpop.permute.xlu0 %12904  ;;  %22011 = vmatprep.mubr.msk.f32.mxu1 %vm23547_vm0, %v25400_v62  ;;  %v12513_v4 = vmul.f32 %v23314_v3, %v23300_v38  ;;  %v23316_v18 = vpop.eup %23315 }
0x1dae   :  { %22019 = vmatprep.subr.mxu1 %v25400_v62  ;;  %22025 = vmatpush3.msra.mxu0 %v12905_v16  ;;  %v12523_v61 = vmul.f32 %v23316_v18, %v25373_v8 }
0x1daf   :  { %22027 = vmatmul.mubr.msk.f32.vlgmr.msra.gmra.mrb[172].mxu0 %vm142_vm3, %v12519_v48  ;;  %22034 = vmatprep.subr.mxu0 %v25400_v62 }
0x1db0   :  { %22012 = vmatmul.mubr.msk.f32.vlgmr.msra.gmra.mrb[120].mxu1 %vm142_vm3, %v12513_v4  ;;  %22036 = vmatprep.mubr.msk.f32.mxu0 %vm23547_vm0, %v25400_v62 }
0x1db1   :  { %22020 = vmatpush3.msra.mxu1 %v12829_v24  ;;  %22021 = vmatprep.mubr.msk.f32.mxu1 %vm23547_vm0, %v25400_v62 }
0x1db2   :  { %22029 = vmatprep.subr.mxu1 %v25400_v62 }
0x1dc0   :  { %13056 = vrot.lane.b32.xlu0 %v23963_v56, %s23572_s19 }
0x1e33   :  { %v12498_v60 = vpop.xlane.xlu0 %12497 }
0x1e34   :  { %23317 = vrcp.f32 %v12498_v60 }
0x1e37   :  { %v12504_v28 = vpop.xlane.xlu0 %12503 }
0x1e38   :  { %23319 = vrcp.f32 %v12504_v28 }
0x1e3b   :  { %v13057_v35 = vpop.permute.xlu0 %13056 }
0x1e3c   :  { %22035 = vmatpush3.msra.mxu0 %v13057_v35 }
0x1e3d   :  { %22037 = vmatmul.mubr.msk.f32.vlgmr.msra.gmra.mrb[174].mxu0 %vm142_vm3, %v12523_v61 }
0x1e3e   :  { %v23318_v5 = vpop.eup %23317 }
0x1e3f   :  { %v12517_v40 = vmul.f32 %v23318_v5, %v23304_v20 }
0x1e41   :  { %22022 = vmatmul.mubr.msk.f32.vlgmr.msra.gmra.mrb[122].mxu1 %vm142_vm3, %v12517_v40 }
0x1e42   :  { %v23320_v56 = vpop.eup %23319  ;;  %22030 = vmatpush3.msra.mxu1 %v12981_v9  ;;  %22031 = vmatprep.mubr.msk.f32.mxu1 %vm23547_vm0, %v25400_v62 }
0x1e43   :  { %v12521_v13 = vmul.f32 %v23320_v56, %v23308_v33  ;;  %22039 = vmatprep.subr.msk.mxu1 %vm4225_vm15, %v13132_v59 }
0x1e45   :  { %22032 = vmatmul.mubr.msk.f32.vlgmr.msra.gmra.mrb[124].mxu1 %vm142_vm3, %v12521_v13 }
0x1e46   :  { %22040 = vmatpush3.msk.msra.mxu1 %vm4225_vm15, %v13132_v59 }
0x1e4a   :  { %v12672_v8 = vpop.f32.mrb[168].mxu0 }
0x1e4b   :  { %v22008_v50 = vpop.f32.mrb[169].mxu0 }
0x1e7e   :  { %v12824_v43 = vpop.f32.mrb[170].mxu0 }
0x1e7f   :  { %v12596_v15 = vpop.f32.mrb[118].mxu1  ;;  %v22018_v39 = vpop.f32.mrb[171].mxu0 }
0x1e80   :  { %v22003_v38 = vpop.f32.mrb[119].mxu1  ;;  %22041 = vmatprep.mubr.msk.f32.mxu1 %vm1553_vm14, %v12596_v15 }
0x1e81   :  { %22042 = vmatmul.mubr.msk.f32.vlgmr.msra.gmra.mrb[50].mxu1 %vm1553_vm14, %v12672_v8 }
0x1e82   :  { %v12976_v32 = vpop.f32.mrb[172].mxu0 }
0x1e83   :  { %v12748_v23 = vpop.f32.mrb[120].mxu1  ;;  %v22028_v14 = vpop.f32.mrb[173].mxu0 }
0x1e84   :  { %v22013_v12 = vpop.f32.mrb[121].mxu1  ;;  %22044 = vmatprep.mubr.msk.f32.mxu1 %vm1553_vm14, %v12748_v23 }
0x1e85   :  { %22045 = vmatmul.mubr.msk.f32.gmra.mrb[52].mxu1 %vm1553_vm14, %v12824_v43 }
0x1f10   :  { %v13128_v30 = vpop.f32.mrb[174].mxu0 }
0x1f11   :  { %v22038_v36 = vpop.f32.mrb[175].mxu0 }
0x1f12   :  { %v13424_v36 = vld [vmem:[#allocation2 + $0x130] sm:$0xff] }
0x1f14   :  { %v12900_v21 = vpop.f32.mrb[122].mxu1 }
0x1f15   :  { %v22023_v57 = vpop.f32.mrb[123].mxu1  ;;  %22047 = vmatprep.mubr.msk.f32.mxu1 %vm1553_vm14, %v12900_v21  ;;  %v13425_v21 = vld [vmem:[#allocation2 + $0x138] sm:$0xff] }
0x1f16   :  { %22048 = vmatmul.mubr.msk.f32.gmra.mrb[54].mxu1 %vm1553_vm14, %v12976_v32  ;;  %v13426_v57 = vld [vmem:[#allocation2 + $0x140] sm:$0xff] }
0x1f18   :  { %v13052_v6 = vpop.f32.mrb[124].mxu1 }
0x1f19   :  { %v22033_v7 = vpop.f32.mrb[125].mxu1  ;;  %22050 = vmatprep.mubr.msk.f32.mxu1 %vm1553_vm14, %v13052_v6  ;;  %v22691_v6 = vpack.c.bf16 %v13425_v21, %v13424_v36 }
0x1f1a   :  { %22051 = vmatmul.mubr.msk.f32.gmra.mrb[56].mxu1 %vm1553_vm14, %v13128_v30  ;;  %v13427_v7 = vld [vmem:[#allocation2 + $0x148] sm:$0xff] }
0x1f1b   :  { %22692 = vmatprep.subr.bf16.mxu0 %v22691_v6 }
0x1f1c   :  { %22694 = vmatpush3.bf16.msra.mxu0 %v22691_v6 }
0x1f54   :  { %v22043_v2 = vpop.f32.mrb[50].mxu1 }
0x1f55   :  { %v13278_v11 = vadd.f32 %v22043_v2, %v20185_v49  ;;  %v13225_v34 = vpop.f32.mrb[51].mxu1 }
0x1f56   :  { %v13277_v41 = vadd.f32 %v20185_v49, %v13225_v34 }
0x1f57   :  { %v13286_v42 = vadd.f32 %v13278_v11, %v23916_v45 }
0x1f58   :  { %v13285_v20 = vadd.f32 %v13277_v41, %v23914_v44  ;;  %v22046_v25 = vpop.f32.mrb[52].mxu1 }
0x1f59   :  { %v13280_v26 = vadd.f32 %v22046_v25, %v20185_v49  ;;  %v13235_v1 = vpop.f32.mrb[53].mxu1  ;;  %v13298_v33 = vsel %vm216_vm6, %v13286_v42, 0.0 }
0x1f5a   :  { %v13279_v29 = vadd.f32 %v20185_v49, %v13235_v1  ;;  %13299 = vadd.xlane.f32.xlu0 %v13298_v33  ;;  %v13295_v17 = vsel %vm216_vm6, %v13285_v20, 0.0 }
0x1f5b   :  { %v13288_v27 = vadd.f32 %v13280_v26, %v23924_v52  ;;  %13296 = vadd.xlane.f32.xlu1 %v13295_v17 }
0x1f5c   :  { %v13287_v10 = vadd.f32 %v13279_v29, %v23922_v51 }
0x1f5d   :  { %v13304_v46 = vsel %vm216_vm6, %v13288_v27, 0.0 }
0x1f5e   :  { %v13301_v45 = vsel %vm216_vm6, %v13287_v10, 0.0 }
0x1f5f   :  { %13305 = vadd.xlane.f32.xlu1 %v13304_v46  ;;  %13302 = vadd.xlane.f32.xlu0 %v13301_v45 }
0x1fe7   :  { %v13300_v44 = vpop.xlane.xlu0 %13299 }
0x1fe8   :  { %v13297_v63 = vpop.xlane.xlu1 %13296  ;;  %v13321_v3 = vmul.f32 0.03125, %v13300_v44 }
0x1fe9   :  { %v22049_v31 = vpop.f32.mrb[54].mxu1  ;;  %v13320_v48 = vmul.f32 0.03125, %v13297_v63 }
0x1fea   :  { %v13282_v16 = vadd.f32 %v22049_v31, %v20185_v49  ;;  %v13245_v4 = vpop.f32.mrb[55].mxu1  ;;  %v25455_v35 = vsub.f32 %v13286_v42, %v13321_v3 }
0x1feb   :  { %v13281_v24 = vadd.f32 %v20185_v49, %v13245_v4  ;;  %v25458_v9 = vsub.f32 %v13285_v20, %v13320_v48 }
0x1fec   :  { %v13290_v60 = vadd.f32 %v13282_v16, %v23932_v55  ;;  %v13306_v52 = vpop.xlane.xlu1 %13305  ;;  %v13303_v28 = vpop.xlane.xlu0 %13302  ;;  %v13337_v15 = vmul.f32 %v25455_v35, %v25455_v35 }
0x1fed   :  { %v13289_v51 = vadd.f32 %v13281_v24, %v23930_v54  ;;  %v22052_v18 = vpop.f32.mrb[56].mxu1  ;;  %v13323_v61 = vmul.f32 0.03125, %v13306_v52  ;;  %v13322_v56 = vmul.f32 0.03125, %v13303_v28  ;;  %v13336_v32 = vmul.f32 %v25458_v9, %v25458_v9 }
0x1fee   :  { %v13284_v5 = vadd.f32 %v22052_v18, %v20185_v49  ;;  %v13255_v59 = vpop.f32.mrb[57].mxu1  ;;  %v13310_v40 = vsel %vm216_vm6, %v13290_v60, 0.0 }
0x1fef   :  { %v13283_v13 = vadd.f32 %v20185_v49, %v13255_v59  ;;  %13311 = vadd.xlane.f32.xlu1 %v13310_v40  ;;  %v13307_v8 = vsel %vm216_vm6, %v13289_v51, 0.0  ;;  %v25463_v50 = vsub.f32 %v13288_v27, %v13323_v61  ;;  %v25468_v39 = vsub.f32 %v13287_v10, %v13322_v56  ;;  %v20186_v56 = vld [vmem:[#allocation2 + $0x120] ss:$0 sm:$0xff] }
0x1ff0   :  { %v13292_v55 = vadd.f32 %v13284_v5, %v23940_v58  ;;  %13308 = vadd.xlane.f32.xlu0 %v13307_v8  ;;  %v13347_v58 = vsel %vm216_vm6, %v13337_v15, 0.0  ;;  %v13344_v23 = vsel %vm216_vm6, %v13336_v32, 0.0  ;;  %v22695_v49 = vpack.c.bf16 %v13427_v7, %v13426_v57 }
0x1ff1   :  { %v13291_v54 = vadd.f32 %v13283_v13, %v23938_v53  ;;  %v13339_v53 = vmul.f32 %v25463_v50, %v25463_v50  ;;  %v13338_v14 = vmul.f32 %v25468_v39, %v25468_v39 }
0x1ff2   :  { %v13316_v43 = vsel %vm216_vm6, %v13292_v55, 0.0  ;;  %22696 = vmatprep.subr.bf16.mxu0 %v22695_v49 }
0x1ff3   :  { %13317 = vadd.xlane.f32.xlu1 %v13316_v43  ;;  %v13313_v38 = vsel %vm216_vm6, %v13291_v54, 0.0  ;;  %v13353_v12 = vsel %vm216_vm6, %v13339_v53, 0.0  ;;  %v13350_v30 = vsel %vm216_vm6, %v13338_v14, 0.0  ;;  %22698 = vmatpush3.bf16.msra.mxu0 %v22695_v49 }
0x1ff4   :  { %13314 = vadd.xlane.f32.xlu0 %v13313_v38  ;;  %22699 = vmatprep.subr.bf16.mxu0 %v27030_v0 }
0x1ff7   :  { %13348 = vadd.xlane.f32.xlu1 %v13347_v58 }
0x1ff8   :  { %13345 = vadd.xlane.f32.xlu0 %v13344_v23 }
0x1ffb   :  { %13354 = vadd.xlane.f32.xlu1 %v13353_v12 }
0x1ffc   :  { %13351 = vadd.xlane.f32.xlu0 %v13350_v30 }
0x207c   :  { %v13312_v2 = vpop.xlane.xlu1 %13311 }
0x207d   :  { %v13325_v11 = vmul.f32 0.03125, %v13312_v2  ;;  %v13309_v34 = vpop.xlane.xlu0 %13308 }
0x207e   :  { %v13324_v41 = vmul.f32 0.03125, %v13309_v34 }
0x207f   :  { %v25482_v42 = vsub.f32 %v13290_v60, %v13325_v11 }
0x2080   :  { %v25484_v20 = vsub.f32 %v13289_v51, %v13324_v41  ;;  %v13318_v25 = vpop.xlane.xlu1 %13317 }
0x2081   :  { %v13327_v26 = vmul.f32 0.03125, %v13318_v25  ;;  %v13315_v1 = vpop.xlane.xlu0 %13314  ;;  %v13341_v33 = vmul.f32 %v25482_v42, %v25482_v42 }
0x2082   :  { %v13326_v29 = vmul.f32 0.03125, %v13315_v1  ;;  %v13340_v17 = vmul.f32 %v25484_v20, %v25484_v20 }
0x2083   :  { %v25490_v27 = vsub.f32 %v13292_v55, %v13327_v26  ;;  %v13359_v10 = vsel %vm216_vm6, %v13341_v33, 0.0 }
0x2084   :  { %v25493_v46 = vsub.f32 %v13291_v54, %v13326_v29  ;;  %13360 = vadd.xlane.f32.xlu1 %v13359_v10  ;;  %v13349_v45 = vpop.xlane.xlu1 %13348  ;;  %v13356_v44 = vsel %vm216_vm6, %v13340_v17, 0.0  ;;  %v20187_v54 = vld [vmem:[#allocation2 + $0x128] ss:$0 sm:$0xff] }
0x2085   :  { %v13369_v63 = vmul.f32 0.03125, %v13349_v45  ;;  %13357 = vadd.xlane.f32.xlu0 %v13356_v44  ;;  %v13346_v31 = vpop.xlane.xlu0 %13345  ;;  %v13343_v3 = vmul.f32 %v25490_v27, %v25490_v27 }
0x2086   :  { %v13368_v16 = vmul.f32 0.03125, %v13346_v31  ;;  %v13342_v4 = vmul.f32 %v25493_v46, %v25493_v46 }
0x2087   :  { %v13377_v48 = vadd.f32 1e-05, %v13369_v63  ;;  %v13365_v24 = vsel %vm216_vm6, %v13343_v3, 0.0 }
0x2088   :  { %v13376_v60 = vadd.f32 1e-05, %v13368_v16  ;;  %13366 = vadd.xlane.f32.xlu1 %v13365_v24  ;;  %v13355_v52 = vpop.xlane.xlu1 %13354  ;;  %v13362_v28 = vsel %vm216_vm6, %v13342_v4, 0.0 }
0x2089   :  { %23321 = vrsqrt.f32 %v13377_v48  ;;  %v13371_v51 = vmul.f32 0.03125, %v13355_v52  ;;  %13363 = vadd.xlane.f32.xlu0 %v13362_v28  ;;  %v13352_v18 = vpop.xlane.xlu0 %13351 }
0x208a   :  { %23323 = vrsqrt.f32 %v13376_v60  ;;  %v13370_v61 = vmul.f32 0.03125, %v13352_v18 }
0x208b   :  { %v13379_v5 = vadd.f32 1e-05, %v13371_v51 }
0x208c   :  { %v13378_v59 = vadd.f32 1e-05, %v13370_v61 }
0x208d   :  { %23325 = vrsqrt.f32 %v13379_v5 }
0x208e   :  { %23327 = vrsqrt.f32 %v13378_v59 }
0x2093   :  { %v23322_v40 = vpop.eup %23321 }
0x2094   :  { %v23324_v13 = vpop.eup %23323  ;;  %v13393_v8 = vmul.f32 %v23322_v40, %v25455_v35 }
0x2095   :  { %v13392_v55 = vmul.f32 %v23324_v13, %v25458_v9 }
0x2096   :  { %v13405_v43 = vmul.f32 %v20186_v56, %v13393_v8 }
0x2097   :  { %v23326_v15 = vpop.eup %23325  ;;  %v13404_v38 = vmul.f32 %v20186_v56, %v13392_v55 }
0x2098   :  { %v23328_v32 = vpop.eup %23327  ;;  %v13395_v58 = vmul.f32 %v23326_v15, %v25463_v50  ;;  %v25508_v14 = vadd.f32 %v20187_v54, %v13405_v43  ;;  %v13570_v50 = vld [vmem:[#allocation2 + $0x158] sm:$0xff] }
0x2099   :  { %v25505_v53 = vadd.f32 %v20187_v54, %v13404_v38  ;;  %v13394_v23 = vmul.f32 %v23328_v32, %v25468_v39  ;;  %22073 = vmatprep.subr.mxu1 %v13570_v50 }
0x209a   :  { %v13407_v12 = vmul.f32 %v20186_v56, %v13395_v58  ;;  %22074 = vmatpush3.msra.mxu1 %v13570_v50 }
0x209b   :  { %22061 = vmatprep.mubr.msk.f32.mxu0 %vm216_vm6, %v25505_v53  ;;  %v13406_v35 = vmul.f32 %v20186_v56, %v13394_v23 }
0x209c   :  { %22062 = vmatmul.mubr.msk.f32.vlgmr.msra.gmra.mrb[176].mxu0 %vm216_vm6, %v25508_v14  ;;  %v25516_v30 = vadd.f32 %v20187_v54, %v13407_v12 }
0x209d   :  { %v25514_v9 = vadd.f32 %v20187_v54, %v13406_v35  ;;  %v20197_v35 = vld [vmem:[#allocation2 + $0x160] ss:$0 sm:$0xff] }
0x209f   :  { %22064 = vmatprep.mubr.msk.f32.mxu0 %vm216_vm6, %v25514_v9 }
0x20a0   :  { %22065 = vmatmul.mubr.msk.f32.gmra.mrb[178].mxu0 %vm216_vm6, %v25516_v30 }
0x2111   :  { %v13361_v39 = vpop.xlane.xlu1 %13360 }
0x2112   :  { %v13373_v36 = vmul.f32 0.03125, %v13361_v39  ;;  %v13358_v21 = vpop.xlane.xlu0 %13357 }
0x2113   :  { %v13372_v57 = vmul.f32 0.03125, %v13358_v21 }
0x2114   :  { %v13381_v6 = vadd.f32 1e-05, %v13373_v36 }
0x2115   :  { %v13380_v7 = vadd.f32 1e-05, %v13372_v57  ;;  %v13367_v49 = vpop.xlane.xlu1 %13366 }
0x2116   :  { %23329 = vrsqrt.f32 %v13381_v6  ;;  %v13375_v2 = vmul.f32 0.03125, %v13367_v49  ;;  %v13364_v11 = vpop.xlane.xlu0 %13363 }
0x2117   :  { %23331 = vrsqrt.f32 %v13380_v7  ;;  %v13374_v34 = vmul.f32 0.03125, %v13364_v11 }
0x2118   :  { %v13383_v41 = vadd.f32 1e-05, %v13375_v2 }
0x2119   :  { %v13382_v25 = vadd.f32 1e-05, %v13374_v34 }
0x211a   :  { %23333 = vrsqrt.f32 %v13383_v41 }
0x211b   :  { %23335 = vrsqrt.f32 %v13382_v25 }
0x2120   :  { %v23330_v26 = vpop.eup %23329 }
0x2121   :  { %v23332_v1 = vpop.eup %23331  ;;  %v13397_v33 = vmul.f32 %v23330_v26, %v25482_v42 }
0x2122   :  { %v13396_v29 = vmul.f32 %v23332_v1, %v25484_v20 }
0x2123   :  { %v13409_v17 = vmul.f32 %v20186_v56, %v13397_v33 }
0x2124   :  { %v23334_v10 = vpop.eup %23333  ;;  %v13408_v45 = vmul.f32 %v20186_v56, %v13396_v29 }
0x2125   :  { %v23336_v44 = vpop.eup %23335  ;;  %v13399_v63 = vmul.f32 %v23334_v10, %v25490_v27  ;;  %v25528_v16 = vadd.f32 %v20187_v54, %v13409_v17  ;;  %v20188_v27 = vld [vmem:[#allocation2 + $0x150] ss:$0 sm:$0xff] }
0x2126   :  { %v25525_v31 = vadd.f32 %v20187_v54, %v13408_v45  ;;  %v13398_v3 = vmul.f32 %v23336_v44, %v25493_v46 }
0x2127   :  { %v13411_v4 = vmul.f32 %v20186_v56, %v13399_v63 }
0x2128   :  { %22067 = vmatprep.mubr.msk.f32.mxu0 %vm216_vm6, %v25525_v31  ;;  %v13410_v48 = vmul.f32 %v20186_v56, %v13398_v3 }
0x2129   :  { %22068 = vmatmul.mubr.msk.f32.gmra.mrb[180].mxu0 %vm216_vm6, %v25528_v16  ;;  %v25536_v20 = vadd.f32 %v20187_v54, %v13411_v4 }
0x212a   :  { %v25534_v42 = vadd.f32 %v20187_v54, %v13410_v48 }
0x212c   :  { %22070 = vmatprep.mubr.msk.f32.mxu0 %vm216_vm6, %v25534_v42 }
0x212d   :  { %22071 = vmatmul.mubr.msk.f32.gmra.mrb[182].mxu0 %vm216_vm6, %v25536_v20 }
0x212e   :  { %22095 = vmatprep.mubr.msk.f32.mxu0 %vm23547_vm0, %v25400_v62 }
0x216f   :  { %v22063_v46 = vpop.f32.mrb[176].mxu0 }
0x2170   :  { %v13529_v24 = vadd.f32 %v22063_v46, %v20188_v27  ;;  %v13523_v60 = vpop.f32.mrb[177].mxu0 }
0x2171   :  { %v13524_v52 = vadd.f32 %v20188_v27, %v13523_v60 }
0x2172   :  { %v13563_v18 = vmax.f32 %v13529_v24, 0.0 }
0x2173   :  { %v13562_v28 = vmax.f32 %v13524_v52, 0.0  ;;  %v22066_v51 = vpop.f32.mrb[178].mxu0 }
0x2174   :  { %v13539_v61 = vadd.f32 %v22066_v51, %v20188_v27  ;;  %v13533_v5 = vpop.f32.mrb[179].mxu0 }
0x2175   :  { %v13534_v59 = vadd.f32 %v20188_v27, %v13533_v5  ;;  %22075 = vmatprep.mubr.msk.f32.mxu1 %vm142_vm3, %v13562_v28 }
0x2176   :  { %22076 = vmatmul.mubr.msk.f32.vlgmr.msra.gmra.mrb[126].mxu1 %vm142_vm3, %v13563_v18  ;;  %v13565_v56 = vmax.f32 %v13539_v61, 0.0 }
0x2177   :  { %v13564_v40 = vmax.f32 %v13534_v59, 0.0 }
0x2179   :  { %22078 = vmatprep.mubr.msk.f32.mxu1 %vm142_vm3, %v13564_v40 }
0x217a   :  { %22079 = vmatmul.mubr.msk.f32.gmra.mrb[128].mxu1 %vm142_vm3, %v13565_v56 }
0x21fc   :  { %v22069_v62 = vpop.f32.mrb[180].mxu0 }
0x21fd   :  { %v13549_v13 = vadd.f32 %v22069_v62, %v20188_v27  ;;  %v13543_v8 = vpop.f32.mrb[181].mxu0 }
0x21fe   :  { %v13544_v55 = vadd.f32 %v20188_v27, %v13543_v8 }
0x21ff   :  { %v13567_v15 = vmax.f32 %v13549_v13, 0.0 }
0x2200   :  { %v13566_v54 = vmax.f32 %v13544_v55, 0.0  ;;  %v22072_v43 = vpop.f32.mrb[182].mxu0 }
0x2201   :  { %v13559_v38 = vadd.f32 %v22072_v43, %v20188_v27  ;;  %v13553_v32 = vpop.f32.mrb[183].mxu0 }
0x2202   :  { %v13554_v58 = vadd.f32 %v20188_v27, %v13553_v32  ;;  %22081 = vmatprep.mubr.msk.f32.mxu1 %vm142_vm3, %v13566_v54 }
0x2203   :  { %22082 = vmatmul.mubr.msk.f32.gmra.mrb[130].mxu1 %vm142_vm3, %v13567_v15  ;;  %v13569_v12 = vmax.f32 %v13559_v38, 0.0 }
0x2204   :  { %v13568_v23 = vmax.f32 %v13554_v58, 0.0 }
0x2206   :  { %22084 = vmatprep.mubr.msk.f32.mxu1 %vm142_vm3, %v13568_v23 }
0x2207   :  { %22085 = vmatmul.mubr.msk.f32.gmra.mrb[132].mxu1 %vm142_vm3, %v13569_v12 }
0x2249   :  { %v22077_v50 = vpop.f32.mrb[126].mxu1 }
0x224a   :  { %v13672_v39 = vadd.f32 %v22077_v50, %v20197_v35  ;;  %v13666_v36 = vpop.f32.mrb[127].mxu1 }
0x224b   :  { %v13667_v21 = vadd.f32 %v20197_v35, %v13666_v36 }
0x224c   :  { %v13706_v57 = vadd.f32 %v13672_v39, %v25508_v14 }
0x224d   :  { %v22080_v6 = vpop.f32.mrb[128].mxu1  ;;  %v13705_v7 = vadd.f32 %v13667_v21, %v25505_v53 }
0x224e   :  { %v13682_v49 = vadd.f32 %v22080_v6, %v20197_v35  ;;  %v13676_v2 = vpop.f32.mrb[129].mxu1  ;;  %v13718_v11 = vsel %vm216_vm6, %v13706_v57, 0.0 }
0x224f   :  { %v13677_v34 = vadd.f32 %v20197_v35, %v13676_v2  ;;  %13719 = vadd.xlane.f32.xlu0 %v13718_v11  ;;  %v13715_v26 = vsel %vm216_vm6, %v13705_v7, 0.0 }
0x2250   :  { %v13708_v41 = vadd.f32 %v13682_v49, %v25516_v30 }
0x2251   :  { %v13707_v25 = vadd.f32 %v13677_v34, %v25514_v9 }
0x2252   :  { %v13724_v1 = vsel %vm216_vm6, %v13708_v41, 0.0 }
0x2253   :  { %13716 = vadd.xlane.f32.xlu0 %v13715_v26  ;;  %13725 = vadd.xlane.f32.xlu1 %v13724_v1  ;;  %v13721_v14 = vsel %vm216_vm6, %v13707_v25, 0.0  ;;  %v13923_v26 = vld [vmem:[#allocation2 + $0x178] sm:$0xff]  ;;  %v13924_v1 = vld [vmem:[#allocation2 + $0x180] sm:$0xff] }
0x2257   :  { %13722 = vadd.xlane.f32.xlu1 %v13721_v14  ;;  %v13925_v14 = vld [vmem:[#allocation2 + $0x188] sm:$0xff] }
0x22d6   :  { %v22083_v53 = vpop.f32.mrb[130].mxu1 }
0x22d7   :  { %v13692_v33 = vadd.f32 %v22083_v53, %v20197_v35  ;;  %v13686_v29 = vpop.f32.mrb[131].mxu1  ;;  %v22700_v53 = vpack.c.bf16 %v13924_v1, %v13923_v26 }
0x22d8   :  { %v13687_v17 = vadd.f32 %v20197_v35, %v13686_v29 }
0x22d9   :  { %v13710_v10 = vadd.f32 %v13692_v33, %v25528_v16  ;;  %v13926_v33 = vld [vmem:[#allocation2 + $0x190] sm:$0xff]  ;;  %22701 = vmatpush3.bf16.msra.mxu0 %v22700_v53 }
0x22da   :  { %v13709_v45 = vadd.f32 %v13687_v17, %v25525_v31  ;;  %v22086_v30 = vpop.f32.mrb[132].mxu1  ;;  %v22703_v29 = vpack.c.bf16 %v13926_v33, %v13925_v14  ;;  %22702 = vmatprep.subr.bf16.mxu0 %v27030_v0 }
0x22db   :  { %v13702_v44 = vadd.f32 %v22086_v30, %v20197_v35  ;;  %v13696_v9 = vpop.f32.mrb[133].mxu1  ;;  %v13730_v63 = vsel %vm216_vm6, %v13710_v10, 0.0 }
0x22dc   :  { %v13697_v3 = vadd.f32 %v20197_v35, %v13696_v9  ;;  %13731 = vadd.xlane.f32.xlu1 %v13730_v63  ;;  %v13720_v4 = vpop.xlane.xlu0 %13719  ;;  %v13727_v48 = vsel %vm216_vm6, %v13709_v45, 0.0 }
0x22dd   :  { %v13712_v27 = vadd.f32 %v13702_v44, %v25536_v20  ;;  %v13740_v46 = vmul.f32 0.03125, %v13720_v4  ;;  %13728 = vadd.xlane.f32.xlu0 %v13727_v48  ;;  %22704 = vmatpush3.bf16.msra.mxu0 %v22703_v29 }
0x22de   :  { %v13711_v24 = vadd.f32 %v13697_v3, %v25534_v42  ;;  %22705 = vmatprep.subr.bf16.mxu0 %v27030_v0 }
0x22df   :  { %v25566_v60 = vsub.f32 %v13706_v57, %v13740_v46  ;;  %v13736_v31 = vsel %vm216_vm6, %v13712_v27, 0.0 }
0x22e0   :  { %v13726_v16 = vpop.xlane.xlu1 %13725  ;;  %13737 = vadd.xlane.f32.xlu1 %v13736_v31  ;;  %v13717_v52 = vpop.xlane.xlu0 %13716  ;;  %v13733_v28 = vsel %vm216_vm6, %v13711_v24, 0.0 }
0x22e1   :  { %v13739_v51 = vmul.f32 0.03125, %v13717_v52  ;;  %13734 = vadd.xlane.f32.xlu0 %v13733_v28  ;;  %v13756_v18 = vmul.f32 %v25566_v60, %v25566_v60  ;;  %v13742_v61 = vmul.f32 0.03125, %v13726_v16 }
0x22e3   :  { %v25572_v20 = vsub.f32 %v13705_v7, %v13739_v51  ;;  %v13766_v5 = vsel %vm216_vm6, %v13756_v18, 0.0  ;;  %v25577_v56 = vsub.f32 %v13708_v41, %v13742_v61  ;;  %v25611_v51 = vld [vmem:[#allocation2 + $0x168] ss:$0 sm:$0xff] }
0x22e4   :  { %v13723_v42 = vpop.xlane.xlu1 %13722 }
0x22e5   :  { %v13741_v59 = vmul.f32 0.03125, %v13723_v42  ;;  %13767 = vadd.xlane.f32.xlu0 %v13766_v5  ;;  %v13755_v40 = vmul.f32 %v25572_v20, %v25572_v20  ;;  %v13758_v54 = vmul.f32 %v25577_v56, %v25577_v56 }
0x22e7   :  { %v25579_v62 = vsub.f32 %v13707_v25, %v13741_v59  ;;  %v13763_v13 = vsel %vm216_vm6, %v13755_v40, 0.0  ;;  %v13772_v43 = vsel %vm216_vm6, %v13758_v54, 0.0  ;;  %v25617_v59 = vld [vmem:[#allocation2 + $0x170] ss:$0 sm:$0xff] }
0x22e9   :  { %13764 = vadd.xlane.f32.xlu0 %v13763_v13  ;;  %v13757_v8 = vmul.f32 %v25579_v62, %v25579_v62 }
0x22eb   :  { %v13769_v55 = vsel %vm216_vm6, %v13757_v8, 0.0 }
0x22ec   :  { %13770 = vadd.xlane.f32.xlu1 %v13769_v55 }
0x22f0   :  { %13773 = vadd.xlane.f32.xlu1 %v13772_v43 }
0x2369   :  { %v13732_v15 = vpop.xlane.xlu1 %13731 }
0x236a   :  { %v13744_v38 = vmul.f32 0.03125, %v13732_v15  ;;  %v13729_v32 = vpop.xlane.xlu0 %13728 }
0x236b   :  { %v13743_v58 = vmul.f32 0.03125, %v13729_v32 }
0x236c   :  { %v25588_v23 = vsub.f32 %v13710_v10, %v13744_v38 }
0x236d   :  { %v25590_v12 = vsub.f32 %v13709_v45, %v13743_v58  ;;  %v13738_v35 = vpop.xlane.xlu1 %13737 }
0x236e   :  { %v13746_v50 = vmul.f32 0.03125, %v13738_v35  ;;  %v13735_v39 = vpop.xlane.xlu0 %13734  ;;  %v13760_v36 = vmul.f32 %v25588_v23, %v25588_v23 }
0x236f   :  { %v13745_v21 = vmul.f32 0.03125, %v13735_v39  ;;  %v13759_v57 = vmul.f32 %v25590_v12, %v25590_v12 }
0x2370   :  { %v25596_v6 = vsub.f32 %v13712_v27, %v13746_v50  ;;  %v13778_v7 = vsel %vm216_vm6, %v13760_v36, 0.0 }
0x2371   :  { %v25599_v49 = vsub.f32 %v13711_v24, %v13745_v21  ;;  %13779 = vadd.xlane.f32.xlu1 %v13778_v7  ;;  %v13775_v2 = vsel %vm216_vm6, %v13759_v57, 0.0 }
0x2372   :  { %13776 = vadd.xlane.f32.xlu0 %v13775_v2  ;;  %v13762_v11 = vmul.f32 %v25596_v6, %v25596_v6  ;;  %v13768_v10 = vpop.xlane.xlu0 %13767 }
0x2373   :  { %v13761_v34 = vmul.f32 %v25599_v49, %v25599_v49  ;;  %v13788_v30 = vmul.f32 0.03125, %v13768_v10 }
0x2374   :  { %v13784_v41 = vsel %vm216_vm6, %v13762_v11, 0.0 }
0x2375   :  { %13785 = vadd.xlane.f32.xlu1 %v13784_v41  ;;  %v13781_v25 = vsel %vm216_vm6, %v13761_v34, 0.0  ;;  %v13796_v3 = vadd.f32 1e-05, %v13788_v30 }
0x2376   :  { %13782 = vadd.xlane.f32.xlu0 %v13781_v25  ;;  %v13765_v44 = vpop.xlane.xlu0 %13764 }
0x2377   :  { %v13787_v4 = vmul.f32 0.03125, %v13765_v44  ;;  %23337 = vrsqrt.f32 %v13796_v3 }
0x2379   :  { %v13771_v17 = vpop.xlane.xlu1 %13770  ;;  %v13795_v46 = vadd.f32 1e-05, %v13787_v4 }
0x237a   :  { %v13789_v9 = vmul.f32 0.03125, %v13771_v17 }
0x237c   :  { %v13797_v48 = vadd.f32 1e-05, %v13789_v9 }
0x237d   :  { %v13774_v45 = vpop.xlane.xlu1 %13773 }
0x237e   :  { %v13790_v63 = vmul.f32 0.03125, %v13774_v45  ;;  %23339 = vrsqrt.f32 %v13797_v48 }
0x2380   :  { %v13798_v27 = vadd.f32 1e-05, %v13790_v63 }
0x2381   :  { %v23338_v24 = vpop.eup %23337 }
0x2382   :  { %23341 = vrsqrt.f32 %v13798_v27  ;;  %v13812_v52 = vmul.f32 %v23338_v24, %v25566_v60 }
0x2383   :  { %23343 = vrsqrt.f32 %v13795_v46 }
0x2384   :  { %v13824_v5 = vmul.f32 %v25611_v51, %v13812_v52 }
0x2386   :  { %v13836_v8 = vadd.f32 %v25617_v59, %v13824_v5 }
0x2388   :  { %v23340_v31 = vpop.eup %23339  ;;  %v13850_v15 = vsel %vm216_vm6, %v13836_v8, 0.0 }
0x2389   :  { %v13813_v18 = vmul.f32 %v23340_v31, %v25579_v62  ;;  %v13851_v36 = vrot.slane %v13850_v15, 4 }
0x238b   :  { %v13825_v40 = vmul.f32 %v25611_v51, %v13813_v18  ;;  %v13852_v1 = vadd.f32 %v13851_v36, %v13850_v15  ;;  %v13901_v36 = vrot.slane %v23715_v37, 2 }
0x238c   :  { %v23342_v16 = vpop.eup %23341 }
0x238d   :  { %v23344_v28 = vpop.eup %23343  ;;  %v13814_v61 = vmul.f32 %v23342_v16, %v25577_v56  ;;  %v13837_v55 = vadd.f32 %v25617_v59, %v13825_v40  ;;  %v13853_v29 = vrot.slane %v13852_v1, 2 }
0x238e   :  { %v13811_v42 = vmul.f32 %v23344_v28, %v25572_v20 }
0x238f   :  { %v13826_v13 = vmul.f32 %v25611_v51, %v13814_v61  ;;  %v13857_v32 = vsel %vm216_vm6, %v13837_v55, 0.0  ;;  %v13854_v3 = vadd.f32 %v13853_v29, %v13852_v1 }
0x2390   :  { %v13823_v60 = vmul.f32 %v25611_v51, %v13811_v42  ;;  %v13858_v2 = vrot.slane %v13857_v32, 4 }
0x2391   :  { %v13838_v62 = vadd.f32 %v25617_v59, %v13826_v13  ;;  %v13855_v61 = vrot.slane %v13854_v3, 1 }
0x2392   :  { %v13835_v20 = vadd.f32 %v25617_v59, %v13823_v60  ;;  %v13859_v14 = vadd.f32 %v13858_v2, %v13857_v32 }
0x2393   :  { %v13864_v35 = vsel %vm216_vm6, %v13838_v62, 0.0 }
0x2394   :  { %v13843_v7 = vsel %vm216_vm6, %v13835_v20, 0.0  ;;  %v13865_v34 = vrot.slane %v13864_v35, 4  ;;  %v13860_v17 = vrot.slane %v13859_v14, 2 }
0x2395   :  { %v13844_v26 = vrot.slane %v13843_v7, 4 }
0x2396   :  { %v13866_v53 = vadd.f32 %v13865_v34, %v13864_v35  ;;  %v13861_v4 = vadd.f32 %v13860_v17, %v13859_v14 }
0x2397   :  { %v13845_v33 = vadd.f32 %v13844_v26, %v13843_v7 }
0x2398   :  { %v13867_v45 = vrot.slane %v13866_v53, 2 }
0x2399   :  { %v13846_v9 = vrot.slane %v13845_v33, 2 }
0x239a   :  { %v13868_v46 = vadd.f32 %v13867_v45, %v13866_v53 }
0x239b   :  { %v13847_v28 = vadd.f32 %v13846_v9, %v13845_v33 }
0x239c   :  { %v13869_v40 = vrot.slane %v13868_v46, 1 }
0x239d   :  { %v13848_v62 = vrot.slane %v13847_v28, 1 }
0x239e   :  { %v13870_v35 = vadd.f32 %v13869_v40, %v13868_v46 }
0x23fe   :  { %v13780_v54 = vpop.xlane.xlu1 %13779 }
0x23ff   :  { %v13792_v56 = vmul.f32 0.03125, %v13780_v54  ;;  %v13777_v43 = vpop.xlane.xlu0 %13776 }
0x2400   :  { %v13791_v38 = vmul.f32 0.03125, %v13777_v43 }
0x2401   :  { %v13800_v58 = vadd.f32 1e-05, %v13792_v56 }
0x2402   :  { %v13799_v50 = vadd.f32 1e-05, %v13791_v38  ;;  %v13786_v39 = vpop.xlane.xlu1 %13785 }
0x2403   :  { %23345 = vrsqrt.f32 %v13800_v58  ;;  %v13794_v21 = vmul.f32 0.03125, %v13786_v39  ;;  %v13783_v57 = vpop.xlane.xlu0 %13782 }
0x2404   :  { %23347 = vrsqrt.f32 %v13799_v50  ;;  %v13793_v11 = vmul.f32 0.03125, %v13783_v57  ;;  %v13900_v50 = vrot.slane %v23715_v37, 1 }
0x2405   :  { %v13802_v41 = vadd.f32 1e-05, %v13794_v21  ;;  %v13849_v21 = vadd.f32 %v13848_v62, %v13847_v28  ;;  %v13905_v28 = vrot.slane %v23715_v37, 6  ;;  %v14144_v62 = vld [vmem:[#allocation2 + $0x1d8] sm:$0xff] }
0x2406   :  { %v13801_v25 = vadd.f32 1e-05, %v13793_v11 }
0x2407   :  { %23349 = vrsqrt.f32 %v13802_v41  ;;  %v13915_v17 = vadd.f32 %v13849_v21, %v23715_v37 }
0x2408   :  { %23351 = vrsqrt.f32 %v13801_v25 }
0x240d   :  { %v23346_v10 = vpop.eup %23345 }
0x240e   :  { %v23348_v30 = vpop.eup %23347  ;;  %v13816_v44 = vmul.f32 %v23346_v10, %v25588_v23 }
0x240f   :  { %v13815_v63 = vmul.f32 %v23348_v30, %v25590_v12  ;;  %v13862_v12 = vrot.slane %v13861_v4, 1  ;;  %v13903_v30 = vrot.slane %v23715_v37, 4 }
0x2410   :  { %v13828_v48 = vmul.f32 %v25611_v51, %v13816_v44 }
0x2411   :  { %v23350_v27 = vpop.eup %23349  ;;  %v13827_v24 = vmul.f32 %v25611_v51, %v13815_v63  ;;  %v13863_v43 = vadd.f32 %v13862_v12, %v13861_v4  ;;  %v13904_v63 = vrot.slane %v23715_v37, 5 }
0x2412   :  { %v23352_v31 = vpop.eup %23351  ;;  %v13840_v16 = vadd.f32 %v25617_v59, %v13828_v48  ;;  %v13818_v52 = vmul.f32 %v23350_v27, %v25596_v6 }
0x2413   :  { %v13839_v18 = vadd.f32 %v25617_v59, %v13827_v24  ;;  %v13817_v23 = vmul.f32 %v23352_v31, %v25599_v49  ;;  %v13856_v49 = vadd.f32 %v13855_v61, %v13854_v3  ;;  %v13917_v34 = vadd.f32 %v13901_v36, %v13863_v43  ;;  %v14137_v43 = vld [vmem:[%s27025_s3 + $0x8] sm:$0xff] }
0x2414   :  { %v13878_v5 = vsel %vm216_vm6, %v13840_v16, 0.0  ;;  %v13830_v42 = vmul.f32 %v25611_v51, %v13818_v52  ;;  %v13906_v24 = vrot.slane %v23715_v37, 7 }
0x2415   :  { %v13879_v13 = vrot.slane %v13878_v5, 4  ;;  %v13871_v8 = vsel %vm216_vm6, %v13839_v18, 0.0  ;;  %v13829_v60 = vmul.f32 %v25611_v51, %v13817_v23  ;;  %v13916_v41 = vadd.f32 %v13900_v50, %v13856_v49  ;;  %v20208_v50 = vld [vmem:[#allocation2 + $0x198] ss:$0 sm:$0xff] }
0x2416   :  { %v13872_v55 = vrot.slane %v13871_v8, 4  ;;  %v13842_v6 = vadd.f32 %v25617_v59, %v13830_v42  ;;  %v13942_v44 = vrot.slane %v13917_v34, 6 }
0x2417   :  { %v13880_v54 = vadd.f32 %v13879_v13, %v13878_v5  ;;  %v13841_v56 = vadd.f32 %v25617_v59, %v13829_v60  ;;  %v13902_v59 = vrot.slane %v23715_v37, 3  ;;  %v13940_v3 = vrot.slane %v13916_v41, 7  ;;  %v25665_v37 = vld [vmem:[%s27029_s7 + $0x8] sm:$0xff] }
0x2418   :  { %v13873_v15 = vadd.f32 %v13872_v55, %v13871_v8  ;;  %v13892_v20 = vsel %vm216_vm6, %v13842_v6, 0.0 }
0x2419   :  { %v13881_v38 = vrot.slane %v13880_v54, 2  ;;  %v13893_v32 = vrot.slane %v13892_v20, 4  ;;  %v13885_v58 = vsel %vm216_vm6, %v13841_v56, 0.0  ;;  %v13918_v1 = vadd.f32 %v13902_v59, %v13870_v35  ;;  %v14136_v56 = vld [vmem:[%s27025_s3] sm:$0xff]  ;;  %v14143_v35 = vld [vmem:[%s27025_s3 + $0x38] sm:$0xff]  ;;  %v14432_v59 = vld [vmem:[%s27026_s4 + $0x28] sm:$0xff] }
0x241a   :  { %v13874_v51 = vrot.slane %v13873_v15, 2  ;;  %v13886_v39 = vrot.slane %v13885_v58, 4  ;;  %v13941_v16 = vsel %vm733_vm7, %v13940_v3, %v13915_v17  ;;  %22113 = vmatprep.mubr.msk.f32.mxu1 %vm14151_vm1, %v14136_v56  ;;  %v14053_v17 = vld [vmem:[#allocation2 + $0x1b8] sm:$0xff] }
0x241b   :  { %v13882_v57 = vadd.f32 %v13881_v38, %v13880_v54  ;;  %v13894_v7 = vadd.f32 %v13893_v32, %v13892_v20  ;;  %v13944_v4 = vrot.slane %v13918_v1, 5  ;;  %v13943_v18 = vsel %vm735_vm8, %v13942_v44, %v13941_v16  ;;  %v14145_v54 = vld [vmem:[#allocation2 + $0x1e0] sm:$0xf]  ;;  %v14139_v20 = vld [vmem:[%s27025_s3 + $0x18] sm:$0xff]  ;;  %v14141_v32 = vld [vmem:[%s27025_s3 + $0x28] sm:$0xff] }
0x241c   :  { %v13875_v2 = vadd.f32 %v13874_v51, %v13873_v15  ;;  %v13887_v11 = vadd.f32 %v13886_v39, %v13885_v58  ;;  %v22711_v49 = vpack.c.bf16 %v14145_v54, %v14144_v62  ;;  %v14138_v15 = vld [vmem:[%s27025_s3 + $0x10] sm:$0xff]  ;;  %v14140_v38 = vld [vmem:[%s27025_s3 + $0x20] sm:$0xff]  ;;  %v14428_v1 = vld [vmem:[%s27026_s4 + $0x8] sm:$0xff] }
0x241d   :  { %v13883_v25 = vrot.slane %v13882_v57, 1  ;;  %v13895_v26 = vrot.slane %v13894_v7, 2  ;;  %v13945_v12 = vsel %vm737_vm9, %v13944_v4, %v13943_v18  ;;  %v14142_v58 = vld [vmem:[%s27025_s3 + $0x30] sm:$0xff]  ;;  %v20214_v18 = vld [vmem:[#allocation2 + $0x1e8] ss:$0 sm:$0xff]  ;;  %v14743_v62 = vld [vmem:[#allocation2 + $0x378] sm:$0xff] }
0x241e   :  { %v13876_v14 = vrot.slane %v13875_v2, 1  ;;  %v13888_v53 = vrot.slane %v13887_v11, 2  ;;  %22713 = vmatprep.subr.msk.bf16.mxu1 %vm22712_vm4, %v22711_v49  ;;  %v14744_v54 = vld [vmem:[#allocation2 + $0x380] sm:$0xff] }
0x241f   :  { %v13884_v33 = vadd.f32 %v13883_v25, %v13882_v57  ;;  %v13896_v29 = vadd.f32 %v13895_v26, %v13894_v7  ;;  %22716 = vmatpush3.bf16.msk.msra.mxu1 %vm22712_vm4, %v22711_v49  ;;  %v14427_v57 = vld [vmem:[%s27026_s4] sm:$0xff]  ;;  %v14430_v7 = vld [vmem:[%s27026_s4 + $0x18] sm:$0xff] }
0x2420   :  { %v13877_v10 = vadd.f32 %v13876_v14, %v13875_v2  ;;  %v13889_v45 = vadd.f32 %v13888_v53, %v13887_v11  ;;  %v14434_v2 = vld [vmem:[%s27026_s4 + $0x38] sm:$0xff]  ;;  %v14429_v14 = vld [vmem:[%s27026_s4 + $0x10] sm:$0xff]  ;;  %v14431_v53 = vld [vmem:[%s27026_s4 + $0x20] sm:$0xff] }
0x2421   :  { %v13897_v9 = vrot.slane %v13896_v29, 1  ;;  %v13920_v31 = vadd.f32 %v13904_v63, %v13884_v33  ;;  %v14433_v33 = vld [vmem:[%s27026_s4 + $0x30] sm:$0xff] }
0x2422   :  { %v13890_v48 = vrot.slane %v13889_v45, 1  ;;  %v13919_v27 = vadd.f32 %v13903_v30, %v13877_v10  ;;  %22114 = vmatmul.mubr.msk.f32.vlgmr.msra.gmra.mrb[134].mxu1 %vm14151_vm1, %v14137_v43  ;;  %v14055_v30 = vld [vmem:[#allocation2 + $0x1c8] sm:$0xff]  ;;  %v22726_v43 = vpack.c.bf16 %v14744_v54, %v14743_v62 }
0x2423   :  { %v13898_v46 = vadd.f32 %v13897_v9, %v13896_v29  ;;  %v13948_v40 = vrot.slane %v13920_v31, 3  ;;  %22116 = vmatprep.mubr.msk.f32.mxu1 %vm14151_vm1, %v14138_v15  ;;  %v14052_v29 = vld [vmem:[#allocation2 + $0x1b0] sm:$0xff] }
0x2424   :  { %v13891_v52 = vadd.f32 %v13890_v48, %v13889_v45  ;;  %v13946_v23 = vrot.slane %v13919_v27, 4  ;;  %v22706_v10 = vpack.c.bf16 %v14053_v17, %v14052_v29  ;;  %v14054_v45 = vld [vmem:[#allocation2 + $0x1c0] sm:$0xff]  ;;  %v14292_v48 = vld [vmem:[#allocation2 + $0x1f0] sm:$0xff] }
0x2425   :  { %v13922_v61 = vadd.f32 %v13906_v24, %v13898_v46  ;;  %v22709_v44 = vpack.c.bf16 %v14055_v30, %v14054_v45 }
0x2426   :  { %v13921_v5 = vadd.f32 %v13905_v28, %v13891_v52  ;;  %v13947_v42 = vsel %vm739_vm10, %v13946_v23, %v13945_v12  ;;  %22117 = vmatmul.mubr.msk.f32.gmra.mrb[136].mxu1 %vm14151_vm1, %v14139_v20 }
0x2427   :  { %v13949_v8 = vsel %vm741_vm11, %v13948_v40, %v13947_v42  ;;  %v13952_v60 = vrot.slane %v13922_v61, 1  ;;  %22119 = vmatprep.mubr.msk.f32.mxu1 %vm14151_vm1, %v14140_v38  ;;  %v20210_v61 = vld [vmem:[#allocation2 + $0x1a0] ss:$0 sm:$0xff]  ;;  %v20211_v42 = vld [vmem:[#allocation2 + $0x1a8] ss:$0 sm:$0xff] }
0x2428   :  { %v13950_v13 = vrot.slane %v13921_v5, 2 }
0x242a   :  { %v13951_v55 = vsel %vm743_vm12, %v13950_v13, %v13949_v8  ;;  %22120 = vmatmul.mubr.msk.f32.gmra.mrb[138].mxu1 %vm14151_vm1, %v14141_v32 }
0x242b   :  { %v13953_v6 = vsel %vm745_vm13, %v13952_v60, %v13951_v55  ;;  %22122 = vmatprep.mubr.msk.f32.mxu1 %vm14151_vm1, %v14142_v58 }
0x242c   :  { %22096 = vmatmul.mubr.msk.f32.vlgmr.msra.gmra.mrb[184].mxu0 %vm216_vm6, %v13953_v6 }
0x242d   :  { %22106 = vmatprep.mubr.msk.f32.mxu0 %vm23547_vm0, %v25665_v37  ;;  %22707 = vmatpush3.bf16.msra.mxu0 %v22706_v10  ;;  %v20234_v10 = vld [vmem:[#allocation2 + $0x208] ss:$0 sm:$0xff] }
0x242e   :  { %22123 = vmatmul.mubr.msk.f32.gmra.mrb[140].mxu1 %vm14151_vm1, %v14143_v35  ;;  %22708 = vmatprep.subr.bf16.mxu0 %v27030_v0 }
0x2431   :  { %22710 = vmatpush3.bf16.msra.mxu0 %v22709_v44 }
0x2432   :  { %22125 = vmatprep.subr.mxu0 %v14292_v48 }
0x24f5   :  { %v22115_v9 = vpop.f32.mrb[134].mxu1 }
0x24f6   :  { %v14245_v63 = vpop.f32.mrb[135].mxu1  ;;  %v14251_v55 = vadd.f32 %v22115_v9, %v20214_v18 }
0x24f7   :  { %v14246_v5 = vadd.f32 %v20214_v18, %v14245_v63 }
0x24f8   :  { %v14285_v15 = vmax.f32 %v14251_v55, 0.0 }
0x24f9   :  { %v22118_v3 = vpop.f32.mrb[136].mxu1  ;;  %v14284_v8 = vmax.f32 %v14246_v5, 0.0 }
0x24fa   :  { %v14255_v4 = vpop.f32.mrb[137].mxu1  ;;  %v14261_v20 = vadd.f32 %v22118_v3, %v20214_v18 }
0x24fb   :  { %v14256_v60 = vadd.f32 %v20214_v18, %v14255_v4 }
0x24fc   :  { %v14287_v58 = vmax.f32 %v14261_v20, 0.0 }
0x24fd   :  { %v22121_v27 = vpop.f32.mrb[138].mxu1  ;;  %v14286_v56 = vmax.f32 %v14256_v60, 0.0 }
0x24fe   :  { %v14265_v46 = vpop.f32.mrb[139].mxu1  ;;  %v14271_v35 = vadd.f32 %v22121_v27, %v20214_v18 }
0x24ff   :  { %v14022_v51 = vpop.f32.mrb[184].mxu0  ;;  %v14266_v49 = vadd.f32 %v20214_v18, %v14265_v46 }
0x2500   :  { %v14023_v39 = vadd.f32 %v20208_v50, %v14022_v51  ;;  %v22097_v36 = vpop.f32.mrb[185].mxu0  ;;  %v14289_v51 = vmax.f32 %v14271_v35, 0.0 }
0x2501   :  { %v22124_v24 = vpop.f32.mrb[140].mxu1  ;;  %v14288_v38 = vmax.f32 %v14266_v49, 0.0 }
0x2502   :  { %v14028_v21 = vsel %vm216_vm6, %v14023_v39, 0.0  ;;  %v14275_v31 = vpop.f32.mrb[141].mxu1 }
0x2503   :  { %14029 = vadd.xlane.f32.xlu0 %v14028_v21  ;;  %v14276_v32 = vadd.f32 %v20214_v18, %v14275_v31  ;;  %v14745_v21 = vld [vmem:[#allocation2 + $0x388] sm:$0xff] }
0x2505   :  { %v14290_v50 = vmax.f32 %v14276_v32, 0.0 }
0x2519   :  { %14438 = vperm.xlu0 %22999, %v14427_v57   ;;  %v14746_v57 = vld [vmem:[#allocation2 + $0x390] sm:$0xff] }
0x251d   :  { %14453 = vperm.xlu0 %22999, %v14430_v7   ;;  %v22729_v7 = vpack.c.bf16 %v14746_v57, %v14745_v21 }
0x2521   :  { %14463 = vperm.xlu0 %22999, %v14432_v59   ;;  %v14565_v59 = vld [vmem:[#allocation2 + $0x210] sm:$0xff] }
0x2525   :  { %14473 = vperm.xlu0 %22999, %v14434_v2   ;;  %v14566_v2 = vld [vmem:[#allocation2 + $0x218] sm:$0xff] }
0x2590   :  { %v14030_v11 = vpop.xlane.xlu0 %14029 }
0x2591   :  { %v14031_v34 = vmul.f32 0.03125, %v14030_v11  ;;  %v22717_v11 = vpack.c.bf16 %v14566_v2, %v14565_v59 }
0x2593   :  { %v14032_v41 = vsub.f32 %v14023_v39, %v14031_v34  ;;  %v14281_v39 = vadd.f32 %v22124_v24, %v20214_v18  ;;  %v14135_v34 = vld [vmem:[%s27027_s5] sm:$0xff]  ;;  %22718 = vmatprep.subr.bf16.mxu1 %v22717_v11 }
0x2594   :  { %22720 = vmatpush3.bf16.msra.mxu1 %v22717_v11 }
0x2595   :  { %v14033_v25 = vmul.f32 %v14032_v41, %v14032_v41  ;;  %v14291_v36 = vmax.f32 %v14281_v39, 0.0 }
0x2597   :  { %v14034_v26 = vsel %vm216_vm6, %v14033_v25, 0.0  ;;  %v14568_v25 = vld [vmem:[#allocation2 + $0x228] sm:$0xff] }
0x2598   :  { %14035 = vadd.xlane.f32.xlu1 %v14034_v26 }
0x25a9   :  { %14443 = vperm.xlu1 %23000, %v14428_v1  }
0x25ad   :  { %14448 = vperm.xlu1 %23000, %v14429_v14  }
0x25b1   :  { %14458 = vperm.xlu1 %23000, %v14431_v53   ;;  %v20233_v53 = vld [vmem:[#allocation2 + $0x200] ss:$0 sm:$0xff] }
0x25b5   :  { %14468 = vperm.xlu1 %23000, %v14433_v33  }
0x2625   :  { %v14036_v16 = vpop.xlane.xlu1 %14035 }
0x2626   :  { %v14037_v52 = vmul.f32 0.03125, %v14036_v16 }
0x2628   :  { %v14038_v28 = vadd.f32 1e-05, %v14037_v52 }
0x2629   :  { %v14444_v1 = vpop.permute.xlu1 %14443 }
0x262a   :  { %23353 = vrsqrt.f32 %v14038_v28  ;;  %v14481_v29 = vmul.f32 %v20233_v53, %v14444_v1 }
0x262c   :  { %v14494_v44 = vadd.f32 %v20234_v10, %v14481_v29 }
0x262d   :  { %v14449_v33 = vpop.permute.xlu1 %14448 }
0x262e   :  { %v14482_v3 = vmul.f32 %v20233_v53, %v14449_v33  ;;  %v20236_v27 = vmul.f32 -1.442695, %v14494_v44 }
0x2630   :  { %v14495_v31 = vadd.f32 %v20234_v10, %v14482_v3  ;;  %23355 = vpow2.f32 %v20236_v27 }
0x2631   :  { %v14459_v9 = vpop.permute.xlu1 %14458 }
0x2632   :  { %v14484_v16 = vmul.f32 %v20233_v53, %v14459_v9 }
0x2634   :  { %v23354_v23 = vpop.eup %23353 }
0x2635   :  { %v14040_v12 = vmul.f32 %v23354_v23, %v14032_v41  ;;  %v14567_v41 = vld [vmem:[#allocation2 + $0x220] sm:$0xff]  ;;  %v14469_v52 = vpop.permute.xlu1 %14468 }
0x2636   :  { %v22721_v26 = vpack.c.bf16 %v14568_v25, %v14567_v41  ;;  %v14486_v5 = vmul.f32 %v20233_v53, %v14469_v52 }
0x2637   :  { %v14045_v40 = vmul.f32 %v20210_v61, %v14040_v12  ;;  %v20237_v61 = vmul.f32 -1.442695, %v14495_v31  ;;  %v14497_v12 = vadd.f32 %v20234_v10, %v14484_v16 }
0x2638   :  { %22722 = vmatprep.subr.bf16.mxu1 %v22721_v26 }
0x2639   :  { %v14050_v13 = vadd.f32 %v20211_v42, %v14045_v40  ;;  %22724 = vmatpush3.bf16.msra.mxu1 %v22721_v26 }
0x263b   :  { %v14051_v6 = vmax.f32 %v14050_v13, 0.0  ;;  %v20239_v13 = vmul.f32 -1.442695, %v14497_v12 }
0x263d   :  { %22107 = vmatmul.mubr.msk.f32.vlgmr.msra.gmra.mrb[186].mxu0 %vm216_vm6, %v14051_v6  ;;  %v23356_v6 = vpop.eup %23355 }
0x263e   :  { %22126 = vmatpush3.msra.mxu0 %v14292_v48  ;;  %22127 = vmatprep.mubr.msk.f32.mxu0 %vm142_vm3, %v14284_v8  ;;  %v14499_v8 = vadd.f32 %v20234_v10, %v14486_v5  ;;  %v14526_v54 = vadd.f32 1.0, %v23356_v6 }
0x263f   :  { %22725 = vmatprep.subr.bf16.mxu0 %v27030_v0 }
0x2640   :  { %v20241_v55 = vmul.f32 -1.442695, %v14499_v8 }
0x2641   :  { %22128 = vmatmul.mubr.msk.f32.vlgmr.msra.gmra.mrb[188].mxu0 %vm142_vm3, %v14285_v15 }
0x2642   :  { %22130 = vmatprep.mubr.msk.f32.mxu0 %vm142_vm3, %v14286_v56  ;;  %22727 = vmatpush3.bf16.msra.mxu0 %v22726_v43 }
0x2643   :  { %22728 = vmatprep.subr.bf16.mxu0 %v27030_v0 }
0x2645   :  { %22131 = vmatmul.mubr.msk.f32.gmra.mrb[190].mxu0 %vm142_vm3, %v14287_v58  ;;  %v20212_v58 = vld [vmem:[#allocation2 + $0x1d0] ss:$0 sm:$0xff] }
0x2646   :  { %22133 = vmatprep.mubr.msk.f32.mxu0 %vm142_vm3, %v14288_v38  ;;  %22730 = vmatpush3.bf16.msra.mxu0 %v22729_v7  ;;  %v20224_v7 = vld [vmem:[#allocation2 + $0x1f8] ss:$0 sm:$0xff] }
0x2649   :  { %22134 = vmatmul.mubr.msk.f32.gmra.mrb[192].mxu0 %vm142_vm3, %v14289_v51 }
0x264a   :  { %22136 = vmatprep.mubr.msk.f32.mxu0 %vm142_vm3, %v14290_v50 }
0x264d   :  { %22137 = vmatmul.mubr.msk.f32.gmra.mrb[194].mxu0 %vm142_vm3, %v14291_v36 }
0x264e   :  { %22167 = vmatprep.mubr.msk.f32.mxu0 %vm23547_vm0, %v25665_v37  ;;  %v14439_v37 = vpop.permute.xlu0 %14438 }
0x264f   :  { %v14480_v17 = vmul.f32 %v20233_v53, %v14439_v37 }
0x2651   :  { %22168 = vmatmul.mubr.msk.f32.vlgmr.msra.gmra.mrb[196].mxu0 %vm216_vm6, %v14135_v34  ;;  %v14493_v63 = vadd.f32 %v20234_v10, %v14480_v17 }
0x2652   :  { %v14454_v14 = vpop.permute.xlu0 %14453 }
0x2653   :  { %v14483_v30 = vmul.f32 %v20233_v53, %v14454_v14  ;;  %v20235_v46 = vmul.f32 -1.442695, %v14493_v63 }
0x2655   :  { %v14496_v4 = vadd.f32 %v20234_v10, %v14483_v30  ;;  %23357 = vpow2.f32 %v20235_v46 }
0x2656   :  { %v14464_v45 = vpop.permute.xlu0 %14463 }
0x2657   :  { %v14485_v48 = vmul.f32 %v20233_v53, %v14464_v45  ;;  %v20238_v28 = vmul.f32 -1.442695, %v14496_v4 }
0x2659   :  { %v14498_v18 = vadd.f32 %v20234_v10, %v14485_v48  ;;  %23359 = vpow2.f32 %v20238_v28 }
0x265a   :  { %v14474_v24 = vpop.permute.xlu0 %14473  ;;  %23361 = vpow2.f32 %v20237_v61 }
0x265b   :  { %v14487_v23 = vmul.f32 %v20233_v53, %v14474_v24  ;;  %v20240_v42 = vmul.f32 -1.442695, %v14498_v18 }
0x265d   :  { %v14500_v40 = vadd.f32 %v20234_v10, %v14487_v23  ;;  %23363 = vpow2.f32 %v20240_v42 }
0x265e   :  { %23365 = vpow2.f32 %v20239_v13 }
0x265f   :  { %v20242_v60 = vmul.f32 -1.442695, %v14500_v40  ;;  %v23358_v62 = vpop.eup %23357 }
0x2660   :  { %v14525_v49 = vadd.f32 1.0, %v23358_v62 }
0x2661   :  { %23367 = vpow2.f32 %v20242_v60 }
0x2662   :  { %23369 = vpow2.f32 %v20241_v55 }
0x2663   :  { %v23360_v56 = vpop.eup %23359  ;;  %23371 = vrcp.f32 %v14526_v54 }
0x2664   :  { %v23362_v43 = vpop.eup %23361  ;;  %v14528_v15 = vadd.f32 1.0, %v23360_v56  ;;  %23373 = vrcp.f32 %v14525_v49  ;;  %v20252_v56 = vld [vmem:[#allocation2 + $0x398] ss:$0 sm:$0xff] }
0x2665   :  { %v14527_v38 = vadd.f32 1.0, %v23362_v43 }
0x2666   :  { %23375 = vrcp.f32 %v14528_v15 }
0x2667   :  { %v23364_v20 = vpop.eup %23363  ;;  %23377 = vrcp.f32 %v14527_v38 }
0x2668   :  { %v23366_v32 = vpop.eup %23365  ;;  %v14530_v35 = vadd.f32 1.0, %v23364_v20 }
0x2669   :  { %v14529_v39 = vadd.f32 1.0, %v23366_v32 }
0x266a   :  { %23379 = vrcp.f32 %v14530_v35  ;;  %v20243_v35 = vld [vmem:[#allocation2 + $0x230] ss:$0 sm:$0xff] }
0x266b   :  { %v23368_v51 = vpop.eup %23367  ;;  %23381 = vrcp.f32 %v14529_v39 }
0x266c   :  { %v23370_v57 = vpop.eup %23369  ;;  %v14532_v59 = vadd.f32 1.0, %v23368_v51 }
0x266d   :  { %v14531_v11 = vadd.f32 1.0, %v23370_v57  ;;  %v23372_v25 = vpop.eup %23371 }
0x266e   :  { %v23374_v37 = vpop.eup %23373  ;;  %23383 = vrcp.f32 %v14532_v59 }
0x266f   :  { %23385 = vrcp.f32 %v14531_v11 }
0x2670   :  { %v23376_v17 = vpop.eup %23375 }
0x2671   :  { %v23378_v30 = vpop.eup %23377 }
0x2674   :  { %v23380_v27 = vpop.eup %23379 }
0x2675   :  { %v23382_v31 = vpop.eup %23381 }
0x2678   :  { %v23384_v12 = vpop.eup %23383 }
0x2679   :  { %v23386_v40 = vpop.eup %23385 }
0x2710   :  { %v14130_v50 = vpop.f32.mrb[186].mxu0 }
0x2711   :  { %v25746_v36 = vadd.f32 %v20212_v58, %v14130_v50  ;;  %v22108_v21 = vpop.f32.mrb[187].mxu0 }
0x2713   :  { %14134 = vst.msk [vmem:[%s27029_s7 + $0x8] sm:$0xff] %vm216_vm6, %v25746_v36 }
0x2714   :  { %v22129_v2 = vpop.f32.mrb[188].mxu0 }
0x2715   :  { %v14394_v34 = vadd.f32 %v22129_v2, %v20224_v7  ;;  %v14388_v41 = vpop.f32.mrb[189].mxu0 }
0x2716   :  { %v14389_v26 = vadd.f32 %v20224_v7, %v14388_v41 }
0x2717   :  { %v25753_v1 = vmul.f32 %v23372_v25, %v14394_v34 }
0x2718   :  { %v25755_v14 = vmul.f32 %v23374_v37, %v14389_v26  ;;  %v22132_v53 = vpop.f32.mrb[190].mxu0 }
0x2719   :  { %v14404_v33 = vadd.f32 %v22132_v53, %v20224_v7  ;;  %v14398_v29 = vpop.f32.mrb[191].mxu0  ;;  %v14558_v44 = vadd.f32 %v25753_v1, %v25746_v36 }
0x271a   :  { %v14557_v10 = vadd.f32 %v25755_v14, %v25746_v36  ;;  %v14399_v45 = vadd.f32 %v20224_v7, %v14398_v29 }
0x271b   :  { %v25761_v9 = vmul.f32 %v23376_v17, %v14404_v33 }
0x271c   :  { %v25763_v63 = vmul.f32 %v23378_v30, %v14399_v45  ;;  %v22135_v3 = vpop.f32.mrb[192].mxu0  ;;  %22147 = vmatprep.mubr.msk.f32.mxu1 %vm216_vm6, %v14557_v10 }
0x271d   :  { %v14414_v4 = vadd.f32 %v22135_v3, %v20224_v7  ;;  %v14408_v48 = vpop.f32.mrb[193].mxu0  ;;  %22148 = vmatmul.mubr.msk.f32.vlgmr.msra.gmra.mrb[142].mxu1 %vm216_vm6, %v14558_v44  ;;  %v14560_v16 = vadd.f32 %v25761_v9, %v25746_v36 }
0x271e   :  { %v14559_v46 = vadd.f32 %v25763_v63, %v25746_v36  ;;  %v14409_v24 = vadd.f32 %v20224_v7, %v14408_v48 }
0x271f   :  { %v25771_v52 = vmul.f32 %v23380_v27, %v14414_v4 }
0x2720   :  { %v25773_v28 = vmul.f32 %v23382_v31, %v14409_v24  ;;  %v22138_v18 = vpop.f32.mrb[194].mxu0  ;;  %22150 = vmatprep.mubr.msk.f32.mxu1 %vm216_vm6, %v14559_v46 }
0x2721   :  { %v14424_v23 = vadd.f32 %v22138_v18, %v20224_v7  ;;  %v14418_v61 = vpop.f32.mrb[195].mxu0  ;;  %22151 = vmatmul.mubr.msk.f32.gmra.mrb[144].mxu1 %vm216_vm6, %v14560_v16  ;;  %v14562_v13 = vadd.f32 %v25771_v52, %v25746_v36 }
0x2722   :  { %v14561_v5 = vadd.f32 %v25773_v28, %v25746_v36  ;;  %v14419_v42 = vadd.f32 %v20224_v7, %v14418_v61 }
0x2723   :  { %v25781_v8 = vmul.f32 %v23384_v12, %v14424_v23 }
0x2724   :  { %v25783_v60 = vmul.f32 %v23386_v40, %v14419_v42  ;;  %22153 = vmatprep.mubr.msk.f32.mxu1 %vm216_vm6, %v14561_v5  ;;  %v14821_v62 = vpop.f32.mrb[196].mxu0 }
0x2725   :  { %22154 = vmatmul.mubr.msk.f32.gmra.mrb[146].mxu1 %vm216_vm6, %v14562_v13  ;;  %v14564_v6 = vadd.f32 %v25781_v8, %v25746_v36  ;;  %v22169_v54 = vpop.f32.mrb[197].mxu0  ;;  %v14822_v49 = vadd.f32 %v20252_v56, %v14821_v62 }
0x2726   :  { %v14563_v55 = vadd.f32 %v25783_v60, %v25746_v36 }
0x2727   :  { %v14833_v43 = vrot.slane %v14822_v49, %v23887_v22  ;;  %v14826_v20 = vcombine.high %v14822_v49, %v14822_v49 }
0x2728   :  { %22156 = vmatprep.mubr.msk.f32.mxu1 %vm216_vm6, %v14563_v55 }
0x2729   :  { %22157 = vmatmul.mubr.msk.f32.gmra.mrb[148].mxu1 %vm216_vm6, %v14564_v6  ;;  %v14841_v15 = vcombine.high %v14833_v43, %v14833_v43  ;;  %v14840_v32 = vrot.slane %v14826_v20, %v23887_v22  ;;  %v14849_v58 = vrot.slane %v14833_v43, %v23887_v22 }
0x272b   :  { %v14863_v38 = vrot.slane %v14841_v15, %v23887_v22  ;;  %v14842_v21 = vcombine.high %v14840_v32, %v14840_v32  ;;  %v14878_v2 = vrot.slane %v14849_v58, %v23784_v19  ;;  %v14871_v11 = vcombine.high %v14849_v58, %v14849_v58 }
0x272c   :  { %v14856_v30 = vrot.slane %v14840_v32, %v23887_v22 }
0x272d   :  { %v14882_v50 = vrot.slane %v14863_v38, %v23784_v19  ;;  %v14873_v51 = vcombine.high %v14863_v38, %v14863_v38  ;;  %v14870_v29 = vrot.slane %v14842_v21, %v23887_v22  ;;  %v14886_v10 = vrot.slane %v14871_v11, %v23784_v19 }
0x272e   :  { %v14894_v18 = vrot.slane %v14856_v30, %v23784_v19  ;;  %v14872_v61 = vcombine.high %v14856_v30, %v14856_v30 }
0x272f   :  { %v14890_v41 = vrot.slane %v14873_v51, %v23784_v19  ;;  %v14898_v27 = vrot.slane %v14870_v29, %v23784_v19  ;;  %v14874_v31 = vcombine.high %v14870_v29, %v14870_v29 }
0x2730   :  { %v14902_v54 = vrot.slane %v14872_v61, %v23784_v19 }
0x2731   :  { %v14906_v13 = vrot.slane %v14874_v31, %v23784_v19 }
0x27f0   :  { %v22149_v39 = vpop.f32.mrb[142].mxu1 }
0x27f1   :  { %v14670_v57 = vadd.f32 %v22149_v39, %v20243_v35  ;;  %v14664_v7 = vpop.f32.mrb[143].mxu1 }
0x27f2   :  { %v14665_v59 = vadd.f32 %v20243_v35, %v14664_v7 }
0x27f3   :  { %v14916_v34 = vadd.f32 %v14882_v50, %v14670_v57 }
0x27f4   :  { %v14915_v25 = vadd.f32 %v14878_v2, %v14665_v59  ;;  %v22152_v26 = vpop.f32.mrb[144].mxu1 }
0x27f5   :  { %v14680_v37 = vadd.f32 %v22152_v26, %v20243_v35  ;;  %v14674_v53 = vpop.f32.mrb[145].mxu1  ;;  %v14928_v33 = vsel %vm216_vm6, %v14916_v34, 0.0 }
0x27f6   :  { %v14675_v17 = vadd.f32 %v20243_v35, %v14674_v53  ;;  %14929 = vadd.xlane.f32.xlu0 %v14928_v33  ;;  %v14925_v45 = vsel %vm216_vm6, %v14915_v25, 0.0 }
0x27f7   :  { %v14918_v44 = vadd.f32 %v14890_v41, %v14680_v37  ;;  %14926 = vadd.xlane.f32.xlu1 %v14925_v45 }
0x27f8   :  { %v14917_v3 = vadd.f32 %v14886_v10, %v14675_v17  ;;  %v22155_v4 = vpop.f32.mrb[146].mxu1 }
0x27f9   :  { %v14690_v48 = vadd.f32 %v22155_v4, %v20243_v35  ;;  %v14684_v46 = vpop.f32.mrb[147].mxu1  ;;  %v14934_v24 = vsel %vm216_vm6, %v14918_v44, 0.0 }
0x27fa   :  { %v14685_v16 = vadd.f32 %v20243_v35, %v14684_v46  ;;  %v14931_v23 = vsel %vm216_vm6, %v14917_v3, 0.0 }
0x27fb   :  { %v14920_v12 = vadd.f32 %v14898_v27, %v14690_v48  ;;  %14932 = vadd.xlane.f32.xlu0 %v14931_v23  ;;  %14935 = vadd.xlane.f32.xlu1 %v14934_v24 }
0x27fc   :  { %v14919_v5 = vadd.f32 %v14894_v18, %v14685_v16  ;;  %v22158_v42 = vpop.f32.mrb[148].mxu1 }
0x27fd   :  { %v14700_v40 = vadd.f32 %v22158_v42, %v20243_v35  ;;  %v14694_v55 = vpop.f32.mrb[149].mxu1  ;;  %v14940_v6 = vsel %vm216_vm6, %v14920_v12, 0.0 }
0x27fe   :  { %v14695_v62 = vadd.f32 %v20243_v35, %v14694_v55  ;;  %v14937_v56 = vsel %vm216_vm6, %v14919_v5, 0.0  ;;  %v15055_v55 = vld [vmem:[#allocation2 + $0x3c0] sm:$0xff] }
0x27ff   :  { %v14922_v49 = vadd.f32 %v14906_v13, %v14700_v40  ;;  %14938 = vadd.xlane.f32.xlu0 %v14937_v56  ;;  %14941 = vadd.xlane.f32.xlu1 %v14940_v6  ;;  %v15053_v40 = vld [vmem:[#allocation2 + $0x3b0] sm:$0xff]  ;;  %v15054_v13 = vld [vmem:[#allocation2 + $0x3b8] sm:$0xff] }
0x2800   :  { %v14921_v43 = vadd.f32 %v14902_v54, %v14695_v62  ;;  %v22731_v6 = vpack.c.bf16 %v15054_v13, %v15053_v40  ;;  %v15056_v62 = vld [vmem:[#allocation2 + $0x3c8] sm:$0xff]  ;;  %v14707_v56 = vld [vmem:[#allocation2 + $0x258] sm:$0xff] }
0x2801   :  { %v14946_v15 = vsel %vm216_vm6, %v14922_v49, 0.0  ;;  %v22735_v54 = vpack.c.bf16 %v15056_v62, %v15055_v55 }
0x2802   :  { %v14943_v20 = vsel %vm216_vm6, %v14921_v43, 0.0  ;;  %22732 = vmatprep.subr.bf16.mxu0 %v22731_v6 }
0x2803   :  { %14944 = vadd.xlane.f32.xlu0 %v14943_v20  ;;  %14947 = vadd.xlane.f32.xlu1 %v14946_v15 }
0x2804   :  { %22734 = vmatpush3.bf16.msra.mxu0 %v22731_v6 }
0x2805   :  { %22736 = vmatprep.subr.bf16.mxu0 %v22735_v54 }
0x2808   :  { %22738 = vmatpush3.bf16.msra.mxu0 %v22735_v54 }
0x2883   :  { %v14930_v38 = vpop.xlane.xlu0 %14929 }
0x2884   :  { %v14950_v32 = vmul.f32 0.03125, %v14930_v38  ;;  %v14927_v58 = vpop.xlane.xlu1 %14926 }
0x2885   :  { %v14949_v50 = vmul.f32 0.03125, %v14927_v58 }
0x2886   :  { %v25815_v51 = vsub.f32 %v14916_v34, %v14950_v32 }
0x2887   :  { %v25817_v35 = vsub.f32 %v14915_v25, %v14949_v50 }
0x2888   :  { %v14933_v39 = vpop.xlane.xlu0 %14932  ;;  %v14936_v21 = vpop.xlane.xlu1 %14935  ;;  %v14966_v57 = vmul.f32 %v25815_v51, %v25815_v51 }
0x2889   :  { %v14951_v7 = vmul.f32 0.03125, %v14933_v39  ;;  %v14952_v59 = vmul.f32 0.03125, %v14936_v21  ;;  %v14965_v2 = vmul.f32 %v25817_v35, %v25817_v35 }
0x288a   :  { %v14976_v11 = vsel %vm216_vm6, %v14966_v57, 0.0 }
0x288b   :  { %v25824_v41 = vsub.f32 %v14917_v3, %v14951_v7  ;;  %v25826_v26 = vsub.f32 %v14918_v44, %v14952_v59  ;;  %14977 = vadd.xlane.f32.xlu1 %v14976_v11  ;;  %v14973_v34 = vsel %vm216_vm6, %v14965_v2, 0.0 }
0x288c   :  { %v14939_v25 = vpop.xlane.xlu0 %14938  ;;  %14974 = vadd.xlane.f32.xlu0 %v14973_v34  ;;  %v14942_v37 = vpop.xlane.xlu1 %14941 }
0x288d   :  { %v14953_v53 = vmul.f32 0.03125, %v14939_v25  ;;  %v14954_v33 = vmul.f32 0.03125, %v14942_v37  ;;  %v14967_v29 = vmul.f32 %v25824_v41, %v25824_v41  ;;  %v14968_v17 = vmul.f32 %v25826_v26, %v25826_v26 }
0x288f   :  { %v25833_v10 = vsub.f32 %v14919_v5, %v14953_v53  ;;  %v25835_v45 = vsub.f32 %v14920_v12, %v14954_v33  ;;  %v14979_v30 = vsel %vm216_vm6, %v14967_v29, 0.0  ;;  %v14982_v44 = vsel %vm216_vm6, %v14968_v17, 0.0 }
0x2890   :  { %v14945_v3 = vpop.xlane.xlu0 %14944  ;;  %14980 = vadd.xlane.f32.xlu0 %v14979_v30  ;;  %14983 = vadd.xlane.f32.xlu1 %v14982_v44  ;;  %v14948_v4 = vpop.xlane.xlu1 %14947 }
0x2891   :  { %v14955_v48 = vmul.f32 0.03125, %v14945_v3  ;;  %v14956_v27 = vmul.f32 0.03125, %v14948_v4  ;;  %v14969_v46 = vmul.f32 %v25833_v10, %v25833_v10  ;;  %v14970_v24 = vmul.f32 %v25835_v45, %v25835_v45  ;;  %v20254_v4 = vld [vmem:[#allocation2 + $0x3a0] ss:$0 sm:$0xff] }
0x2893   :  { %v25843_v31 = vsub.f32 %v14921_v43, %v14955_v48  ;;  %v25845_v16 = vsub.f32 %v14922_v49, %v14956_v27  ;;  %v14985_v18 = vsel %vm216_vm6, %v14969_v46, 0.0  ;;  %v14988_v23 = vsel %vm216_vm6, %v14970_v24, 0.0  ;;  %v14708_v49 = vld [vmem:[#allocation2 + $0x260] sm:$0xff] }
0x2894   :  { %14986 = vadd.xlane.f32.xlu0 %v14985_v18  ;;  %14989 = vadd.xlane.f32.xlu1 %v14988_v23  ;;  %v22739_v43 = vpack.c.bf16 %v14708_v49, %v14707_v56  ;;  %v20255_v23 = vld [vmem:[#allocation2 + $0x3a8] ss:$0 sm:$0xff] }
0x2895   :  { %v14971_v61 = vmul.f32 %v25843_v31, %v25843_v31  ;;  %v14972_v12 = vmul.f32 %v25845_v16, %v25845_v16 }
0x2896   :  { %22740 = vmatprep.subr.bf16.mxu0 %v22739_v43 }
0x2897   :  { %v14991_v5 = vsel %vm216_vm6, %v14971_v61, 0.0  ;;  %v14994_v42 = vsel %vm216_vm6, %v14972_v12, 0.0 }
0x2898   :  { %14992 = vadd.xlane.f32.xlu0 %v14991_v5  ;;  %14995 = vadd.xlane.f32.xlu1 %v14994_v42  ;;  %v14709_v5 = vld [vmem:[#allocation2 + $0x268] sm:$0xff]  ;;  %v14710_v42 = vld [vmem:[#allocation2 + $0x270] sm:$0xff] }
0x2899   :  { %v22743_v54 = vpack.c.bf16 %v14710_v42, %v14709_v5 }
0x2918   :  { %v14978_v15 = vpop.xlane.xlu1 %14977 }
0x2919   :  { %v14998_v20 = vmul.f32 0.03125, %v14978_v15  ;;  %v14975_v38 = vpop.xlane.xlu0 %14974 }
0x291a   :  { %v14997_v32 = vmul.f32 0.03125, %v14975_v38 }
0x291b   :  { %v15006_v58 = vadd.f32 1e-05, %v14998_v20 }
0x291c   :  { %v15005_v50 = vadd.f32 1e-05, %v14997_v32 }
0x291d   :  { %23387 = vrsqrt.f32 %v15006_v58  ;;  %v14981_v39 = vpop.xlane.xlu0 %14980  ;;  %v14984_v21 = vpop.xlane.xlu1 %14983 }
0x291e   :  { %23389 = vrsqrt.f32 %v15005_v50  ;;  %v14999_v57 = vmul.f32 0.03125, %v14981_v39  ;;  %v15000_v7 = vmul.f32 0.03125, %v14984_v21 }
0x2920   :  { %v15007_v59 = vadd.f32 1e-05, %v14999_v57  ;;  %v15008_v2 = vadd.f32 1e-05, %v15000_v7 }
0x2921   :  { %v14987_v11 = vpop.xlane.xlu0 %14986  ;;  %v14990_v34 = vpop.xlane.xlu1 %14989 }
0x2922   :  { %23391 = vrsqrt.f32 %v15007_v59  ;;  %v15001_v25 = vmul.f32 0.03125, %v14987_v11  ;;  %v15002_v37 = vmul.f32 0.03125, %v14990_v34 }
0x2923   :  { %23393 = vrsqrt.f32 %v15008_v2 }
0x2924   :  { %v15009_v53 = vadd.f32 1e-05, %v15001_v25  ;;  %v15010_v33 = vadd.f32 1e-05, %v15002_v37 }
0x2925   :  { %v14993_v29 = vpop.xlane.xlu0 %14992  ;;  %v14996_v17 = vpop.xlane.xlu1 %14995 }
0x2926   :  { %23395 = vrsqrt.f32 %v15009_v53  ;;  %v15003_v30 = vmul.f32 0.03125, %v14993_v29  ;;  %v15004_v44 = vmul.f32 0.03125, %v14996_v17 }
0x2927   :  { %v23388_v3 = vpop.eup %23387  ;;  %23397 = vrsqrt.f32 %v15010_v33 }
0x2928   :  { %v23390_v48 = vpop.eup %23389  ;;  %v15022_v27 = vmul.f32 %v23388_v3, %v25815_v51  ;;  %v15011_v46 = vadd.f32 1e-05, %v15003_v30  ;;  %v15012_v24 = vadd.f32 1e-05, %v15004_v44 }
0x2929   :  { %v15021_v18 = vmul.f32 %v23390_v48, %v25817_v35 }
0x292a   :  { %23399 = vrsqrt.f32 %v15011_v46  ;;  %v15034_v61 = vmul.f32 %v20254_v4, %v15022_v27 }
0x292b   :  { %23401 = vrsqrt.f32 %v15012_v24  ;;  %v15033_v12 = vmul.f32 %v20254_v4, %v15021_v18 }
0x292c   :  { %v23392_v40 = vpop.eup %23391  ;;  %v25860_v62 = vadd.f32 %v20255_v23, %v15034_v61 }
0x292d   :  { %v23394_v13 = vpop.eup %23393  ;;  %v25857_v55 = vadd.f32 %v20255_v23, %v15033_v12  ;;  %v15023_v6 = vmul.f32 %v23392_v40, %v25824_v41 }
0x292e   :  { %v15024_v51 = vmul.f32 %v23394_v13, %v25826_v26 }
0x292f   :  { %22178 = vmatprep.mubr.msk.f32.mxu0 %vm216_vm6, %v25857_v55  ;;  %v15035_v35 = vmul.f32 %v20254_v4, %v15023_v6  ;;  %v20265_v6 = vld [vmem:[#allocation2 + $0x3e0] ss:$0 sm:$0xff] }
0x2930   :  { %v23396_v56 = vpop.eup %23395  ;;  %22179 = vmatmul.mubr.msk.f32.vlgmr.msra.gmra.mrb[198].mxu0 %vm216_vm6, %v25860_v62  ;;  %v15036_v49 = vmul.f32 %v20254_v4, %v15024_v51 }
0x2931   :  { %v23398_v15 = vpop.eup %23397  ;;  %v25867_v20 = vadd.f32 %v20255_v23, %v15035_v35  ;;  %v15025_v38 = vmul.f32 %v23396_v56, %v25833_v10  ;;  %22742 = vmatpush3.bf16.msra.mxu0 %v22739_v43 }
0x2932   :  { %v25870_v41 = vadd.f32 %v20255_v23, %v15036_v49  ;;  %v15026_v26 = vmul.f32 %v23398_v15, %v25835_v45  ;;  %22744 = vmatprep.subr.bf16.mxu0 %v22743_v54 }
0x2933   :  { %22181 = vmatprep.mubr.msk.f32.mxu0 %vm216_vm6, %v25867_v20  ;;  %v15037_v32 = vmul.f32 %v20254_v4, %v15025_v38 }
0x2934   :  { %v23400_v58 = vpop.eup %23399  ;;  %22182 = vmatmul.mubr.msk.f32.gmra.mrb[200].mxu0 %vm216_vm6, %v25870_v41  ;;  %v15038_v50 = vmul.f32 %v20254_v4, %v15026_v26 }
0x2935   :  { %v23402_v39 = vpop.eup %23401  ;;  %v25877_v21 = vadd.f32 %v20255_v23, %v15037_v32  ;;  %v15027_v10 = vmul.f32 %v23400_v58, %v25843_v31  ;;  %22746 = vmatpush3.bf16.msra.mxu0 %v22743_v54 }
0x2936   :  { %v25880_v43 = vadd.f32 %v20255_v23, %v15038_v50  ;;  %v15028_v45 = vmul.f32 %v23402_v39, %v25845_v16 }
0x2937   :  { %22184 = vmatprep.mubr.msk.f32.mxu0 %vm216_vm6, %v25877_v21  ;;  %v15039_v57 = vmul.f32 %v20254_v4, %v15027_v10 }
0x2938   :  { %22185 = vmatmul.mubr.msk.f32.gmra.mrb[202].mxu0 %vm216_vm6, %v25880_v43  ;;  %v15040_v7 = vmul.f32 %v20254_v4, %v15028_v45 }
0x2939   :  { %v25887_v59 = vadd.f32 %v20255_v23, %v15039_v57 }
0x293a   :  { %v25889_v2 = vadd.f32 %v20255_v23, %v15040_v7 }
0x293b   :  { %22187 = vmatprep.mubr.msk.f32.mxu0 %vm216_vm6, %v25887_v59 }
0x293c   :  { %22188 = vmatmul.mubr.msk.f32.gmra.mrb[204].mxu0 %vm216_vm6, %v25889_v2 }
0x293d   :  { %22212 = vmatprep.mubr.msk.f32.mxu0 %vm216_vm6, %v25755_v14  ;;  %v15199_v14 = vld [vmem:[#allocation2 + $0x3d8] sm:$0xff] }
0x293e   :  { %22190 = vmatprep.subr.mxu1 %v15199_v14 }
0x293f   :  { %22191 = vmatpush3.msra.mxu1 %v15199_v14 }
0x2940   :  { %22213 = vmatmul.mubr.msk.f32.vlgmr.msra.gmra.mrb[206].mxu0 %vm216_vm6, %v25753_v1  ;;  %v20256_v1 = vld [vmem:[#allocation2 + $0x3d0] ss:$0 sm:$0xff] }
0x2941   :  { %22215 = vmatprep.mubr.msk.f32.mxu0 %vm216_vm6, %v25763_v63 }
0x2944   :  { %22216 = vmatmul.mubr.msk.f32.gmra.mrb[208].mxu0 %vm216_vm6, %v25761_v9 }
0x2945   :  { %22218 = vmatprep.mubr.msk.f32.mxu0 %vm216_vm6, %v25773_v28 }
0x2948   :  { %22219 = vmatmul.mubr.msk.f32.gmra.mrb[210].mxu0 %vm216_vm6, %v25771_v52 }
0x2949   :  { %22221 = vmatprep.mubr.msk.f32.mxu0 %vm216_vm6, %v25783_v60 }
0x294c   :  { %22222 = vmatmul.mubr.msk.f32.gmra.mrb[212].mxu0 %vm216_vm6, %v25781_v8 }
0x2a03   :  { %v22180_v63 = vpop.f32.mrb[198].mxu0 }
0x2a04   :  { %v15158_v31 = vadd.f32 %v22180_v63, %v20256_v1  ;;  %v15152_v16 = vpop.f32.mrb[199].mxu0 }
0x2a05   :  { %v15153_v9 = vadd.f32 %v20256_v1, %v15152_v16 }
0x2a06   :  { %v15192_v28 = vmax.f32 %v15158_v31, 0.0 }
0x2a07   :  { %v15191_v11 = vmax.f32 %v15153_v9, 0.0  ;;  %v22183_v34 = vpop.f32.mrb[200].mxu0 }
0x2a08   :  { %v15168_v25 = vadd.f32 %v22183_v34, %v20256_v1  ;;  %v15162_v37 = vpop.f32.mrb[201].mxu0 }
0x2a09   :  { %v15163_v52 = vadd.f32 %v20256_v1, %v15162_v37  ;;  %22192 = vmatprep.mubr.msk.f32.mxu1 %vm142_vm3, %v15191_v11 }
0x2a0a   :  { %22193 = vmatmul.mubr.msk.f32.vlgmr.msra.gmra.mrb[150].mxu1 %vm142_vm3, %v15192_v28  ;;  %v15194_v53 = vmax.f32 %v15168_v25, 0.0 }
0x2a0b   :  { %v15193_v60 = vmax.f32 %v15163_v52, 0.0  ;;  %v22186_v8 = vpop.f32.mrb[202].mxu0 }
0x2a0c   :  { %v15178_v33 = vadd.f32 %v22186_v8, %v20256_v1  ;;  %v15172_v29 = vpop.f32.mrb[203].mxu0 }
0x2a0d   :  { %v15173_v17 = vadd.f32 %v20256_v1, %v15172_v29  ;;  %22195 = vmatprep.mubr.msk.f32.mxu1 %vm142_vm3, %v15193_v60 }
0x2a0e   :  { %22196 = vmatmul.mubr.msk.f32.gmra.mrb[152].mxu1 %vm142_vm3, %v15194_v53  ;;  %v15196_v3 = vmax.f32 %v15178_v33, 0.0 }
0x2a0f   :  { %v15195_v30 = vmax.f32 %v15173_v17, 0.0  ;;  %v22189_v44 = vpop.f32.mrb[204].mxu0 }
0x2a10   :  { %v15188_v4 = vadd.f32 %v22189_v44, %v20256_v1  ;;  %v15182_v48 = vpop.f32.mrb[205].mxu0 }
0x2a11   :  { %v15183_v27 = vadd.f32 %v20256_v1, %v15182_v48  ;;  %22198 = vmatprep.mubr.msk.f32.mxu1 %vm142_vm3, %v15195_v30 }
0x2a12   :  { %22199 = vmatmul.mubr.msk.f32.gmra.mrb[154].mxu1 %vm142_vm3, %v15196_v3  ;;  %v15198_v18 = vmax.f32 %v15188_v4, 0.0 }
0x2a13   :  { %v15197_v46 = vmax.f32 %v15183_v27, 0.0  ;;  %v25917_v24 = vpop.f32.mrb[206].mxu0 }
0x2a14   :  { %v25919_v23 = vpop.f32.mrb[207].mxu0 }
0x2a15   :  { %22201 = vmatprep.mubr.msk.f32.mxu1 %vm142_vm3, %v15197_v46 }
0x2a16   :  { %22202 = vmatmul.mubr.msk.f32.gmra.mrb[156].mxu1 %vm142_vm3, %v15198_v18 }
0x2a17   :  { %v25923_v61 = vpop.f32.mrb[208].mxu0 }
0x2a18   :  { %v25925_v12 = vpop.f32.mrb[209].mxu0 }
0x2a1b   :  { %v25927_v5 = vpop.f32.mrb[210].mxu0 }
0x2a1c   :  { %v25929_v42 = vpop.f32.mrb[211].mxu0 }
0x2a1f   :  { %v25931_v40 = vpop.f32.mrb[212].mxu0 }
0x2a20   :  { %v25933_v13 = vpop.f32.mrb[213].mxu0 }
0x2add   :  { %v22194_v51 = vpop.f32.mrb[150].mxu1 }
0x2ade   :  { %v15301_v54 = vadd.f32 %v22194_v51, %v20265_v6  ;;  %v15295_v35 = vpop.f32.mrb[151].mxu1 }
0x2adf   :  { %v15296_v56 = vadd.f32 %v20265_v6, %v15295_v35 }
0x2ae0   :  { %v15335_v49 = vadd.f32 %v15301_v54, %v25860_v62 }
0x2ae1   :  { %v15334_v15 = vadd.f32 %v15296_v56, %v25857_v55  ;;  %v22197_v38 = vpop.f32.mrb[152].mxu1 }
0x2ae2   :  { %v15311_v26 = vadd.f32 %v22197_v38, %v20265_v6  ;;  %v15305_v32 = vpop.f32.mrb[153].mxu1  ;;  %v15347_v58 = vsel %vm216_vm6, %v15335_v49, 0.0 }
0x2ae3   :  { %v15306_v50 = vadd.f32 %v20265_v6, %v15305_v32  ;;  %15348 = vadd.xlane.f32.xlu1 %v15347_v58  ;;  %v15344_v39 = vsel %vm216_vm6, %v15334_v15, 0.0 }
0x2ae4   :  { %v15337_v10 = vadd.f32 %v15311_v26, %v25870_v41  ;;  %15345 = vadd.xlane.f32.xlu0 %v15344_v39 }
0x2ae5   :  { %v15336_v45 = vadd.f32 %v15306_v50, %v25867_v20  ;;  %v22200_v57 = vpop.f32.mrb[154].mxu1 }
0x2ae6   :  { %v15321_v7 = vadd.f32 %v22200_v57, %v20265_v6  ;;  %v15315_v14 = vpop.f32.mrb[155].mxu1  ;;  %v15353_v62 = vsel %vm216_vm6, %v15337_v10, 0.0 }
0x2ae7   :  { %v15316_v55 = vadd.f32 %v20265_v6, %v15315_v14  ;;  %15354 = vadd.xlane.f32.xlu1 %v15353_v62  ;;  %v15350_v1 = vsel %vm216_vm6, %v15336_v45, 0.0 }
0x2ae8   :  { %v15339_v63 = vadd.f32 %v15321_v7, %v25880_v43  ;;  %15351 = vadd.xlane.f32.xlu0 %v15350_v1 }
0x2ae9   :  { %v15338_v31 = vadd.f32 %v15316_v55, %v25877_v21  ;;  %v22203_v16 = vpop.f32.mrb[156].mxu1 }
0x2aea   :  { %v15331_v9 = vadd.f32 %v22203_v16, %v20265_v6  ;;  %v15325_v41 = vpop.f32.mrb[157].mxu1  ;;  %v15359_v11 = vsel %vm216_vm6, %v15339_v63, 0.0  ;;  %v14704_v16 = vld [vmem:[#allocation2 + $0x240] sm:$0xff] }
0x2aeb   :  { %v15326_v20 = vadd.f32 %v20265_v6, %v15325_v41  ;;  %15360 = vadd.xlane.f32.xlu1 %v15359_v11  ;;  %v15356_v34 = vsel %vm216_vm6, %v15338_v31, 0.0  ;;  %v14706_v11 = vld [vmem:[#allocation2 + $0x250] sm:$0xff] }
0x2aec   :  { %v15341_v28 = vadd.f32 %v15331_v9, %v25889_v2  ;;  %15357 = vadd.xlane.f32.xlu0 %v15356_v34  ;;  %v14705_v9 = vld [vmem:[#allocation2 + $0x248] sm:$0xff] }
0x2aed   :  { %v15340_v25 = vadd.f32 %v15326_v20, %v25887_v59  ;;  %v25993_v20 = vpack.c.bf16 %v14706_v11, %v14705_v9 }
0x2aee   :  { %v15365_v37 = vsel %vm216_vm6, %v15341_v28, 0.0 }
0x2aef   :  { %15366 = vadd.xlane.f32.xlu1 %v15365_v37  ;;  %v15362_v43 = vsel %vm216_vm6, %v15340_v25, 0.0 }
0x2af0   :  { %15363 = vadd.xlane.f32.xlu0 %v15362_v43 }
0x2b70   :  { %v15349_v21 = vpop.xlane.xlu1 %15348 }
0x2b71   :  { %v15369_v52 = vmul.f32 0.03125, %v15349_v21  ;;  %v15346_v60 = vpop.xlane.xlu0 %15345 }
0x2b72   :  { %v15368_v8 = vmul.f32 0.03125, %v15346_v60 }
0x2b73   :  { %v25951_v53 = vsub.f32 %v15335_v49, %v15369_v52 }
0x2b74   :  { %v25953_v33 = vsub.f32 %v15334_v15, %v15368_v8  ;;  %v15355_v29 = vpop.xlane.xlu1 %15354 }
0x2b75   :  { %v15371_v17 = vmul.f32 0.03125, %v15355_v29  ;;  %v15352_v2 = vpop.xlane.xlu0 %15351  ;;  %v15385_v59 = vmul.f32 %v25951_v53, %v25951_v53 }
0x2b76   :  { %v15370_v30 = vmul.f32 0.03125, %v15352_v2  ;;  %v15384_v44 = vmul.f32 %v25953_v33, %v25953_v33 }
0x2b77   :  { %v25959_v3 = vsub.f32 %v15337_v10, %v15371_v17  ;;  %v15395_v4 = vsel %vm216_vm6, %v15385_v59, 0.0 }
0x2b78   :  { %v25962_v48 = vsub.f32 %v15336_v45, %v15370_v30  ;;  %15396 = vadd.xlane.f32.xlu1 %v15395_v4  ;;  %v15361_v27 = vpop.xlane.xlu1 %15360  ;;  %v15392_v46 = vsel %vm216_vm6, %v15384_v44, 0.0 }
0x2b79   :  { %v15373_v18 = vmul.f32 0.03125, %v15361_v27  ;;  %v15358_v6 = vpop.xlane.xlu0 %15357  ;;  %15393 = vadd.xlane.f32.xlu0 %v15392_v46  ;;  %v15387_v51 = vmul.f32 %v25959_v3, %v25959_v3 }
0x2b7a   :  { %v15372_v54 = vmul.f32 0.03125, %v15358_v6  ;;  %v15386_v35 = vmul.f32 %v25962_v48, %v25962_v48 }
0x2b7b   :  { %v25969_v56 = vsub.f32 %v15339_v63, %v15373_v18  ;;  %v15401_v49 = vsel %vm216_vm6, %v15387_v51, 0.0 }
0x2b7c   :  { %v25972_v15 = vsub.f32 %v15338_v31, %v15372_v54  ;;  %15402 = vadd.xlane.f32.xlu1 %v15401_v49  ;;  %v15367_v38 = vpop.xlane.xlu1 %15366  ;;  %v15398_v26 = vsel %vm216_vm6, %v15386_v35, 0.0  ;;  %v14703_v31 = vld [vmem:[#allocation2 + $0x238] sm:$0xff]  ;;  %v20274_v49 = vld [vmem:[#allocation2 + $0x3e8] ss:$0 sm:$0xff] }
0x2b7d   :  { %v15375_v32 = vmul.f32 0.03125, %v15367_v38  ;;  %15399 = vadd.xlane.f32.xlu0 %v15398_v26  ;;  %v15364_v58 = vpop.xlane.xlu0 %15363  ;;  %v15389_v50 = vmul.f32 %v25969_v56, %v25969_v56  ;;  %v25991_v41 = vpack.c.bf16 %v14704_v16, %v14703_v31 }
0x2b7e   :  { %v15374_v39 = vmul.f32 0.03125, %v15364_v58  ;;  %v15388_v10 = vmul.f32 %v25972_v15, %v25972_v15 }
0x2b7f   :  { %v25979_v45 = vsub.f32 %v15341_v28, %v15375_v32  ;;  %v15407_v57 = vsel %vm216_vm6, %v15389_v50, 0.0  ;;  %22748 = vmatprep.subr.bf16.mxu1 %v25991_v41 }
0x2b80   :  { %v25982_v7 = vsub.f32 %v15340_v25, %v15374_v39  ;;  %15408 = vadd.xlane.f32.xlu1 %v15407_v57  ;;  %v15404_v14 = vsel %vm216_vm6, %v15388_v10, 0.0  ;;  %22750 = vmatpush3.bf16.msra.mxu1 %v25991_v41  ;;  %v20275_v10 = vld [vmem:[#allocation2 + $0x3f0] ss:$0 sm:$0xff] }
0x2b81   :  { %15405 = vadd.xlane.f32.xlu0 %v15404_v14  ;;  %v15391_v62 = vmul.f32 %v25979_v45, %v25979_v45  ;;  %22752 = vmatprep.subr.bf16.mxu1 %v25993_v20 }
0x2b82   :  { %v15390_v55 = vmul.f32 %v25982_v7, %v25982_v7 }
0x2b83   :  { %v15413_v1 = vsel %vm216_vm6, %v15391_v62, 0.0 }
0x2b84   :  { %15414 = vadd.xlane.f32.xlu1 %v15413_v1  ;;  %v15410_v63 = vsel %vm216_vm6, %v15390_v55, 0.0  ;;  %22754 = vmatpush3.bf16.msra.mxu1 %v25993_v20 }
0x2b85   :  { %15411 = vadd.xlane.f32.xlu0 %v15410_v63 }
0x2c05   :  { %v15397_v34 = vpop.xlane.xlu1 %15396 }
0x2c06   :  { %v15417_v28 = vmul.f32 0.03125, %v15397_v34  ;;  %v15394_v25 = vpop.xlane.xlu0 %15393 }
0x2c07   :  { %v15416_v37 = vmul.f32 0.03125, %v15394_v25 }
0x2c08   :  { %v15425_v43 = vadd.f32 1e-05, %v15417_v28 }
0x2c09   :  { %v15424_v21 = vadd.f32 1e-05, %v15416_v37  ;;  %v15403_v52 = vpop.xlane.xlu1 %15402 }
0x2c0a   :  { %23403 = vrsqrt.f32 %v15425_v43  ;;  %v15419_v60 = vmul.f32 0.03125, %v15403_v52  ;;  %v15400_v8 = vpop.xlane.xlu0 %15399 }
0x2c0b   :  { %23405 = vrsqrt.f32 %v15424_v21  ;;  %v15418_v29 = vmul.f32 0.03125, %v15400_v8 }
0x2c0c   :  { %v15427_v17 = vadd.f32 1e-05, %v15419_v60 }
0x2c0d   :  { %v15426_v2 = vadd.f32 1e-05, %v15418_v29  ;;  %v15409_v59 = vpop.xlane.xlu1 %15408 }
0x2c0e   :  { %23407 = vrsqrt.f32 %v15427_v17  ;;  %v15421_v30 = vmul.f32 0.03125, %v15409_v59  ;;  %v15406_v44 = vpop.xlane.xlu0 %15405  ;;  %v14713_v59 = vld [vmem:[#allocation2 + $0x288] sm:$0xff] }
0x2c0f   :  { %23409 = vrsqrt.f32 %v15426_v2  ;;  %v15420_v4 = vmul.f32 0.03125, %v15406_v44  ;;  %v14712_v2 = vld [vmem:[#allocation2 + $0x280] sm:$0xff] }
0x2c10   :  { %v15429_v27 = vadd.f32 1e-05, %v15421_v30  ;;  %v26015_v30 = vpack.c.bf16 %v14713_v59, %v14712_v2  ;;  %v14727_v2 = vld [vmem:[#allocation2 + $0x2f8] sm:$0xff] }
0x2c11   :  { %v15428_v46 = vadd.f32 1e-05, %v15420_v4  ;;  %v15415_v18 = vpop.xlane.xlu1 %15414  ;;  %v14717_v4 = vld [vmem:[#allocation2 + $0x2a8] sm:$0xff] }
0x2c12   :  { %23411 = vrsqrt.f32 %v15429_v27  ;;  %v15423_v6 = vmul.f32 0.03125, %v15415_v18  ;;  %v15412_v51 = vpop.xlane.xlu0 %15411  ;;  %22756 = vmatprep.subr.bf16.mxu0 %v26015_v30  ;;  %v14718_v27 = vld [vmem:[#allocation2 + $0x2b0] sm:$0xff] }
0x2c13   :  { %23413 = vrsqrt.f32 %v15428_v46  ;;  %v15422_v54 = vmul.f32 0.03125, %v15412_v51  ;;  %22758 = vmatpush3.bf16.msra.mxu0 %v26015_v30  ;;  %v14724_v46 = vld [vmem:[#allocation2 + $0x2e0] sm:$0xff]  ;;  %v26023_v18 = vpack.c.bf16 %v14718_v27, %v14717_v4 }
0x2c14   :  { %v23404_v35 = vpop.eup %23403  ;;  %v15431_v38 = vadd.f32 1e-05, %v15423_v6  ;;  %v14725_v6 = vld [vmem:[#allocation2 + $0x2e8] sm:$0xff] }
0x2c15   :  { %v23406_v26 = vpop.eup %23405  ;;  %v15441_v32 = vmul.f32 %v23404_v35, %v25951_v53  ;;  %v15430_v58 = vadd.f32 1e-05, %v15422_v54  ;;  %v26025_v51 = vpack.c.bf16 %v14725_v6, %v14724_v46  ;;  %22764 = vmatprep.subr.bf16.mxu1 %v26023_v18  ;;  %v20292_v54 = vld [vmem:[#allocation2 + $0x278] ss:$0 sm:$0xff] }
0x2c16   :  { %23415 = vrsqrt.f32 %v15431_v38  ;;  %v15440_v50 = vmul.f32 %v23406_v26, %v25953_v33 }
0x2c17   :  { %v15453_v39 = vmul.f32 %v20274_v49, %v15441_v32  ;;  %23417 = vrsqrt.f32 %v15430_v58 }
0x2c18   :  { %v23408_v57 = vpop.eup %23407  ;;  %v15452_v14 = vmul.f32 %v20274_v49, %v15440_v50 }
0x2c19   :  { %v23410_v62 = vpop.eup %23409  ;;  %v15443_v55 = vmul.f32 %v23408_v57, %v25959_v3  ;;  %v15465_v31 = vadd.f32 %v20275_v10, %v15453_v39 }
0x2c1a   :  { %v15464_v1 = vadd.f32 %v20275_v10, %v15452_v14  ;;  %v15442_v63 = vmul.f32 %v23410_v62, %v25962_v48 }
0x2c1b   :  { %v15455_v16 = vmul.f32 %v20274_v49, %v15443_v55 }
0x2c1c   :  { %v23412_v9 = vpop.eup %23411  ;;  %22232 = vmatprep.mubr.msk.f32.mxu1 %vm216_vm6, %v15464_v1  ;;  %v15454_v53 = vmul.f32 %v20274_v49, %v15442_v63 }
0x2c1d   :  { %v23414_v11 = vpop.eup %23413  ;;  %22233 = vmatmul.mubr.msk.f32.vlgmr.msra.gmra.mrb[158].mxu1 %vm216_vm6, %v15465_v31  ;;  %v15445_v33 = vmul.f32 %v23412_v9, %v25969_v56  ;;  %v15467_v25 = vadd.f32 %v20275_v10, %v15455_v16 }
0x2c1e   :  { %v15466_v34 = vadd.f32 %v20275_v10, %v15454_v53  ;;  %v15444_v28 = vmul.f32 %v23414_v11, %v25972_v15  ;;  %22766 = vmatpush3.bf16.msra.mxu1 %v26023_v18 }
0x2c1f   :  { %v15457_v37 = vmul.f32 %v20274_v49, %v15445_v33 }
0x2c20   :  { %v23416_v3 = vpop.eup %23415  ;;  %22235 = vmatprep.mubr.msk.f32.mxu1 %vm216_vm6, %v15466_v34  ;;  %v15456_v48 = vmul.f32 %v20274_v49, %v15444_v28 }
0x2c21   :  { %v23418_v43 = vpop.eup %23417  ;;  %22236 = vmatmul.mubr.msk.f32.gmra.mrb[160].mxu1 %vm216_vm6, %v15467_v25  ;;  %v15447_v21 = vmul.f32 %v23416_v3, %v25979_v45  ;;  %v15469_v8 = vadd.f32 %v20275_v10, %v15457_v37  ;;  %v14714_v45 = vld [vmem:[#allocation2 + $0x290] sm:$0xff] }
0x2c22   :  { %v15468_v52 = vadd.f32 %v20275_v10, %v15456_v48  ;;  %v15446_v60 = vmul.f32 %v23418_v43, %v25982_v7  ;;  %v14715_v7 = vld [vmem:[#allocation2 + $0x298] sm:$0xff] }
0x2c23   :  { %v15459_v29 = vmul.f32 %v20274_v49, %v15447_v21  ;;  %v26019_v44 = vpack.c.bf16 %v14715_v7, %v14714_v45  ;;  %v20293_v45 = vld [vmem:[#allocation2 + $0x2a0] ss:$0 sm:$0xff] }
0x2c24   :  { %22238 = vmatprep.mubr.msk.f32.mxu1 %vm216_vm6, %v15468_v52  ;;  %v15458_v56 = vmul.f32 %v20274_v49, %v15446_v60 }
0x2c25   :  { %22239 = vmatmul.mubr.msk.f32.gmra.mrb[162].mxu1 %vm216_vm6, %v15469_v8  ;;  %v15471_v17 = vadd.f32 %v20275_v10, %v15459_v29  ;;  %22760 = vmatprep.subr.bf16.mxu0 %v26019_v44  ;;  %v14719_v29 = vld [vmem:[#allocation2 + $0x2b8] sm:$0xff] }
0x2c26   :  { %v15470_v15 = vadd.f32 %v20275_v10, %v15458_v56  ;;  %22762 = vmatpush3.bf16.msra.mxu0 %v26019_v44  ;;  %v14720_v56 = vld [vmem:[#allocation2 + $0x2c0] sm:$0xff] }
0x2c27   :  { %22772 = vmatprep.subr.bf16.mxu0 %v26025_v51 }
0x2c28   :  { %22241 = vmatprep.mubr.msk.f32.mxu1 %vm216_vm6, %v15470_v15  ;;  %v14726_v15 = vld [vmem:[#allocation2 + $0x2f0] sm:$0xff] }
0x2c29   :  { %22242 = vmatmul.mubr.msk.f32.gmra.mrb[164].mxu1 %vm216_vm6, %v15471_v17  ;;  %v26047_v17 = vpack.c.bf16 %v14720_v56, %v14719_v29  ;;  %v26049_v59 = vpack.c.bf16 %v14727_v2, %v14726_v15 }
0x2c2b   :  { %22768 = vmatprep.subr.bf16.mxu1 %v26047_v17 }
0x2c2c   :  { %22770 = vmatpush3.bf16.msra.mxu1 %v26047_v17 }
0x2cf0   :  { %v22234_v35 = vpop.f32.mrb[158].mxu1 }
0x2cf1   :  { %v15697_v49 = vadd.f32 %v22234_v35, %v25917_v24  ;;  %v15691_v38 = vpop.f32.mrb[159].mxu1 }
0x2cf2   :  { %v15692_v26 = vadd.f32 %v15691_v38, %v25919_v23 }
0x2cf3   :  { %v15735_v32 = vadd.f32 %v20292_v54, %v15697_v49 }
0x2cf4   :  { %v15734_v58 = vadd.f32 %v20292_v54, %v15692_v26  ;;  %v22237_v50 = vpop.f32.mrb[160].mxu1 }
0x2cf5   :  { %v15707_v39 = vadd.f32 %v22237_v50, %v25923_v61  ;;  %v15701_v10 = vpop.f32.mrb[161].mxu1  ;;  %v15743_v62 = vmax.f32 %v15735_v32, 0.0 }
0x2cf6   :  { %v15742_v57 = vmax.f32 %v15734_v58, 0.0  ;;  %v15702_v14 = vadd.f32 %v15701_v10, %v25925_v12 }
0x2cf7   :  { %v15737_v55 = vadd.f32 %v20292_v54, %v15707_v39 }
0x2cf8   :  { %v15736_v1 = vadd.f32 %v20292_v54, %v15702_v14  ;;  %v22240_v63 = vpop.f32.mrb[162].mxu1  ;;  %22252 = vmatprep.mubr.msk.f32.mxu0 %vm216_vm6, %v15742_v57  ;;  %v26107_v14 = vld [vmem:[%s27029_s7 + $0x10] sm:$0xff] }
0x2cf9   :  { %v15717_v31 = vadd.f32 %v22240_v63, %v25927_v5  ;;  %v15711_v16 = vpop.f32.mrb[163].mxu1  ;;  %22253 = vmatmul.mubr.msk.f32.vlgmr.msra.gmra.mrb[214].mxu0 %vm216_vm6, %v15743_v62  ;;  %v15745_v11 = vmax.f32 %v15737_v55, 0.0  ;;  %v14729_v62 = vld [vmem:[#allocation2 + $0x308] sm:$0xff]  ;;  %v20312_v55 = vld [vmem:[#allocation2 + $0x300] ss:$0 sm:$0xff] }
0x2cfa   :  { %v15744_v9 = vmax.f32 %v15736_v1, 0.0  ;;  %v15712_v53 = vadd.f32 %v15711_v16, %v25929_v42  ;;  %22774 = vmatpush3.bf16.msra.mxu0 %v26025_v51  ;;  %22304 = vmatprep.subr.mxu1 %v14729_v62 }
0x2cfb   :  { %v15739_v33 = vadd.f32 %v20292_v54, %v15717_v31  ;;  %22776 = vmatprep.subr.bf16.mxu0 %v26049_v59 }
0x2cfc   :  { %v15738_v34 = vadd.f32 %v20292_v54, %v15712_v53  ;;  %v22243_v28 = vpop.f32.mrb[164].mxu1  ;;  %22255 = vmatprep.mubr.msk.f32.mxu0 %vm216_vm6, %v15744_v9 }
0x2cfd   :  { %v15727_v25 = vadd.f32 %v22243_v28, %v25931_v40  ;;  %v15721_v37 = vpop.f32.mrb[165].mxu1  ;;  %22256 = vmatmul.mubr.msk.f32.gmra.mrb[216].mxu0 %vm216_vm6, %v15745_v11  ;;  %v15747_v43 = vmax.f32 %v15739_v33, 0.0 }
0x2cfe   :  { %v15746_v3 = vmax.f32 %v15738_v34, 0.0  ;;  %v15722_v48 = vadd.f32 %v15721_v37, %v25933_v13  ;;  %22778 = vmatpush3.bf16.msra.mxu0 %v26049_v59 }
0x2cff   :  { %v15741_v21 = vadd.f32 %v20292_v54, %v15727_v25  ;;  %22779 = vmatprep.subr.bf16.mxu0 %v27030_v0 }
0x2d00   :  { %v15740_v52 = vadd.f32 %v20292_v54, %v15722_v48  ;;  %22258 = vmatprep.mubr.msk.f32.mxu0 %vm216_vm6, %v15746_v3 }
0x2d01   :  { %22259 = vmatmul.mubr.msk.f32.gmra.mrb[218].mxu0 %vm216_vm6, %v15747_v43  ;;  %v15749_v8 = vmax.f32 %v15741_v21, 0.0 }
0x2d02   :  { %v15748_v60 = vmax.f32 %v15740_v52, 0.0 }
0x2d04   :  { %22261 = vmatprep.mubr.msk.f32.mxu0 %vm216_vm6, %v15748_v60 }
0x2d05   :  { %22262 = vmatmul.mubr.msk.f32.gmra.mrb[220].mxu0 %vm216_vm6, %v15749_v8 }
0x2dcc   :  { %v22254_v7 = vpop.f32.mrb[214].mxu0 }
0x2dcd   :  { %v15844_v4 = vpop.f32.mrb[215].mxu0  ;;  %v26058_v46 = vadd.f32 %v22254_v7, %v20293_v45 }
0x2dce   :  { %v26056_v27 = vadd.f32 %v20293_v45, %v15844_v4 }
0x2dd0   :  { %v22257_v6 = vpop.f32.mrb[216].mxu0  ;;  %22272 = vmatprep.mubr.msk.f32.mxu1 %vm216_vm6, %v26056_v27  ;;  %22292 = vmatprep.mubr.msk.f32.mxu0 %vm216_vm6, %v26056_v27 }
0x2dd1   :  { %v15854_v54 = vpop.f32.mrb[217].mxu0  ;;  %22273 = vmatmul.mubr.msk.f32.vlgmr.msra.gmra.mrb[166].mxu1 %vm216_vm6, %v26058_v46  ;;  %22293 = vmatmul.mubr.msk.f32.vlgmr.msra.gmra.mrb[222].mxu0 %vm216_vm6, %v26058_v46  ;;  %v26070_v49 = vadd.f32 %v22257_v6, %v20293_v45 }
0x2dd2   :  { %v26068_v35 = vadd.f32 %v20293_v45, %v15854_v54  ;;  %22305 = vmatpush3.msra.mxu1 %v14729_v62  ;;  %v14731_v62 = vld [vmem:[#allocation2 + $0x318] sm:$0xff] }
0x2dd3   :  { %22785 = vmatprep.subr.bf16.mxu1 %v27030_v0 }
0x2dd4   :  { %v22260_v38 = vpop.f32.mrb[218].mxu0  ;;  %22275 = vmatprep.mubr.msk.f32.mxu1 %vm216_vm6, %v26068_v35  ;;  %22295 = vmatprep.mubr.msk.f32.mxu0 %vm216_vm6, %v26068_v35 }
0x2dd5   :  { %v15864_v26 = vpop.f32.mrb[219].mxu0  ;;  %22276 = vmatmul.mubr.msk.f32.gmra.mrb[168].mxu1 %vm216_vm6, %v26070_v49  ;;  %22296 = vmatmul.mubr.msk.f32.gmra.mrb[224].mxu0 %vm216_vm6, %v26070_v49  ;;  %v26082_v58 = vadd.f32 %v22260_v38, %v20293_v45 }
0x2dd6   :  { %v26080_v32 = vadd.f32 %v20293_v45, %v15864_v26 }
0x2dd8   :  { %v22263_v50 = vpop.f32.mrb[220].mxu0  ;;  %22278 = vmatprep.mubr.msk.f32.mxu1 %vm216_vm6, %v26080_v32  ;;  %22298 = vmatprep.mubr.msk.f32.mxu0 %vm216_vm6, %v26080_v32 }
0x2dd9   :  { %v15874_v39 = vpop.f32.mrb[221].mxu0  ;;  %22279 = vmatmul.mubr.msk.f32.gmra.mrb[170].mxu1 %vm216_vm6, %v26082_v58  ;;  %22299 = vmatmul.mubr.msk.f32.gmra.mrb[226].mxu0 %vm216_vm6, %v26082_v58  ;;  %v26094_v57 = vadd.f32 %v22263_v50, %v20293_v45 }
0x2dda   :  { %v26092_v10 = vadd.f32 %v20293_v45, %v15874_v39 }
0x2ddc   :  { %22281 = vmatprep.mubr.msk.f32.mxu1 %vm216_vm6, %v26092_v10  ;;  %22301 = vmatprep.mubr.msk.f32.mxu0 %vm216_vm6, %v26092_v10 }
0x2ddd   :  { %22282 = vmatmul.mubr.msk.f32.gmra.mrb[172].mxu1 %vm216_vm6, %v26094_v57  ;;  %22302 = vmatmul.mubr.msk.f32.gmra.mrb[228].mxu0 %vm216_vm6, %v26094_v57 }
0x2dde   :  { %22326 = vmatprep.mubr.msk.f32.mxu0 %vm23547_vm0, %v26107_v14 }
0x2ea4   :  { %v26112_v1 = vpop.f32.mrb[166].mxu1  ;;  %v22294_v63 = vpop.f32.mrb[222].mxu0 }
0x2ea5   :  { %v16198_v31 = vadd.f32 %v22294_v63, %v20312_v55  ;;  %v26114_v16 = vpop.f32.mrb[167].mxu1  ;;  %v16192_v9 = vpop.f32.mrb[223].mxu0  ;;  %v14732_v63 = vld [vmem:[#allocation2 + $0x320] sm:$0xff] }
0x2ea6   :  { %v16193_v53 = vadd.f32 %v20312_v55, %v16192_v9  ;;  %v14733_v9 = vld [vmem:[#allocation2 + $0x328] sm:$0xff] }
0x2ea7   :  { %v16232_v28 = vmax.f32 %v16198_v31, 0.0  ;;  %v26138_v31 = vpack.c.bf16 %v14732_v63, %v14731_v62 }
0x2ea8   :  { %v16231_v11 = vmax.f32 %v16193_v53, 0.0  ;;  %v26116_v33 = vpop.f32.mrb[168].mxu1  ;;  %v22297_v34 = vpop.f32.mrb[224].mxu0  ;;  %v14734_v53 = vld [vmem:[#allocation2 + $0x330] sm:$0xff] }
0x2ea9   :  { %27035 = vst [vmem:[#allocation6_spill] sm:$0xff] %v26116_v33  ;;  %v16208_v25 = vadd.f32 %v22297_v34, %v20312_v55  ;;  %v26118_v37 = vpop.f32.mrb[169].mxu1  ;;  %v16202_v3 = vpop.f32.mrb[225].mxu0  ;;  %22781 = vmatpush3.bf16.msra.mxu0 %v26138_v31 }
0x2eaa   :  { %v16203_v48 = vadd.f32 %v20312_v55, %v16202_v3  ;;  %22306 = vmatprep.mubr.msk.f32.mxu1 %vm142_vm3, %v16231_v11  ;;  %22782 = vmatprep.subr.bf16.mxu0 %v27030_v0  ;;  %v20321_v11 = vld [vmem:[#allocation2 + $0x310] ss:$0 sm:$0xff] }
0x2eab   :  { %22307 = vmatmul.mubr.msk.f32.vlgmr.msra.gmra.mrb[174].mxu1 %vm142_vm3, %v16232_v28  ;;  %v16234_v60 = vmax.f32 %v16208_v25, 0.0 }
0x2eac   :  { %v16233_v43 = vmax.f32 %v16203_v48, 0.0  ;;  %v26122_v21 = vpop.f32.mrb[170].mxu1  ;;  %v22300_v52 = vpop.f32.mrb[226].mxu0 }
0x2ead   :  { %27036 = vst [vmem:[#allocation7_spill] sm:$0xff] %v26122_v21  ;;  %v16218_v8 = vadd.f32 %v22300_v52, %v20312_v55  ;;  %v26124_v29 = vpop.f32.mrb[171].mxu1  ;;  %v16212_v56 = vpop.f32.mrb[227].mxu0 }
0x2eae   :  { %v16213_v15 = vadd.f32 %v20312_v55, %v16212_v56  ;;  %22309 = vmatprep.mubr.msk.f32.mxu1 %vm142_vm3, %v16233_v43 }
0x2eaf   :  { %22310 = vmatmul.mubr.msk.f32.gmra.mrb[176].mxu1 %vm142_vm3, %v16234_v60  ;;  %v16236_v4 = vmax.f32 %v16218_v8, 0.0 }
0x2eb0   :  { %v16235_v2 = vmax.f32 %v16213_v15, 0.0  ;;  %v26128_v45 = vpop.f32.mrb[172].mxu1  ;;  %v22303_v7 = vpop.f32.mrb[228].mxu0 }
0x2eb1   :  { %27037 = vst [vmem:[#allocation8_spill] sm:$0xff] %v26128_v45  ;;  %v16228_v6 = vadd.f32 %v22303_v7, %v20312_v55  ;;  %v26130_v54 = vpop.f32.mrb[173].mxu1  ;;  %v16222_v38 = vpop.f32.mrb[229].mxu0 }
0x2eb2   :  { %v16223_v26 = vadd.f32 %v20312_v55, %v16222_v38  ;;  %22312 = vmatprep.mubr.msk.f32.mxu1 %vm142_vm3, %v16235_v2  ;;  %v26141_v55 = vpack.c.bf16 %v14734_v53, %v14733_v9 }
0x2eb3   :  { %22313 = vmatmul.mubr.msk.f32.gmra.mrb[178].mxu1 %vm142_vm3, %v16236_v4  ;;  %v16238_v39 = vmax.f32 %v16228_v6, 0.0 }
0x2eb4   :  { %v16237_v50 = vmax.f32 %v16223_v26, 0.0  ;;  %22784 = vmatpush3.bf16.msra.mxu0 %v26141_v55 }
0x2eb5   :  { %22791 = vmatprep.subr.bf16.mxu0 %v27030_v0 }
0x2eb6   :  { %22315 = vmatprep.mubr.msk.f32.mxu1 %vm142_vm3, %v16237_v50 }
0x2eb7   :  { %22316 = vmatmul.mubr.msk.f32.gmra.mrb[180].mxu1 %vm142_vm3, %v16238_v39 }
0x2eb8   :  { %22337 = vmatprep.mubr.msk.f32.mxu1 %vm23547_vm0, %v26107_v14 }
0x2f7e   :  { %v22308_v34 = vpop.f32.mrb[174].mxu1 }
0x2f7f   :  { %v16339_v28 = vadd.f32 %v22308_v34, %v20321_v11  ;;  %v16333_v25 = vpop.f32.mrb[175].mxu1 }
0x2f80   :  { %v16334_v3 = vadd.f32 %v20321_v11, %v16333_v25 }
0x2f81   :  { %v16373_v48 = vsel %vm216_vm6, %v16339_v28, 0.0 }
0x2f82   :  { %v16372_v43 = vsel %vm216_vm6, %v16334_v3, 0.0  ;;  %v22311_v52 = vpop.f32.mrb[176].mxu1 }
0x2f83   :  { %v16374_v60 = vadd.f32 %v16373_v48, %v16372_v43  ;;  %v16343_v8 = vpop.f32.mrb[177].mxu1  ;;  %v16349_v56 = vadd.f32 %v22311_v52, %v20321_v11  ;;  %v16567_v52 = vld [vmem:[#allocation2 + $0x3f8] sm:$0xff] }
0x2f84   :  { %v16344_v15 = vadd.f32 %v20321_v11, %v16343_v8 }
0x2f85   :  { %v16377_v38 = vsel %vm216_vm6, %v16349_v56, 0.0 }
0x2f86   :  { %v16375_v2 = vsel %vm216_vm6, %v16344_v15, 0.0  ;;  %v22314_v7 = vpop.f32.mrb[178].mxu1 }
0x2f87   :  { %v16376_v4 = vadd.f32 %v16375_v2, %v16374_v60  ;;  %v16353_v6 = vpop.f32.mrb[179].mxu1  ;;  %v16359_v26 = vadd.f32 %v22314_v7, %v20321_v11  ;;  %v16568_v60 = vld [vmem:[#allocation2 + $0x400] sm:$0xff]  ;;  %v16569_v7 = vld [vmem:[#allocation2 + $0x408] sm:$0xff] }
0x2f88   :  { %v16354_v50 = vadd.f32 %v20321_v11, %v16353_v6  ;;  %v22792_v15 = vpack.c.bf16 %v16568_v60, %v16567_v52 }
0x2f89   :  { %v16378_v39 = vadd.f32 %v16377_v38, %v16376_v4  ;;  %v16381_v34 = vsel %vm216_vm6, %v16359_v26, 0.0  ;;  %v16570_v4 = vld [vmem:[#allocation2 + $0x410] sm:$0xff]  ;;  %v20330_v38 = vld [vmem:[#allocation2 + $0x338] ss:$0 sm:$0xff] }
0x2f8a   :  { %v16379_v62 = vsel %vm216_vm6, %v16354_v50, 0.0  ;;  %v22317_v63 = vpop.f32.mrb[180].mxu1  ;;  %v22795_v6 = vpack.c.bf16 %v16570_v4, %v16569_v7 }
0x2f8b   :  { %v16380_v9 = vadd.f32 %v16379_v62, %v16378_v39  ;;  %v16363_v53 = vpop.f32.mrb[181].mxu1  ;;  %v16369_v28 = vadd.f32 %v22317_v63, %v20321_v11  ;;  %v20336_v63 = vld [vmem:[#allocation2 + $0x418] ss:$0 sm:$0xff] }
0x2f8c   :  { %v16364_v25 = vadd.f32 %v20321_v11, %v16363_v53  ;;  %v23496_v11 = vld [vmem:[%s27027_s5] sm:$0xff] }
0x2f8d   :  { %v16382_v3 = vadd.f32 %v16381_v34, %v16380_v9  ;;  %v16385_v8 = vsel %vm216_vm6, %v16369_v28, 0.0 }
0x2f8e   :  { %v16383_v48 = vsel %vm216_vm6, %v16364_v25, 0.0 }
0x2f8f   :  { %v16384_v43 = vadd.f32 %v16383_v48, %v16382_v3 }
0x2f91   :  { %v16386_v56 = vadd.f32 %v16385_v8, %v16384_v43 }
0x2f93   :  { %v16387_v2 = vadd.f32 %v16386_v56, %v25746_v36 }
0x2f95   :  { %22327 = vmatmul.mubr.msk.f32.vlgmr.msra.gmra.mrb[230].mxu0 %vm216_vm6, %v16387_v2 }
0x2f96   :  { %22793 = vmatpush3.bf16.msra.mxu0 %v22792_v15  ;;  %22348 = vmatprep.mubr.msk.f32.mxu0 %vm23547_vm0, %v26107_v14 }
0x2f97   :  { %22794 = vmatprep.subr.bf16.mxu0 %v27030_v0 }
0x2f9a   :  { %22796 = vmatpush3.bf16.msra.mxu0 %v22795_v6 }
0x2f9d   :  { %22349 = vmatmul.mubr.msk.f32.vlgmr.msra.gmra.mrb[232].mxu0 %vm216_vm6, %v23496_v11 }
0x3068   :  { %v16461_v26 = vpop.f32.mrb[230].mxu0 }
0x3069   :  { %v16462_v50 = vadd.f32 %v20330_v38, %v16461_v26  ;;  %v22328_v39 = vpop.f32.mrb[231].mxu0 }
0x306b   :  { %v16465_v62 = vsel %vm216_vm6, %v16462_v50, 0.0 }
0x306c   :  { %16466 = vadd.xlane.f32.xlu0 %v16465_v62 }
0x3070   :  { %v16642_v9 = vpop.f32.mrb[232].mxu0 }
0x3071   :  { %v16643_v53 = vadd.f32 %v20336_v63, %v16642_v9  ;;  %v22350_v14 = vpop.f32.mrb[233].mxu0 }
0x3073   :  { %v16647_v34 = vcombine.high %v16643_v53, %v16643_v53  ;;  %v16654_v28 = vrot.slane %v16643_v53, %v23887_v22 }
0x3075   :  { %v16661_v25 = vrot.slane %v16647_v34, %v23887_v22  ;;  %v16662_v3 = vcombine.high %v16654_v28, %v16654_v28  ;;  %v16670_v48 = vrot.slane %v16654_v28, %v23887_v22 }
0x3077   :  { %v16663_v43 = vcombine.high %v16661_v25, %v16661_v25  ;;  %v16684_v52 = vrot.slane %v16662_v3, %v23887_v22  ;;  %v16692_v60 = vcombine.high %v16670_v48, %v16670_v48  ;;  %v16677_v8 = vrot.slane %v16661_v25, %v23887_v22 }
0x3078   :  { %v16699_v56 = vrot.slane %v16670_v48, %v23784_v19 }
0x3079   :  { %v16703_v15 = vrot.slane %v16684_v52, %v23784_v19  ;;  %v16707_v2 = vrot.slane %v16692_v60, %v23784_v19  ;;  %v16694_v7 = vcombine.high %v16684_v52, %v16684_v52  ;;  %v16691_v6 = vrot.slane %v16663_v43, %v23887_v22 }
0x307a   :  { %v16736_v4 = vadd.f32 %v16699_v56, %v26056_v27  ;;  %v16715_v62 = vrot.slane %v16677_v8, %v23784_v19  ;;  %v16693_v63 = vcombine.high %v16677_v8, %v16677_v8 }
0x307b   :  { %v16737_v11 = vadd.f32 %v16703_v15, %v26058_v46  ;;  %v16711_v38 = vrot.slane %v16694_v7, %v23784_v19  ;;  %v16738_v39 = vadd.f32 %v16707_v2, %v26068_v35  ;;  %v16719_v27 = vrot.slane %v16691_v6, %v23784_v19 }
0x307c   :  { %v16746_v26 = vsel %vm216_vm6, %v16736_v4, 0.0  ;;  %v16695_v14 = vcombine.high %v16691_v6, %v16691_v6  ;;  %v16740_v34 = vadd.f32 %v16715_v62, %v26080_v32  ;;  %v16723_v28 = vrot.slane %v16693_v63, %v23784_v19 }
0x307d   :  { %16747 = vadd.xlane.f32.xlu1 %v16746_v26  ;;  %v16749_v9 = vsel %vm216_vm6, %v16737_v11, 0.0  ;;  %v16739_v53 = vadd.f32 %v16711_v38, %v26070_v49  ;;  %v16752_v46 = vsel %vm216_vm6, %v16738_v39, 0.0  ;;  %v16741_v25 = vadd.f32 %v16719_v27, %v26082_v58 }
0x307e   :  { %16750 = vadd.xlane.f32.xlu0 %v16749_v9  ;;  %v16727_v3 = vrot.slane %v16695_v14, %v23784_v19  ;;  %v16758_v49 = vsel %vm216_vm6, %v16740_v34, 0.0  ;;  %v16742_v48 = vadd.f32 %v16723_v28, %v26092_v10 }
0x307f   :  { %v16755_v35 = vsel %vm216_vm6, %v16739_v53, 0.0  ;;  %v16761_v43 = vsel %vm216_vm6, %v16741_v25, 0.0 }
0x3080   :  { %v16743_v52 = vadd.f32 %v16727_v3, %v26094_v57  ;;  %v16764_v32 = vsel %vm216_vm6, %v16742_v48, 0.0 }
0x3081   :  { %16753 = vadd.xlane.f32.xlu1 %v16752_v46 }
0x3082   :  { %16756 = vadd.xlane.f32.xlu0 %v16755_v35  ;;  %v16767_v60 = vsel %vm216_vm6, %v16743_v52, 0.0 }
0x3085   :  { %16759 = vadd.xlane.f32.xlu1 %v16758_v49 }
0x3086   :  { %16762 = vadd.xlane.f32.xlu0 %v16761_v43 }
0x3089   :  { %16765 = vadd.xlane.f32.xlu1 %v16764_v32 }
0x308a   :  { %16768 = vadd.xlane.f32.xlu0 %v16767_v60 }
0x30f9   :  { %v16467_v58 = vpop.xlane.xlu0 %16466 }
0x30fa   :  { %v16468_v8 = vmul.f32 0.03125, %v16467_v58 }
0x30fc   :  { %v26194_v56 = vsub.f32 %v16462_v50, %v16468_v8 }
0x30fe   :  { %v16470_v15 = vmul.f32 %v26194_v56, %v26194_v56 }
0x3100   :  { %v16471_v10 = vsel %vm216_vm6, %v16470_v15, 0.0 }
0x3101   :  { %16472 = vadd.xlane.f32.xlu1 %v16471_v10 }
0x310a   :  { %v16748_v2 = vpop.xlane.xlu1 %16747 }
0x310b   :  { %v16770_v7 = vmul.f32 0.03125, %v16748_v2  ;;  %v16751_v57 = vpop.xlane.xlu0 %16750 }
0x310c   :  { %v16771_v6 = vmul.f32 0.03125, %v16751_v57 }
0x310d   :  { %v26199_v38 = vsub.f32 %v16736_v4, %v16770_v7 }
0x310e   :  { %v26201_v26 = vsub.f32 %v16737_v11, %v16771_v6  ;;  %v16754_v62 = vpop.xlane.xlu1 %16753 }
0x310f   :  { %v16772_v63 = vmul.f32 0.03125, %v16754_v62  ;;  %v16757_v9 = vpop.xlane.xlu0 %16756  ;;  %v16786_v50 = vmul.f32 %v26199_v38, %v26199_v38 }
0x3110   :  { %v16773_v27 = vmul.f32 0.03125, %v16757_v9  ;;  %v16787_v14 = vmul.f32 %v26201_v26, %v26201_v26 }
0x3111   :  { %v26207_v46 = vsub.f32 %v16738_v39, %v16772_v63  ;;  %v16794_v28 = vsel %vm216_vm6, %v16786_v50, 0.0 }
0x3112   :  { %v26210_v35 = vsub.f32 %v16739_v53, %v16773_v27  ;;  %v16760_v4 = vpop.xlane.xlu1 %16759  ;;  %16795 = vadd.xlane.f32.xlu0 %v16794_v28  ;;  %v16797_v11 = vsel %vm216_vm6, %v16787_v14, 0.0  ;;  %v14738_v14 = vld [vmem:[#allocation2 + $0x350] sm:$0xff]  ;;  %v14739_v28 = vld [vmem:[#allocation2 + $0x358] sm:$0xff] }
0x3113   :  { %v16774_v3 = vmul.f32 0.03125, %v16760_v4  ;;  %16798 = vadd.xlane.f32.xlu1 %v16797_v11  ;;  %v16763_v49 = vpop.xlane.xlu0 %16762  ;;  %v16788_v43 = vmul.f32 %v26207_v46, %v26207_v46  ;;  %v14740_v4 = vld [vmem:[#allocation2 + $0x360] sm:$0xff]  ;;  %v14741_v11 = vld [vmem:[#allocation2 + $0x368] sm:$0xff] }
0x3114   :  { %v16775_v32 = vmul.f32 0.03125, %v16763_v49  ;;  %v16789_v60 = vmul.f32 %v26210_v35, %v26210_v35  ;;  %v16874_v49 = vld [vmem:[#allocation2 + $0x430] sm:$0xff] }
0x3115   :  { %v26217_v39 = vsub.f32 %v16740_v34, %v16774_v3  ;;  %v16800_v58 = vsel %vm216_vm6, %v16788_v43, 0.0  ;;  %v26243_v3 = vpack.c.bf16 %v14741_v11, %v14740_v4  ;;  %v16875_v43 = vld [vmem:[#allocation2 + $0x438] sm:$0xff] }
0x3116   :  { %v26220_v53 = vsub.f32 %v16741_v25, %v16775_v32  ;;  %v16766_v8 = vpop.xlane.xlu1 %16765  ;;  %16801 = vadd.xlane.f32.xlu0 %v16800_v58  ;;  %v16803_v15 = vsel %vm216_vm6, %v16789_v60, 0.0  ;;  %v22797_v32 = vpack.c.bf16 %v16875_v43, %v16874_v49 }
0x3117   :  { %v16776_v10 = vmul.f32 0.03125, %v16766_v8  ;;  %16804 = vadd.xlane.f32.xlu1 %v16803_v15  ;;  %v16769_v2 = vpop.xlane.xlu0 %16768  ;;  %v16790_v7 = vmul.f32 %v26217_v39, %v26217_v39 }
0x3118   :  { %v16777_v57 = vmul.f32 0.03125, %v16769_v2  ;;  %v16791_v6 = vmul.f32 %v26220_v53, %v26220_v53 }
0x3119   :  { %v26227_v34 = vsub.f32 %v16742_v48, %v16776_v10  ;;  %v16806_v62 = vsel %vm216_vm6, %v16790_v7, 0.0  ;;  %v20332_v10 = vld [vmem:[#allocation2 + $0x340] ss:$0 sm:$0xff]  ;;  %v20333_v7 = vld [vmem:[#allocation2 + $0x348] ss:$0 sm:$0xff] }
0x311a   :  { %v26230_v25 = vsub.f32 %v16743_v52, %v16777_v57  ;;  %16807 = vadd.xlane.f32.xlu0 %v16806_v62  ;;  %v16809_v63 = vsel %vm216_vm6, %v16791_v6, 0.0  ;;  %v26239_v52 = vpack.c.bf16 %v14739_v28, %v14738_v14 }
0x311b   :  { %16810 = vadd.xlane.f32.xlu1 %v16809_v63  ;;  %v16792_v9 = vmul.f32 %v26227_v34, %v26227_v34 }
0x311c   :  { %v16793_v50 = vmul.f32 %v26230_v25, %v26230_v25  ;;  %22787 = vmatpush3.bf16.msra.mxu1 %v26239_v52 }
0x311d   :  { %v16812_v27 = vsel %vm216_vm6, %v16792_v9, 0.0  ;;  %22788 = vmatprep.subr.bf16.mxu1 %v27030_v0 }
0x311e   :  { %16813 = vadd.xlane.f32.xlu0 %v16812_v27  ;;  %v16815_v48 = vsel %vm216_vm6, %v16793_v50, 0.0  ;;  %v16876_v50 = vld [vmem:[#allocation2 + $0x440] sm:$0xff]  ;;  %v16877_v27 = vld [vmem:[#allocation2 + $0x448] sm:$0xff] }
0x311f   :  { %16816 = vadd.xlane.f32.xlu1 %v16815_v48 }
0x3120   :  { %22790 = vmatpush3.bf16.msra.mxu1 %v26243_v3 }
0x3121   :  { %22798 = vmatprep.subr.bf16.mxu1 %v22797_v32 }
0x318e   :  { %v16473_v60 = vpop.xlane.xlu1 %16472 }
0x318f   :  { %v16474_v58 = vmul.f32 0.03125, %v16473_v60  ;;  %v22801_v60 = vpack.c.bf16 %v16877_v27, %v16876_v50 }
0x3191   :  { %v16475_v8 = vadd.f32 1e-05, %v16474_v58 }
0x3193   :  { %23419 = vrsqrt.f32 %v16475_v8 }
0x319d   :  { %v23420_v15 = vpop.eup %23419 }
0x319e   :  { %v16477_v2 = vmul.f32 %v23420_v15, %v26194_v56 }
0x319f   :  { %v16796_v57 = vpop.xlane.xlu0 %16795 }
0x31a0   :  { %v16482_v6 = vmul.f32 %v20332_v10, %v16477_v2  ;;  %v16818_v62 = vmul.f32 0.03125, %v16796_v57  ;;  %v16799_v63 = vpop.xlane.xlu1 %16798 }
0x31a1   :  { %v16819_v9 = vmul.f32 0.03125, %v16799_v63 }
0x31a2   :  { %v16487_v48 = vadd.f32 %v20333_v7, %v16482_v6  ;;  %v16826_v14 = vadd.f32 1e-05, %v16818_v62 }
0x31a3   :  { %v16827_v28 = vadd.f32 1e-05, %v16819_v9  ;;  %v16802_v4 = vpop.xlane.xlu0 %16801 }
0x31a4   :  { %v16488_v11 = vmax.f32 %v16487_v48, 0.0  ;;  %23421 = vrsqrt.f32 %v16826_v14  ;;  %v16820_v49 = vmul.f32 0.03125, %v16802_v4  ;;  %v16805_v43 = vpop.xlane.xlu1 %16804 }
0x31a5   :  { %23423 = vrsqrt.f32 %v16827_v28  ;;  %v16821_v58 = vmul.f32 0.03125, %v16805_v43 }
0x31a6   :  { %v16828_v56 = vadd.f32 1e-05, %v16820_v49  ;;  %22338 = vmatmul.mubr.msk.f32.vlgmr.msra.gmra.mrb[182].mxu1 %vm216_vm6, %v16488_v11  ;;  %v20339_v49 = vld [vmem:[#allocation2 + $0x428] ss:$0 sm:$0xff] }
0x31a7   :  { %v16829_v8 = vadd.f32 1e-05, %v16821_v58  ;;  %v16808_v15 = vpop.xlane.xlu0 %16807  ;;  %22800 = vmatpush3.bf16.msra.mxu1 %v22797_v32  ;;  %v20338_v32 = vld [vmem:[#allocation2 + $0x420] ss:$0 sm:$0xff] }
0x31a8   :  { %23425 = vrsqrt.f32 %v16828_v56  ;;  %v16822_v10 = vmul.f32 0.03125, %v16808_v15  ;;  %v16811_v2 = vpop.xlane.xlu1 %16810  ;;  %22802 = vmatprep.subr.bf16.mxu1 %v22801_v60 }
0x31a9   :  { %23427 = vrsqrt.f32 %v16829_v8  ;;  %v16823_v7 = vmul.f32 0.03125, %v16811_v2 }
0x31aa   :  { %v16830_v57 = vadd.f32 1e-05, %v16822_v10 }
0x31ab   :  { %v16831_v6 = vadd.f32 1e-05, %v16823_v7  ;;  %v16814_v62 = vpop.xlane.xlu0 %16813  ;;  %22804 = vmatpush3.bf16.msra.mxu1 %v22801_v60 }
0x31ac   :  { %23429 = vrsqrt.f32 %v16830_v57  ;;  %v16824_v63 = vmul.f32 0.03125, %v16814_v62  ;;  %v16817_v9 = vpop.xlane.xlu1 %16816  ;;  %22814 = vmatprep.subr.bf16.mxu1 %v26015_v30 }
0x31ad   :  { %23431 = vrsqrt.f32 %v16831_v6  ;;  %v16825_v50 = vmul.f32 0.03125, %v16817_v9 }
0x31ae   :  { %v23422_v27 = vpop.eup %23421  ;;  %v16832_v48 = vadd.f32 1e-05, %v16824_v63 }
0x31af   :  { %v23424_v14 = vpop.eup %23423  ;;  %v16833_v28 = vadd.f32 1e-05, %v16825_v50  ;;  %v16842_v4 = vmul.f32 %v23422_v27, %v26199_v38 }
0x31b0   :  { %v16843_v11 = vmul.f32 %v23424_v14, %v26201_v26  ;;  %23433 = vrsqrt.f32 %v16832_v48 }
0x31b1   :  { %23435 = vrsqrt.f32 %v16833_v28  ;;  %v16854_v43 = vmul.f32 %v20338_v32, %v16842_v4 }
0x31b2   :  { %v23426_v60 = vpop.eup %23425  ;;  %v16855_v58 = vmul.f32 %v20338_v32, %v16843_v11 }
0x31b3   :  { %v23428_v56 = vpop.eup %23427  ;;  %v26251_v8 = vadd.f32 %v20339_v49, %v16854_v43  ;;  %v16844_v15 = vmul.f32 %v23426_v60, %v26207_v46 }
0x31b4   :  { %v26254_v10 = vadd.f32 %v20339_v49, %v16855_v58  ;;  %v16845_v2 = vmul.f32 %v23428_v56, %v26210_v35 }
0x31b5   :  { %22359 = vmatprep.mubr.msk.f32.mxu1 %vm216_vm6, %v26251_v8  ;;  %v16856_v38 = vmul.f32 %v20338_v32, %v16844_v15 }
0x31b6   :  { %v23430_v26 = vpop.eup %23429  ;;  %22360 = vmatmul.mubr.msk.f32.vlgmr.msra.gmra.mrb[184].mxu1 %vm216_vm6, %v26254_v10  ;;  %v16857_v7 = vmul.f32 %v20338_v32, %v16845_v2 }
0x31b7   :  { %v23432_v57 = vpop.eup %23431  ;;  %v26261_v6 = vadd.f32 %v20339_v49, %v16856_v38  ;;  %v16846_v62 = vmul.f32 %v23430_v26, %v26217_v39  ;;  %22816 = vmatpush3.bf16.msra.mxu1 %v26015_v30 }
0x31b8   :  { %v26265_v46 = vadd.f32 %v20339_v49, %v16857_v7  ;;  %v16847_v35 = vmul.f32 %v23432_v57, %v26220_v53  ;;  %22818 = vmatprep.subr.bf16.mxu1 %v26019_v44 }
0x31b9   :  { %22362 = vmatprep.mubr.msk.f32.mxu1 %vm216_vm6, %v26261_v6  ;;  %v16858_v63 = vmul.f32 %v20338_v32, %v16846_v62 }
0x31ba   :  { %v23434_v9 = vpop.eup %23433  ;;  %22363 = vmatmul.mubr.msk.f32.gmra.mrb[186].mxu1 %vm216_vm6, %v26265_v46  ;;  %v16859_v50 = vmul.f32 %v20338_v32, %v16847_v35 }
0x31bb   :  { %v23436_v27 = vpop.eup %23435  ;;  %v26273_v48 = vadd.f32 %v20339_v49, %v16858_v63  ;;  %v16848_v39 = vmul.f32 %v23434_v9, %v26227_v34  ;;  %22820 = vmatpush3.bf16.msra.mxu1 %v26019_v44  ;;  %v17020_v34 = vld [vmem:[#allocation2 + $0x458] sm:$0xff] }
0x31bc   :  { %v26277_v14 = vadd.f32 %v20339_v49, %v16859_v50  ;;  %v16849_v53 = vmul.f32 %v23436_v27, %v26230_v25  ;;  %22830 = vmatprep.subr.bf16.mxu1 %v26025_v51  ;;  %22371 = vmatprep.subr.mxu0 %v17020_v34  ;;  %v20334_v25 = vld [vmem:[#allocation2 + $0x370] ss:$0 sm:$0xff] }
0x31bd   :  { %22365 = vmatprep.mubr.msk.f32.mxu1 %vm216_vm6, %v26273_v48  ;;  %v16860_v28 = vmul.f32 %v20338_v32, %v16848_v39  ;;  %22372 = vmatpush3.msra.mxu0 %v17020_v34 }
0x31be   :  { %22366 = vmatmul.mubr.msk.f32.gmra.mrb[188].mxu1 %vm216_vm6, %v26277_v14  ;;  %v16861_v4 = vmul.f32 %v20338_v32, %v16849_v53  ;;  %22806 = vmatprep.subr.bf16.mxu0 %v25991_v41  ;;  %v20340_v32 = vld [vmem:[#allocation2 + $0x450] ss:$0 sm:$0xff] }
0x31bf   :  { %v26285_v11 = vadd.f32 %v20339_v49, %v16860_v28 }
0x31c0   :  { %v26287_v43 = vadd.f32 %v20339_v49, %v16861_v4 }
0x31c1   :  { %22368 = vmatprep.mubr.msk.f32.mxu1 %vm216_vm6, %v26285_v11 }
0x31c2   :  { %22369 = vmatmul.mubr.msk.f32.gmra.mrb[190].mxu1 %vm216_vm6, %v26287_v43 }
0x3279   :  { %v16562_v60 = vpop.f32.mrb[182].mxu1 }
0x327a   :  { %v16563_v58 = vadd.f32 %v20334_v25, %v16562_v60  ;;  %v22339_v56 = vpop.f32.mrb[183].mxu1 }
0x327c   :  { %16566 = vst.msk [vmem:[%s27029_s7 + $0x10] sm:$0xff] %vm216_vm6, %v16563_v58 }
0x3289   :  { %v22361_v49 = vpop.f32.mrb[184].mxu1 }
0x328a   :  { %v16979_v15 = vadd.f32 %v22361_v49, %v20340_v32  ;;  %v16973_v2 = vpop.f32.mrb[185].mxu1 }
0x328b   :  { %v16974_v38 = vadd.f32 %v20340_v32, %v16973_v2  ;;  %v20349_v2 = vld [vmem:[#allocation2 + $0x460] ss:$0 sm:$0xff] }
0x328c   :  { %v17013_v57 = vmax.f32 %v16979_v15, 0.0 }
0x328d   :  { %v17012_v26 = vmax.f32 %v16974_v38, 0.0  ;;  %v22364_v7 = vpop.f32.mrb[186].mxu1 }
0x328e   :  { %v16989_v62 = vadd.f32 %v22364_v7, %v20340_v32  ;;  %v16983_v35 = vpop.f32.mrb[187].mxu1 }
0x328f   :  { %v16984_v63 = vadd.f32 %v20340_v32, %v16983_v35  ;;  %22373 = vmatprep.mubr.msk.f32.mxu0 %vm142_vm3, %v17012_v26 }
0x3290   :  { %22374 = vmatmul.mubr.msk.f32.vlgmr.msra.gmra.mrb[234].mxu0 %vm142_vm3, %v17013_v57  ;;  %v17015_v27 = vmax.f32 %v16989_v62, 0.0 }
0x3291   :  { %v17014_v9 = vmax.f32 %v16984_v63, 0.0  ;;  %v22367_v50 = vpop.f32.mrb[188].mxu1  ;;  %22808 = vmatpush3.bf16.msra.mxu0 %v25991_v41 }
0x3292   :  { %v16999_v39 = vadd.f32 %v22367_v50, %v20340_v32  ;;  %v16993_v53 = vpop.f32.mrb[189].mxu1  ;;  %22810 = vmatprep.subr.bf16.mxu0 %v25993_v20 }
0x3293   :  { %v16994_v28 = vadd.f32 %v20340_v32, %v16993_v53  ;;  %22376 = vmatprep.mubr.msk.f32.mxu0 %vm142_vm3, %v17014_v9 }
0x3294   :  { %22377 = vmatmul.mubr.msk.f32.gmra.mrb[236].mxu0 %vm142_vm3, %v17015_v27  ;;  %v17017_v25 = vmax.f32 %v16999_v39, 0.0 }
0x3295   :  { %v17016_v4 = vmax.f32 %v16994_v28, 0.0  ;;  %v22370_v34 = vpop.f32.mrb[190].mxu1  ;;  %22812 = vmatpush3.bf16.msra.mxu0 %v25993_v20 }
0x3296   :  { %v17009_v60 = vadd.f32 %v22370_v34, %v20340_v32  ;;  %v17003_v58 = vpop.f32.mrb[191].mxu1  ;;  %22822 = vmatprep.subr.bf16.mxu0 %v26023_v18 }
0x3297   :  { %v17004_v56 = vadd.f32 %v20340_v32, %v17003_v58  ;;  %22379 = vmatprep.mubr.msk.f32.mxu0 %vm142_vm3, %v17016_v4 }
0x3298   :  { %22380 = vmatmul.mubr.msk.f32.gmra.mrb[238].mxu0 %vm142_vm3, %v17017_v25  ;;  %v17019_v15 = vmax.f32 %v17009_v60, 0.0 }
0x3299   :  { %v17018_v49 = vmax.f32 %v17004_v56, 0.0 }
0x329b   :  { %22382 = vmatprep.mubr.msk.f32.mxu0 %vm142_vm3, %v17018_v49 }
0x329c   :  { %22383 = vmatmul.mubr.msk.f32.gmra.mrb[240].mxu0 %vm142_vm3, %v17019_v15 }
0x3363   :  { %v22375_v38 = vpop.f32.mrb[234].mxu0 }
0x3364   :  { %v17122_v26 = vadd.f32 %v22375_v38, %v20349_v2  ;;  %v17116_v7 = vpop.f32.mrb[235].mxu0 }
0x3365   :  { %v17117_v57 = vadd.f32 %v20349_v2, %v17116_v7 }
0x3366   :  { %v17156_v62 = vadd.f32 %v17122_v26, %v26254_v10 }
0x3367   :  { %v17155_v35 = vadd.f32 %v17117_v57, %v26251_v8  ;;  %v22378_v32 = vpop.f32.mrb[236].mxu0 }
0x3368   :  { %v17132_v63 = vadd.f32 %v22378_v32, %v20349_v2  ;;  %v17126_v9 = vpop.f32.mrb[237].mxu0  ;;  %v17168_v50 = vsel %vm216_vm6, %v17156_v62, 0.0 }
0x3369   :  { %v17127_v27 = vadd.f32 %v20349_v2, %v17126_v9  ;;  %17169 = vadd.xlane.f32.xlu1 %v17168_v50  ;;  %v17165_v39 = vsel %vm216_vm6, %v17155_v35, 0.0 }
0x336a   :  { %v17158_v53 = vadd.f32 %v17132_v63, %v26265_v46  ;;  %17166 = vadd.xlane.f32.xlu0 %v17165_v39 }
0x336b   :  { %v17157_v28 = vadd.f32 %v17127_v27, %v26261_v6  ;;  %v22381_v4 = vpop.f32.mrb[238].mxu0 }
0x336c   :  { %v17142_v34 = vadd.f32 %v22381_v4, %v20349_v2  ;;  %v17136_v25 = vpop.f32.mrb[239].mxu0  ;;  %v17174_v10 = vsel %vm216_vm6, %v17158_v53, 0.0 }
0x336d   :  { %v17137_v8 = vadd.f32 %v20349_v2, %v17136_v25  ;;  %17175 = vadd.xlane.f32.xlu1 %v17174_v10  ;;  %v17171_v60 = vsel %vm216_vm6, %v17157_v28, 0.0 }
0x336e   :  { %v17160_v58 = vadd.f32 %v17142_v34, %v26277_v14  ;;  %17172 = vadd.xlane.f32.xlu0 %v17171_v60 }
0x336f   :  { %v17159_v56 = vadd.f32 %v17137_v8, %v26273_v48  ;;  %v22384_v49 = vpop.f32.mrb[240].mxu0 }
0x3370   :  { %v17152_v15 = vadd.f32 %v22384_v49, %v20349_v2  ;;  %v17146_v46 = vpop.f32.mrb[241].mxu0  ;;  %v17180_v38 = vsel %vm216_vm6, %v17160_v58, 0.0 }
0x3371   :  { %v17147_v6 = vadd.f32 %v20349_v2, %v17146_v46  ;;  %17181 = vadd.xlane.f32.xlu1 %v17180_v38  ;;  %v17177_v26 = vsel %vm216_vm6, %v17159_v56, 0.0 }
0x3372   :  { %v17162_v7 = vadd.f32 %v17152_v15, %v26287_v43  ;;  %17178 = vadd.xlane.f32.xlu0 %v17177_v26 }
0x3373   :  { %v17161_v57 = vadd.f32 %v17147_v6, %v26285_v11 }
0x3374   :  { %v17186_v32 = vsel %vm216_vm6, %v17162_v7, 0.0 }
0x3375   :  { %17187 = vadd.xlane.f32.xlu1 %v17186_v32  ;;  %v17183_v14 = vsel %vm216_vm6, %v17161_v57, 0.0 }
0x3376   :  { %17184 = vadd.xlane.f32.xlu0 %v17183_v14 }
0x33f6   :  { %v17170_v48 = vpop.xlane.xlu1 %17169 }
0x33f7   :  { %v17190_v63 = vmul.f32 0.03125, %v17170_v48  ;;  %v17167_v9 = vpop.xlane.xlu0 %17166 }
0x33f8   :  { %v17189_v50 = vmul.f32 0.03125, %v17167_v9 }
0x33f9   :  { %v26326_v27 = vsub.f32 %v17156_v62, %v17190_v63 }
0x33fa   :  { %v26328_v2 = vsub.f32 %v17155_v35, %v17189_v50  ;;  %v17176_v39 = vpop.xlane.xlu1 %17175 }
0x33fb   :  { %v17192_v4 = vmul.f32 0.03125, %v17176_v39  ;;  %v17173_v43 = vpop.xlane.xlu0 %17172  ;;  %v17206_v11 = vmul.f32 %v26326_v27, %v26326_v27 }
0x33fc   :  { %v17191_v34 = vmul.f32 0.03125, %v17173_v43  ;;  %v17205_v25 = vmul.f32 %v26328_v2, %v26328_v2 }
0x33fd   :  { %v26334_v10 = vsub.f32 %v17158_v53, %v17192_v4  ;;  %v17216_v8 = vsel %vm216_vm6, %v17206_v11, 0.0 }
0x33fe   :  { %v26337_v60 = vsub.f32 %v17157_v28, %v17191_v34  ;;  %v17182_v62 = vpop.xlane.xlu1 %17181  ;;  %17217 = vadd.xlane.f32.xlu1 %v17216_v8  ;;  %v17213_v35 = vsel %vm216_vm6, %v17205_v25, 0.0 }
0x33ff   :  { %v17194_v49 = vmul.f32 0.03125, %v17182_v62  ;;  %17214 = vadd.xlane.f32.xlu0 %v17213_v35  ;;  %v17179_v15 = vpop.xlane.xlu0 %17178  ;;  %v17208_v46 = vmul.f32 %v26334_v10, %v26334_v10 }
0x3400   :  { %v17193_v38 = vmul.f32 0.03125, %v17179_v15  ;;  %v17207_v6 = vmul.f32 %v26337_v60, %v26337_v60 }
0x3401   :  { %v26344_v53 = vsub.f32 %v17160_v58, %v17194_v49  ;;  %v17222_v26 = vsel %vm216_vm6, %v17208_v46, 0.0 }
0x3402   :  { %v26347_v28 = vsub.f32 %v17159_v56, %v17193_v38  ;;  %17223 = vadd.xlane.f32.xlu1 %v17222_v26  ;;  %v17188_v32 = vpop.xlane.xlu1 %17187  ;;  %v17219_v14 = vsel %vm216_vm6, %v17207_v6, 0.0 }
0x3403   :  { %v17196_v48 = vmul.f32 0.03125, %v17188_v32  ;;  %17220 = vadd.xlane.f32.xlu0 %v17219_v14  ;;  %v17185_v63 = vpop.xlane.xlu0 %17184  ;;  %v17210_v9 = vmul.f32 %v26344_v53, %v26344_v53 }
0x3404   :  { %v17195_v50 = vmul.f32 0.03125, %v17185_v63  ;;  %v17209_v39 = vmul.f32 %v26347_v28, %v26347_v28 }
0x3405   :  { %v26354_v58 = vsub.f32 %v17162_v7, %v17196_v48  ;;  %v17228_v4 = vsel %vm216_vm6, %v17210_v9, 0.0 }
0x3406   :  { %v26357_v56 = vsub.f32 %v17161_v57, %v17195_v50  ;;  %17229 = vadd.xlane.f32.xlu1 %v17228_v4  ;;  %v17225_v43 = vsel %vm216_vm6, %v17209_v39, 0.0 }
0x3407   :  { %17226 = vadd.xlane.f32.xlu0 %v17225_v43  ;;  %v17212_v11 = vmul.f32 %v26354_v58, %v26354_v58 }
0x3408   :  { %v17211_v34 = vmul.f32 %v26357_v56, %v26357_v56 }
0x3409   :  { %v17234_v25 = vsel %vm216_vm6, %v17212_v11, 0.0 }
0x340a   :  { %17235 = vadd.xlane.f32.xlu1 %v17234_v25  ;;  %v17231_v7 = vsel %vm216_vm6, %v17211_v34, 0.0 }
0x340b   :  { %17232 = vadd.xlane.f32.xlu0 %v17231_v7 }
0x348b   :  { %v17218_v8 = vpop.xlane.xlu1 %17217 }
0x348c   :  { %v17238_v62 = vmul.f32 0.03125, %v17218_v8  ;;  %v17215_v57 = vpop.xlane.xlu0 %17214  ;;  %v20358_v8 = vld [vmem:[#allocation2 + $0x468] ss:$0 sm:$0xff] }
0x348d   :  { %v17237_v35 = vmul.f32 0.03125, %v17215_v57 }
0x348e   :  { %v17246_v49 = vadd.f32 1e-05, %v17238_v62 }
0x348f   :  { %v17245_v15 = vadd.f32 1e-05, %v17237_v35  ;;  %v17224_v46 = vpop.xlane.xlu1 %17223 }
0x3490   :  { %23437 = vrsqrt.f32 %v17246_v49  ;;  %v17240_v38 = vmul.f32 0.03125, %v17224_v46  ;;  %v17221_v6 = vpop.xlane.xlu0 %17220  ;;  %v20359_v46 = vld [vmem:[#allocation2 + $0x470] ss:$0 sm:$0xff] }
0x3491   :  { %23439 = vrsqrt.f32 %v17245_v15  ;;  %v17239_v26 = vmul.f32 0.03125, %v17221_v6 }
0x3492   :  { %v17248_v32 = vadd.f32 1e-05, %v17240_v38 }
0x3493   :  { %v17247_v14 = vadd.f32 1e-05, %v17239_v26  ;;  %v17230_v48 = vpop.xlane.xlu1 %17229 }
0x3494   :  { %23441 = vrsqrt.f32 %v17248_v32  ;;  %v17242_v63 = vmul.f32 0.03125, %v17230_v48  ;;  %v17227_v9 = vpop.xlane.xlu0 %17226 }
0x3495   :  { %23443 = vrsqrt.f32 %v17247_v14  ;;  %v17241_v50 = vmul.f32 0.03125, %v17227_v9 }
0x3496   :  { %v17250_v39 = vadd.f32 1e-05, %v17242_v63 }
0x3497   :  { %v17249_v4 = vadd.f32 1e-05, %v17241_v50  ;;  %v17236_v43 = vpop.xlane.xlu1 %17235 }
0x3498   :  { %23445 = vrsqrt.f32 %v17250_v39  ;;  %v17244_v11 = vmul.f32 0.03125, %v17236_v43  ;;  %v17233_v34 = vpop.xlane.xlu0 %17232 }
0x3499   :  { %23447 = vrsqrt.f32 %v17249_v4  ;;  %v17243_v25 = vmul.f32 0.03125, %v17233_v34 }
0x349a   :  { %v23438_v7 = vpop.eup %23437  ;;  %v17252_v62 = vadd.f32 1e-05, %v17244_v11 }
0x349b   :  { %v23440_v57 = vpop.eup %23439  ;;  %v17262_v35 = vmul.f32 %v23438_v7, %v26326_v27  ;;  %v17251_v49 = vadd.f32 1e-05, %v17243_v25 }
0x349c   :  { %23449 = vrsqrt.f32 %v17252_v62  ;;  %v17261_v15 = vmul.f32 %v23440_v57, %v26328_v2 }
0x349d   :  { %v17274_v38 = vmul.f32 %v20358_v8, %v17262_v35  ;;  %23451 = vrsqrt.f32 %v17251_v49  ;;  %v26381_v49 = vld [vmem:[#allocation2 + $0x308] sm:$0xff] }
0x349e   :  { %v23442_v6 = vpop.eup %23441  ;;  %v17273_v26 = vmul.f32 %v20358_v8, %v17261_v15 }
0x349f   :  { %v23444_v32 = vpop.eup %23443  ;;  %v17264_v14 = vmul.f32 %v23442_v6, %v26334_v10  ;;  %v17286_v9 = vadd.f32 %v20359_v46, %v17274_v38 }
0x34a0   :  { %v17285_v48 = vadd.f32 %v20359_v46, %v17273_v26  ;;  %v17263_v63 = vmul.f32 %v23444_v32, %v26337_v60 }
0x34a1   :  { %v17276_v50 = vmul.f32 %v20358_v8, %v17264_v14  ;;  %v23498_v14 = vld [vmem:[#allocation2 + $0x278] ss:$0 sm:$0xff] }
0x34a2   :  { %v23446_v39 = vpop.eup %23445  ;;  %22393 = vmatprep.mubr.msk.f32.mxu0 %vm216_vm6, %v17285_v48  ;;  %v17275_v27 = vmul.f32 %v20358_v8, %v17263_v63 }
0x34a3   :  { %v23448_v4 = vpop.eup %23447  ;;  %22394 = vmatmul.mubr.msk.f32.vlgmr.msra.gmra.mrb[242].mxu0 %vm216_vm6, %v17286_v9  ;;  %v17266_v2 = vmul.f32 %v23446_v39, %v26344_v53  ;;  %v17288_v10 = vadd.f32 %v20359_v46, %v17276_v50 }
0x34a4   :  { %v17287_v43 = vadd.f32 %v20359_v46, %v17275_v27  ;;  %v17265_v11 = vmul.f32 %v23448_v4, %v26347_v28  ;;  %22824 = vmatpush3.bf16.msra.mxu0 %v26023_v18 }
0x34a5   :  { %v17278_v34 = vmul.f32 %v20358_v8, %v17266_v2  ;;  %22826 = vmatprep.subr.bf16.mxu0 %v26047_v17 }
0x34a6   :  { %v23450_v60 = vpop.eup %23449  ;;  %22396 = vmatprep.mubr.msk.f32.mxu0 %vm216_vm6, %v17287_v43  ;;  %v17277_v25 = vmul.f32 %v20358_v8, %v17265_v11 }
0x34a7   :  { %v23452_v7 = vpop.eup %23451  ;;  %22397 = vmatmul.mubr.msk.f32.gmra.mrb[244].mxu0 %vm216_vm6, %v17288_v10  ;;  %v17268_v62 = vmul.f32 %v23450_v60, %v26354_v58  ;;  %v17290_v28 = vadd.f32 %v20359_v46, %v17278_v34 }
0x34a8   :  { %v17289_v57 = vadd.f32 %v20359_v46, %v17277_v25  ;;  %v17267_v53 = vmul.f32 %v23452_v7, %v26357_v56  ;;  %22828 = vmatpush3.bf16.msra.mxu0 %v26047_v17 }
0x34a9   :  { %v17280_v35 = vmul.f32 %v20358_v8, %v17268_v62  ;;  %22465 = vmatprep.subr.mxu0 %v26381_v49 }
0x34aa   :  { %22399 = vmatprep.mubr.msk.f32.mxu0 %vm216_vm6, %v17289_v57  ;;  %v17279_v15 = vmul.f32 %v20358_v8, %v17267_v53 }
0x34ab   :  { %22400 = vmatmul.mubr.msk.f32.gmra.mrb[246].mxu0 %vm216_vm6, %v17290_v28  ;;  %v17292_v6 = vadd.f32 %v20359_v46, %v17280_v35 }
0x34ac   :  { %v17291_v38 = vadd.f32 %v20359_v46, %v17279_v15 }
0x34ae   :  { %22402 = vmatprep.mubr.msk.f32.mxu0 %vm216_vm6, %v17291_v38 }
0x34af   :  { %22403 = vmatmul.mubr.msk.f32.gmra.mrb[248].mxu0 %vm216_vm6, %v17292_v6 }
0x3576   :  { %v22395_v58 = vpop.f32.mrb[242].mxu0 }
0x3577   :  { %v17389_v56 = vadd.f32 %v22395_v58, %v25917_v24  ;;  %v17383_v26 = vpop.f32.mrb[243].mxu0 }
0x3578   :  { %v17384_v32 = vadd.f32 %v17383_v26, %v25919_v23 }
0x3579   :  { %v17423_v48 = vadd.f32 %v23498_v14, %v17389_v56 }
0x357a   :  { %v17422_v63 = vadd.f32 %v23498_v14, %v17384_v32  ;;  %v22398_v9 = vpop.f32.mrb[244].mxu0 }
0x357b   :  { %v17399_v8 = vadd.f32 %v22398_v9, %v25923_v61  ;;  %v17393_v50 = vpop.f32.mrb[245].mxu0  ;;  %v17431_v27 = vmax.f32 %v17423_v48, 0.0 }
0x357c   :  { %v17430_v39 = vmax.f32 %v17422_v63, 0.0  ;;  %v17394_v46 = vadd.f32 %v17393_v50, %v25925_v12  ;;  %v23499_v63 = vld [vmem:[#allocation2 + $0x2a0] ss:$0 sm:$0xff] }
0x357d   :  { %v17425_v4 = vadd.f32 %v23498_v14, %v17399_v8 }
0x357e   :  { %v17424_v2 = vadd.f32 %v23498_v14, %v17394_v46  ;;  %v22401_v43 = vpop.f32.mrb[246].mxu0  ;;  %22413 = vmatprep.mubr.msk.f32.mxu1 %vm216_vm6, %v17430_v39 }
0x357f   :  { %v17409_v11 = vadd.f32 %v22401_v43, %v25927_v5  ;;  %v17403_v10 = vpop.f32.mrb[247].mxu0  ;;  %22414 = vmatmul.mubr.msk.f32.vlgmr.msra.gmra.mrb[192].mxu1 %vm216_vm6, %v17431_v27  ;;  %v17433_v25 = vmax.f32 %v17425_v4, 0.0 }
0x3580   :  { %v17432_v34 = vmax.f32 %v17424_v2, 0.0  ;;  %v17404_v60 = vadd.f32 %v17403_v10, %v25929_v42  ;;  %22832 = vmatpush3.bf16.msra.mxu1 %v26025_v51 }
0x3581   :  { %v17427_v7 = vadd.f32 %v23498_v14, %v17409_v11  ;;  %22834 = vmatprep.subr.bf16.mxu1 %v26049_v59 }
0x3582   :  { %v17426_v62 = vadd.f32 %v23498_v14, %v17404_v60  ;;  %v22404_v57 = vpop.f32.mrb[248].mxu0  ;;  %22416 = vmatprep.mubr.msk.f32.mxu1 %vm216_vm6, %v17432_v34  ;;  %v26465_v60 = vld [vmem:[%s27029_s7 + $0x18] sm:$0xff] }
0x3583   :  { %v17419_v53 = vadd.f32 %v22404_v57, %v25931_v40  ;;  %v17413_v28 = vpop.f32.mrb[249].mxu0  ;;  %22417 = vmatmul.mubr.msk.f32.gmra.mrb[194].mxu1 %vm216_vm6, %v17433_v25  ;;  %v17435_v38 = vmax.f32 %v17427_v7, 0.0 }
0x3584   :  { %v17434_v35 = vmax.f32 %v17426_v62, 0.0  ;;  %v17414_v15 = vadd.f32 %v17413_v28, %v25933_v13  ;;  %22836 = vmatpush3.bf16.msra.mxu1 %v26049_v59  ;;  %v23501_v62 = vld [vmem:[#allocation2 + $0x300] ss:$0 sm:$0xff] }
0x3585   :  { %v17429_v6 = vadd.f32 %v23498_v14, %v17419_v53  ;;  %22837 = vmatprep.subr.bf16.mxu1 %v27030_v0 }
0x3586   :  { %v17428_v58 = vadd.f32 %v23498_v14, %v17414_v15  ;;  %22419 = vmatprep.mubr.msk.f32.mxu1 %vm216_vm6, %v17434_v35  ;;  %v18214_v35 = vld [vmem:[#allocation2 + $0x478] sm:$0xff]  ;;  %v18215_v15 = vld [vmem:[#allocation2 + $0x480] sm:$0xff] }
0x3587   :  { %22420 = vmatmul.mubr.msk.f32.gmra.mrb[196].mxu1 %vm216_vm6, %v17435_v38  ;;  %v17437_v26 = vmax.f32 %v17429_v6, 0.0 }
0x3588   :  { %v17436_v56 = vmax.f32 %v17428_v58, 0.0 }
0x358a   :  { %22422 = vmatprep.mubr.msk.f32.mxu1 %vm216_vm6, %v17436_v56 }
0x358b   :  { %22423 = vmatmul.mubr.msk.f32.gmra.mrb[198].mxu1 %vm216_vm6, %v17437_v26  ;;  %v22850_v26 = vpack.c.bf16 %v18215_v15, %v18214_v35 }
0x3652   :  { %v22415_v32 = vpop.f32.mrb[192].mxu1 }
0x3653   :  { %v17528_v48 = vpop.f32.mrb[193].mxu1  ;;  %v26410_v8 = vadd.f32 %v23499_v63, %v22415_v32 }
0x3654   :  { %v26408_v9 = vadd.f32 %v23499_v63, %v17528_v48 }
0x3656   :  { %v22418_v50 = vpop.f32.mrb[194].mxu1  ;;  %22433 = vmatprep.mubr.msk.f32.mxu0 %vm216_vm6, %v26408_v9  ;;  %22453 = vmatprep.mubr.msk.f32.mxu1 %vm216_vm6, %v26408_v9 }
0x3657   :  { %v17538_v14 = vpop.f32.mrb[195].mxu1  ;;  %22434 = vmatmul.mubr.msk.f32.vlgmr.msra.gmra.mrb[250].mxu0 %vm216_vm6, %v26410_v8  ;;  %22454 = vmatmul.mubr.msk.f32.vlgmr.msra.gmra.mrb[200].mxu1 %vm216_vm6, %v26410_v8  ;;  %v26424_v46 = vadd.f32 %v23499_v63, %v22418_v50 }
0x3658   :  { %v26420_v39 = vadd.f32 %v23499_v63, %v17538_v14  ;;  %22466 = vmatpush3.msra.mxu0 %v26381_v49  ;;  %22839 = vmatpush3.bf16.msra.mxu1 %v26138_v31  ;;  %v18216_v14 = vld [vmem:[#allocation2 + $0x488] sm:$0xff] }
0x3659   :  { %22849 = vmatprep.subr.bf16.mxu0 %v27030_v0  ;;  %22840 = vmatprep.subr.bf16.mxu1 %v27030_v0 }
0x365a   :  { %v22421_v27 = vpop.f32.mrb[196].mxu1  ;;  %22436 = vmatprep.mubr.msk.f32.mxu0 %vm216_vm6, %v26420_v39  ;;  %22456 = vmatprep.mubr.msk.f32.mxu1 %vm216_vm6, %v26420_v39 }
0x365b   :  { %v17548_v4 = vpop.f32.mrb[197].mxu1  ;;  %22437 = vmatmul.mubr.msk.f32.gmra.mrb[252].mxu0 %vm216_vm6, %v26424_v46  ;;  %22457 = vmatmul.mubr.msk.f32.gmra.mrb[202].mxu1 %vm216_vm6, %v26424_v46  ;;  %v26439_v2 = vadd.f32 %v23499_v63, %v22421_v27  ;;  %v18217_v27 = vld [vmem:[#allocation2 + $0x490] sm:$0xff] }
0x365c   :  { %v26436_v49 = vadd.f32 %v23499_v63, %v17548_v4  ;;  %22842 = vmatpush3.bf16.msra.mxu1 %v26141_v55 }
0x365d   :  { %22843 = vmatprep.subr.bf16.mxu1 %v27030_v0 }
0x365e   :  { %v22424_v43 = vpop.f32.mrb[198].mxu1  ;;  %22439 = vmatprep.mubr.msk.f32.mxu0 %vm216_vm6, %v26436_v49  ;;  %22459 = vmatprep.mubr.msk.f32.mxu1 %vm216_vm6, %v26436_v49 }
0x365f   :  { %v17558_v11 = vpop.f32.mrb[199].mxu1  ;;  %22440 = vmatmul.mubr.msk.f32.gmra.mrb[254].mxu0 %vm216_vm6, %v26439_v2  ;;  %22460 = vmatmul.mubr.msk.f32.gmra.mrb[204].mxu1 %vm216_vm6, %v26439_v2  ;;  %v26452_v34 = vadd.f32 %v23499_v63, %v22424_v43 }
0x3660   :  { %v26450_v10 = vadd.f32 %v23499_v63, %v17558_v11 }
0x3662   :  { %22442 = vmatprep.mubr.msk.f32.mxu0 %vm216_vm6, %v26450_v10  ;;  %22462 = vmatprep.mubr.msk.f32.mxu1 %vm216_vm6, %v26450_v10 }
0x3663   :  { %22443 = vmatmul.mubr.msk.f32.gmra.mrb[0].mxu0 %vm216_vm6, %v26452_v34  ;;  %22463 = vmatmul.mubr.msk.f32.gmra.mrb[206].mxu1 %vm216_vm6, %v26452_v34 }
0x3664   :  { %22487 = vmatprep.mubr.msk.f32.mxu1 %vm23547_vm0, %v26465_v60 }
0x372a   :  { %v26469_v25 = vpop.f32.mrb[250].mxu0  ;;  %v22455_v7 = vpop.f32.mrb[200].mxu1 }
0x372b   :  { %v17865_v57 = vadd.f32 %v23501_v62, %v22455_v7  ;;  %v26471_v53 = vpop.f32.mrb[251].mxu0  ;;  %v17859_v28 = vpop.f32.mrb[201].mxu1 }
0x372c   :  { %v17860_v38 = vadd.f32 %v23501_v62, %v17859_v28  ;;  %v22853_v28 = vpack.c.bf16 %v18217_v27, %v18216_v14 }
0x372d   :  { %v17899_v32 = vmax.f32 %v17865_v57, 0.0 }
0x372e   :  { %v17898_v6 = vmax.f32 %v17860_v38, 0.0  ;;  %v26473_v58 = vpop.f32.mrb[252].mxu0  ;;  %v22458_v56 = vpop.f32.mrb[202].mxu1 }
0x372f   :  { %v17875_v48 = vadd.f32 %v23501_v62, %v22458_v56  ;;  %v26475_v63 = vpop.f32.mrb[253].mxu0  ;;  %v17869_v50 = vpop.f32.mrb[203].mxu1 }
0x3730   :  { %27038 = vst [vmem:[#allocation9_spill] sm:$0xff] %v26475_v63  ;;  %v17870_v4 = vadd.f32 %v23501_v62, %v17869_v50  ;;  %22467 = vmatprep.mubr.msk.f32.mxu0 %vm142_vm3, %v17898_v6 }
0x3731   :  { %22468 = vmatmul.mubr.msk.f32.vlgmr.msra.gmra.mrb[2].mxu0 %vm142_vm3, %v17899_v32  ;;  %v17901_v38 = vmax.f32 %v17875_v48, 0.0 }
0x3732   :  { %v17900_v43 = vmax.f32 %v17870_v4, 0.0  ;;  %v26479_v11 = vpop.f32.mrb[254].mxu0  ;;  %v22461_v7 = vpop.f32.mrb[204].mxu1  ;;  %22851 = vmatpush3.bf16.msra.mxu0 %v22850_v26 }
0x3733   :  { %v17885_v35 = vadd.f32 %v23501_v62, %v22461_v7  ;;  %v26481_v57 = vpop.f32.mrb[255].mxu0  ;;  %v17879_v15 = vpop.f32.mrb[205].mxu1  ;;  %22852 = vmatprep.subr.bf16.mxu0 %v27030_v0 }
0x3734   :  { %27039 = vst [vmem:[#allocation10_spill] sm:$0xff] %v26481_v57  ;;  %v17880_v56 = vadd.f32 %v23501_v62, %v17879_v15  ;;  %22470 = vmatprep.mubr.msk.f32.mxu0 %vm142_vm3, %v17900_v43  ;;  %v23502_v43 = vld [vmem:[%s27027_s5] sm:$0xff] }
0x3735   :  { %22471 = vmatmul.mubr.msk.f32.gmra.mrb[4].mxu0 %vm142_vm3, %v17901_v38  ;;  %v17903_v4 = vmax.f32 %v17885_v35, 0.0 }
0x3736   :  { %v17902_v6 = vmax.f32 %v17880_v56, 0.0  ;;  %v26486_v32 = vpop.f32.mrb[0].mxu0  ;;  %v22464_v50 = vpop.f32.mrb[206].mxu1  ;;  %22854 = vmatpush3.bf16.msra.mxu0 %v22853_v28  ;;  %v23503_v28 = vld [vmem:[#allocation2 + $0x310] ss:$0 sm:$0xff] }
0x3737   :  { %v17895_v26 = vadd.f32 %v23501_v62, %v22464_v50  ;;  %v26488_v14 = vpop.f32.mrb[1].mxu0  ;;  %v17889_v48 = vpop.f32.mrb[207].mxu1 }
0x3738   :  { %27040 = vst [vmem:[#allocation11_spill] sm:$0xff] %v26488_v14  ;;  %v17890_v27 = vadd.f32 %v23501_v62, %v17889_v48  ;;  %22473 = vmatprep.mubr.msk.f32.mxu0 %vm142_vm3, %v17902_v6 }
0x3739   :  { %22474 = vmatmul.mubr.msk.f32.gmra.mrb[6].mxu0 %vm142_vm3, %v17903_v4  ;;  %v17905_v15 = vmax.f32 %v17895_v26, 0.0 }
0x373a   :  { %v17904_v7 = vmax.f32 %v17890_v27, 0.0 }
0x373c   :  { %22476 = vmatprep.mubr.msk.f32.mxu0 %vm142_vm3, %v17904_v7 }
0x373d   :  { %22477 = vmatmul.mubr.msk.f32.gmra.mrb[8].mxu0 %vm142_vm3, %v17905_v15 }
0x373e   :  { %22509 = vmatprep.mubr.msk.f32.mxu0 %vm23547_vm0, %v26465_v60 }
0x3741   :  { %22510 = vmatmul.mubr.msk.f32.vlgmr.msra.gmra.mrb[10].mxu0 %vm216_vm6, %v23502_v43 }
0x3804   :  { %v22469_v62 = vpop.f32.mrb[2].mxu0 }
0x3805   :  { %v18002_v38 = vadd.f32 %v23503_v28, %v22469_v62  ;;  %v17996_v35 = vpop.f32.mrb[3].mxu0 }
0x3806   :  { %v17997_v56 = vadd.f32 %v23503_v28, %v17996_v35 }
0x3807   :  { %v18036_v6 = vsel %vm216_vm6, %v18002_v38, 0.0 }
0x3808   :  { %v18035_v50 = vsel %vm216_vm6, %v17997_v56, 0.0  ;;  %v22472_v4 = vpop.f32.mrb[4].mxu0 }
0x3809   :  { %v18037_v26 = vadd.f32 %v18036_v6, %v18035_v50  ;;  %v18006_v48 = vpop.f32.mrb[5].mxu0  ;;  %v18012_v27 = vadd.f32 %v23503_v28, %v22472_v4 }
0x380a   :  { %v18007_v7 = vadd.f32 %v23503_v28, %v18006_v48  ;;  %v20402_v48 = vld [vmem:[#allocation2 + $0x498] ss:$0 sm:$0xff] }
0x380b   :  { %v18040_v43 = vsel %vm216_vm6, %v18012_v27, 0.0 }
0x380c   :  { %v18038_v15 = vsel %vm216_vm6, %v18007_v7, 0.0  ;;  %v22475_v0 = vpop.f32.mrb[6].mxu0 }
0x380d   :  { %v18039_v47 = vadd.f32 %v18038_v15, %v18037_v26  ;;  %v18016_v45 = vpop.f32.mrb[7].mxu0  ;;  %v18022_v14 = vadd.f32 %v23503_v28, %v22475_v0 }
0x380e   :  { %v18017_v62 = vadd.f32 %v23503_v28, %v18016_v45 }
0x380f   :  { %v18041_v21 = vadd.f32 %v18040_v43, %v18039_v47  ;;  %v18044_v6 = vsel %vm216_vm6, %v18022_v14, 0.0 }
0x3810   :  { %v18042_v35 = vsel %vm216_vm6, %v18017_v62, 0.0  ;;  %v22478_v38 = vpop.f32.mrb[8].mxu0 }
0x3811   :  { %v18043_v57 = vadd.f32 %v18042_v35, %v18041_v21  ;;  %v18026_v56 = vpop.f32.mrb[9].mxu0  ;;  %v18032_v50 = vadd.f32 %v23503_v28, %v22478_v38  ;;  %v27041_v35 = vmov 0.0|0.0  }
0x3812   :  { %v18027_v4 = vadd.f32 %v23503_v28, %v18026_v56 }
0x3813   :  { %v18045_v33 = vadd.f32 %v18044_v6, %v18043_v57  ;;  %v18048_v0 = vsel %vm216_vm6, %v18032_v50, 0.0 }
0x3814   :  { %v18046_v7 = vsel %vm216_vm6, %v18027_v4, 0.0  ;;  %v18289_v26 = vpop.f32.mrb[10].mxu0 }
0x3815   :  { %v18047_v15 = vadd.f32 %v18046_v7, %v18045_v33  ;;  %v18290_v63 = vadd.f32 %v20402_v48, %v18289_v26  ;;  %v22511_v27 = vpop.f32.mrb[11].mxu0 }
0x3817   :  { %v18049_v47 = vadd.f32 %v18048_v0, %v18047_v15  ;;  %v18294_v45 = vcombine.high %v18290_v63, %v18290_v63  ;;  %v18301_v43 = vrot.slane %v18290_v63, %v23887_v22 }
0x3819   :  { %v18050_v21 = vadd.f32 %v18049_v47, %v25746_v36  ;;  %v18308_v14 = vrot.slane %v18294_v45, %v23887_v22  ;;  %v18317_v28 = vrot.slane %v18301_v43, %v23887_v22  ;;  %v18309_v15 = vcombine.high %v18301_v43, %v18301_v43 }
0x381b   :  { %v18339_v62 = vcombine.high %v18317_v28, %v18317_v28  ;;  %22488 = vmatmul.mubr.msk.f32.vlgmr.msra.gmra.mrb[208].mxu1 %vm216_vm6, %v18050_v21  ;;  %v18324_v57 = vrot.slane %v18308_v14, %v23887_v22  ;;  %v18346_v33 = vrot.slane %v18317_v28, %v23784_v19  ;;  %v18331_v27 = vrot.slane %v18309_v15, %v23887_v22 }
0x381c   :  { %22845 = vmatpush3.bf16.msra.mxu1 %v26239_v52  ;;  %22498 = vmatprep.mubr.msk.f32.mxu1 %vm23547_vm0, %v26465_v60  ;;  %v18310_v0 = vcombine.high %v18308_v14, %v18308_v14 }
0x381d   :  { %v18354_v63 = vrot.slane %v18339_v62, %v23784_v19  ;;  %22846 = vmatprep.subr.bf16.mxu1 %v27041_v35  ;;  %v18383_v38 = vadd.f32 %v18346_v33, %v26408_v9  ;;  %v18362_v50 = vrot.slane %v18324_v57, %v23784_v19  ;;  %v18340_v4 = vcombine.high %v18324_v57, %v18324_v57 }
0x381e   :  { %v18350_v47 = vrot.slane %v18331_v27, %v23784_v19  ;;  %v18341_v45 = vcombine.high %v18331_v27, %v18331_v27 }
0x381f   :  { %v18393_v56 = vsel %vm216_vm6, %v18383_v38, 0.0  ;;  %v18385_v6 = vadd.f32 %v18354_v63, %v26420_v39  ;;  %v18387_v60 = vadd.f32 %v18362_v50, %v26436_v49  ;;  %v18370_v7 = vrot.slane %v18340_v4, %v23784_v19  ;;  %v23504_v49 = vld [vmem:[#allocation2 + $0x338] ss:$0 sm:$0xff] }
0x3820   :  { %22848 = vmatpush3.bf16.msra.mxu1 %v26243_v3  ;;  %18394 = vadd.xlane.f32.xlu1 %v18393_v56  ;;  %v18358_v63 = vrot.slane %v18341_v45, %v23784_v19  ;;  %v18338_v56 = vrot.slane %v18310_v0, %v23887_v22 }
0x3821   :  { %v18399_v48 = vsel %vm216_vm6, %v18385_v6, 0.0  ;;  %v18405_v26 = vsel %vm216_vm6, %v18387_v60, 0.0  ;;  %v18389_v9 = vadd.f32 %v18370_v7, %v26450_v10  ;;  %v18384_v10 = vadd.f32 %v18350_v47, %v26410_v8 }
0x3822   :  { %v18386_v14 = vadd.f32 %v18358_v63, %v26424_v46  ;;  %v18366_v50 = vrot.slane %v18338_v56, %v23784_v19  ;;  %v18342_v4 = vcombine.high %v18338_v56, %v18338_v56 }
0x3823   :  { %v18411_v39 = vsel %vm216_vm6, %v18389_v9, 0.0  ;;  %v18396_v43 = vsel %vm216_vm6, %v18384_v10, 0.0 }
0x3824   :  { %18400 = vadd.xlane.f32.xlu1 %v18399_v48  ;;  %v18374_v8 = vrot.slane %v18342_v4, %v23784_v19 }
0x3826   :  { %v18390_v46 = vadd.f32 %v18374_v8, %v26452_v34 }
0x3828   :  { %18406 = vadd.xlane.f32.xlu1 %v18405_v26  ;;  %v18402_v26 = vsel %vm216_vm6, %v18386_v14, 0.0 }
0x382c   :  { %18412 = vadd.xlane.f32.xlu1 %v18411_v39  ;;  %v18388_v39 = vadd.f32 %v18366_v50, %v26439_v2 }
0x382e   :  { %v18408_v0 = vsel %vm216_vm6, %v18388_v39, 0.0 }
0x38ad   :  { %v18395_v57 = vpop.xlane.xlu1 %18394 }
0x38ae   :  { %v18417_v7 = vmul.f32 0.03125, %v18395_v57 }
0x38b0   :  { %v26543_v22 = vsub.f32 %v18383_v38, %v18417_v7 }
0x38b1   :  { %v18401_v48 = vpop.xlane.xlu1 %18400 }
0x38b2   :  { %v18419_v27 = vmul.f32 0.03125, %v18401_v48  ;;  %v18433_v2 = vmul.f32 %v26543_v22, %v26543_v22 }
0x38b4   :  { %v26547_v47 = vsub.f32 %v18385_v6, %v18419_v27 }
0x38b5   :  { %v18407_v15 = vpop.xlane.xlu1 %18406 }
0x38b6   :  { %v18421_v45 = vmul.f32 0.03125, %v18407_v15  ;;  %v18435_v57 = vmul.f32 %v26547_v47, %v26547_v47 }
0x38b8   :  { %v26552_v19 = vsub.f32 %v18387_v60, %v18421_v45  ;;  %v18447_v6 = vsel %vm216_vm6, %v18435_v57, 0.0 }
0x38ee   :  { %v18120_v21 = vpop.f32.mrb[208].mxu1 }
0x38ef   :  { %v18121_v28 = vadd.f32 %v23504_v49, %v18120_v21  ;;  %v22489_v62 = vpop.f32.mrb[209].mxu1  ;;  %v18414_v21 = vsel %vm216_vm6, %v18390_v46, 0.0  ;;  %v18413_v49 = vpop.xlane.xlu1 %18412 }
0x38f0   :  { %v18423_v38 = vmul.f32 0.03125, %v18413_v49  ;;  %v18441_v62 = vsel %vm216_vm6, %v18433_v2, 0.0 }
0x38f1   :  { %v18124_v33 = vsel %vm216_vm6, %v18121_v28, 0.0 }
0x38f2   :  { %18125 = vadd.xlane.f32.xlu0 %v18124_v33  ;;  %v26557_v34 = vsub.f32 %v18389_v9, %v18423_v38  ;;  %v18437_v33 = vmul.f32 %v26552_v19, %v26552_v19 }
0x38f4   :  { %v18453_v63 = vsel %vm216_vm6, %v18437_v33, 0.0  ;;  %v18439_v60 = vmul.f32 %v26557_v34, %v26557_v34 }
0x38f6   :  { %18397 = vadd.xlane.f32.xlu0 %v18396_v43  ;;  %v18459_v56 = vsel %vm216_vm6, %v18439_v60, 0.0 }
0x38fa   :  { %18403 = vadd.xlane.f32.xlu0 %v18402_v26 }
0x38fe   :  { %18409 = vadd.xlane.f32.xlu0 %v18408_v0 }
0x3902   :  { %18415 = vadd.xlane.f32.xlu0 %v18414_v21 }
0x3906   :  { %18442 = vadd.xlane.f32.xlu0 %v18441_v62 }
0x390a   :  { %18448 = vadd.xlane.f32.xlu0 %v18447_v6 }
0x390e   :  { %18454 = vadd.xlane.f32.xlu0 %v18453_v63 }
0x3912   :  { %18460 = vadd.xlane.f32.xlu0 %v18459_v56  ;;  %v18522_v56 = vld [vmem:[#allocation2 + $0x4b8] sm:$0xff] }
0x397f   :  { %v18126_v43 = vpop.xlane.xlu0 %18125 }
0x3980   :  { %v18127_v50 = vmul.f32 0.03125, %v18126_v43 }
0x3982   :  { %v26566_v4 = vsub.f32 %v18121_v28, %v18127_v50 }
0x3983   :  { %v18398_v9 = vpop.xlane.xlu0 %18397 }
0x3984   :  { %v18418_v48 = vmul.f32 0.03125, %v18398_v9  ;;  %v18129_v7 = vmul.f32 %v26566_v4, %v26566_v4 }
0x3986   :  { %v26570_v26 = vsub.f32 %v18384_v10, %v18418_v48  ;;  %v18130_v8 = vsel %vm216_vm6, %v18129_v7, 0.0 }
0x3987   :  { %18131 = vadd.xlane.f32.xlu1 %v18130_v8  ;;  %v18404_v15 = vpop.xlane.xlu0 %18403 }
0x3988   :  { %v18420_v27 = vmul.f32 0.03125, %v18404_v15  ;;  %v18434_v0 = vmul.f32 %v26570_v26, %v26570_v26 }
0x398a   :  { %v26575_v45 = vsub.f32 %v18386_v14, %v18420_v27  ;;  %v18444_v28 = vsel %vm216_vm6, %v18434_v0, 0.0 }
0x398b   :  { %18445 = vadd.xlane.f32.xlu1 %v18444_v28  ;;  %v18410_v21 = vpop.xlane.xlu0 %18409 }
0x398c   :  { %v18422_v2 = vmul.f32 0.03125, %v18410_v21  ;;  %v18436_v49 = vmul.f32 %v26575_v45, %v26575_v45 }
0x398e   :  { %v26580_v10 = vsub.f32 %v18388_v39, %v18422_v2  ;;  %v18450_v38 = vsel %vm216_vm6, %v18436_v49, 0.0  ;;  %v18521_v39 = vld [vmem:[#allocation2 + $0x4b0] sm:$0xff] }
0x398f   :  { %18451 = vadd.xlane.f32.xlu1 %v18450_v38  ;;  %v18416_v62 = vpop.xlane.xlu0 %18415  ;;  %v22855_v43 = vpack.c.bf16 %v18522_v56, %v18521_v39 }
0x3990   :  { %v18424_v57 = vmul.f32 0.03125, %v18416_v62  ;;  %v18438_v6 = vmul.f32 %v26580_v10, %v26580_v10 }
0x3991   :  { %22856 = vmatprep.subr.bf16.mxu1 %v22855_v43 }
0x3992   :  { %v26585_v14 = vsub.f32 %v18390_v46, %v18424_v57  ;;  %v18456_v33 = vsel %vm216_vm6, %v18438_v6, 0.0 }
0x3993   :  { %18457 = vadd.xlane.f32.xlu1 %v18456_v33  ;;  %v18443_v50 = vpop.xlane.xlu0 %18442 }
0x3994   :  { %v18440_v63 = vmul.f32 %v26585_v14, %v26585_v14  ;;  %v18465_v9 = vmul.f32 0.03125, %v18443_v50 }
0x3996   :  { %v18462_v60 = vsel %vm216_vm6, %v18440_v63, 0.0  ;;  %v18473_v7 = vadd.f32 1e-05, %v18465_v9 }
0x3997   :  { %18463 = vadd.xlane.f32.xlu1 %v18462_v60  ;;  %v18449_v48 = vpop.xlane.xlu0 %18448 }
0x3998   :  { %23453 = vrsqrt.f32 %v18473_v7  ;;  %v18467_v27 = vmul.f32 0.03125, %v18449_v48 }
0x399a   :  { %v18475_v2 = vadd.f32 1e-05, %v18467_v27  ;;  %v20404_v27 = vld [vmem:[#allocation2 + $0x4a0] ss:$0 sm:$0xff] }
0x399b   :  { %v18455_v46 = vpop.xlane.xlu0 %18454 }
0x399c   :  { %v18469_v49 = vmul.f32 0.03125, %v18455_v46 }
0x399e   :  { %v18477_v33 = vadd.f32 1e-05, %v18469_v49 }
0x399f   :  { %v18461_v38 = vpop.xlane.xlu0 %18460 }
0x39a0   :  { %v18471_v63 = vmul.f32 0.03125, %v18461_v38 }
0x39a2   :  { %v23454_v39 = vpop.eup %23453  ;;  %v18479_v9 = vadd.f32 1e-05, %v18471_v63 }
0x3a14   :  { %v18132_v8 = vpop.xlane.xlu1 %18131 }
0x3a15   :  { %v18133_v15 = vmul.f32 0.03125, %v18132_v8  ;;  %v18489_v8 = vmul.f32 %v23454_v39, %v26543_v22 }
0x3a17   :  { %v18134_v0 = vadd.f32 1e-05, %v18133_v15  ;;  %v18501_v38 = vmul.f32 %v20404_v27, %v18489_v8 }
0x3a18   :  { %v18446_v28 = vpop.xlane.xlu1 %18445 }
0x3a19   :  { %23455 = vrsqrt.f32 %v18134_v0  ;;  %v18466_v21 = vmul.f32 0.03125, %v18446_v28  ;;  %v23505_v28 = vld [vmem:[#allocation2 + $0x340] ss:$0 sm:$0xff] }
0x3a1b   :  { %v18474_v62 = vadd.f32 1e-05, %v18466_v21 }
0x3a1c   :  { %v18452_v57 = vpop.xlane.xlu1 %18451 }
0x3a1d   :  { %23457 = vrsqrt.f32 %v18474_v62  ;;  %v18468_v6 = vmul.f32 0.03125, %v18452_v57  ;;  %v18523_v62 = vld [vmem:[#allocation2 + $0x4c0] sm:$0xff]  ;;  %v18524_v57 = vld [vmem:[#allocation2 + $0x4c8] sm:$0xff] }
0x3a1e   :  { %23459 = vrsqrt.f32 %v18475_v2  ;;  %v22859_v39 = vpack.c.bf16 %v18524_v57, %v18523_v62 }
0x3a1f   :  { %v18476_v60 = vadd.f32 1e-05, %v18468_v6 }
0x3a20   :  { %v18458_v56 = vpop.xlane.xlu1 %18457 }
0x3a21   :  { %23461 = vrsqrt.f32 %v18476_v60  ;;  %v18470_v50 = vmul.f32 0.03125, %v18458_v56  ;;  %v20405_v60 = vld [vmem:[#allocation2 + $0x4a8] ss:$0 sm:$0xff] }
0x3a22   :  { %23463 = vrsqrt.f32 %v18477_v33  ;;  %v23506_v33 = vld [vmem:[#allocation2 + $0x348] ss:$0 sm:$0xff] }
0x3a23   :  { %v23456_v48 = vpop.eup %23455  ;;  %v18478_v7 = vadd.f32 1e-05, %v18470_v50  ;;  %v26594_v50 = vadd.f32 %v20405_v60, %v18501_v38 }
0x3a24   :  { %v18136_v46 = vmul.f32 %v23456_v48, %v26566_v4  ;;  %v18464_v15 = vpop.xlane.xlu1 %18463 }
0x3a25   :  { %23465 = vrsqrt.f32 %v18478_v7  ;;  %v18472_v0 = vmul.f32 0.03125, %v18464_v15 }
0x3a26   :  { %23467 = vrsqrt.f32 %v18479_v9  ;;  %v18137_v21 = vmul.f32 %v23505_v28, %v18136_v46 }
0x3a27   :  { %v23458_v2 = vpop.eup %23457  ;;  %v18480_v49 = vadd.f32 1e-05, %v18472_v0 }
0x3a28   :  { %v23460_v6 = vpop.eup %23459  ;;  %v18138_v63 = vadd.f32 %v23506_v33, %v18137_v21  ;;  %v18490_v22 = vmul.f32 %v23458_v2, %v26570_v26  ;;  %v18667_v33 = vld [vmem:[#allocation2 + $0x4d8] sm:$0xff] }
0x3a29   :  { %23469 = vrsqrt.f32 %v18480_v49  ;;  %v18491_v9 = vmul.f32 %v23460_v6, %v26547_v47  ;;  %22532 = vmatprep.subr.mxu0 %v18667_v33 }
0x3a2a   :  { %v18139_v4 = vmax.f32 %v18138_v63, 0.0  ;;  %v18502_v7 = vmul.f32 %v20404_v27, %v18490_v22  ;;  %22533 = vmatpush3.msra.mxu0 %v18667_v33 }
0x3a2b   :  { %v23462_v56 = vpop.eup %23461  ;;  %v18503_v26 = vmul.f32 %v20404_v27, %v18491_v9  ;;  %22872 = vmatprep.subr.bf16.mxu0 %v26015_v30 }
0x3a2c   :  { %v23464_v48 = vpop.eup %23463  ;;  %22499 = vmatmul.mubr.msk.f32.vlgmr.msra.gmra.mrb[210].mxu1 %vm216_vm6, %v18139_v4  ;;  %v18492_v8 = vmul.f32 %v23462_v56, %v26575_v45  ;;  %v26602_v28 = vadd.f32 %v20405_v60, %v18502_v7  ;;  %v20406_v4 = vld [vmem:[#allocation2 + $0x4d0] ss:$0 sm:$0xff] }
0x3a2d   :  { %22858 = vmatpush3.bf16.msra.mxu1 %v22855_v43  ;;  %22520 = vmatprep.mubr.msk.f32.mxu1 %vm216_vm6, %v26594_v50  ;;  %v18493_v15 = vmul.f32 %v23464_v48, %v26552_v19  ;;  %v26606_v2 = vadd.f32 %v20405_v60, %v18503_v26 }
0x3a2e   :  { %22860 = vmatprep.subr.bf16.mxu1 %v22859_v39  ;;  %v18504_v47 = vmul.f32 %v20404_v27, %v18492_v8 }
0x3a2f   :  { %v23466_v46 = vpop.eup %23465  ;;  %v18505_v49 = vmul.f32 %v20404_v27, %v18493_v15 }
0x3a30   :  { %v23468_v0 = vpop.eup %23467  ;;  %v18494_v21 = vmul.f32 %v23466_v46, %v26580_v10  ;;  %v26614_v19 = vadd.f32 %v20405_v60, %v18504_v47 }
0x3a31   :  { %22862 = vmatpush3.bf16.msra.mxu1 %v22859_v39  ;;  %v18495_v38 = vmul.f32 %v23468_v0, %v26557_v34  ;;  %v26618_v62 = vadd.f32 %v20405_v60, %v18505_v49 }
0x3a32   :  { %22864 = vmatprep.subr.bf16.mxu1 %v25991_v41  ;;  %v18506_v45 = vmul.f32 %v20404_v27, %v18494_v21 }
0x3a33   :  { %v23470_v43 = vpop.eup %23469  ;;  %v18507_v57 = vmul.f32 %v20404_v27, %v18495_v38 }
0x3a34   :  { %22521 = vmatmul.mubr.msk.f32.vlgmr.msra.gmra.mrb[212].mxu1 %vm216_vm6, %v26602_v28  ;;  %v18496_v10 = vmul.f32 %v23470_v43, %v26585_v14  ;;  %v26625_v34 = vadd.f32 %v20405_v60, %v18506_v45 }
0x3a35   :  { %22523 = vmatprep.mubr.msk.f32.mxu1 %vm216_vm6, %v26606_v2  ;;  %22866 = vmatpush3.bf16.msra.mxu1 %v25991_v41  ;;  %v26628_v6 = vadd.f32 %v20405_v60, %v18507_v57 }
0x3a36   :  { %22868 = vmatprep.subr.bf16.mxu1 %v25993_v20  ;;  %v18508_v41 = vmul.f32 %v20404_v27, %v18496_v10  ;;  %v23507_v27 = vld [vmem:[#allocation2 + $0x370] ss:$0 sm:$0xff] }
0x3a38   :  { %22524 = vmatmul.mubr.msk.f32.gmra.mrb[214].mxu1 %vm216_vm6, %v26614_v19  ;;  %v26634_v14 = vadd.f32 %v20405_v60, %v18508_v41 }
0x3a39   :  { %22526 = vmatprep.mubr.msk.f32.mxu1 %vm216_vm6, %v26618_v62  ;;  %22870 = vmatpush3.bf16.msra.mxu1 %v25993_v20 }
0x3a3a   :  { %22880 = vmatprep.subr.bf16.mxu1 %v26023_v18 }
0x3a3c   :  { %22527 = vmatmul.mubr.msk.f32.gmra.mrb[216].mxu1 %vm216_vm6, %v26625_v34 }
0x3a3d   :  { %22529 = vmatprep.mubr.msk.f32.mxu1 %vm216_vm6, %v26628_v6 }
0x3a40   :  { %22530 = vmatmul.mubr.msk.f32.gmra.mrb[218].mxu1 %vm216_vm6, %v26634_v14 }
0x3aff   :  { %v18209_v20 = vpop.f32.mrb[210].mxu1 }
0x3b00   :  { %v18210_v63 = vadd.f32 %v23507_v27, %v18209_v20  ;;  %v22500_v22 = vpop.f32.mrb[211].mxu1 }
0x3b02   :  { %18213 = vst.msk [vmem:[%s27029_s7 + $0x18] sm:$0xff] %vm216_vm6, %v18210_v63  ;;  %v20415_v63 = vld [vmem:[#allocation2 + $0x4e0] ss:$0 sm:$0xff] }
0x3b07   :  { %v22522_v60 = vpop.f32.mrb[212].mxu1 }
0x3b08   :  { %v18626_v39 = vadd.f32 %v22522_v60, %v20406_v4  ;;  %v18620_v56 = vpop.f32.mrb[213].mxu1 }
0x3b09   :  { %v18621_v9 = vadd.f32 %v20406_v4, %v18620_v56 }
0x3b0a   :  { %v18660_v8 = vmax.f32 %v18626_v39, 0.0 }
0x3b0b   :  { %v18659_v48 = vmax.f32 %v18621_v9, 0.0  ;;  %v22525_v7 = vpop.f32.mrb[214].mxu1 }
0x3b0c   :  { %v18636_v46 = vadd.f32 %v22525_v7, %v20406_v4  ;;  %v18630_v26 = vpop.f32.mrb[215].mxu1 }
0x3b0d   :  { %v18631_v15 = vadd.f32 %v20406_v4, %v18630_v26  ;;  %22534 = vmatprep.mubr.msk.f32.mxu0 %vm142_vm3, %v18659_v48 }
0x3b0e   :  { %22535 = vmatmul.mubr.msk.f32.vlgmr.msra.gmra.mrb[12].mxu0 %vm142_vm3, %v18660_v8  ;;  %v18662_v21 = vmax.f32 %v18636_v46, 0.0 }
0x3b0f   :  { %v18661_v0 = vmax.f32 %v18631_v15, 0.0  ;;  %v22528_v47 = vpop.f32.mrb[216].mxu1  ;;  %22874 = vmatpush3.bf16.msra.mxu0 %v26015_v30 }
0x3b10   :  { %v18646_v43 = vadd.f32 %v22528_v47, %v20406_v4  ;;  %v18640_v49 = vpop.f32.mrb[217].mxu1  ;;  %22876 = vmatprep.subr.bf16.mxu0 %v26019_v44 }
0x3b11   :  { %v18641_v38 = vadd.f32 %v20406_v4, %v18640_v49  ;;  %22537 = vmatprep.mubr.msk.f32.mxu0 %vm142_vm3, %v18661_v0 }
0x3b12   :  { %22538 = vmatmul.mubr.msk.f32.gmra.mrb[14].mxu0 %vm142_vm3, %v18662_v21  ;;  %v18664_v57 = vmax.f32 %v18646_v43, 0.0 }
0x3b13   :  { %v18663_v45 = vmax.f32 %v18641_v38, 0.0  ;;  %v22531_v10 = vpop.f32.mrb[218].mxu1  ;;  %22878 = vmatpush3.bf16.msra.mxu0 %v26019_v44 }
0x3b14   :  { %v18656_v41 = vadd.f32 %v22531_v10, %v20406_v4  ;;  %v18650_v33 = vpop.f32.mrb[219].mxu1  ;;  %22888 = vmatprep.subr.bf16.mxu0 %v26025_v51 }
0x3b15   :  { %v18651_v30 = vadd.f32 %v20406_v4, %v18650_v33  ;;  %22540 = vmatprep.mubr.msk.f32.mxu0 %vm142_vm3, %v18663_v45 }
0x3b16   :  { %22541 = vmatmul.mubr.msk.f32.gmra.mrb[16].mxu0 %vm142_vm3, %v18664_v57  ;;  %v18666_v27 = vmax.f32 %v18656_v41, 0.0 }
0x3b17   :  { %v18665_v20 = vmax.f32 %v18651_v30, 0.0 }
0x3b19   :  { %22543 = vmatprep.mubr.msk.f32.mxu0 %vm142_vm3, %v18665_v20 }
0x3b1a   :  { %22544 = vmatmul.mubr.msk.f32.gmra.mrb[18].mxu0 %vm142_vm3, %v18666_v27 }
0x3be1   :  { %v22536_v22 = vpop.f32.mrb[12].mxu0 }
0x3be2   :  { %v18769_v60 = vadd.f32 %v22536_v22, %v20415_v63  ;;  %v18763_v44 = vpop.f32.mrb[13].mxu0 }
0x3be3   :  { %v18764_v39 = vadd.f32 %v20415_v63, %v18763_v44 }
0x3be4   :  { %v18803_v56 = vadd.f32 %v18769_v60, %v26602_v28 }
0x3be5   :  { %v18802_v9 = vadd.f32 %v18764_v39, %v26594_v50  ;;  %v22539_v4 = vpop.f32.mrb[14].mxu0 }
0x3be6   :  { %v18779_v48 = vadd.f32 %v22539_v4, %v20415_v63  ;;  %v18773_v7 = vpop.f32.mrb[15].mxu0  ;;  %v18815_v8 = vsel %vm216_vm6, %v18803_v56, 0.0 }
0x3be7   :  { %v18774_v46 = vadd.f32 %v20415_v63, %v18773_v7  ;;  %18816 = vadd.xlane.f32.xlu1 %v18815_v8  ;;  %v18812_v26 = vsel %vm216_vm6, %v18802_v9, 0.0 }
0x3be8   :  { %v18805_v15 = vadd.f32 %v18779_v48, %v26614_v19  ;;  %18813 = vadd.xlane.f32.xlu0 %v18812_v26 }
0x3be9   :  { %v18804_v0 = vadd.f32 %v18774_v46, %v26606_v2  ;;  %v22542_v47 = vpop.f32.mrb[16].mxu0 }
0x3bea   :  { %v18789_v21 = vadd.f32 %v22542_v47, %v20415_v63  ;;  %v18783_v43 = vpop.f32.mrb[17].mxu0  ;;  %v18821_v28 = vsel %vm216_vm6, %v18805_v15, 0.0 }
0x3beb   :  { %v18784_v50 = vadd.f32 %v20415_v63, %v18783_v43  ;;  %18822 = vadd.xlane.f32.xlu1 %v18821_v28  ;;  %v18818_v49 = vsel %vm216_vm6, %v18804_v0, 0.0 }
0x3bec   :  { %v18807_v38 = vadd.f32 %v18789_v21, %v26625_v34  ;;  %18819 = vadd.xlane.f32.xlu0 %v18818_v49 }
0x3bed   :  { %v18806_v45 = vadd.f32 %v18784_v50, %v26618_v62  ;;  %v22545_v10 = vpop.f32.mrb[18].mxu0 }
0x3bee   :  { %v18799_v57 = vadd.f32 %v22545_v10, %v20415_v63  ;;  %v18793_v19 = vpop.f32.mrb[19].mxu0  ;;  %v18827_v41 = vsel %vm216_vm6, %v18807_v38, 0.0 }
0x3bef   :  { %v18794_v2 = vadd.f32 %v20415_v63, %v18793_v19  ;;  %18828 = vadd.xlane.f32.xlu1 %v18827_v41  ;;  %v18824_v33 = vsel %vm216_vm6, %v18806_v45, 0.0 }
0x3bf0   :  { %v18809_v30 = vadd.f32 %v18799_v57, %v26634_v14  ;;  %18825 = vadd.xlane.f32.xlu0 %v18824_v33 }
0x3bf1   :  { %v18808_v20 = vadd.f32 %v18794_v2, %v26628_v6 }
0x3bf2   :  { %v18833_v27 = vsel %vm216_vm6, %v18809_v30, 0.0 }
0x3bf3   :  { %18834 = vadd.xlane.f32.xlu1 %v18833_v27  ;;  %v18830_v34 = vsel %vm216_vm6, %v18808_v20, 0.0 }
0x3bf4   :  { %18831 = vadd.xlane.f32.xlu0 %v18830_v34 }
0x3c74   :  { %v18817_v62 = vpop.xlane.xlu1 %18816 }
0x3c75   :  { %v18837_v22 = vmul.f32 0.03125, %v18817_v62  ;;  %v18814_v60 = vpop.xlane.xlu0 %18813 }
0x3c76   :  { %v18836_v44 = vmul.f32 0.03125, %v18814_v60 }
0x3c77   :  { %v26671_v39 = vsub.f32 %v18803_v56, %v18837_v22 }
0x3c78   :  { %v26673_v63 = vsub.f32 %v18802_v9, %v18836_v44  ;;  %v18823_v4 = vpop.xlane.xlu1 %18822 }
0x3c79   :  { %v18839_v48 = vmul.f32 0.03125, %v18823_v4  ;;  %v18820_v14 = vpop.xlane.xlu0 %18819  ;;  %v18853_v6 = vmul.f32 %v26671_v39, %v26671_v39 }
0x3c7a   :  { %v18838_v7 = vmul.f32 0.03125, %v18820_v14  ;;  %v18852_v8 = vmul.f32 %v26673_v63, %v26673_v63 }
0x3c7b   :  { %v26679_v46 = vsub.f32 %v18805_v15, %v18839_v48  ;;  %v18863_v26 = vsel %vm216_vm6, %v18853_v6, 0.0 }
0x3c7c   :  { %v26682_v47 = vsub.f32 %v18804_v0, %v18838_v7  ;;  %v18829_v56 = vpop.xlane.xlu1 %18828  ;;  %18864 = vadd.xlane.f32.xlu1 %v18863_v26  ;;  %v18860_v9 = vsel %vm216_vm6, %v18852_v8, 0.0 }
0x3c7d   :  { %v18841_v21 = vmul.f32 0.03125, %v18829_v56  ;;  %18861 = vadd.xlane.f32.xlu0 %v18860_v9  ;;  %v18826_v43 = vpop.xlane.xlu0 %18825  ;;  %v18855_v28 = vmul.f32 %v26679_v46, %v26679_v46 }
0x3c7e   :  { %v18840_v50 = vmul.f32 0.03125, %v18826_v43  ;;  %v18854_v49 = vmul.f32 %v26682_v47, %v26682_v47 }
0x3c7f   :  { %v26689_v15 = vsub.f32 %v18807_v38, %v18841_v21  ;;  %v18869_v10 = vsel %vm216_vm6, %v18855_v28, 0.0 }
0x3c80   :  { %v26692_v0 = vsub.f32 %v18806_v45, %v18840_v50  ;;  %18870 = vadd.xlane.f32.xlu1 %v18869_v10  ;;  %v18835_v57 = vpop.xlane.xlu1 %18834  ;;  %v18866_v19 = vsel %vm216_vm6, %v18854_v49, 0.0 }
0x3c81   :  { %v18843_v41 = vmul.f32 0.03125, %v18835_v57  ;;  %18867 = vadd.xlane.f32.xlu0 %v18866_v19  ;;  %v18832_v2 = vpop.xlane.xlu0 %18831  ;;  %v18857_v33 = vmul.f32 %v26689_v15, %v26689_v15 }
0x3c82   :  { %v18842_v27 = vmul.f32 0.03125, %v18832_v2  ;;  %v18856_v34 = vmul.f32 %v26692_v0, %v26692_v0 }
0x3c83   :  { %v26699_v38 = vsub.f32 %v18809_v30, %v18843_v41  ;;  %v18875_v62 = vsel %vm216_vm6, %v18857_v33, 0.0 }
0x3c84   :  { %v26702_v45 = vsub.f32 %v18808_v20, %v18842_v27  ;;  %18876 = vadd.xlane.f32.xlu1 %v18875_v62  ;;  %v18872_v22 = vsel %vm216_vm6, %v18856_v34, 0.0 }
0x3c85   :  { %18873 = vadd.xlane.f32.xlu0 %v18872_v22  ;;  %v18859_v60 = vmul.f32 %v26699_v38, %v26699_v38  ;;  %v20424_v22 = vld [vmem:[#allocation2 + $0x4e8] ss:$0 sm:$0xff] }
0x3c86   :  { %v18858_v44 = vmul.f32 %v26702_v45, %v26702_v45 }
0x3c87   :  { %v18881_v4 = vsel %vm216_vm6, %v18859_v60, 0.0 }
0x3c88   :  { %18882 = vadd.xlane.f32.xlu1 %v18881_v4  ;;  %v18878_v30 = vsel %vm216_vm6, %v18858_v44, 0.0 }
0x3c89   :  { %18879 = vadd.xlane.f32.xlu0 %v18878_v30 }
0x3d09   :  { %v18865_v48 = vpop.xlane.xlu1 %18864 }
0x3d0a   :  { %v18885_v14 = vmul.f32 0.03125, %v18865_v48  ;;  %v18862_v20 = vpop.xlane.xlu0 %18861 }
0x3d0b   :  { %v18884_v6 = vmul.f32 0.03125, %v18862_v20 }
0x3d0c   :  { %v18893_v7 = vadd.f32 1e-05, %v18885_v14  ;;  %v20425_v14 = vld [vmem:[#allocation2 + $0x4f0] ss:$0 sm:$0xff] }
0x3d0d   :  { %v18892_v8 = vadd.f32 1e-05, %v18884_v6  ;;  %v18871_v26 = vpop.xlane.xlu1 %18870 }
0x3d0e   :  { %23471 = vrsqrt.f32 %v18893_v7  ;;  %v18887_v56 = vmul.f32 0.03125, %v18871_v26  ;;  %v18868_v9 = vpop.xlane.xlu0 %18867 }
0x3d0f   :  { %23473 = vrsqrt.f32 %v18892_v8  ;;  %v18886_v21 = vmul.f32 0.03125, %v18868_v9 }
0x3d10   :  { %v18895_v43 = vadd.f32 1e-05, %v18887_v56 }
0x3d11   :  { %v18894_v28 = vadd.f32 1e-05, %v18886_v21  ;;  %v18877_v50 = vpop.xlane.xlu1 %18876 }
0x3d12   :  { %23475 = vrsqrt.f32 %v18895_v43  ;;  %v18889_v49 = vmul.f32 0.03125, %v18877_v50  ;;  %v18874_v10 = vpop.xlane.xlu0 %18873 }
0x3d13   :  { %23477 = vrsqrt.f32 %v18894_v28  ;;  %v18888_v57 = vmul.f32 0.03125, %v18874_v10 }
0x3d14   :  { %v18897_v19 = vadd.f32 1e-05, %v18889_v49 }
0x3d15   :  { %v18896_v41 = vadd.f32 1e-05, %v18888_v57  ;;  %v18883_v2 = vpop.xlane.xlu1 %18882 }
0x3d16   :  { %23479 = vrsqrt.f32 %v18897_v19  ;;  %v18891_v33 = vmul.f32 0.03125, %v18883_v2  ;;  %v18880_v27 = vpop.xlane.xlu0 %18879 }
0x3d17   :  { %23481 = vrsqrt.f32 %v18896_v41  ;;  %v18890_v34 = vmul.f32 0.03125, %v18880_v27  ;;  %v26726_v27 = vld [vmem:[#allocation2 + $0x308] sm:$0xff] }
0x3d18   :  { %v23472_v62 = vpop.eup %23471  ;;  %v18899_v60 = vadd.f32 1e-05, %v18891_v33 }
0x3d19   :  { %v23474_v44 = vpop.eup %23473  ;;  %v18909_v4 = vmul.f32 %v23472_v62, %v26671_v39  ;;  %v18898_v30 = vadd.f32 1e-05, %v18890_v34 }
0x3d1a   :  { %23483 = vrsqrt.f32 %v18899_v60  ;;  %v18908_v48 = vmul.f32 %v23474_v44, %v26673_v63 }
0x3d1b   :  { %v18921_v20 = vmul.f32 %v20424_v22, %v18909_v4  ;;  %23485 = vrsqrt.f32 %v18898_v30  ;;  %v23509_v4 = vld [vmem:[#allocation2 + $0x278] ss:$0 sm:$0xff] }
0x3d1c   :  { %v23476_v6 = vpop.eup %23475  ;;  %v18920_v7 = vmul.f32 %v20424_v22, %v18908_v48 }
0x3d1d   :  { %v23478_v8 = vpop.eup %23477  ;;  %v18911_v26 = vmul.f32 %v23476_v6, %v26679_v46  ;;  %v18933_v21 = vadd.f32 %v20425_v14, %v18921_v20 }
0x3d1e   :  { %v18932_v56 = vadd.f32 %v20425_v14, %v18920_v7  ;;  %v18910_v9 = vmul.f32 %v23478_v8, %v26682_v47 }
0x3d1f   :  { %v18923_v43 = vmul.f32 %v20424_v22, %v18911_v26 }
0x3d20   :  { %v23480_v28 = vpop.eup %23479  ;;  %22554 = vmatprep.mubr.msk.f32.mxu1 %vm216_vm6, %v18932_v56  ;;  %v18922_v39 = vmul.f32 %v20424_v22, %v18910_v9 }
0x3d21   :  { %v23482_v50 = vpop.eup %23481  ;;  %22555 = vmatmul.mubr.msk.f32.vlgmr.msra.gmra.mrb[220].mxu1 %vm216_vm6, %v18933_v21  ;;  %v18913_v63 = vmul.f32 %v23480_v28, %v26689_v15  ;;  %v18935_v46 = vadd.f32 %v20425_v14, %v18923_v43 }
0x3d22   :  { %v18934_v49 = vadd.f32 %v20425_v14, %v18922_v39  ;;  %v18912_v10 = vmul.f32 %v23482_v50, %v26692_v0  ;;  %22882 = vmatpush3.bf16.msra.mxu1 %v26023_v18 }
0x3d23   :  { %v18925_v57 = vmul.f32 %v20424_v22, %v18913_v63  ;;  %22884 = vmatprep.subr.bf16.mxu1 %v26047_v17 }
0x3d24   :  { %v23484_v47 = vpop.eup %23483  ;;  %22557 = vmatprep.mubr.msk.f32.mxu1 %vm216_vm6, %v18934_v49  ;;  %v18924_v19 = vmul.f32 %v20424_v22, %v18912_v10 }
0x3d25   :  { %v23486_v41 = vpop.eup %23485  ;;  %22558 = vmatmul.mubr.msk.f32.gmra.mrb[222].mxu1 %vm216_vm6, %v18935_v46  ;;  %v18915_v2 = vmul.f32 %v23484_v47, %v26699_v38  ;;  %v18937_v0 = vadd.f32 %v20425_v14, %v18925_v57 }
0x3d26   :  { %v18936_v33 = vadd.f32 %v20425_v14, %v18924_v19  ;;  %v18914_v15 = vmul.f32 %v23486_v41, %v26702_v45  ;;  %22886 = vmatpush3.bf16.msra.mxu1 %v26047_v17 }
0x3d27   :  { %v18927_v18 = vmul.f32 %v20424_v22, %v18915_v2  ;;  %22626 = vmatprep.subr.mxu1 %v26726_v27 }
0x3d28   :  { %22560 = vmatprep.mubr.msk.f32.mxu1 %vm216_vm6, %v18936_v33  ;;  %v18926_v34 = vmul.f32 %v20424_v22, %v18914_v15 }
0x3d29   :  { %22561 = vmatmul.mubr.msk.f32.gmra.mrb[224].mxu1 %vm216_vm6, %v18937_v0  ;;  %v18939_v60 = vadd.f32 %v20425_v14, %v18927_v18 }
0x3d2a   :  { %v18938_v62 = vadd.f32 %v20425_v14, %v18926_v34 }
0x3d2c   :  { %22563 = vmatprep.mubr.msk.f32.mxu1 %vm216_vm6, %v18938_v62 }
0x3d2d   :  { %22564 = vmatmul.mubr.msk.f32.gmra.mrb[226].mxu1 %vm216_vm6, %v18939_v60 }
0x3df4   :  { %v22556_v38 = vpop.f32.mrb[220].mxu1 }
0x3df5   :  { %v19036_v17 = vadd.f32 %v22556_v38, %v25917_v24  ;;  %v19030_v45 = vpop.f32.mrb[221].mxu1 }
0x3df6   :  { %v19031_v44 = vadd.f32 %v19030_v45, %v25919_v23 }
0x3df7   :  { %v19070_v30 = vadd.f32 %v23509_v4, %v19036_v17 }
0x3df8   :  { %v19069_v48 = vadd.f32 %v23509_v4, %v19031_v44  ;;  %v22559_v20 = vpop.f32.mrb[222].mxu1  ;;  %v23512_v44 = vld [vmem:[#allocation2 + $0x300] ss:$0 sm:$0xff] }
0x3df9   :  { %v19046_v22 = vadd.f32 %v22559_v20, %v25923_v61  ;;  %v19040_v6 = vpop.f32.mrb[223].mxu1  ;;  %v19078_v8 = vmax.f32 %v19070_v30, 0.0 }
0x3dfa   :  { %v19077_v7 = vmax.f32 %v19069_v48, 0.0  ;;  %v19041_v14 = vadd.f32 %v19040_v6, %v25925_v12 }
0x3dfb   :  { %v19072_v26 = vadd.f32 %v23509_v4, %v19046_v22 }
0x3dfc   :  { %v19071_v56 = vadd.f32 %v23509_v4, %v19041_v14  ;;  %v22562_v9 = vpop.f32.mrb[224].mxu1  ;;  %22574 = vmatprep.mubr.msk.f32.mxu0 %vm216_vm6, %v19077_v7 }
0x3dfd   :  { %v19056_v24 = vadd.f32 %v22562_v9, %v25927_v5  ;;  %v19050_v21 = vpop.f32.mrb[225].mxu1  ;;  %22575 = vmatmul.mubr.msk.f32.vlgmr.msra.gmra.mrb[20].mxu0 %vm216_vm6, %v19078_v8  ;;  %v19080_v61 = vmax.f32 %v19072_v26, 0.0 }
0x3dfe   :  { %v19079_v23 = vmax.f32 %v19071_v56, 0.0  ;;  %v19051_v43 = vadd.f32 %v19050_v21, %v25929_v42  ;;  %22890 = vmatpush3.bf16.msra.mxu0 %v26025_v51 }
0x3dff   :  { %v19074_v28 = vadd.f32 %v23509_v4, %v19056_v24  ;;  %22892 = vmatprep.subr.bf16.mxu0 %v26049_v59 }
0x3e00   :  { %v19073_v12 = vadd.f32 %v23509_v4, %v19051_v43  ;;  %v22565_v39 = vpop.f32.mrb[226].mxu1  ;;  %22577 = vmatprep.mubr.msk.f32.mxu0 %vm216_vm6, %v19079_v23 }
0x3e01   :  { %v19066_v50 = vadd.f32 %v22565_v39, %v25931_v40  ;;  %v19060_v63 = vpop.f32.mrb[227].mxu1  ;;  %22578 = vmatmul.mubr.msk.f32.gmra.mrb[22].mxu0 %vm216_vm6, %v19080_v61  ;;  %v19082_v42 = vmax.f32 %v19074_v28, 0.0 }
0x3e02   :  { %v19081_v5 = vmax.f32 %v19073_v12, 0.0  ;;  %v19061_v49 = vadd.f32 %v19060_v63, %v25933_v13  ;;  %22894 = vmatpush3.bf16.msra.mxu0 %v26049_v59  ;;  %v23510_v13 = vld [vmem:[#allocation2 + $0x2a0] ss:$0 sm:$0xff] }
0x3e03   :  { %v19076_v51 = vadd.f32 %v23509_v4, %v19066_v50  ;;  %22895 = vmatprep.subr.bf16.mxu0 %v27041_v35 }
0x3e04   :  { %v19075_v10 = vadd.f32 %v23509_v4, %v19061_v49  ;;  %22580 = vmatprep.mubr.msk.f32.mxu0 %vm216_vm6, %v19081_v5 }
0x3e05   :  { %22581 = vmatmul.mubr.msk.f32.gmra.mrb[24].mxu0 %vm216_vm6, %v19082_v42  ;;  %v19084_v57 = vmax.f32 %v19076_v51, 0.0 }
0x3e06   :  { %v19083_v46 = vmax.f32 %v19075_v10, 0.0 }
0x3e08   :  { %22583 = vmatprep.mubr.msk.f32.mxu0 %vm216_vm6, %v19083_v46 }
0x3e09   :  { %22584 = vmatmul.mubr.msk.f32.gmra.mrb[26].mxu0 %vm216_vm6, %v19084_v57 }
0x3ed0   :  { %v22576_v40 = vpop.f32.mrb[20].mxu0 }
0x3ed1   :  { %v19175_v47 = vpop.f32.mrb[21].mxu0  ;;  %v19181_v59 = vadd.f32 %v23510_v13, %v22576_v40 }
0x3ed2   :  { %v19176_v19 = vadd.f32 %v23510_v13, %v19175_v47 }
0x3ed4   :  { %v22579_v41 = vpop.f32.mrb[22].mxu0  ;;  %22594 = vmatprep.mubr.msk.f32.mxu1 %vm216_vm6, %v19176_v19  ;;  %22614 = vmatprep.mubr.msk.f32.mxu0 %vm216_vm6, %v19176_v19 }
0x3ed5   :  { %v19185_v2 = vpop.f32.mrb[23].mxu0  ;;  %22595 = vmatmul.mubr.msk.f32.vlgmr.msra.gmra.mrb[228].mxu1 %vm216_vm6, %v19181_v59  ;;  %22615 = vmatmul.mubr.msk.f32.vlgmr.msra.gmra.mrb[28].mxu0 %vm216_vm6, %v19181_v59  ;;  %v19191_v15 = vadd.f32 %v23510_v13, %v22579_v41 }
0x3ed6   :  { %v19186_v33 = vadd.f32 %v23510_v13, %v19185_v2  ;;  %22627 = vmatpush3.msra.mxu1 %v26726_v27  ;;  %22897 = vmatpush3.bf16.msra.mxu0 %v26138_v31 }
0x3ed7   :  { %22898 = vmatprep.subr.bf16.mxu0 %v27041_v35 }
0x3ed8   :  { %v22582_v0 = vpop.f32.mrb[24].mxu0  ;;  %22597 = vmatprep.mubr.msk.f32.mxu1 %vm216_vm6, %v19186_v33  ;;  %22617 = vmatprep.mubr.msk.f32.mxu0 %vm216_vm6, %v19186_v33 }
0x3ed9   :  { %v19195_v18 = vpop.f32.mrb[25].mxu0  ;;  %22598 = vmatmul.mubr.msk.f32.gmra.mrb[230].mxu1 %vm216_vm6, %v19191_v15  ;;  %22618 = vmatmul.mubr.msk.f32.gmra.mrb[30].mxu0 %vm216_vm6, %v19191_v15  ;;  %v19201_v62 = vadd.f32 %v23510_v13, %v22582_v0 }
0x3eda   :  { %v19196_v34 = vadd.f32 %v23510_v13, %v19195_v18  ;;  %22900 = vmatpush3.bf16.msra.mxu0 %v26141_v55  ;;  %v26777_v55 = vld [vmem:[%s27029_s7 + $0x20] sm:$0xff] }
0x3edb   :  { %22901 = vmatprep.subr.bf16.mxu0 %v27041_v35 }
0x3edc   :  { %v22585_v31 = vpop.f32.mrb[26].mxu0  ;;  %22600 = vmatprep.mubr.msk.f32.mxu1 %vm216_vm6, %v19196_v34  ;;  %22620 = vmatprep.mubr.msk.f32.mxu0 %vm216_vm6, %v19196_v34 }
0x3edd   :  { %v19205_v27 = vpop.f32.mrb[27].mxu0  ;;  %22601 = vmatmul.mubr.msk.f32.gmra.mrb[232].mxu1 %vm216_vm6, %v19201_v62  ;;  %22621 = vmatmul.mubr.msk.f32.gmra.mrb[32].mxu0 %vm216_vm6, %v19201_v62  ;;  %v19211_v38 = vadd.f32 %v23510_v13, %v22585_v31 }
0x3ede   :  { %v19206_v60 = vadd.f32 %v23510_v13, %v19205_v27  ;;  %v23513_v13 = vld [vmem:[#allocation2 + $0x310] ss:$0 sm:$0xff] }
0x3ee0   :  { %22603 = vmatprep.mubr.msk.f32.mxu1 %vm216_vm6, %v19206_v60  ;;  %22623 = vmatprep.mubr.msk.f32.mxu0 %vm216_vm6, %v19206_v60 }
0x3ee1   :  { %22604 = vmatmul.mubr.msk.f32.gmra.mrb[234].mxu1 %vm216_vm6, %v19211_v38  ;;  %22624 = vmatmul.mubr.msk.f32.gmra.mrb[34].mxu0 %vm216_vm6, %v19211_v38 }
0x3ee2   :  { %22648 = vmatprep.mubr.msk.f32.mxu0 %vm23547_vm0, %v26777_v55 }
0x3fa8   :  { %v26781_v17 = vpop.f32.mrb[228].mxu1  ;;  %v22616_v45 = vpop.f32.mrb[28].mxu0 }
0x3fa9   :  { %v19512_v4 = vadd.f32 %v23512_v44, %v22616_v45  ;;  %v26783_v30 = vpop.f32.mrb[229].mxu1  ;;  %v19506_v48 = vpop.f32.mrb[29].mxu0 }
0x3faa   :  { %v19507_v20 = vadd.f32 %v23512_v44, %v19506_v48 }
0x3fab   :  { %v19546_v14 = vmax.f32 %v19512_v4, 0.0 }
0x3fac   :  { %v19545_v22 = vmax.f32 %v19507_v20, 0.0  ;;  %v26785_v6 = vpop.f32.mrb[230].mxu1  ;;  %v22619_v7 = vpop.f32.mrb[30].mxu0 }
0x3fad   :  { %v19522_v8 = vadd.f32 %v23512_v44, %v22619_v7  ;;  %v26787_v26 = vpop.f32.mrb[231].mxu1  ;;  %v19516_v56 = vpop.f32.mrb[31].mxu0 }
0x3fae   :  { %v19517_v9 = vadd.f32 %v23512_v44, %v19516_v56  ;;  %22628 = vmatprep.mubr.msk.f32.mxu1 %vm142_vm3, %v19545_v22 }
0x3faf   :  { %22629 = vmatmul.mubr.msk.f32.vlgmr.msra.gmra.mrb[236].mxu1 %vm142_vm3, %v19546_v14  ;;  %v19548_v43 = vmax.f32 %v19522_v8, 0.0 }
0x3fb0   :  { %v19547_v24 = vmax.f32 %v19517_v9, 0.0  ;;  %v26791_v21 = vpop.f32.mrb[232].mxu1  ;;  %v22622_v23 = vpop.f32.mrb[32].mxu0 }
0x3fb1   :  { %v19532_v61 = vadd.f32 %v23512_v44, %v22622_v23  ;;  %v26793_v28 = vpop.f32.mrb[233].mxu1  ;;  %v19526_v12 = vpop.f32.mrb[33].mxu0 }
0x3fb2   :  { %v19527_v39 = vadd.f32 %v23512_v44, %v19526_v12  ;;  %22631 = vmatprep.mubr.msk.f32.mxu1 %vm142_vm3, %v19547_v24 }
0x3fb3   :  { %22632 = vmatmul.mubr.msk.f32.gmra.mrb[238].mxu1 %vm142_vm3, %v19548_v43  ;;  %v19550_v49 = vmax.f32 %v19532_v61, 0.0 }
0x3fb4   :  { %v19549_v50 = vmax.f32 %v19527_v39, 0.0  ;;  %v26797_v63 = vpop.f32.mrb[234].mxu1  ;;  %v22625_v5 = vpop.f32.mrb[34].mxu0 }
0x3fb5   :  { %v19542_v42 = vadd.f32 %v23512_v44, %v22625_v5  ;;  %v26799_v51 = vpop.f32.mrb[235].mxu1  ;;  %v19536_v10 = vpop.f32.mrb[35].mxu0  ;;  %v26820_v5 = vld [vmem:[#allocation2 + $0x2c8] ss:$0 sm:$0xff] }
0x3fb6   :  { %v19537_v46 = vadd.f32 %v23512_v44, %v19536_v10  ;;  %22634 = vmatprep.mubr.msk.f32.mxu1 %vm142_vm3, %v19549_v50  ;;  %v14723_v50 = vld [vmem:[#allocation2 + $0x2d8] sm:$0x1]  ;;  %v26826_v10 = vld [vmem:[#allocation2 + $0x2d0] ss:$0 sm:$0xff] }
0x3fb7   :  { %22635 = vmatmul.mubr.msk.f32.gmra.mrb[240].mxu1 %vm142_vm3, %v19550_v49  ;;  %v19552_v40 = vmax.f32 %v19542_v42, 0.0  ;;  %22965 = vpush %v14723_v50  ;;  %v15978_v49 = vadd.f32 %v26820_v5, %v26114_v16 }
0x3fb8   :  { %v19551_v57 = vmax.f32 %v19537_v46, 0.0  ;;  %v23514_v46 = vld [vmem:[#allocation2 + $0x338] ss:$0 sm:$0xff] }
0x3fb9   :  { %v16016_v42 = vmax.f32 %v15978_v49, 0.0 }
0x3fba   :  { %22637 = vmatprep.mubr.msk.f32.mxu1 %vm142_vm3, %v19551_v57 }
0x3fbb   :  { %22638 = vmatmul.mubr.msk.f32.gmra.mrb[242].mxu1 %vm142_vm3, %v19552_v40  ;;  %v19305_v40 = vadd.f32 %v26820_v5, %v26783_v30  ;;  %v19315_v30 = vadd.f32 %v26820_v5, %v26787_v26 }
0x3fe8   :  { %s22966_s3 = spop %22965 }
0x4082   :  { %v22630_v47 = vpop.f32.mrb[236].mxu1 }
0x4083   :  { %v19649_v19 = vadd.f32 %v23513_v13, %v22630_v47  ;;  %v19643_v59 = vpop.f32.mrb[237].mxu1 }
0x4084   :  { %v19644_v41 = vadd.f32 %v23513_v13, %v19643_v59 }
0x4085   :  { %v19683_v2 = vsel %vm216_vm6, %v19649_v19, 0.0 }
0x4086   :  { %v19682_v33 = vsel %vm216_vm6, %v19644_v41, 0.0  ;;  %v22633_v15 = vpop.f32.mrb[238].mxu1 }
0x4087   :  { %v19684_v0 = vadd.f32 %v19683_v2, %v19682_v33  ;;  %v19653_v18 = vpop.f32.mrb[239].mxu1  ;;  %v19659_v34 = vadd.f32 %v23513_v13, %v22633_v15  ;;  %v19345_v15 = vmax.f32 %v19315_v30, 0.0  ;;  %v19320_v30 = vadd.f32 %v26785_v6, %v26820_v5 }
0x4088   :  { %v19654_v62 = vadd.f32 %v23513_v13, %v19653_v18  ;;  %v15998_v18 = vadd.f32 %v26820_v5, %v26124_v29  ;;  %v17683_v29 = vadd.f32 %v26479_v11, %v26820_v5 }
0x4089   :  { %v19687_v45 = vsel %vm216_vm6, %v19659_v34, 0.0 }
0x408a   :  { %v19685_v31 = vsel %vm216_vm6, %v19654_v62, 0.0  ;;  %v22636_v27 = vpop.f32.mrb[240].mxu1  ;;  %v19353_v62 = vmul.f32 %v26826_v10, %v19345_v15 }
0x408b   :  { %v19686_v60 = vadd.f32 %v19685_v31, %v19684_v0  ;;  %v19663_v38 = vpop.f32.mrb[241].mxu1  ;;  %v19669_v44 = vadd.f32 %v23513_v13, %v22636_v27  ;;  %v16020_v31 = vmax.f32 %v15998_v18, 0.0 }
0x408c   :  { %v19664_v4 = vadd.f32 %v23513_v13, %v19663_v38 }
0x408d   :  { %v19688_v48 = vadd.f32 %v19687_v45, %v19686_v60  ;;  %v19691_v8 = vsel %vm216_vm6, %v19669_v44, 0.0  ;;  %v19325_v60 = vadd.f32 %v26820_v5, %v26793_v28  ;;  %v16032_v38 = vmul.f32 %v26826_v10, %v16020_v31 }
0x408e   :  { %v19689_v20 = vsel %vm216_vm6, %v19664_v4, 0.0  ;;  %v22639_v22 = vpop.f32.mrb[242].mxu1  ;;  %v16008_v4 = vadd.f32 %v26820_v5, %v26130_v54  ;;  %v17693_v54 = vadd.f32 %v26486_v32, %v26820_v5  ;;  %v15983_v32 = vadd.f32 %v26112_v1, %v26820_v5 }
0x408f   :  { %v19690_v7 = vadd.f32 %v19689_v20, %v19688_v48  ;;  %v19673_v14 = vpop.f32.mrb[243].mxu1  ;;  %v19679_v56 = vadd.f32 %v23513_v13, %v22639_v22  ;;  %v19347_v45 = vmax.f32 %v19325_v60, 0.0  ;;  %v17701_v48 = vmax.f32 %v17683_v29, 0.0 }
0x4090   :  { %v19674_v9 = vadd.f32 %v23513_v13, %v19673_v14  ;;  %v19343_v13 = vmax.f32 %v19305_v40, 0.0  ;;  %v16022_v22 = vmax.f32 %v16008_v4, 0.0  ;;  %v19335_v14 = vadd.f32 %v26820_v5, %v26799_v51  ;;  %v27042_v40 = vld [vmem:[#allocation9_spill] sm:$0xff] }
0x4091   :  { %v19692_v24 = vadd.f32 %v19691_v8, %v19690_v7  ;;  %v19695_v61 = vsel %vm216_vm6, %v19679_v56, 0.0  ;;  %v19355_v20 = vmul.f32 %v26826_v10, %v19347_v45  ;;  %v17709_v7 = vmul.f32 %v26826_v10, %v17701_v48  ;;  %v27046_v45 = vld [vmem:[#allocation11_spill] sm:$0xff] }
0x4092   :  { %v19693_v23 = vsel %vm216_vm6, %v19674_v9, 0.0  ;;  %v19351_v41 = vmul.f32 %v26826_v10, %v19343_v13  ;;  %v16034_v8 = vmul.f32 %v26826_v10, %v16022_v22  ;;  %v19349_v56 = vmax.f32 %v19335_v14, 0.0 }
0x4093   :  { %v19694_v43 = vadd.f32 %v19693_v23, %v19692_v24  ;;  %v17703_v24 = vmax.f32 %v17693_v54, 0.0  ;;  %v16017_v49 = vmax.f32 %v15983_v32, 0.0 }
0x4094   :  { %v19357_v23 = vmul.f32 %v26826_v10, %v19349_v56 }
0x4095   :  { %v19696_v12 = vadd.f32 %v19695_v61, %v19694_v43  ;;  %v17711_v51 = vmul.f32 %v26826_v10, %v17703_v24 }
0x4097   :  { %v19697_v39 = vadd.f32 %v19696_v12, %v25746_v36  ;;  %v17658_v36 = vadd.f32 %v26820_v5, %v26471_v53  ;;  %v15988_v53 = vadd.f32 %v26820_v5, %v26118_v37  ;;  %v17673_v37 = vadd.f32 %v26473_v58, %v26820_v5 }
0x4099   :  { %22649 = vmatmul.mubr.msk.f32.vlgmr.msra.gmra.mrb[36].mxu0 %vm216_vm6, %v19697_v39  ;;  %v17696_v57 = vmax.f32 %v17658_v36, 0.0  ;;  %v16018_v59 = vmax.f32 %v15988_v53, 0.0  ;;  %v17699_v34 = vmax.f32 %v17673_v37, 0.0  ;;  %v27043_v53 = vld [vmem:[#allocation6_spill] sm:$0xff] }
0x409a   :  { %22903 = vmatpush3.bf16.msra.mxu0 %v26239_v52  ;;  %22659 = vmatprep.mubr.msk.f32.mxu0 %vm23547_vm0, %v26777_v55  ;;  %vm16036_vm0 = vcmask 130048   ;;  %v27044_v37 = vld [vmem:[#allocation10_spill] sm:$0xff] }
0x409b   :  { %22904 = vmatprep.subr.bf16.mxu0 %v27041_v35  ;;  %v17704_v47 = vmul.f32 %v26826_v10, %v17696_v57  ;;  %v16030_v33 = vmul.f32 %v26826_v10, %v16018_v59  ;;  %v19359_v0 = vsel %vm16036_vm0, %v19351_v41, 0.0  ;;  %v17707_v27 = vmul.f32 %v26826_v10, %v17699_v34  ;;  %v27045_v34 = vld [vmem:[#allocation7_spill] sm:$0xff] }
0x409c   :  { %v19365_v58 = vsel %vm16036_vm0, %v19353_v62, 0.0  ;;  %v16049_v28 = vsel %vm16036_vm0, %v16032_v38, 0.0  ;;  %v19371_v11 = vsel %vm16036_vm0, %v19355_v20, 0.0  ;;  %v17727_v9 = vsel %vm16036_vm0, %v17709_v7, 0.0  ;;  %v27047_v20 = vld [vmem:[#allocation8_spill] sm:$0xff] }
0x409d   :  { %v17712_v2 = vsel %vm16036_vm0, %v17704_v47, 0.0  ;;  %v16043_v26 = vsel %vm16036_vm0, %v16030_v33, 0.0  ;;  %v17721_v44 = vsel %vm16036_vm0, %v17707_v27, 0.0  ;;  %v16055_v43 = vsel %vm16036_vm0, %v16034_v8, 0.0 }
0x409e   :  { %22906 = vmatpush3.bf16.msra.mxu0 %v26243_v3  ;;  %v16028_v3 = vmul.f32 %v26826_v10, %v16016_v42  ;;  %v19377_v61 = vsel %vm16036_vm0, %v19357_v23, 0.0  ;;  %v17733_v12 = vsel %vm16036_vm0, %v17711_v51, 0.0  ;;  %v17663_v42 = vadd.f32 %v26469_v25, %v26820_v5 }
0x409f   :  { %v17668_v25 = vadd.f32 %v26820_v5, %v27042_v40  ;;  %v15993_v47 = vadd.f32 %v27043_v53, %v26820_v5  ;;  %v17678_v15 = vadd.f32 %v26820_v5, %v27044_v37  ;;  %v16003_v62 = vadd.f32 %v27045_v34, %v26820_v5  ;;  %v23516_v53 = vld [vmem:[#allocation2 + $0x348] ss:$0 sm:$0xff] }
0x40a0   :  { %v16037_v19 = vsel %vm16036_vm0, %v16028_v3, 0.0  ;;  %v19310_v3 = vadd.f32 %v26781_v17, %v26820_v5  ;;  %v19340_v8 = vadd.f32 %v26797_v63, %v26820_v5 }
0x40a1   :  { %v17698_v13 = vmax.f32 %v17668_v25, 0.0  ;;  %v16019_v59 = vmax.f32 %v15993_v47, 0.0  ;;  %v16021_v27 = vmax.f32 %v16003_v62, 0.0 }
0x40a3   :  { %v17706_v41 = vmul.f32 %v26826_v10, %v17698_v13  ;;  %v16031_v33 = vmul.f32 %v26826_v10, %v16019_v59  ;;  %v16033_v29 = vmul.f32 %v26826_v10, %v16021_v27 }
0x40a5   :  { %v17718_v18 = vsel %vm16036_vm0, %v17706_v41, 0.0  ;;  %v16046_v6 = vsel %vm16036_vm0, %v16031_v33, 0.0  ;;  %v26934_v41 = vstv %s22966_s3 }
0x416c   :  { %v19767_v52 = vpop.f32.mrb[36].mxu0 }
0x416d   :  { %v26828_v55 = vadd.f32 %v23514_v46, %v19767_v52  ;;  %v22650_v35 = vpop.f32.mrb[37].mxu0  ;;  %v16029_v46 = vmul.f32 %v26826_v10, %v16017_v49 }
0x416e   :  { %v17697_v35 = vmax.f32 %v17663_v42, 0.0 }
0x416f   :  { %v19771_v16 = vsel %vm216_vm6, %v26828_v55, 0.0 }
0x4170   :  { %19772 = vadd.xlane.f32.xlu0 %v19771_v16  ;;  %v17705_v57 = vmul.f32 %v26826_v10, %v17697_v35  ;;  %v19344_v16 = vmax.f32 %v19310_v3, 0.0 }
0x4172   :  { %v17715_v17 = vsel %vm16036_vm0, %v17705_v57, 0.0 }
0x4174   :  { %16038 = vadd.xlane.f32.xlu0 %v16037_v19  ;;  %v19352_v19 = vmul.f32 %v26826_v10, %v19344_v16  ;;  %v23515_v16 = vld [vmem:[#allocation2 + $0x340] ss:$0 sm:$0xff] }
0x4178   :  { %17713 = vadd.xlane.f32.xlu0 %v17712_v2  ;;  %v19362_v2 = vsel %vm16036_vm0, %v19352_v19, 0.0 }
0x417c   :  { %19360 = vadd.xlane.f32.xlu0 %v19359_v0  ;;  %v19346_v0 = vmax.f32 %v19320_v30, 0.0 }
0x417e   :  { %v19354_v31 = vmul.f32 %v26826_v10, %v19346_v0 }
0x4180   :  { %16044 = vadd.xlane.f32.xlu0 %v16043_v26  ;;  %v17700_v26 = vmax.f32 %v17678_v15, 0.0  ;;  %v19368_v38 = vsel %vm16036_vm0, %v19354_v31, 0.0 }
0x4182   :  { %v17708_v60 = vmul.f32 %v26826_v10, %v17700_v26 }
0x4184   :  { %19366 = vadd.xlane.f32.xlu0 %v19365_v58  ;;  %v19330_v58 = vadd.f32 %v26791_v21, %v26820_v5  ;;  %v17724_v48 = vsel %vm16036_vm0, %v17708_v60, 0.0  ;;  %v16052_v21 = vsel %vm16036_vm0, %v16033_v29, 0.0 }
0x4186   :  { %v19348_v4 = vmax.f32 %v19330_v58, 0.0 }
0x4188   :  { %17722 = vadd.xlane.f32.xlu0 %v17721_v44  ;;  %v17688_v44 = vadd.f32 %v26820_v5, %v27046_v45  ;;  %v19356_v7 = vmul.f32 %v26826_v10, %v19348_v4 }
0x418a   :  { %v17702_v22 = vmax.f32 %v17688_v44, 0.0  ;;  %v19374_v54 = vsel %vm16036_vm0, %v19356_v7, 0.0 }
0x418c   :  { %16050 = vadd.xlane.f32.xlu0 %v16049_v28  ;;  %v16013_v28 = vadd.f32 %v27047_v20, %v26820_v5 }
0x418e   :  { %v16023_v14 = vmax.f32 %v16013_v28, 0.0 }
0x4190   :  { %19372 = vadd.xlane.f32.xlu0 %v19371_v11  ;;  %v17710_v11 = vmul.f32 %v26826_v10, %v17702_v22  ;;  %v16035_v56 = vmul.f32 %v26826_v10, %v16023_v14 }
0x4192   :  { %v17730_v24 = vsel %vm16036_vm0, %v17710_v11, 0.0 }
0x4194   :  { %17728 = vadd.xlane.f32.xlu0 %v17727_v9  ;;  %v19350_v9 = vmax.f32 %v19340_v8, 0.0 }
0x4196   :  { %v19358_v23 = vmul.f32 %v26826_v10, %v19350_v9 }
0x4198   :  { %16056 = vadd.xlane.f32.xlu0 %v16055_v43  ;;  %v16058_v43 = vsel %vm16036_vm0, %v16035_v56, 0.0  ;;  %v19380_v51 = vsel %vm16036_vm0, %v19358_v23, 0.0 }
0x419c   :  { %19378 = vadd.xlane.f32.xlu0 %v19377_v61 }
0x41a0   :  { %17734 = vadd.xlane.f32.xlu0 %v17733_v12 }
0x41fd   :  { %v19773_v39 = vpop.xlane.xlu0 %19772 }
0x41fe   :  { %v19774_v50 = vmul.f32 0.03125, %v19773_v39 }
0x4200   :  { %v26881_v36 = vsub.f32 %v26828_v55, %v19774_v50  ;;  %v16040_v55 = vsel %vm16036_vm0, %v16029_v46, 0.0 }
0x4201   :  { %v16039_v61 = vpop.xlane.xlu0 %16038 }
0x4202   :  { %v19776_v52 = vmul.f32 %v26881_v36, %v26881_v36  ;;  %v16065_v33 = vadd.f32 %v26934_v41, %v16039_v61 }
0x4204   :  { %v19777_v1 = vsel %vm216_vm6, %v19776_v52, 0.0 }
0x4205   :  { %19778 = vadd.xlane.f32.xlu1 %v19777_v1  ;;  %v17714_v12 = vpop.xlane.xlu0 %17713 }
0x4206   :  { %v17736_v15 = vadd.f32 %v17714_v12, %v26934_v41 }
0x4209   :  { %16041 = vadd.xlane.f32.xlu1 %v16040_v55  ;;  %v19361_v63 = vpop.xlane.xlu0 %19360 }
0x420a   :  { %v19383_v45 = vadd.f32 %v19361_v63, %v26934_v41 }
0x420d   :  { %17716 = vadd.xlane.f32.xlu1 %v17715_v17  ;;  %v16045_v5 = vpop.xlane.xlu0 %16044 }
0x420e   :  { %v16067_v60 = vadd.f32 %v26934_v41, %v16045_v5 }
0x4211   :  { %19363 = vadd.xlane.f32.xlu1 %v19362_v2  ;;  %v19367_v32 = vpop.xlane.xlu0 %19366 }
0x4212   :  { %v19385_v4 = vadd.f32 %v19367_v32, %v26934_v41 }
0x4215   :  { %17719 = vadd.xlane.f32.xlu1 %v17718_v18  ;;  %v17723_v39 = vpop.xlane.xlu0 %17722  ;;  %v27048_v18 = vld [vmem:[#allocation5_spill] sm:$0xff] }
0x4216   :  { %v16084_v27 = vrot.slane %v16065_v33, %v27048_v18  ;;  %v17755_v29 = vrot.slane %v17736_v15, %v27048_v18  ;;  %v17739_v44 = vadd.f32 %v17723_v39, %v26934_v41  ;;  %v16092_v11 = vrot.slane %v16067_v60, %v27048_v18 }
0x4217   :  { %v19402_v9 = vrot.slane %v19383_v45, %v27048_v18 }
0x4219   :  { %16047 = vadd.xlane.f32.xlu1 %v16046_v6  ;;  %v16051_v46 = vpop.xlane.xlu0 %16050 }
0x421a   :  { %v16069_v23 = vadd.f32 %v26934_v41, %v16051_v46 }
0x421d   :  { %19369 = vadd.xlane.f32.xlu1 %v19368_v38  ;;  %v26930_v10 = vpop.xlane.xlu0 %19372 }
0x4221   :  { %17725 = vadd.xlane.f32.xlu1 %v17724_v48  ;;  %v17729_v25 = vpop.xlane.xlu0 %17728 }
0x4225   :  { %16053 = vadd.xlane.f32.xlu1 %v16052_v21  ;;  %v16057_v17 = vpop.xlane.xlu0 %16056 }
0x4229   :  { %19375 = vadd.xlane.f32.xlu1 %v19374_v54  ;;  %v19379_v0 = vpop.xlane.xlu0 %19378 }
0x422d   :  { %17731 = vadd.xlane.f32.xlu1 %v17730_v24  ;;  %v17735_v20 = vpop.xlane.xlu0 %17734  ;;  %v17767_v24 = vrot.slane %v17739_v44, %v27048_v18 }
0x422e   :  { %v17743_v61 = vadd.f32 %v17735_v20, %v26934_v41 }
0x4231   :  { %16059 = vadd.xlane.f32.xlu1 %v16058_v43  ;;  %v17741_v43 = vadd.f32 %v17729_v25, %v26934_v41 }
0x4235   :  { %19381 = vadd.xlane.f32.xlu1 %v19380_v51  ;;  %v19410_v51 = vrot.slane %v19385_v4, %v27048_v18 }
0x4292   :  { %v19779_v50 = vpop.xlane.xlu1 %19778 }
0x4293   :  { %v19780_v49 = vmul.f32 0.03125, %v19779_v50 }
0x4295   :  { %v19781_v42 = vadd.f32 1e-05, %v19780_v49 }
0x4296   :  { %v16042_v52 = vpop.xlane.xlu1 %16041 }
0x4297   :  { %23487 = vrsqrt.f32 %v19781_v42  ;;  %v16066_v30 = vadd.f32 %v26934_v41, %v16042_v52 }
0x4299   :  { %v16088_v34 = vrot.slane %v16066_v30, %v27048_v18 }
0x429a   :  { %v17717_v35 = vpop.xlane.xlu1 %17716 }
0x429b   :  { %v17737_v2 = vadd.f32 %v17717_v35, %v26934_v41  ;;  %v16113_v48 = vsel %vm733_vm7, %v16088_v34, %v16084_v27  ;;  %v16100_v35 = vrot.slane %v16069_v23, %v27048_v18 }
0x429c   :  { %v16114_v12 = vsel %vm735_vm8, %v16092_v11, %v16113_v48 }
0x429d   :  { %v17759_v62 = vrot.slane %v17737_v2, %v27048_v18 }
0x429e   :  { %v19364_v3 = vpop.xlane.xlu1 %19363 }
0x429f   :  { %v19384_v26 = vadd.f32 %v19364_v3, %v26934_v41  ;;  %v17784_v28 = vsel %vm733_vm7, %v17759_v62, %v17755_v29  ;;  %v19387_v3 = vadd.f32 %v26930_v10, %v26934_v41 }
0x42a1   :  { %v23488_v1 = vpop.eup %23487  ;;  %v19406_v22 = vrot.slane %v19384_v26, %v27048_v18  ;;  %v19418_v30 = vrot.slane %v19387_v3, %v27048_v18 }
0x42a2   :  { %v19783_v57 = vmul.f32 %v23488_v1, %v26881_v36  ;;  %v17720_v40 = vpop.xlane.xlu1 %17719  ;;  %v17775_v1 = vrot.slane %v17741_v43, %v27048_v18 }
0x42a3   :  { %v17738_v37 = vadd.f32 %v17720_v40, %v26934_v41  ;;  %v19431_v63 = vsel %vm733_vm7, %v19406_v22, %v19402_v9 }
0x42a4   :  { %v19784_v55 = vmul.f32 %v23515_v16, %v19783_v57  ;;  %v16071_v57 = vadd.f32 %v26934_v41, %v16057_v17  ;;  %v19432_v40 = vsel %vm735_vm8, %v19410_v51, %v19431_v63  ;;  %v17783_v16 = vrot.slane %v17743_v61, %v27048_v18 }
0x42a5   :  { %v17763_v58 = vrot.slane %v17738_v37, %v27048_v18 }
0x42a6   :  { %v19785_v47 = vadd.f32 %v23516_v53, %v19784_v55  ;;  %v16048_v13 = vpop.xlane.xlu1 %16047  ;;  %v16108_v2 = vrot.slane %v16071_v57, %v27048_v18 }
0x42a7   :  { %v16068_v31 = vadd.f32 %v26934_v41, %v16048_v13  ;;  %v17785_v8 = vsel %vm735_vm8, %v17763_v58, %v17784_v28 }
0x42a8   :  { %v19786_v19 = vmax.f32 %v19785_v47, 0.0  ;;  %v17786_v39 = vsel %vm737_vm9, %v17767_v24, %v17785_v8 }
0x42a9   :  { %v16096_v7 = vrot.slane %v16068_v31, %v27048_v18 }
0x42aa   :  { %22660 = vmatmul.mubr.msk.f32.vlgmr.msra.gmra.mrb[38].mxu0 %vm216_vm6, %v19786_v19  ;;  %v19370_v59 = vpop.xlane.xlu1 %19369 }
0x42ab   :  { %v19386_v21 = vadd.f32 %v19370_v59, %v26934_v41  ;;  %v16115_v5 = vsel %vm737_vm9, %v16096_v7, %v16114_v12 }
0x42ac   :  { %v16116_v53 = vsel %vm739_vm10, %v16100_v35, %v16115_v5 }
0x42ad   :  { %v19414_v32 = vrot.slane %v19386_v21, %v27048_v18 }
0x42ae   :  { %v17726_v36 = vpop.xlane.xlu1 %17725 }
0x42af   :  { %v17740_v38 = vadd.f32 %v17726_v36, %v26934_v41  ;;  %v19433_v55 = vsel %vm737_vm9, %v19414_v32, %v19432_v40  ;;  %v19389_v36 = vadd.f32 %v19379_v0, %v26934_v41 }
0x42b0   :  { %v19434_v15 = vsel %vm739_vm10, %v19418_v30, %v19433_v55 }
0x42b1   :  { %v17771_v54 = vrot.slane %v17740_v38, %v27048_v18 }
0x42b2   :  { %v16054_v6 = vpop.xlane.xlu1 %16053 }
0x42b3   :  { %v16070_v56 = vadd.f32 %v26934_v41, %v16054_v6  ;;  %v17787_v49 = vsel %vm739_vm10, %v17771_v54, %v17786_v39  ;;  %v19426_v6 = vrot.slane %v19389_v36, %v27048_v18 }
0x42b4   :  { %v17788_v47 = vsel %vm741_vm11, %v17775_v1, %v17787_v49 }
0x42b5   :  { %v16104_v42 = vrot.slane %v16070_v56, %v27048_v18 }
0x42b6   :  { %v19376_v14 = vpop.xlane.xlu1 %19375 }
0x42b7   :  { %v19388_v52 = vadd.f32 %v19376_v14, %v26934_v41  ;;  %v16117_v19 = vsel %vm741_vm11, %v16104_v42, %v16116_v53 }
0x42b8   :  { %v16118_v34 = vsel %vm743_vm12, %v16108_v2, %v16117_v19 }
0x42b9   :  { %v19422_v10 = vrot.slane %v19388_v52, %v27048_v18 }
0x42ba   :  { %v17732_v50 = vpop.xlane.xlu1 %17731 }
0x42bb   :  { %v17742_v46 = vadd.f32 %v17732_v50, %v26934_v41  ;;  %v19435_v26 = vsel %vm741_vm11, %v19422_v10, %v19434_v15 }
0x42bc   :  { %v19436_v60 = vsel %vm743_vm12, %v19426_v6, %v19435_v26 }
0x42bd   :  { %v17779_v25 = vrot.slane %v17742_v46, %v27048_v18 }
0x42be   :  { %v16060_v13 = vpop.xlane.xlu1 %16059 }
0x42bf   :  { %v17789_v59 = vsel %vm743_vm12, %v17779_v25, %v17788_v47  ;;  %v16072_v17 = vadd.f32 %v26934_v41, %v16060_v13 }
0x42c0   :  { %v17790_v33 = vsel %vm745_vm13, %v17783_v16, %v17789_v59 }
0x42c1   :  { %17792 = vst.msk [vmem:[%s27029_s7 + $0x30] sm:$0xff] %vm142_vm3, %v17790_v33  ;;  %v16112_v37 = vrot.slane %v16072_v17, %v27048_v18 }
0x42c2   :  { %v19382_v62 = vpop.xlane.xlu1 %19381 }
0x42c3   :  { %v16119_v31 = vsel %vm745_vm13, %v16112_v37, %v16118_v34  ;;  %v19390_v0 = vadd.f32 %v19382_v62, %v26934_v41  ;;  %v23517_v41 = vld [vmem:[#allocation2 + $0x370] ss:$0 sm:$0xff] }
0x42c4   :  { %16121 = vst.msk [vmem:[%s27029_s7 + $0x28] sm:$0xff] %vm142_vm3, %v16119_v31 }
0x42c5   :  { %v19430_v27 = vrot.slane %v19390_v0, %v27048_v18 }
0x42c7   :  { %v19437_v58 = vsel %vm745_vm13, %v19430_v27, %v19436_v60 }
0x42c8   :  { %19439 = vst.msk [vmem:[%s27029_s7 + $0x38] sm:$0xff] %vm142_vm3, %v19437_v58 }
0x437d   :  { %v19856_v38 = vpop.f32.mrb[38].mxu0 }
0x437e   :  { %v19857_v29 = vadd.f32 %v23517_v41, %v19856_v38  ;;  %v22661_v45 = vpop.f32.mrb[39].mxu0 }
0x4380   :  { %19860 = vst.msk [vmem:[%s27029_s7 + $0x20] sm:$0xff] %vm216_vm6, %v19857_v29 }
0x4381   :  { %19865 = vsyncpa [#allocation3], 1 }

</bundles_post_ra>
